<compile_context>
chip_gen: v7x
topology: tpu7x:2x2x1
jax: 0.10.0
libtpu: 0.0.40
codegen_flags: <defaults>
</compile_context>

<pallas_src>
import math
import functools

import numpy as np
import jax
import jax.numpy as jnp
from jax import lax
from jax.experimental import pallas as pl
from jax.experimental.pallas import tpu as pltpu


def _round_up(x, m):
    return ((x + m - 1) // m) * m


# ----------------------------------------------------------------------------
# Pallas kernel: one chunk of `tchunk` time steps of the 2-layer HM-LSTM per
# grid step; grid = (batch_shards, n_chunks).
# ----------------------------------------------------------------------------
def _hm_lstm_kernel(H1, H2, D, tchunk, T,
                    # inputs
                    x_ref,                                   # (Bs, tchunk, D)
                    wg1_ref, wz1_ref, bg1_ref,               # cell-1 fused weights
                    wg2_ref, wz2_ref, bg2_ref,               # cell-2 fused weights
                    zb_ref,                                  # (1, 2) z biases (SMEM)
                    # outputs
                    h1_out, h2_out, z1_out, z2_out,          # (Bs, tchunk, *)
                    c1_out, c2_out,                          # (1, Bs, H) final c
                    # scratch (persistent across chunks)
                    rhs1_s, rhs2_s, h1_s, c1_s, h2_s, c2_s, z1_s, z2_s):
    chunk = pl.program_id(1)
    last_valid_chunk = (T - 1) // tchunk
    t_last = (T - 1) % tchunk

    @pl.when(chunk == 0)
    def _():
        # fresh sequence for this batch shard: zero all recurrent state and the
        # (padded) rhs staging buffers.
        rhs1_s[...] = jnp.zeros_like(rhs1_s)
        rhs2_s[...] = jnp.zeros_like(rhs2_s)
        h1_s[...] = jnp.zeros_like(h1_s)
        c1_s[...] = jnp.zeros_like(c1_s)
        h2_s[...] = jnp.zeros_like(h2_s)
        c2_s[...] = jnp.zeros_like(c2_s)
        z1_s[...] = jnp.zeros_like(z1_s)
        z2_s[...] = jnp.zeros_like(z2_s)

    # hoisted loads (constant across the chunk)
    wg1 = wg1_ref[...]                     # (Kp1, 4*H1)
    wz1 = wz1_ref[...]                     # (1, Kp1)  (slope `a` folded in)
    bg1 = bg1_ref[...]                     # (1, 4*H1)
    wg2 = wg2_ref[...]                     # (Kp2, 4*H2)
    wz2 = wz2_ref[...]                     # (1, Kp2)
    bg2 = bg2_ref[...]                     # (1, 4*H2)
    bz1 = zb_ref[0, 0]                     # scalar (SMEM): a * bias_z of cell 1
    bz2 = zb_ref[0, 1]

    h1 = h1_s[...]; c1 = c1_s[...]; z1 = z1_s[...]
    h2 = h2_s[...]; c2 = c2_s[...]; z2 = z2_s[...]

    def mxu(lhs, w):
        # MXU dot; bf16 operands with f32 accumulation by default, or exact f32.
        if w.dtype == jnp.float32:
            return jnp.dot(lhs, w, preferred_element_type=jnp.float32,
                           precision=lax.Precision.HIGHEST)
        return jnp.dot(lhs.astype(w.dtype), w, preferred_element_type=jnp.float32)

    # TODO(synk): at large H*B convert this static unroll to
    # lax.fori_loop(..., unroll=True) with pl.ds output stores to bound vreg
    # live ranges, and optionally drive the MXU explicitly
    # (matmul_push_rhs/acc_lhs/pop) since the weights are step-invariant.
    for t in range(tchunk):
        # --------------------- cell 1 (z_bottom == 1) ---------------------
        # fused pre-activation: [h1 ; z1*h2 ; x_t] @ [U11 | U21 | W01]^T
        rhs1_s[:, 0:H1] = h1
        rhs1_s[:, H1:H1 + H2] = z1 * h2
        rhs1_s[:, H1 + H2:H1 + H2 + D] = x_ref[:, t, :]
        rhs1 = rhs1_s[...]                                   # (Bs, Kp1)
        gs1 = mxu(rhs1, wg1) + bg1                           # (Bs, 4*H1)
        sig1 = jax.nn.sigmoid(gs1[:, 0:3 * H1])              # fused f|i|o
        f = sig1[:, 0:H1]
        i = sig1[:, H1:2 * H1]
        o = sig1[:, 2 * H1:3 * H1]
        g = jnp.tanh(gs1[:, 3 * H1:4 * H1])
        # with z_bottom == 1 the HM-LSTM blend collapses exactly to:
        c1 = i * g + (1.0 - z1) * (f * c1)
        h1 = o * jnp.tanh(c1)
        # z pre-activation on the VPU/XLU (slope a and bias already folded in);
        # bound(hard_sigm(a, x)) > 0.5  <=>  a*x > 0.
        zpre1 = jnp.sum(rhs1 * wz1, axis=-1, keepdims=True) + bz1
        z1 = (zpre1 > 0.0).astype(jnp.float32)

        # --------------------- cell 2 (last layer) ------------------------
        rhs2_s[:, 0:H2] = z1 * h2
        rhs2_s[:, H2:H2 + H1] = h1
        rhs2 = rhs2_s[...]                                   # (Bs, Kp2)
        gs2 = mxu(rhs2, wg2) + bg2                           # (Bs, 4*H2)
        sig2 = jax.nn.sigmoid(gs2[:, 0:3 * H2])
        f2 = sig2[:, 0:H2]
        i2 = sig2[:, H2:2 * H2]
        o2 = sig2[:, 2 * H2:3 * H2]
        g2 = jnp.tanh(gs2[:, 3 * H2:4 * H2])
        zb = z2 > 0.5                   # previous z of this layer (exactly 0/1)
        zbb = z1 > 0.5                  # new z of the layer below (exactly 0/1)
        ig2 = i2 * g2
        c2 = jnp.where(zb, ig2, jnp.where(zbb, f2 * c2 + ig2, c2))
        h2 = jnp.where(jnp.logical_or(zb, zbb), o2 * jnp.tanh(c2), h2)
        zpre2 = jnp.sum(rhs2 * wz2, axis=-1, keepdims=True) + bz2
        z2 = (zpre2 > 0.0).astype(jnp.float32)

        # per-step outputs, lane-dense (hidden dim on lanes), final layout
        h1_out[:, t, :] = h1
        h2_out[:, t, :] = h2
        z1_out[:, t, :] = z1
        z2_out[:, t, :] = z2

        # final cell state written at the exact last *valid* step (the time
        # axis may be zero-padded beyond T).
        if t == t_last:
            @pl.when(chunk == last_valid_chunk)
            def _():
                c1_out[0] = c1
                c2_out[0] = c2

    # carry recurrent state to the next chunk
    h1_s[...] = h1; c1_s[...] = c1; z1_s[...] = z1
    h2_s[...] = h2; c2_s[...] = c2; z2_s[...] = z2


# ----------------------------------------------------------------------------
# Wrapper
# ----------------------------------------------------------------------------
def hm_lstm_forward(inputs, params, a, *, max_chunk=32,
                    mxu_dtype=jnp.bfloat16, batch_shards=1):
    """inputs: (batch, time, input_size) float.  Returns (h_1, h_2, z_1, z_2, hidden)
    with the same shapes/semantics as the PyTorch HM_LSTM.forward (hidden=None).
    batch_shards=2 splits the batch across the two TensorCores of a v7x chip.
    """
    # TODO(synk): resuming from a user-provided non-zero `hidden` is not wired
    # up (forward always starts from zeros, i.e. the hidden=None path).
    (w01_1, u11_1, u21_1, b1, w01_2, u11_2, b2) = params
    B, T, D = inputs.shape
    H1 = u11_1.shape[1]
    H2 = u11_2.shape[1]
    if B % batch_shards != 0:
        raise ValueError(f"batch ({B}) must be divisible by batch_shards ({batch_shards})")
    Bs = B // batch_shards

    f32 = jnp.float32
    a = jnp.asarray(a, f32)

    # ---- time chunking (tchunk == T for short sequences, else a multiple of 8;
    #      pad T up so the grid is exact; padded steps are sliced off below) ----
    if T <= max_chunk:
        tchunk = T
    else:
        tchunk = max(8, (max_chunk // 8) * 8)
    T_pad = _round_up(T, tchunk)
    nchunks = T_pad // tchunk

    x = inputs.astype(f32)
    if T_pad > T:
        x = jnp.pad(x, ((0, 0), (0, T_pad - T), (0, 0)))

    # ---- fused, transposed, lane-major weights ----
    K1 = H1 + H2 + D            # rhs1 = [h1 ; z1*h2 ; x_t]
    K2 = H2 + H1                # rhs2 = [z1*h2 ; h1]
    Kp1 = _round_up(K1, 128)
    Kp2 = _round_up(K2, 128)

    w01_1 = w01_1.astype(f32); u11_1 = u11_1.astype(f32); u21_1 = u21_1.astype(f32)
    b1 = b1.astype(f32)
    w01_2 = w01_2.astype(f32); u11_2 = u11_2.astype(f32); b2 = b2.astype(f32)

    def pad_rows(m, rows):
        return jnp.pad(m, ((0, rows - m.shape[0]), (0, 0)))

    # gate rows 0:4H, z row 4H (computed separately on VPU/XLU)
    Wg1 = jnp.concatenate(
        [u11_1[:4 * H1].T, u21_1[:4 * H1].T, w01_1[:4 * H1].T], axis=0)
    Wg1 = pad_rows(Wg1, Kp1).astype(mxu_dtype)                    # (Kp1, 4*H1)
    wz1 = jnp.concatenate([u11_1[4 * H1], u21_1[4 * H1], w01_1[4 * H1]], axis=0)
    wz1 = (a * jnp.pad(wz1, (0, Kp1 - K1))).reshape(1, Kp1)       # slope folded in
    bg1 = b1[:4 * H1].reshape(1, 4 * H1)
    bz1 = a * b1[4 * H1]

    Wg2 = jnp.concatenate([u11_2[:4 * H2].T, w01_2[:4 * H2].T], axis=0)
    Wg2 = pad_rows(Wg2, Kp2).astype(mxu_dtype)                    # (Kp2, 4*H2)
    wz2 = jnp.concatenate([u11_2[4 * H2], w01_2[4 * H2]], axis=0)
    wz2 = (a * jnp.pad(wz2, (0, Kp2 - K2))).reshape(1, Kp2)
    bg2 = b2[:4 * H2].reshape(1, 4 * H2)
    bz2 = a * b2[4 * H2]
    zb = jnp.stack([bz1, bz2]).reshape(1, 2)

    kernel = functools.partial(_hm_lstm_kernel, H1, H2, D, tchunk, T)

    out_shape = (
        jax.ShapeDtypeStruct((B, T_pad, H1), f32),        # h1 per step (final layout)
        jax.ShapeDtypeStruct((B, T_pad, H2), f32),        # h2 per step
        jax.ShapeDtypeStruct((B, T_pad, 1), f32),         # z1 per step
        jax.ShapeDtypeStruct((B, T_pad, 1), f32),         # z2 per step
        jax.ShapeDtypeStruct((batch_shards, Bs, H1), f32),  # final c1 (per shard)
        jax.ShapeDtypeStruct((batch_shards, Bs, H2), f32),  # final c2 (per shard)
    )

    smem_spec = pl.BlockSpec(memory_space=pltpu.MemorySpace.SMEM)
    grid_spec = pltpu.PrefetchScalarGridSpec(
        num_scalar_prefetch=0,
        grid=(batch_shards, nchunks),
        in_specs=[
            pl.BlockSpec((Bs, tchunk, D), lambda s, c: (s, c, 0)),   # raw inputs
            pl.BlockSpec((Kp1, 4 * H1), lambda s, c: (0, 0)),        # Wg1
            pl.BlockSpec((1, Kp1), lambda s, c: (0, 0)),             # wz1
            pl.BlockSpec((1, 4 * H1), lambda s, c: (0, 0)),          # bg1
            pl.BlockSpec((Kp2, 4 * H2), lambda s, c: (0, 0)),        # Wg2
            pl.BlockSpec((1, Kp2), lambda s, c: (0, 0)),             # wz2
            pl.BlockSpec((1, 4 * H2), lambda s, c: (0, 0)),          # bg2
            smem_spec,                                               # z biases
        ],
        out_specs=[
            pl.BlockSpec((Bs, tchunk, H1), lambda s, c: (s, c, 0)),
            pl.BlockSpec((Bs, tchunk, H2), lambda s, c: (s, c, 0)),
            pl.BlockSpec((Bs, tchunk, 1), lambda s, c: (s, c, 0)),
            pl.BlockSpec((Bs, tchunk, 1), lambda s, c: (s, c, 0)),
            pl.BlockSpec((1, Bs, H1), lambda s, c: (s, 0, 0)),
            pl.BlockSpec((1, Bs, H2), lambda s, c: (s, 0, 0)),
        ],
        scratch_shapes=[
            pltpu.VMEM((Bs, Kp1), f32),   # rhs staging, cell 1
            pltpu.VMEM((Bs, Kp2), f32),   # rhs staging, cell 2
            pltpu.VMEM((Bs, H1), f32),    # h1 state
            pltpu.VMEM((Bs, H1), f32),    # c1 state
            pltpu.VMEM((Bs, H2), f32),    # h2 state
            pltpu.VMEM((Bs, H2), f32),    # c2 state
            pltpu.VMEM((Bs, 1), f32),     # z1 state
            pltpu.VMEM((Bs, 1), f32),     # z2 state
        ],
    )

    # explicit VMEM budget (double-buffered input/output blocks + resident
    # weights + scratch), with margin; keeps v7x's 64 MiB physical VMEM in mind.
    def _bytes(shape, dtype):
        n = 1
        for d in shape:
            n *= int(d)
        return n * jnp.dtype(dtype).itemsize

    vmem_need = (
        2 * _bytes((Bs, tchunk, D), f32)
        + 2 * (_bytes((Bs, tchunk, H1), f32) + _bytes((Bs, tchunk, H2), f32)
               + 2 * _bytes((Bs, tchunk, 1), f32))
        + _bytes((Kp1, 4 * H1), mxu_dtype) + _bytes((Kp2, 4 * H2), mxu_dtype)
        + _bytes((1, Kp1), f32) + _bytes((1, Kp2), f32)
        + _bytes((1, 4 * H1), f32) + _bytes((1, 4 * H2), f32)
        + 2 * (_bytes((1, Bs, H1), f32) + _bytes((1, Bs, H2), f32))
        + _bytes((Bs, Kp1), f32) + _bytes((Bs, Kp2), f32)
        + 2 * (_bytes((Bs, H1), f32) + _bytes((Bs, H2), f32))
        + 2 * _bytes((Bs, 1), f32)
    )
    vmem_limit = int(min(max(4 * vmem_need, 8 << 20), 64 << 20))

    h1_seq, h2_seq, z1_seq, z2_seq, c1_f, c2_f = pl.pallas_call(
        kernel,
        out_shape=out_shape,
        grid_spec=grid_spec,
        compiler_params=pltpu.CompilerParams(
            dimension_semantics=("parallel", "arbitrary"),
            vmem_limit_bytes=vmem_limit),
    )(x, Wg1, wz1, bg1, Wg2, wz2, bg2, zb)

    # drop time padding (no-op when T_pad == T); outputs are already (B, T, H).
    h_1 = h1_seq[:, :T, :]
    h_2 = h2_seq[:, :T, :]
    z_1 = z1_seq[:, :T, :]
    z_2 = z2_seq[:, :T, :]

    # PyTorch-facing hidden tuple: (H, B) / (1, B) layout (tiny transposes only).
    c_t1 = c1_f.reshape(B, H1).T
    c_t2 = c2_f.reshape(B, H2).T
    hidden = (h_1[:, -1, :].T, c_t1, z_1[:, -1, :].T,
              h_2[:, -1, :].T, c_t2, z_2[:, -1, :].T)
    return h_1, h_2, z_1, z_2, hidden


# ----------------------------------------------------------------------------
# Deterministic parameter init (mirrors HM_LSTMCell.reset_parameters)
# ----------------------------------------------------------------------------
def init_params(key, input_size, size_list):
    H1, H2 = size_list
    k = jax.random.split(key, 7)
    std1 = 1.0 / math.sqrt(H1)
    std2 = 1.0 / math.sqrt(H2)
    u = lambda kk, shape, s: jax.random.uniform(kk, shape, jnp.float32, -s, s)
    w01_1 = u(k[0], (4 * H1 + 1, input_size), std1)
    u11_1 = u(k[1], (4 * H1 + 1, H1), std1)
    u21_1 = u(k[2], (4 * H1 + 1, H2), std1)
    b1 = u(k[3], (4 * H1 + 1,), std1)
    w01_2 = u(k[4], (4 * H2 + 1, H1), std2)
    u11_2 = u(k[5], (4 * H2 + 1, H2), std2)
    b2 = u(k[6], (4 * H2 + 1,), std2)
    return (w01_1, u11_1, u21_1, b1, w01_2, u11_2, b2)


# ----------------------------------------------------------------------------
# Pure-JAX reference (direct transcription of the PyTorch forward) for checking
# ----------------------------------------------------------------------------
def _cell_ref(a, H, w01, u11, u21, bias, c, h_bottom, h, h_top, z, z_bottom):
    hp = jax.lax.Precision.HIGHEST
    s_recur = jnp.dot(w01, h_bottom, precision=hp)
    s_topdown = z * jnp.dot(u21, h_top, precision=hp) if u21 is not None else jnp.zeros_like(s_recur)
    s_bottomup = z_bottom * jnp.dot(u11, h, precision=hp)
    f_s = s_recur + s_topdown + s_bottomup + bias[:, None]
    f = jax.nn.sigmoid(f_s[0:H])
    i = jax.nn.sigmoid(f_s[H:2 * H])
    o = jax.nn.sigmoid(f_s[2 * H:3 * H])
    g = jnp.tanh(f_s[3 * H:4 * H])
    z_hat = jnp.clip((a * f_s[4 * H:4 * H + 1] + 1.0) * 0.5, 0.0, 1.0)
    c_new = z * (i * g) + (1 - z) * (1 - z_bottom) * c + (1 - z) * z_bottom * (f * c + i * g)
    tc = jnp.tanh(c_new)
    h_new = z * o * tc + (1 - z) * (1 - z_bottom) * h + (1 - z) * z_bottom * o * tc
    z_new = (z_hat > 0.5).astype(jnp.float32)
    return h_new, c_new, z_new


def hm_lstm_reference(inputs, params, a):
    (w01_1, u11_1, u21_1, b1, w01_2, u11_2, b2) = params
    B, T, D = inputs.shape
    H1, H2 = u11_1.shape[1], u11_2.shape[1]
    h_t1 = jnp.zeros((H1, B)); c_t1 = jnp.zeros((H1, B)); z_t1 = jnp.zeros((1, B))
    h_t2 = jnp.zeros((H2, B)); c_t2 = jnp.zeros((H2, B)); z_t2 = jnp.zeros((1, B))
    z_one = jnp.ones((1, B))
    h1s, h2s, z1s, z2s = [], [], [], []
    for t in range(T):
        h_t1, c_t1, z_t1 = _cell_ref(a, H1, w01_1, u11_1, u21_1, b1,
                                     c_t1, inputs[:, t, :].T, h_t1, h_t2, z_t1, z_one)
        h_t2, c_t2, z_t2 = _cell_ref(a, H2, w01_2, u11_2, None, b2,
                                     c_t2, h_t1, h_t2, None, z_t2, z_t1)
        h1s.append(h_t1.T); h2s.append(h_t2.T); z1s.append(z_t1.T); z2s.append(z_t2.T)
    hidden = (h_t1, c_t1, z_t1, h_t2, c_t2, z_t2)
    return (jnp.stack(h1s, 1), jnp.stack(h2s, 1),
            jnp.stack(z1s, 1), jnp.stack(z2s, 1), hidden)


if __name__ == "__main__":
    key = jax.random.PRNGKey(0)
    kp, kx = jax.random.split(key)

    batch, time_steps, input_size = 2, 8, 4
    size_list = (32, 32)
    a = 1.0

    params = init_params(kp, input_size, size_list)
    inputs = jax.random.normal(kx, (batch, time_steps, input_size), jnp.float32)

    ref = hm_lstm_reference(inputs, params, a)

    # exact-math path (f32 MXU, HIGHEST precision): strict check vs reference
    outs = hm_lstm_forward(inputs, params, a, mxu_dtype=jnp.float32)
    jax.block_until_ready(outs)
    for o, r in zip(jax.tree_util.tree_leaves(outs), jax.tree_util.tree_leaves(ref)):
        np.testing.assert_allclose(np.asarray(o), np.asarray(r), atol=1e-4, rtol=1e-4)

    # megacore batch-shard path (v7x: 2 TensorCores), still exact math for the check
    outs2 = hm_lstm_forward(inputs, params, a, mxu_dtype=jnp.float32, batch_shards=2)
    jax.block_until_ready(outs2)
    for o, r in zip(jax.tree_util.tree_leaves(outs2), jax.tree_util.tree_leaves(ref)):
        np.testing.assert_allclose(np.asarray(o), np.asarray(r), atol=1e-4, rtol=1e-4)

    # default production path (bf16 MXU operands, f32 accumulate): smoke run
    outs_bf16 = hm_lstm_forward(inputs, params, a)
    jax.block_until_ready(outs_bf16)
    for o in jax.tree_util.tree_leaves(outs_bf16):
        assert np.all(np.isfinite(np.asarray(o)))

    print("KERNEL_OK")
</pallas_src>

<mosaic_0001>
module attributes {stable_mosaic.version = 11 : i64} {
  func.func @_hm_lstm_kernel(%arg0: i32, %arg1: i32, %arg2: memref<2x8x4xf32, #tpu.memory_space<vmem>>, %arg3: memref<128x128xf32, #tpu.memory_space<vmem>>, %arg4: memref<1x128xf32, #tpu.memory_space<vmem>>, %arg5: memref<1x128xf32, #tpu.memory_space<vmem>>, %arg6: memref<128x128xf32, #tpu.memory_space<vmem>>, %arg7: memref<1x128xf32, #tpu.memory_space<vmem>>, %arg8: memref<1x128xf32, #tpu.memory_space<vmem>>, %arg9: memref<1x2xf32, #tpu.memory_space<smem>>, %arg10: memref<2x8x32xf32, #tpu.memory_space<vmem>>, %arg11: memref<2x8x32xf32, #tpu.memory_space<vmem>>, %arg12: memref<2x8x1xf32, #tpu.memory_space<vmem>>, %arg13: memref<2x8x1xf32, #tpu.memory_space<vmem>>, %arg14: memref<1x2x32xf32, #tpu.memory_space<vmem>>, %arg15: memref<1x2x32xf32, #tpu.memory_space<vmem>>, %arg16: memref<2x128xf32, #tpu.memory_space<vmem>>, %arg17: memref<2x128xf32, #tpu.memory_space<vmem>>, %arg18: memref<2x32xf32, #tpu.memory_space<vmem>>, %arg19: memref<2x32xf32, #tpu.memory_space<vmem>>, %arg20: memref<2x32xf32, #tpu.memory_space<vmem>>, %arg21: memref<2x32xf32, #tpu.memory_space<vmem>>, %arg22: memref<2x1xf32, #tpu.memory_space<vmem>>, %arg23: memref<2x1xf32, #tpu.memory_space<vmem>>) attributes {dimension_semantics = [#tpu.dimension_semantics<parallel>, #tpu.dimension_semantics<arbitrary>], iteration_bounds = array<i64: 1, 1>, scalar_prefetch = 0 : i64, scratch_operands = 8 : i64, tpu.core_type = #tpu.core_type<tc>, window_params = [{transform_indices = @transform_0, window_bounds = array<i64: 2, 8, 4>}, {pipeline_mode = #tpu.pipeline_mode<synchronous>, transform_indices = @transform_1, window_bounds = array<i64: 128, 128>}, {pipeline_mode = #tpu.pipeline_mode<synchronous>, transform_indices = @transform_2, window_bounds = array<i64: 1, 128>}, {pipeline_mode = #tpu.pipeline_mode<synchronous>, transform_indices = @transform_3, window_bounds = array<i64: 1, 128>}, {pipeline_mode = #tpu.pipeline_mode<synchronous>, transform_indices = @transform_4, window_bounds = array<i64: 128, 128>}, {pipeline_mode = #tpu.pipeline_mode<synchronous>, transform_indices = @transform_5, window_bounds = array<i64: 1, 128>}, {pipeline_mode = #tpu.pipeline_mode<synchronous>, transform_indices = @transform_6, window_bounds = array<i64: 1, 128>}, {transform_indices = @transform_7, window_bounds = array<i64: 1, 2>}, {transform_indices = @transform_8, window_bounds = array<i64: 2, 8, 32>}, {transform_indices = @transform_9, window_bounds = array<i64: 2, 8, 32>}, {transform_indices = @transform_10, window_bounds = array<i64: 2, 8, 1>}, {transform_indices = @transform_11, window_bounds = array<i64: 2, 8, 1>}, {transform_indices = @transform_12, window_bounds = array<i64: 1, 2, 32>}, {transform_indices = @transform_13, window_bounds = array<i64: 1, 2, 32>}]} {
    %c0_i32 = arith.constant 0 : i32
    %0 = arith.cmpi eq, %arg1, %c0_i32 : i32
    %1 = arith.extui %0 : i1 to i32
    %c0_i32_0 = arith.constant 0 : i32
    %2 = arith.cmpi ne, %1, %c0_i32_0 : i32
    scf.if %2 {
      %cst_352 = arith.constant 0.000000e+00 : f32
      %834 = vector.broadcast %cst_352 : f32 to vector<2x128xf32>
      %c0_353 = arith.constant 0 : index
      %c0_354 = arith.constant 0 : index
      %835 = vector.load %arg16[%c0_353, %c0_354] : memref<2x128xf32, #tpu.memory_space<vmem>>, vector<2x128xf32>
      tpu.vector_store %arg16[%c0_353, %c0_354], %834 {strides = array<i32>} : memref<2x128xf32, #tpu.memory_space<vmem>>, vector<2x128xf32>,
      %cst_355 = arith.constant 0.000000e+00 : f32
      %836 = vector.broadcast %cst_355 : f32 to vector<2x128xf32>
      %c0_356 = arith.constant 0 : index
      %c0_357 = arith.constant 0 : index
      %837 = vector.load %arg17[%c0_356, %c0_357] : memref<2x128xf32, #tpu.memory_space<vmem>>, vector<2x128xf32>
      tpu.vector_store %arg17[%c0_356, %c0_357], %836 {strides = array<i32>} : memref<2x128xf32, #tpu.memory_space<vmem>>, vector<2x128xf32>,
      %cst_358 = arith.constant 0.000000e+00 : f32
      %838 = vector.broadcast %cst_358 : f32 to vector<2x32xf32>
      %c0_359 = arith.constant 0 : index
      %c0_360 = arith.constant 0 : index
      %839 = vector.load %arg18[%c0_359, %c0_360] : memref<2x32xf32, #tpu.memory_space<vmem>>, vector<2x32xf32>
      tpu.vector_store %arg18[%c0_359, %c0_360], %838 {strides = array<i32>} : memref<2x32xf32, #tpu.memory_space<vmem>>, vector<2x32xf32>,
      %cst_361 = arith.constant 0.000000e+00 : f32
      %840 = vector.broadcast %cst_361 : f32 to vector<2x32xf32>
      %c0_362 = arith.constant 0 : index
      %c0_363 = arith.constant 0 : index
      %841 = vector.load %arg19[%c0_362, %c0_363] : memref<2x32xf32, #tpu.memory_space<vmem>>, vector<2x32xf32>
      tpu.vector_store %arg19[%c0_362, %c0_363], %840 {strides = array<i32>} : memref<2x32xf32, #tpu.memory_space<vmem>>, vector<2x32xf32>,
      %cst_364 = arith.constant 0.000000e+00 : f32
      %842 = vector.broadcast %cst_364 : f32 to vector<2x32xf32>
      %c0_365 = arith.constant 0 : index
      %c0_366 = arith.constant 0 : index
      %843 = vector.load %arg20[%c0_365, %c0_366] : memref<2x32xf32, #tpu.memory_space<vmem>>, vector<2x32xf32>
      tpu.vector_store %arg20[%c0_365, %c0_366], %842 {strides = array<i32>} : memref<2x32xf32, #tpu.memory_space<vmem>>, vector<2x32xf32>,
      %cst_367 = arith.constant 0.000000e+00 : f32
      %844 = vector.broadcast %cst_367 : f32 to vector<2x32xf32>
      %c0_368 = arith.constant 0 : index
      %c0_369 = arith.constant 0 : index
      %845 = vector.load %arg21[%c0_368, %c0_369] : memref<2x32xf32, #tpu.memory_space<vmem>>, vector<2x32xf32>
      tpu.vector_store %arg21[%c0_368, %c0_369], %844 {strides = array<i32>} : memref<2x32xf32, #tpu.memory_space<vmem>>, vector<2x32xf32>,
      %cst_370 = arith.constant 0.000000e+00 : f32
      %846 = vector.broadcast %cst_370 : f32 to vector<2x1xf32>
      %c0_371 = arith.constant 0 : index
      %c0_372 = arith.constant 0 : index
      %847 = vector.load %arg22[%c0_371, %c0_372] : memref<2x1xf32, #tpu.memory_space<vmem>>, vector<2x1xf32>
      tpu.vector_store %arg22[%c0_371, %c0_372], %846 {strides = array<i32>} : memref<2x1xf32, #tpu.memory_space<vmem>>, vector<2x1xf32>,
      %cst_373 = arith.constant 0.000000e+00 : f32
      %848 = vector.broadcast %cst_373 : f32 to vector<2x1xf32>
      %c0_374 = arith.constant 0 : index
      %c0_375 = arith.constant 0 : index
      %849 = vector.load %arg23[%c0_374, %c0_375] : memref<2x1xf32, #tpu.memory_space<vmem>>, vector<2x1xf32>
      tpu.vector_store %arg23[%c0_374, %c0_375], %848 {strides = array<i32>} : memref<2x1xf32, #tpu.memory_space<vmem>>, vector<2x1xf32>,
    } else {
    }
    %c0 = arith.constant 0 : index
    %c0_1 = arith.constant 0 : index
    %3 = vector.load %arg3[%c0, %c0_1] : memref<128x128xf32, #tpu.memory_space<vmem>>, vector<128x128xf32>
    %c0_2 = arith.constant 0 : index
    %c0_3 = arith.constant 0 : index
    %4 = vector.load %arg4[%c0_2, %c0_3] : memref<1x128xf32, #tpu.memory_space<vmem>>, vector<1x128xf32>
    %c0_4 = arith.constant 0 : index
    %c0_5 = arith.constant 0 : index
    %5 = vector.load %arg5[%c0_4, %c0_5] : memref<1x128xf32, #tpu.memory_space<vmem>>, vector<1x128xf32>
    %c0_6 = arith.constant 0 : index
    %c0_7 = arith.constant 0 : index
    %6 = vector.load %arg6[%c0_6, %c0_7] : memref<128x128xf32, #tpu.memory_space<vmem>>, vector<128x128xf32>
    %c0_8 = arith.constant 0 : index
    %c0_9 = arith.constant 0 : index
    %7 = vector.load %arg7[%c0_8, %c0_9] : memref<1x128xf32, #tpu.memory_space<vmem>>, vector<1x128xf32>
    %c0_10 = arith.constant 0 : index
    %c0_11 = arith.constant 0 : index
    %8 = vector.load %arg8[%c0_10, %c0_11] : memref<1x128xf32, #tpu.memory_space<vmem>>, vector<1x128xf32>
    %c0_12 = arith.constant 0 : index
    %c0_13 = arith.constant 0 : index
    %9 = memref.load %arg9[%c0_12, %c0_13] : memref<1x2xf32, #tpu.memory_space<smem>>
    %c0_14 = arith.constant 0 : index
    %c1 = arith.constant 1 : index
    %10 = memref.load %arg9[%c0_14, %c1] : memref<1x2xf32, #tpu.memory_space<smem>>
    %c0_15 = arith.constant 0 : index
    %c0_16 = arith.constant 0 : index
    %11 = vector.load %arg18[%c0_15, %c0_16] : memref<2x32xf32, #tpu.memory_space<vmem>>, vector<2x32xf32>
    %c0_17 = arith.constant 0 : index
    %c0_18 = arith.constant 0 : index
    %12 = vector.load %arg19[%c0_17, %c0_18] : memref<2x32xf32, #tpu.memory_space<vmem>>, vector<2x32xf32>
    %c0_19 = arith.constant 0 : index
    %c0_20 = arith.constant 0 : index
    %13 = vector.load %arg22[%c0_19, %c0_20] : memref<2x1xf32, #tpu.memory_space<vmem>>, vector<2x1xf32>
    %c0_21 = arith.constant 0 : index
    %c0_22 = arith.constant 0 : index
    %14 = vector.load %arg20[%c0_21, %c0_22] : memref<2x32xf32, #tpu.memory_space<vmem>>, vector<2x32xf32>
    %c0_23 = arith.constant 0 : index
    %c0_24 = arith.constant 0 : index
    %15 = vector.load %arg21[%c0_23, %c0_24] : memref<2x32xf32, #tpu.memory_space<vmem>>, vector<2x32xf32>
    %c0_25 = arith.constant 0 : index
    %c0_26 = arith.constant 0 : index
    %16 = vector.load %arg23[%c0_25, %c0_26] : memref<2x1xf32, #tpu.memory_space<vmem>>, vector<2x1xf32>
    %c0_27 = arith.constant 0 : index
    %c0_28 = arith.constant 0 : index
    %17 = vector.load %arg16[%c0_27, %c0_28] : memref<2x128xf32, #tpu.memory_space<vmem>>, vector<2x32xf32>
    tpu.vector_store %arg16[%c0_27, %c0_28], %11 {strides = array<i32>} : memref<2x128xf32, #tpu.memory_space<vmem>>, vector<2x32xf32>,
    %18 = vector.broadcast %13 : vector<2x1xf32> to vector<2x32xf32>
    %19 = arith.mulf %18, %14 : vector<2x32xf32>
    %c0_29 = arith.constant 0 : index
    %c32 = arith.constant 32 : index
    %20 = vector.load %arg16[%c0_29, %c32] : memref<2x128xf32, #tpu.memory_space<vmem>>, vector<2x32xf32>
    tpu.vector_store %arg16[%c0_29, %c32], %19 {strides = array<i32>} : memref<2x128xf32, #tpu.memory_space<vmem>>, vector<2x32xf32>,
    %c0_30 = arith.constant 0 : index
    %c0_31 = arith.constant 0 : index
    %c0_32 = arith.constant 0 : index
    %21 = vector.load %arg2[%c0_30, %c0_31, %c0_32] : memref<2x8x4xf32, #tpu.memory_space<vmem>>, vector<2x1x4xf32>
    %22 = vector.shape_cast %21 : vector<2x1x4xf32> to vector<2x4xf32>
    %c0_33 = arith.constant 0 : index
    %c64 = arith.constant 64 : index
    %23 = vector.load %arg16[%c0_33, %c64] : memref<2x128xf32, #tpu.memory_space<vmem>>, vector<2x4xf32>
    tpu.vector_store %arg16[%c0_33, %c64], %22 {strides = array<i32>} : memref<2x128xf32, #tpu.memory_space<vmem>>, vector<2x4xf32>,
    %c0_34 = arith.constant 0 : index
    %c0_35 = arith.constant 0 : index
    %24 = vector.load %arg16[%c0_34, %c0_35] : memref<2x128xf32, #tpu.memory_space<vmem>>, vector<2x128xf32>
    %cst = arith.constant dense<0.000000e+00> : vector<2x128xf32>
    %25 = tpu.matmul %24, %3, %cst {dimension_numbers = #tpu.dot_dimension_numbers<[1], [0], [0], [1], [0, 0, 1, 1], [], []>, precision = #tpu.contract_precision<fp32>} : vector<2x128xf32>, vector<128x128xf32>, vector<2x128xf32> -> vector<2x128xf32>
    %26 = vector.broadcast %5 : vector<1x128xf32> to vector<2x128xf32>
    %27 = arith.addf %25, %26 : vector<2x128xf32>
    %28 = vector.extract_strided_slice %27 {offsets = [0, 0], sizes = [2, 96], strides = [1, 1]} : vector<2x128xf32> to vector<2x96xf32>
    %29 = arith.negf %28 : vector<2x96xf32>
    %30 = math.exp %29 : vector<2x96xf32>
    %cst_36 = arith.constant 1.000000e+00 : f32
    %31 = vector.broadcast %cst_36 : f32 to vector<2x96xf32>
    %32 = arith.addf %31, %30 : vector<2x96xf32>
    %33 = arith.divf %31, %32 : vector<2x96xf32>
    %34 = vector.extract_strided_slice %33 {offsets = [0, 0], sizes = [2, 32], strides = [1, 1]} : vector<2x96xf32> to vector<2x32xf32>
    %35 = vector.extract_strided_slice %33 {offsets = [0, 32], sizes = [2, 32], strides = [1, 1]} : vector<2x96xf32> to vector<2x32xf32>
    %36 = vector.extract_strided_slice %33 {offsets = [0, 64], sizes = [2, 32], strides = [1, 1]} : vector<2x96xf32> to vector<2x32xf32>
    %37 = vector.extract_strided_slice %27 {offsets = [0, 96], sizes = [2, 32], strides = [1, 1]} : vector<2x128xf32> to vector<2x32xf32>
    %38 = math.tanh %37 : vector<2x32xf32>
    %39 = arith.mulf %35, %38 : vector<2x32xf32>
    %cst_37 = arith.constant 1.000000e+00 : f32
    %40 = vector.broadcast %cst_37 : f32 to vector<2x1xf32>
    %41 = arith.subf %40, %13 : vector<2x1xf32>
    %42 = arith.mulf %34, %12 : vector<2x32xf32>
    %43 = vector.broadcast %41 : vector<2x1xf32> to vector<2x32xf32>
    %44 = arith.mulf %43, %42 : vector<2x32xf32>
    %45 = arith.addf %39, %44 : vector<2x32xf32>
    %46 = math.tanh %45 : vector<2x32xf32>
    %47 = arith.mulf %36, %46 : vector<2x32xf32>
    %48 = vector.broadcast %4 : vector<1x128xf32> to vector<2x128xf32>
    %49 = arith.mulf %24, %48 : vector<2x128xf32>
    %cst_38 = arith.constant dense<0.000000e+00> : vector<2xf32>
    %50 = vector.multi_reduction <add>, %49, %cst_38 [1] : vector<2x128xf32> to vector<2xf32>
    %51 = vector.shape_cast %50 : vector<2xf32> to vector<2x1xf32>
    %52 = vector.broadcast %9 : f32 to vector<2x1xf32>
    %53 = arith.addf %51, %52 : vector<2x1xf32>
    %cst_39 = arith.constant 0.000000e+00 : f32
    %54 = vector.broadcast %cst_39 : f32 to vector<2x1xf32>
    %55 = arith.cmpf ogt, %53, %54 : vector<2x1xf32>
    %56 = arith.extui %55 : vector<2x1xi1> to vector<2x1xi32>
    %57 = arith.sitofp %56 : vector<2x1xi32> to vector<2x1xf32>
    %58 = vector.broadcast %57 : vector<2x1xf32> to vector<2x32xf32>
    %59 = arith.mulf %58, %14 : vector<2x32xf32>
    %c0_40 = arith.constant 0 : index
    %c0_41 = arith.constant 0 : index
    %60 = vector.load %arg17[%c0_40, %c0_41] : memref<2x128xf32, #tpu.memory_space<vmem>>, vector<2x32xf32>
    tpu.vector_store %arg17[%c0_40, %c0_41], %59 {strides = array<i32>} : memref<2x128xf32, #tpu.memory_space<vmem>>, vector<2x32xf32>,
    %c0_42 = arith.constant 0 : index
    %c32_43 = arith.constant 32 : index
    %61 = vector.load %arg17[%c0_42, %c32_43] : memref<2x128xf32, #tpu.memory_space<vmem>>, vector<2x32xf32>
    tpu.vector_store %arg17[%c0_42, %c32_43], %47 {strides = array<i32>} : memref<2x128xf32, #tpu.memory_space<vmem>>, vector<2x32xf32>,
    %c0_44 = arith.constant 0 : index
    %c0_45 = arith.constant 0 : index
    %62 = vector.load %arg17[%c0_44, %c0_45] : memref<2x128xf32, #tpu.memory_space<vmem>>, vector<2x128xf32>
    %cst_46 = arith.constant dense<0.000000e+00> : vector<2x128xf32>
    %63 = tpu.matmul %62, %6, %cst_46 {dimension_numbers = #tpu.dot_dimension_numbers<[1], [0], [0], [1], [0, 0, 1, 1], [], []>, precision = #tpu.contract_precision<fp32>} : vector<2x128xf32>, vector<128x128xf32>, vector<2x128xf32> -> vector<2x128xf32>
    %64 = vector.broadcast %8 : vector<1x128xf32> to vector<2x128xf32>
    %65 = arith.addf %63, %64 : vector<2x128xf32>
    %66 = vector.extract_strided_slice %65 {offsets = [0, 0], sizes = [2, 96], strides = [1, 1]} : vector<2x128xf32> to vector<2x96xf32>
    %67 = arith.negf %66 : vector<2x96xf32>
    %68 = math.exp %67 : vector<2x96xf32>
    %cst_47 = arith.constant 1.000000e+00 : f32
    %69 = vector.broadcast %cst_47 : f32 to vector<2x96xf32>
    %70 = arith.addf %69, %68 : vector<2x96xf32>
    %71 = arith.divf %69, %70 : vector<2x96xf32>
    %72 = vector.extract_strided_slice %71 {offsets = [0, 0], sizes = [2, 32], strides = [1, 1]} : vector<2x96xf32> to vector<2x32xf32>
    %73 = vector.extract_strided_slice %71 {offsets = [0, 32], sizes = [2, 32], strides = [1, 1]} : vector<2x96xf32> to vector<2x32xf32>
    %74 = vector.extract_strided_slice %71 {offsets = [0, 64], sizes = [2, 32], strides = [1, 1]} : vector<2x96xf32> to vector<2x32xf32>
    %75 = vector.extract_strided_slice %65 {offsets = [0, 96], sizes = [2, 32], strides = [1, 1]} : vector<2x128xf32> to vector<2x32xf32>
    %76 = math.tanh %75 : vector<2x32xf32>
    %cst_48 = arith.constant 5.000000e-01 : f32
    %77 = vector.broadcast %cst_48 : f32 to vector<2x1xf32>
    %78 = arith.cmpf ogt, %16, %77 : vector<2x1xf32>
    %cst_49 = arith.constant 5.000000e-01 : f32
    %79 = vector.broadcast %cst_49 : f32 to vector<2x1xf32>
    %80 = arith.cmpf ogt, %57, %79 : vector<2x1xf32>
    %81 = arith.mulf %73, %76 : vector<2x32xf32>
    %82 = arith.mulf %72, %15 : vector<2x32xf32>
    %83 = arith.addf %82, %81 : vector<2x32xf32>
    %84 = vector.shape_cast %80 : vector<2x1xi1> to vector<2x1xi1>
    %85 = vector.broadcast %84 : vector<2x1xi1> to vector<2x32xi1>
    %86 = arith.select %85, %83, %15 : vector<2x32xi1>, vector<2x32xf32>
    %87 = vector.shape_cast %78 : vector<2x1xi1> to vector<2x1xi1>
    %88 = vector.broadcast %87 : vector<2x1xi1> to vector<2x32xi1>
    %89 = arith.select %88, %81, %86 : vector<2x32xi1>, vector<2x32xf32>
    %90 = arith.ori %78, %80 : vector<2x1xi1>
    %91 = math.tanh %89 : vector<2x32xf32>
    %92 = arith.mulf %74, %91 : vector<2x32xf32>
    %93 = vector.shape_cast %90 : vector<2x1xi1> to vector<2x1xi1>
    %94 = vector.broadcast %93 : vector<2x1xi1> to vector<2x32xi1>
    %95 = arith.select %94, %92, %14 : vector<2x32xi1>, vector<2x32xf32>
    %96 = vector.broadcast %7 : vector<1x128xf32> to vector<2x128xf32>
    %97 = arith.mulf %62, %96 : vector<2x128xf32>
    %cst_50 = arith.constant dense<0.000000e+00> : vector<2xf32>
    %98 = vector.multi_reduction <add>, %97, %cst_50 [1] : vector<2x128xf32> to vector<2xf32>
    %99 = vector.shape_cast %98 : vector<2xf32> to vector<2x1xf32>
    %100 = vector.broadcast %10 : f32 to vector<2x1xf32>
    %101 = arith.addf %99, %100 : vector<2x1xf32>
    %cst_51 = arith.constant 0.000000e+00 : f32
    %102 = vector.broadcast %cst_51 : f32 to vector<2x1xf32>
    %103 = arith.cmpf ogt, %101, %102 : vector<2x1xf32>
    %104 = arith.extui %103 : vector<2x1xi1> to vector<2x1xi32>
    %105 = arith.sitofp %104 : vector<2x1xi32> to vector<2x1xf32>
    %c0_52 = arith.constant 0 : index
    %c0_53 = arith.constant 0 : index
    %c0_54 = arith.constant 0 : index
    %106 = vector.load %arg10[%c0_52, %c0_53, %c0_54] : memref<2x8x32xf32, #tpu.memory_space<vmem>>, vector<2x1x32xf32>
    %107 = vector.shape_cast %106 : vector<2x1x32xf32> to vector<2x32xf32>
    %108 = vector.shape_cast %47 : vector<2x32xf32> to vector<2x1x32xf32>
    tpu.vector_store %arg10[%c0_52, %c0_53, %c0_54], %108 {strides = array<i32>} : memref<2x8x32xf32, #tpu.memory_space<vmem>>, vector<2x1x32xf32>,
    %c0_55 = arith.constant 0 : index
    %c0_56 = arith.constant 0 : index
    %c0_57 = arith.constant 0 : index
    %109 = vector.load %arg11[%c0_55, %c0_56, %c0_57] : memref<2x8x32xf32, #tpu.memory_space<vmem>>, vector<2x1x32xf32>
    %110 = vector.shape_cast %109 : vector<2x1x32xf32> to vector<2x32xf32>
    %111 = vector.shape_cast %95 : vector<2x32xf32> to vector<2x1x32xf32>
    tpu.vector_store %arg11[%c0_55, %c0_56, %c0_57], %111 {strides = array<i32>} : memref<2x8x32xf32, #tpu.memory_space<vmem>>, vector<2x1x32xf32>,
    %c0_58 = arith.constant 0 : index
    %c0_59 = arith.constant 0 : index
    %c0_60 = arith.constant 0 : index
    %112 = vector.load %arg12[%c0_58, %c0_59, %c0_60] : memref<2x8x1xf32, #tpu.memory_space<vmem>>, vector<2x1x1xf32>
    %113 = vector.shape_cast %112 : vector<2x1x1xf32> to vector<2x1xf32>
    %114 = vector.shape_cast %57 : vector<2x1xf32> to vector<2x1x1xf32>
    tpu.vector_store %arg12[%c0_58, %c0_59, %c0_60], %114 {strides = array<i32>} : memref<2x8x1xf32, #tpu.memory_space<vmem>>, vector<2x1x1xf32>,
    %c0_61 = arith.constant 0 : index
    %c0_62 = arith.constant 0 : index
    %c0_63 = arith.constant 0 : index
    %115 = vector.load %arg13[%c0_61, %c0_62, %c0_63] : memref<2x8x1xf32, #tpu.memory_space<vmem>>, vector<2x1x1xf32>
    %116 = vector.shape_cast %115 : vector<2x1x1xf32> to vector<2x1xf32>
    %117 = vector.shape_cast %105 : vector<2x1xf32> to vector<2x1x1xf32>
    tpu.vector_store %arg13[%c0_61, %c0_62, %c0_63], %117 {strides = array<i32>} : memref<2x8x1xf32, #tpu.memory_space<vmem>>, vector<2x1x1xf32>,
    %c0_64 = arith.constant 0 : index
    %c0_65 = arith.constant 0 : index
    %118 = vector.load %arg16[%c0_64, %c0_65] : memref<2x128xf32, #tpu.memory_space<vmem>>, vector<2x32xf32>
    tpu.vector_store %arg16[%c0_64, %c0_65], %47 {strides = array<i32>} : memref<2x128xf32, #tpu.memory_space<vmem>>, vector<2x32xf32>,
    %119 = vector.broadcast %57 : vector<2x1xf32> to vector<2x32xf32>
    %120 = arith.mulf %119, %95 : vector<2x32xf32>
    %c0_66 = arith.constant 0 : index
    %c32_67 = arith.constant 32 : index
    %121 = vector.load %arg16[%c0_66, %c32_67] : memref<2x128xf32, #tpu.memory_space<vmem>>, vector<2x32xf32>
    tpu.vector_store %arg16[%c0_66, %c32_67], %120 {strides = array<i32>} : memref<2x128xf32, #tpu.memory_space<vmem>>, vector<2x32xf32>,
    %c0_68 = arith.constant 0 : index
    %c1_69 = arith.constant 1 : index
    %c0_70 = arith.constant 0 : index
    %122 = vector.load %arg2[%c0_68, %c1_69, %c0_70] : memref<2x8x4xf32, #tpu.memory_space<vmem>>, vector<2x1x4xf32>
    %123 = vector.shape_cast %122 : vector<2x1x4xf32> to vector<2x4xf32>
    %c0_71 = arith.constant 0 : index
    %c64_72 = arith.constant 64 : index
    %124 = vector.load %arg16[%c0_71, %c64_72] : memref<2x128xf32, #tpu.memory_space<vmem>>, vector<2x4xf32>
    tpu.vector_store %arg16[%c0_71, %c64_72], %123 {strides = array<i32>} : memref<2x128xf32, #tpu.memory_space<vmem>>, vector<2x4xf32>,
    %c0_73 = arith.constant 0 : index
    %c0_74 = arith.constant 0 : index
    %125 = vector.load %arg16[%c0_73, %c0_74] : memref<2x128xf32, #tpu.memory_space<vmem>>, vector<2x128xf32>
    %cst_75 = arith.constant dense<0.000000e+00> : vector<2x128xf32>
    %126 = tpu.matmul %125, %3, %cst_75 {dimension_numbers = #tpu.dot_dimension_numbers<[1], [0], [0], [1], [0, 0, 1, 1], [], []>, precision = #tpu.contract_precision<fp32>} : vector<2x128xf32>, vector<128x128xf32>, vector<2x128xf32> -> vector<2x128xf32>
    %127 = vector.broadcast %5 : vector<1x128xf32> to vector<2x128xf32>
    %128 = arith.addf %126, %127 : vector<2x128xf32>
    %129 = vector.extract_strided_slice %128 {offsets = [0, 0], sizes = [2, 96], strides = [1, 1]} : vector<2x128xf32> to vector<2x96xf32>
    %130 = arith.negf %129 : vector<2x96xf32>
    %131 = math.exp %130 : vector<2x96xf32>
    %cst_76 = arith.constant 1.000000e+00 : f32
    %132 = vector.broadcast %cst_76 : f32 to vector<2x96xf32>
    %133 = arith.addf %132, %131 : vector<2x96xf32>
    %134 = arith.divf %132, %133 : vector<2x96xf32>
    %135 = vector.extract_strided_slice %134 {offsets = [0, 0], sizes = [2, 32], strides = [1, 1]} : vector<2x96xf32> to vector<2x32xf32>
    %136 = vector.extract_strided_slice %134 {offsets = [0, 32], sizes = [2, 32], strides = [1, 1]} : vector<2x96xf32> to vector<2x32xf32>
    %137 = vector.extract_strided_slice %134 {offsets = [0, 64], sizes = [2, 32], strides = [1, 1]} : vector<2x96xf32> to vector<2x32xf32>
    %138 = vector.extract_strided_slice %128 {offsets = [0, 96], sizes = [2, 32], strides = [1, 1]} : vector<2x128xf32> to vector<2x32xf32>
    %139 = math.tanh %138 : vector<2x32xf32>
    %140 = arith.mulf %136, %139 : vector<2x32xf32>
    %cst_77 = arith.constant 1.000000e+00 : f32
    %141 = vector.broadcast %cst_77 : f32 to vector<2x1xf32>
    %142 = arith.subf %141, %57 : vector<2x1xf32>
    %143 = arith.mulf %135, %45 : vector<2x32xf32>
    %144 = vector.broadcast %142 : vector<2x1xf32> to vector<2x32xf32>
    %145 = arith.mulf %144, %143 : vector<2x32xf32>
    %146 = arith.addf %140, %145 : vector<2x32xf32>
    %147 = math.tanh %146 : vector<2x32xf32>
    %148 = arith.mulf %137, %147 : vector<2x32xf32>
    %149 = vector.broadcast %4 : vector<1x128xf32> to vector<2x128xf32>
    %150 = arith.mulf %125, %149 : vector<2x128xf32>
    %cst_78 = arith.constant dense<0.000000e+00> : vector<2xf32>
    %151 = vector.multi_reduction <add>, %150, %cst_78 [1] : vector<2x128xf32> to vector<2xf32>
    %152 = vector.shape_cast %151 : vector<2xf32> to vector<2x1xf32>
    %153 = vector.broadcast %9 : f32 to vector<2x1xf32>
    %154 = arith.addf %152, %153 : vector<2x1xf32>
    %cst_79 = arith.constant 0.000000e+00 : f32
    %155 = vector.broadcast %cst_79 : f32 to vector<2x1xf32>
    %156 = arith.cmpf ogt, %154, %155 : vector<2x1xf32>
    %157 = arith.extui %156 : vector<2x1xi1> to vector<2x1xi32>
    %158 = arith.sitofp %157 : vector<2x1xi32> to vector<2x1xf32>
    %159 = vector.broadcast %158 : vector<2x1xf32> to vector<2x32xf32>
    %160 = arith.mulf %159, %95 : vector<2x32xf32>
    %c0_80 = arith.constant 0 : index
    %c0_81 = arith.constant 0 : index
    %161 = vector.load %arg17[%c0_80, %c0_81] : memref<2x128xf32, #tpu.memory_space<vmem>>, vector<2x32xf32>
    tpu.vector_store %arg17[%c0_80, %c0_81], %160 {strides = array<i32>} : memref<2x128xf32, #tpu.memory_space<vmem>>, vector<2x32xf32>,
    %c0_82 = arith.constant 0 : index
    %c32_83 = arith.constant 32 : index
    %162 = vector.load %arg17[%c0_82, %c32_83] : memref<2x128xf32, #tpu.memory_space<vmem>>, vector<2x32xf32>
    tpu.vector_store %arg17[%c0_82, %c32_83], %148 {strides = array<i32>} : memref<2x128xf32, #tpu.memory_space<vmem>>, vector<2x32xf32>,
    %c0_84 = arith.constant 0 : index
    %c0_85 = arith.constant 0 : index
    %163 = vector.load %arg17[%c0_84, %c0_85] : memref<2x128xf32, #tpu.memory_space<vmem>>, vector<2x128xf32>
    %cst_86 = arith.constant dense<0.000000e+00> : vector<2x128xf32>
    %164 = tpu.matmul %163, %6, %cst_86 {dimension_numbers = #tpu.dot_dimension_numbers<[1], [0], [0], [1], [0, 0, 1, 1], [], []>, precision = #tpu.contract_precision<fp32>} : vector<2x128xf32>, vector<128x128xf32>, vector<2x128xf32> -> vector<2x128xf32>
    %165 = vector.broadcast %8 : vector<1x128xf32> to vector<2x128xf32>
    %166 = arith.addf %164, %165 : vector<2x128xf32>
    %167 = vector.extract_strided_slice %166 {offsets = [0, 0], sizes = [2, 96], strides = [1, 1]} : vector<2x128xf32> to vector<2x96xf32>
    %168 = arith.negf %167 : vector<2x96xf32>
    %169 = math.exp %168 : vector<2x96xf32>
    %cst_87 = arith.constant 1.000000e+00 : f32
    %170 = vector.broadcast %cst_87 : f32 to vector<2x96xf32>
    %171 = arith.addf %170, %169 : vector<2x96xf32>
    %172 = arith.divf %170, %171 : vector<2x96xf32>
    %173 = vector.extract_strided_slice %172 {offsets = [0, 0], sizes = [2, 32], strides = [1, 1]} : vector<2x96xf32> to vector<2x32xf32>
    %174 = vector.extract_strided_slice %172 {offsets = [0, 32], sizes = [2, 32], strides = [1, 1]} : vector<2x96xf32> to vector<2x32xf32>
    %175 = vector.extract_strided_slice %172 {offsets = [0, 64], sizes = [2, 32], strides = [1, 1]} : vector<2x96xf32> to vector<2x32xf32>
    %176 = vector.extract_strided_slice %166 {offsets = [0, 96], sizes = [2, 32], strides = [1, 1]} : vector<2x128xf32> to vector<2x32xf32>
    %177 = math.tanh %176 : vector<2x32xf32>
    %cst_88 = arith.constant 5.000000e-01 : f32
    %178 = vector.broadcast %cst_88 : f32 to vector<2x1xf32>
    %179 = arith.cmpf ogt, %105, %178 : vector<2x1xf32>
    %cst_89 = arith.constant 5.000000e-01 : f32
    %180 = vector.broadcast %cst_89 : f32 to vector<2x1xf32>
    %181 = arith.cmpf ogt, %158, %180 : vector<2x1xf32>
    %182 = arith.mulf %174, %177 : vector<2x32xf32>
    %183 = arith.mulf %173, %89 : vector<2x32xf32>
    %184 = arith.addf %183, %182 : vector<2x32xf32>
    %185 = vector.shape_cast %181 : vector<2x1xi1> to vector<2x1xi1>
    %186 = vector.broadcast %185 : vector<2x1xi1> to vector<2x32xi1>
    %187 = arith.select %186, %184, %89 : vector<2x32xi1>, vector<2x32xf32>
    %188 = vector.shape_cast %179 : vector<2x1xi1> to vector<2x1xi1>
    %189 = vector.broadcast %188 : vector<2x1xi1> to vector<2x32xi1>
    %190 = arith.select %189, %182, %187 : vector<2x32xi1>, vector<2x32xf32>
    %191 = arith.ori %179, %181 : vector<2x1xi1>
    %192 = math.tanh %190 : vector<2x32xf32>
    %193 = arith.mulf %175, %192 : vector<2x32xf32>
    %194 = vector.shape_cast %191 : vector<2x1xi1> to vector<2x1xi1>
    %195 = vector.broadcast %194 : vector<2x1xi1> to vector<2x32xi1>
    %196 = arith.select %195, %193, %95 : vector<2x32xi1>, vector<2x32xf32>
    %197 = vector.broadcast %7 : vector<1x128xf32> to vector<2x128xf32>
    %198 = arith.mulf %163, %197 : vector<2x128xf32>
    %cst_90 = arith.constant dense<0.000000e+00> : vector<2xf32>
    %199 = vector.multi_reduction <add>, %198, %cst_90 [1] : vector<2x128xf32> to vector<2xf32>
    %200 = vector.shape_cast %199 : vector<2xf32> to vector<2x1xf32>
    %201 = vector.broadcast %10 : f32 to vector<2x1xf32>
    %202 = arith.addf %200, %201 : vector<2x1xf32>
    %cst_91 = arith.constant 0.000000e+00 : f32
    %203 = vector.broadcast %cst_91 : f32 to vector<2x1xf32>
    %204 = arith.cmpf ogt, %202, %203 : vector<2x1xf32>
    %205 = arith.extui %204 : vector<2x1xi1> to vector<2x1xi32>
    %206 = arith.sitofp %205 : vector<2x1xi32> to vector<2x1xf32>
    %c0_92 = arith.constant 0 : index
    %c1_93 = arith.constant 1 : index
    %c0_94 = arith.constant 0 : index
    %207 = vector.load %arg10[%c0_92, %c1_93, %c0_94] : memref<2x8x32xf32, #tpu.memory_space<vmem>>, vector<2x1x32xf32>
    %208 = vector.shape_cast %207 : vector<2x1x32xf32> to vector<2x32xf32>
    %209 = vector.shape_cast %148 : vector<2x32xf32> to vector<2x1x32xf32>
    tpu.vector_store %arg10[%c0_92, %c1_93, %c0_94], %209 {strides = array<i32>} : memref<2x8x32xf32, #tpu.memory_space<vmem>>, vector<2x1x32xf32>,
    %c0_95 = arith.constant 0 : index
    %c1_96 = arith.constant 1 : index
    %c0_97 = arith.constant 0 : index
    %210 = vector.load %arg11[%c0_95, %c1_96, %c0_97] : memref<2x8x32xf32, #tpu.memory_space<vmem>>, vector<2x1x32xf32>
    %211 = vector.shape_cast %210 : vector<2x1x32xf32> to vector<2x32xf32>
    %212 = vector.shape_cast %196 : vector<2x32xf32> to vector<2x1x32xf32>
    tpu.vector_store %arg11[%c0_95, %c1_96, %c0_97], %212 {strides = array<i32>} : memref<2x8x32xf32, #tpu.memory_space<vmem>>, vector<2x1x32xf32>,
    %c0_98 = arith.constant 0 : index
    %c1_99 = arith.constant 1 : index
    %c0_100 = arith.constant 0 : index
    %213 = vector.load %arg12[%c0_98, %c1_99, %c0_100] : memref<2x8x1xf32, #tpu.memory_space<vmem>>, vector<2x1x1xf32>
    %214 = vector.shape_cast %213 : vector<2x1x1xf32> to vector<2x1xf32>
    %215 = vector.shape_cast %158 : vector<2x1xf32> to vector<2x1x1xf32>
    tpu.vector_store %arg12[%c0_98, %c1_99, %c0_100], %215 {strides = array<i32>} : memref<2x8x1xf32, #tpu.memory_space<vmem>>, vector<2x1x1xf32>,
    %c0_101 = arith.constant 0 : index
    %c1_102 = arith.constant 1 : index
    %c0_103 = arith.constant 0 : index
    %216 = vector.load %arg13[%c0_101, %c1_102, %c0_103] : memref<2x8x1xf32, #tpu.memory_space<vmem>>, vector<2x1x1xf32>
    %217 = vector.shape_cast %216 : vector<2x1x1xf32> to vector<2x1xf32>
    %218 = vector.shape_cast %206 : vector<2x1xf32> to vector<2x1x1xf32>
    tpu.vector_store %arg13[%c0_101, %c1_102, %c0_103], %218 {strides = array<i32>} : memref<2x8x1xf32, #tpu.memory_space<vmem>>, vector<2x1x1xf32>,
    %c0_104 = arith.constant 0 : index
    %c0_105 = arith.constant 0 : index
    %219 = vector.load %arg16[%c0_104, %c0_105] : memref<2x128xf32, #tpu.memory_space<vmem>>, vector<2x32xf32>
    tpu.vector_store %arg16[%c0_104, %c0_105], %148 {strides = array<i32>} : memref<2x128xf32, #tpu.memory_space<vmem>>, vector<2x32xf32>,
    %220 = vector.broadcast %158 : vector<2x1xf32> to vector<2x32xf32>
    %221 = arith.mulf %220, %196 : vector<2x32xf32>
    %c0_106 = arith.constant 0 : index
    %c32_107 = arith.constant 32 : index
    %222 = vector.load %arg16[%c0_106, %c32_107] : memref<2x128xf32, #tpu.memory_space<vmem>>, vector<2x32xf32>
    tpu.vector_store %arg16[%c0_106, %c32_107], %221 {strides = array<i32>} : memref<2x128xf32, #tpu.memory_space<vmem>>, vector<2x32xf32>,
    %c0_108 = arith.constant 0 : index
    %c2 = arith.constant 2 : index
    %c0_109 = arith.constant 0 : index
    %223 = vector.load %arg2[%c0_108, %c2, %c0_109] : memref<2x8x4xf32, #tpu.memory_space<vmem>>, vector<2x1x4xf32>
    %224 = vector.shape_cast %223 : vector<2x1x4xf32> to vector<2x4xf32>
    %c0_110 = arith.constant 0 : index
    %c64_111 = arith.constant 64 : index
    %225 = vector.load %arg16[%c0_110, %c64_111] : memref<2x128xf32, #tpu.memory_space<vmem>>, vector<2x4xf32>
    tpu.vector_store %arg16[%c0_110, %c64_111], %224 {strides = array<i32>} : memref<2x128xf32, #tpu.memory_space<vmem>>, vector<2x4xf32>,
    %c0_112 = arith.constant 0 : index
    %c0_113 = arith.constant 0 : index
    %226 = vector.load %arg16[%c0_112, %c0_113] : memref<2x128xf32, #tpu.memory_space<vmem>>, vector<2x128xf32>
    %cst_114 = arith.constant dense<0.000000e+00> : vector<2x128xf32>
    %227 = tpu.matmul %226, %3, %cst_114 {dimension_numbers = #tpu.dot_dimension_numbers<[1], [0], [0], [1], [0, 0, 1, 1], [], []>, precision = #tpu.contract_precision<fp32>} : vector<2x128xf32>, vector<128x128xf32>, vector<2x128xf32> -> vector<2x128xf32>
    %228 = vector.broadcast %5 : vector<1x128xf32> to vector<2x128xf32>
    %229 = arith.addf %227, %228 : vector<2x128xf32>
    %230 = vector.extract_strided_slice %229 {offsets = [0, 0], sizes = [2, 96], strides = [1, 1]} : vector<2x128xf32> to vector<2x96xf32>
    %231 = arith.negf %230 : vector<2x96xf32>
    %232 = math.exp %231 : vector<2x96xf32>
    %cst_115 = arith.constant 1.000000e+00 : f32
    %233 = vector.broadcast %cst_115 : f32 to vector<2x96xf32>
    %234 = arith.addf %233, %232 : vector<2x96xf32>
    %235 = arith.divf %233, %234 : vector<2x96xf32>
    %236 = vector.extract_strided_slice %235 {offsets = [0, 0], sizes = [2, 32], strides = [1, 1]} : vector<2x96xf32> to vector<2x32xf32>
    %237 = vector.extract_strided_slice %235 {offsets = [0, 32], sizes = [2, 32], strides = [1, 1]} : vector<2x96xf32> to vector<2x32xf32>
    %238 = vector.extract_strided_slice %235 {offsets = [0, 64], sizes = [2, 32], strides = [1, 1]} : vector<2x96xf32> to vector<2x32xf32>
    %239 = vector.extract_strided_slice %229 {offsets = [0, 96], sizes = [2, 32], strides = [1, 1]} : vector<2x128xf32> to vector<2x32xf32>
    %240 = math.tanh %239 : vector<2x32xf32>
    %241 = arith.mulf %237, %240 : vector<2x32xf32>
    %cst_116 = arith.constant 1.000000e+00 : f32
    %242 = vector.broadcast %cst_116 : f32 to vector<2x1xf32>
    %243 = arith.subf %242, %158 : vector<2x1xf32>
    %244 = arith.mulf %236, %146 : vector<2x32xf32>
    %245 = vector.broadcast %243 : vector<2x1xf32> to vector<2x32xf32>
    %246 = arith.mulf %245, %244 : vector<2x32xf32>
    %247 = arith.addf %241, %246 : vector<2x32xf32>
    %248 = math.tanh %247 : vector<2x32xf32>
    %249 = arith.mulf %238, %248 : vector<2x32xf32>
    %250 = vector.broadcast %4 : vector<1x128xf32> to vector<2x128xf32>
    %251 = arith.mulf %226, %250 : vector<2x128xf32>
    %cst_117 = arith.constant dense<0.000000e+00> : vector<2xf32>
    %252 = vector.multi_reduction <add>, %251, %cst_117 [1] : vector<2x128xf32> to vector<2xf32>
    %253 = vector.shape_cast %252 : vector<2xf32> to vector<2x1xf32>
    %254 = vector.broadcast %9 : f32 to vector<2x1xf32>
    %255 = arith.addf %253, %254 : vector<2x1xf32>
    %cst_118 = arith.constant 0.000000e+00 : f32
    %256 = vector.broadcast %cst_118 : f32 to vector<2x1xf32>
    %257 = arith.cmpf ogt, %255, %256 : vector<2x1xf32>
    %258 = arith.extui %257 : vector<2x1xi1> to vector<2x1xi32>
    %259 = arith.sitofp %258 : vector<2x1xi32> to vector<2x1xf32>
    %260 = vector.broadcast %259 : vector<2x1xf32> to vector<2x32xf32>
    %261 = arith.mulf %260, %196 : vector<2x32xf32>
    %c0_119 = arith.constant 0 : index
    %c0_120 = arith.constant 0 : index
    %262 = vector.load %arg17[%c0_119, %c0_120] : memref<2x128xf32, #tpu.memory_space<vmem>>, vector<2x32xf32>
    tpu.vector_store %arg17[%c0_119, %c0_120], %261 {strides = array<i32>} : memref<2x128xf32, #tpu.memory_space<vmem>>, vector<2x32xf32>,
    %c0_121 = arith.constant 0 : index
    %c32_122 = arith.constant 32 : index
    %263 = vector.load %arg17[%c0_121, %c32_122] : memref<2x128xf32, #tpu.memory_space<vmem>>, vector<2x32xf32>
    tpu.vector_store %arg17[%c0_121, %c32_122], %249 {strides = array<i32>} : memref<2x128xf32, #tpu.memory_space<vmem>>, vector<2x32xf32>,
    %c0_123 = arith.constant 0 : index
    %c0_124 = arith.constant 0 : index
    %264 = vector.load %arg17[%c0_123, %c0_124] : memref<2x128xf32, #tpu.memory_space<vmem>>, vector<2x128xf32>
    %cst_125 = arith.constant dense<0.000000e+00> : vector<2x128xf32>
    %265 = tpu.matmul %264, %6, %cst_125 {dimension_numbers = #tpu.dot_dimension_numbers<[1], [0], [0], [1], [0, 0, 1, 1], [], []>, precision = #tpu.contract_precision<fp32>} : vector<2x128xf32>, vector<128x128xf32>, vector<2x128xf32> -> vector<2x128xf32>
    %266 = vector.broadcast %8 : vector<1x128xf32> to vector<2x128xf32>
    %267 = arith.addf %265, %266 : vector<2x128xf32>
    %268 = vector.extract_strided_slice %267 {offsets = [0, 0], sizes = [2, 96], strides = [1, 1]} : vector<2x128xf32> to vector<2x96xf32>
    %269 = arith.negf %268 : vector<2x96xf32>
    %270 = math.exp %269 : vector<2x96xf32>
    %cst_126 = arith.constant 1.000000e+00 : f32
    %271 = vector.broadcast %cst_126 : f32 to vector<2x96xf32>
    %272 = arith.addf %271, %270 : vector<2x96xf32>
    %273 = arith.divf %271, %272 : vector<2x96xf32>
    %274 = vector.extract_strided_slice %273 {offsets = [0, 0], sizes = [2, 32], strides = [1, 1]} : vector<2x96xf32> to vector<2x32xf32>
    %275 = vector.extract_strided_slice %273 {offsets = [0, 32], sizes = [2, 32], strides = [1, 1]} : vector<2x96xf32> to vector<2x32xf32>
    %276 = vector.extract_strided_slice %273 {offsets = [0, 64], sizes = [2, 32], strides = [1, 1]} : vector<2x96xf32> to vector<2x32xf32>
    %277 = vector.extract_strided_slice %267 {offsets = [0, 96], sizes = [2, 32], strides = [1, 1]} : vector<2x128xf32> to vector<2x32xf32>
    %278 = math.tanh %277 : vector<2x32xf32>
    %cst_127 = arith.constant 5.000000e-01 : f32
    %279 = vector.broadcast %cst_127 : f32 to vector<2x1xf32>
    %280 = arith.cmpf ogt, %206, %279 : vector<2x1xf32>
    %cst_128 = arith.constant 5.000000e-01 : f32
    %281 = vector.broadcast %cst_128 : f32 to vector<2x1xf32>
    %282 = arith.cmpf ogt, %259, %281 : vector<2x1xf32>
    %283 = arith.mulf %275, %278 : vector<2x32xf32>
    %284 = arith.mulf %274, %190 : vector<2x32xf32>
    %285 = arith.addf %284, %283 : vector<2x32xf32>
    %286 = vector.shape_cast %282 : vector<2x1xi1> to vector<2x1xi1>
    %287 = vector.broadcast %286 : vector<2x1xi1> to vector<2x32xi1>
    %288 = arith.select %287, %285, %190 : vector<2x32xi1>, vector<2x32xf32>
    %289 = vector.shape_cast %280 : vector<2x1xi1> to vector<2x1xi1>
    %290 = vector.broadcast %289 : vector<2x1xi1> to vector<2x32xi1>
    %291 = arith.select %290, %283, %288 : vector<2x32xi1>, vector<2x32xf32>
    %292 = arith.ori %280, %282 : vector<2x1xi1>
    %293 = math.tanh %291 : vector<2x32xf32>
    %294 = arith.mulf %276, %293 : vector<2x32xf32>
    %295 = vector.shape_cast %292 : vector<2x1xi1> to vector<2x1xi1>
    %296 = vector.broadcast %295 : vector<2x1xi1> to vector<2x32xi1>
    %297 = arith.select %296, %294, %196 : vector<2x32xi1>, vector<2x32xf32>
    %298 = vector.broadcast %7 : vector<1x128xf32> to vector<2x128xf32>
    %299 = arith.mulf %264, %298 : vector<2x128xf32>
    %cst_129 = arith.constant dense<0.000000e+00> : vector<2xf32>
    %300 = vector.multi_reduction <add>, %299, %cst_129 [1] : vector<2x128xf32> to vector<2xf32>
    %301 = vector.shape_cast %300 : vector<2xf32> to vector<2x1xf32>
    %302 = vector.broadcast %10 : f32 to vector<2x1xf32>
    %303 = arith.addf %301, %302 : vector<2x1xf32>
    %cst_130 = arith.constant 0.000000e+00 : f32
    %304 = vector.broadcast %cst_130 : f32 to vector<2x1xf32>
    %305 = arith.cmpf ogt, %303, %304 : vector<2x1xf32>
    %306 = arith.extui %305 : vector<2x1xi1> to vector<2x1xi32>
    %307 = arith.sitofp %306 : vector<2x1xi32> to vector<2x1xf32>
    %c0_131 = arith.constant 0 : index
    %c2_132 = arith.constant 2 : index
    %c0_133 = arith.constant 0 : index
    %308 = vector.load %arg10[%c0_131, %c2_132, %c0_133] : memref<2x8x32xf32, #tpu.memory_space<vmem>>, vector<2x1x32xf32>
    %309 = vector.shape_cast %308 : vector<2x1x32xf32> to vector<2x32xf32>
    %310 = vector.shape_cast %249 : vector<2x32xf32> to vector<2x1x32xf32>
    tpu.vector_store %arg10[%c0_131, %c2_132, %c0_133], %310 {strides = array<i32>} : memref<2x8x32xf32, #tpu.memory_space<vmem>>, vector<2x1x32xf32>,
    %c0_134 = arith.constant 0 : index
    %c2_135 = arith.constant 2 : index
    %c0_136 = arith.constant 0 : index
    %311 = vector.load %arg11[%c0_134, %c2_135, %c0_136] : memref<2x8x32xf32, #tpu.memory_space<vmem>>, vector<2x1x32xf32>
    %312 = vector.shape_cast %311 : vector<2x1x32xf32> to vector<2x32xf32>
    %313 = vector.shape_cast %297 : vector<2x32xf32> to vector<2x1x32xf32>
    tpu.vector_store %arg11[%c0_134, %c2_135, %c0_136], %313 {strides = array<i32>} : memref<2x8x32xf32, #tpu.memory_space<vmem>>, vector<2x1x32xf32>,
    %c0_137 = arith.constant 0 : index
    %c2_138 = arith.constant 2 : index
    %c0_139 = arith.constant 0 : index
    %314 = vector.load %arg12[%c0_137, %c2_138, %c0_139] : memref<2x8x1xf32, #tpu.memory_space<vmem>>, vector<2x1x1xf32>
    %315 = vector.shape_cast %314 : vector<2x1x1xf32> to vector<2x1xf32>
    %316 = vector.shape_cast %259 : vector<2x1xf32> to vector<2x1x1xf32>
    tpu.vector_store %arg12[%c0_137, %c2_138, %c0_139], %316 {strides = array<i32>} : memref<2x8x1xf32, #tpu.memory_space<vmem>>, vector<2x1x1xf32>,
    %c0_140 = arith.constant 0 : index
    %c2_141 = arith.constant 2 : index
    %c0_142 = arith.constant 0 : index
    %317 = vector.load %arg13[%c0_140, %c2_141, %c0_142] : memref<2x8x1xf32, #tpu.memory_space<vmem>>, vector<2x1x1xf32>
    %318 = vector.shape_cast %317 : vector<2x1x1xf32> to vector<2x1xf32>
    %319 = vector.shape_cast %307 : vector<2x1xf32> to vector<2x1x1xf32>
    tpu.vector_store %arg13[%c0_140, %c2_141, %c0_142], %319 {strides = array<i32>} : memref<2x8x1xf32, #tpu.memory_space<vmem>>, vector<2x1x1xf32>,
    %c0_143 = arith.constant 0 : index
    %c0_144 = arith.constant 0 : index
    %320 = vector.load %arg16[%c0_143, %c0_144] : memref<2x128xf32, #tpu.memory_space<vmem>>, vector<2x32xf32>
    tpu.vector_store %arg16[%c0_143, %c0_144], %249 {strides = array<i32>} : memref<2x128xf32, #tpu.memory_space<vmem>>, vector<2x32xf32>,
    %321 = vector.broadcast %259 : vector<2x1xf32> to vector<2x32xf32>
    %322 = arith.mulf %321, %297 : vector<2x32xf32>
    %c0_145 = arith.constant 0 : index
    %c32_146 = arith.constant 32 : index
    %323 = vector.load %arg16[%c0_145, %c32_146] : memref<2x128xf32, #tpu.memory_space<vmem>>, vector<2x32xf32>
    tpu.vector_store %arg16[%c0_145, %c32_146], %322 {strides = array<i32>} : memref<2x128xf32, #tpu.memory_space<vmem>>, vector<2x32xf32>,
    %c0_147 = arith.constant 0 : index
    %c3 = arith.constant 3 : index
    %c0_148 = arith.constant 0 : index
    %324 = vector.load %arg2[%c0_147, %c3, %c0_148] : memref<2x8x4xf32, #tpu.memory_space<vmem>>, vector<2x1x4xf32>
    %325 = vector.shape_cast %324 : vector<2x1x4xf32> to vector<2x4xf32>
    %c0_149 = arith.constant 0 : index
    %c64_150 = arith.constant 64 : index
    %326 = vector.load %arg16[%c0_149, %c64_150] : memref<2x128xf32, #tpu.memory_space<vmem>>, vector<2x4xf32>
    tpu.vector_store %arg16[%c0_149, %c64_150], %325 {strides = array<i32>} : memref<2x128xf32, #tpu.memory_space<vmem>>, vector<2x4xf32>,
    %c0_151 = arith.constant 0 : index
    %c0_152 = arith.constant 0 : index
    %327 = vector.load %arg16[%c0_151, %c0_152] : memref<2x128xf32, #tpu.memory_space<vmem>>, vector<2x128xf32>
    %cst_153 = arith.constant dense<0.000000e+00> : vector<2x128xf32>
    %328 = tpu.matmul %327, %3, %cst_153 {dimension_numbers = #tpu.dot_dimension_numbers<[1], [0], [0], [1], [0, 0, 1, 1], [], []>, precision = #tpu.contract_precision<fp32>} : vector<2x128xf32>, vector<128x128xf32>, vector<2x128xf32> -> vector<2x128xf32>
    %329 = vector.broadcast %5 : vector<1x128xf32> to vector<2x128xf32>
    %330 = arith.addf %328, %329 : vector<2x128xf32>
    %331 = vector.extract_strided_slice %330 {offsets = [0, 0], sizes = [2, 96], strides = [1, 1]} : vector<2x128xf32> to vector<2x96xf32>
    %332 = arith.negf %331 : vector<2x96xf32>
    %333 = math.exp %332 : vector<2x96xf32>
    %cst_154 = arith.constant 1.000000e+00 : f32
    %334 = vector.broadcast %cst_154 : f32 to vector<2x96xf32>
    %335 = arith.addf %334, %333 : vector<2x96xf32>
    %336 = arith.divf %334, %335 : vector<2x96xf32>
    %337 = vector.extract_strided_slice %336 {offsets = [0, 0], sizes = [2, 32], strides = [1, 1]} : vector<2x96xf32> to vector<2x32xf32>
    %338 = vector.extract_strided_slice %336 {offsets = [0, 32], sizes = [2, 32], strides = [1, 1]} : vector<2x96xf32> to vector<2x32xf32>
    %339 = vector.extract_strided_slice %336 {offsets = [0, 64], sizes = [2, 32], strides = [1, 1]} : vector<2x96xf32> to vector<2x32xf32>
    %340 = vector.extract_strided_slice %330 {offsets = [0, 96], sizes = [2, 32], strides = [1, 1]} : vector<2x128xf32> to vector<2x32xf32>
    %341 = math.tanh %340 : vector<2x32xf32>
    %342 = arith.mulf %338, %341 : vector<2x32xf32>
    %cst_155 = arith.constant 1.000000e+00 : f32
    %343 = vector.broadcast %cst_155 : f32 to vector<2x1xf32>
    %344 = arith.subf %343, %259 : vector<2x1xf32>
    %345 = arith.mulf %337, %247 : vector<2x32xf32>
    %346 = vector.broadcast %344 : vector<2x1xf32> to vector<2x32xf32>
    %347 = arith.mulf %346, %345 : vector<2x32xf32>
    %348 = arith.addf %342, %347 : vector<2x32xf32>
    %349 = math.tanh %348 : vector<2x32xf32>
    %350 = arith.mulf %339, %349 : vector<2x32xf32>
    %351 = vector.broadcast %4 : vector<1x128xf32> to vector<2x128xf32>
    %352 = arith.mulf %327, %351 : vector<2x128xf32>
    %cst_156 = arith.constant dense<0.000000e+00> : vector<2xf32>
    %353 = vector.multi_reduction <add>, %352, %cst_156 [1] : vector<2x128xf32> to vector<2xf32>
    %354 = vector.shape_cast %353 : vector<2xf32> to vector<2x1xf32>
    %355 = vector.broadcast %9 : f32 to vector<2x1xf32>
    %356 = arith.addf %354, %355 : vector<2x1xf32>
    %cst_157 = arith.constant 0.000000e+00 : f32
    %357 = vector.broadcast %cst_157 : f32 to vector<2x1xf32>
    %358 = arith.cmpf ogt, %356, %357 : vector<2x1xf32>
    %359 = arith.extui %358 : vector<2x1xi1> to vector<2x1xi32>
    %360 = arith.sitofp %359 : vector<2x1xi32> to vector<2x1xf32>
    %361 = vector.broadcast %360 : vector<2x1xf32> to vector<2x32xf32>
    %362 = arith.mulf %361, %297 : vector<2x32xf32>
    %c0_158 = arith.constant 0 : index
    %c0_159 = arith.constant 0 : index
    %363 = vector.load %arg17[%c0_158, %c0_159] : memref<2x128xf32, #tpu.memory_space<vmem>>, vector<2x32xf32>
    tpu.vector_store %arg17[%c0_158, %c0_159], %362 {strides = array<i32>} : memref<2x128xf32, #tpu.memory_space<vmem>>, vector<2x32xf32>,
    %c0_160 = arith.constant 0 : index
    %c32_161 = arith.constant 32 : index
    %364 = vector.load %arg17[%c0_160, %c32_161] : memref<2x128xf32, #tpu.memory_space<vmem>>, vector<2x32xf32>
    tpu.vector_store %arg17[%c0_160, %c32_161], %350 {strides = array<i32>} : memref<2x128xf32, #tpu.memory_space<vmem>>, vector<2x32xf32>,
    %c0_162 = arith.constant 0 : index
    %c0_163 = arith.constant 0 : index
    %365 = vector.load %arg17[%c0_162, %c0_163] : memref<2x128xf32, #tpu.memory_space<vmem>>, vector<2x128xf32>
    %cst_164 = arith.constant dense<0.000000e+00> : vector<2x128xf32>
    %366 = tpu.matmul %365, %6, %cst_164 {dimension_numbers = #tpu.dot_dimension_numbers<[1], [0], [0], [1], [0, 0, 1, 1], [], []>, precision = #tpu.contract_precision<fp32>} : vector<2x128xf32>, vector<128x128xf32>, vector<2x128xf32> -> vector<2x128xf32>
    %367 = vector.broadcast %8 : vector<1x128xf32> to vector<2x128xf32>
    %368 = arith.addf %366, %367 : vector<2x128xf32>
    %369 = vector.extract_strided_slice %368 {offsets = [0, 0], sizes = [2, 96], strides = [1, 1]} : vector<2x128xf32> to vector<2x96xf32>
    %370 = arith.negf %369 : vector<2x96xf32>
    %371 = math.exp %370 : vector<2x96xf32>
    %cst_165 = arith.constant 1.000000e+00 : f32
    %372 = vector.broadcast %cst_165 : f32 to vector<2x96xf32>
    %373 = arith.addf %372, %371 : vector<2x96xf32>
    %374 = arith.divf %372, %373 : vector<2x96xf32>
    %375 = vector.extract_strided_slice %374 {offsets = [0, 0], sizes = [2, 32], strides = [1, 1]} : vector<2x96xf32> to vector<2x32xf32>
    %376 = vector.extract_strided_slice %374 {offsets = [0, 32], sizes = [2, 32], strides = [1, 1]} : vector<2x96xf32> to vector<2x32xf32>
    %377 = vector.extract_strided_slice %374 {offsets = [0, 64], sizes = [2, 32], strides = [1, 1]} : vector<2x96xf32> to vector<2x32xf32>
    %378 = vector.extract_strided_slice %368 {offsets = [0, 96], sizes = [2, 32], strides = [1, 1]} : vector<2x128xf32> to vector<2x32xf32>
    %379 = math.tanh %378 : vector<2x32xf32>
    %cst_166 = arith.constant 5.000000e-01 : f32
    %380 = vector.broadcast %cst_166 : f32 to vector<2x1xf32>
    %381 = arith.cmpf ogt, %307, %380 : vector<2x1xf32>
    %cst_167 = arith.constant 5.000000e-01 : f32
    %382 = vector.broadcast %cst_167 : f32 to vector<2x1xf32>
    %383 = arith.cmpf ogt, %360, %382 : vector<2x1xf32>
    %384 = arith.mulf %376, %379 : vector<2x32xf32>
    %385 = arith.mulf %375, %291 : vector<2x32xf32>
    %386 = arith.addf %385, %384 : vector<2x32xf32>
    %387 = vector.shape_cast %383 : vector<2x1xi1> to vector<2x1xi1>
    %388 = vector.broadcast %387 : vector<2x1xi1> to vector<2x32xi1>
    %389 = arith.select %388, %386, %291 : vector<2x32xi1>, vector<2x32xf32>
    %390 = vector.shape_cast %381 : vector<2x1xi1> to vector<2x1xi1>
    %391 = vector.broadcast %390 : vector<2x1xi1> to vector<2x32xi1>
    %392 = arith.select %391, %384, %389 : vector<2x32xi1>, vector<2x32xf32>
    %393 = arith.ori %381, %383 : vector<2x1xi1>
    %394 = math.tanh %392 : vector<2x32xf32>
    %395 = arith.mulf %377, %394 : vector<2x32xf32>
    %396 = vector.shape_cast %393 : vector<2x1xi1> to vector<2x1xi1>
    %397 = vector.broadcast %396 : vector<2x1xi1> to vector<2x32xi1>
    %398 = arith.select %397, %395, %297 : vector<2x32xi1>, vector<2x32xf32>
    %399 = vector.broadcast %7 : vector<1x128xf32> to vector<2x128xf32>
    %400 = arith.mulf %365, %399 : vector<2x128xf32>
    %cst_168 = arith.constant dense<0.000000e+00> : vector<2xf32>
    %401 = vector.multi_reduction <add>, %400, %cst_168 [1] : vector<2x128xf32> to vector<2xf32>
    %402 = vector.shape_cast %401 : vector<2xf32> to vector<2x1xf32>
    %403 = vector.broadcast %10 : f32 to vector<2x1xf32>
    %404 = arith.addf %402, %403 : vector<2x1xf32>
    %cst_169 = arith.constant 0.000000e+00 : f32
    %405 = vector.broadcast %cst_169 : f32 to vector<2x1xf32>
    %406 = arith.cmpf ogt, %404, %405 : vector<2x1xf32>
    %407 = arith.extui %406 : vector<2x1xi1> to vector<2x1xi32>
    %408 = arith.sitofp %407 : vector<2x1xi32> to vector<2x1xf32>
    %c0_170 = arith.constant 0 : index
    %c3_171 = arith.constant 3 : index
    %c0_172 = arith.constant 0 : index
    %409 = vector.load %arg10[%c0_170, %c3_171, %c0_172] : memref<2x8x32xf32, #tpu.memory_space<vmem>>, vector<2x1x32xf32>
    %410 = vector.shape_cast %409 : vector<2x1x32xf32> to vector<2x32xf32>
    %411 = vector.shape_cast %350 : vector<2x32xf32> to vector<2x1x32xf32>
    tpu.vector_store %arg10[%c0_170, %c3_171, %c0_172], %411 {strides = array<i32>} : memref<2x8x32xf32, #tpu.memory_space<vmem>>, vector<2x1x32xf32>,
    %c0_173 = arith.constant 0 : index
    %c3_174 = arith.constant 3 : index
    %c0_175 = arith.constant 0 : index
    %412 = vector.load %arg11[%c0_173, %c3_174, %c0_175] : memref<2x8x32xf32, #tpu.memory_space<vmem>>, vector<2x1x32xf32>
    %413 = vector.shape_cast %412 : vector<2x1x32xf32> to vector<2x32xf32>
    %414 = vector.shape_cast %398 : vector<2x32xf32> to vector<2x1x32xf32>
    tpu.vector_store %arg11[%c0_173, %c3_174, %c0_175], %414 {strides = array<i32>} : memref<2x8x32xf32, #tpu.memory_space<vmem>>, vector<2x1x32xf32>,
    %c0_176 = arith.constant 0 : index
    %c3_177 = arith.constant 3 : index
    %c0_178 = arith.constant 0 : index
    %415 = vector.load %arg12[%c0_176, %c3_177, %c0_178] : memref<2x8x1xf32, #tpu.memory_space<vmem>>, vector<2x1x1xf32>
    %416 = vector.shape_cast %415 : vector<2x1x1xf32> to vector<2x1xf32>
    %417 = vector.shape_cast %360 : vector<2x1xf32> to vector<2x1x1xf32>
    tpu.vector_store %arg12[%c0_176, %c3_177, %c0_178], %417 {strides = array<i32>} : memref<2x8x1xf32, #tpu.memory_space<vmem>>, vector<2x1x1xf32>,
    %c0_179 = arith.constant 0 : index
    %c3_180 = arith.constant 3 : index
    %c0_181 = arith.constant 0 : index
    %418 = vector.load %arg13[%c0_179, %c3_180, %c0_181] : memref<2x8x1xf32, #tpu.memory_space<vmem>>, vector<2x1x1xf32>
    %419 = vector.shape_cast %418 : vector<2x1x1xf32> to vector<2x1xf32>
    %420 = vector.shape_cast %408 : vector<2x1xf32> to vector<2x1x1xf32>
    tpu.vector_store %arg13[%c0_179, %c3_180, %c0_181], %420 {strides = array<i32>} : memref<2x8x1xf32, #tpu.memory_space<vmem>>, vector<2x1x1xf32>,
    %c0_182 = arith.constant 0 : index
    %c0_183 = arith.constant 0 : index
    %421 = vector.load %arg16[%c0_182, %c0_183] : memref<2x128xf32, #tpu.memory_space<vmem>>, vector<2x32xf32>
    tpu.vector_store %arg16[%c0_182, %c0_183], %350 {strides = array<i32>} : memref<2x128xf32, #tpu.memory_space<vmem>>, vector<2x32xf32>,
    %422 = vector.broadcast %360 : vector<2x1xf32> to vector<2x32xf32>
    %423 = arith.mulf %422, %398 : vector<2x32xf32>
    %c0_184 = arith.constant 0 : index
    %c32_185 = arith.constant 32 : index
    %424 = vector.load %arg16[%c0_184, %c32_185] : memref<2x128xf32, #tpu.memory_space<vmem>>, vector<2x32xf32>
    tpu.vector_store %arg16[%c0_184, %c32_185], %423 {strides = array<i32>} : memref<2x128xf32, #tpu.memory_space<vmem>>, vector<2x32xf32>,
    %c0_186 = arith.constant 0 : index
    %c4 = arith.constant 4 : index
    %c0_187 = arith.constant 0 : index
    %425 = vector.load %arg2[%c0_186, %c4, %c0_187] : memref<2x8x4xf32, #tpu.memory_space<vmem>>, vector<2x1x4xf32>
    %426 = vector.shape_cast %425 : vector<2x1x4xf32> to vector<2x4xf32>
    %c0_188 = arith.constant 0 : index
    %c64_189 = arith.constant 64 : index
    %427 = vector.load %arg16[%c0_188, %c64_189] : memref<2x128xf32, #tpu.memory_space<vmem>>, vector<2x4xf32>
    tpu.vector_store %arg16[%c0_188, %c64_189], %426 {strides = array<i32>} : memref<2x128xf32, #tpu.memory_space<vmem>>, vector<2x4xf32>,
    %c0_190 = arith.constant 0 : index
    %c0_191 = arith.constant 0 : index
    %428 = vector.load %arg16[%c0_190, %c0_191] : memref<2x128xf32, #tpu.memory_space<vmem>>, vector<2x128xf32>
    %cst_192 = arith.constant dense<0.000000e+00> : vector<2x128xf32>
    %429 = tpu.matmul %428, %3, %cst_192 {dimension_numbers = #tpu.dot_dimension_numbers<[1], [0], [0], [1], [0, 0, 1, 1], [], []>, precision = #tpu.contract_precision<fp32>} : vector<2x128xf32>, vector<128x128xf32>, vector<2x128xf32> -> vector<2x128xf32>
    %430 = vector.broadcast %5 : vector<1x128xf32> to vector<2x128xf32>
    %431 = arith.addf %429, %430 : vector<2x128xf32>
    %432 = vector.extract_strided_slice %431 {offsets = [0, 0], sizes = [2, 96], strides = [1, 1]} : vector<2x128xf32> to vector<2x96xf32>
    %433 = arith.negf %432 : vector<2x96xf32>
    %434 = math.exp %433 : vector<2x96xf32>
    %cst_193 = arith.constant 1.000000e+00 : f32
    %435 = vector.broadcast %cst_193 : f32 to vector<2x96xf32>
    %436 = arith.addf %435, %434 : vector<2x96xf32>
    %437 = arith.divf %435, %436 : vector<2x96xf32>
    %438 = vector.extract_strided_slice %437 {offsets = [0, 0], sizes = [2, 32], strides = [1, 1]} : vector<2x96xf32> to vector<2x32xf32>
    %439 = vector.extract_strided_slice %437 {offsets = [0, 32], sizes = [2, 32], strides = [1, 1]} : vector<2x96xf32> to vector<2x32xf32>
    %440 = vector.extract_strided_slice %437 {offsets = [0, 64], sizes = [2, 32], strides = [1, 1]} : vector<2x96xf32> to vector<2x32xf32>
    %441 = vector.extract_strided_slice %431 {offsets = [0, 96], sizes = [2, 32], strides = [1, 1]} : vector<2x128xf32> to vector<2x32xf32>
    %442 = math.tanh %441 : vector<2x32xf32>
    %443 = arith.mulf %439, %442 : vector<2x32xf32>
    %cst_194 = arith.constant 1.000000e+00 : f32
    %444 = vector.broadcast %cst_194 : f32 to vector<2x1xf32>
    %445 = arith.subf %444, %360 : vector<2x1xf32>
    %446 = arith.mulf %438, %348 : vector<2x32xf32>
    %447 = vector.broadcast %445 : vector<2x1xf32> to vector<2x32xf32>
    %448 = arith.mulf %447, %446 : vector<2x32xf32>
    %449 = arith.addf %443, %448 : vector<2x32xf32>
    %450 = math.tanh %449 : vector<2x32xf32>
    %451 = arith.mulf %440, %450 : vector<2x32xf32>
    %452 = vector.broadcast %4 : vector<1x128xf32> to vector<2x128xf32>
    %453 = arith.mulf %428, %452 : vector<2x128xf32>
    %cst_195 = arith.constant dense<0.000000e+00> : vector<2xf32>
    %454 = vector.multi_reduction <add>, %453, %cst_195 [1] : vector<2x128xf32> to vector<2xf32>
    %455 = vector.shape_cast %454 : vector<2xf32> to vector<2x1xf32>
    %456 = vector.broadcast %9 : f32 to vector<2x1xf32>
    %457 = arith.addf %455, %456 : vector<2x1xf32>
    %cst_196 = arith.constant 0.000000e+00 : f32
    %458 = vector.broadcast %cst_196 : f32 to vector<2x1xf32>
    %459 = arith.cmpf ogt, %457, %458 : vector<2x1xf32>
    %460 = arith.extui %459 : vector<2x1xi1> to vector<2x1xi32>
    %461 = arith.sitofp %460 : vector<2x1xi32> to vector<2x1xf32>
    %462 = vector.broadcast %461 : vector<2x1xf32> to vector<2x32xf32>
    %463 = arith.mulf %462, %398 : vector<2x32xf32>
    %c0_197 = arith.constant 0 : index
    %c0_198 = arith.constant 0 : index
    %464 = vector.load %arg17[%c0_197, %c0_198] : memref<2x128xf32, #tpu.memory_space<vmem>>, vector<2x32xf32>
    tpu.vector_store %arg17[%c0_197, %c0_198], %463 {strides = array<i32>} : memref<2x128xf32, #tpu.memory_space<vmem>>, vector<2x32xf32>,
    %c0_199 = arith.constant 0 : index
    %c32_200 = arith.constant 32 : index
    %465 = vector.load %arg17[%c0_199, %c32_200] : memref<2x128xf32, #tpu.memory_space<vmem>>, vector<2x32xf32>
    tpu.vector_store %arg17[%c0_199, %c32_200], %451 {strides = array<i32>} : memref<2x128xf32, #tpu.memory_space<vmem>>, vector<2x32xf32>,
    %c0_201 = arith.constant 0 : index
    %c0_202 = arith.constant 0 : index
    %466 = vector.load %arg17[%c0_201, %c0_202] : memref<2x128xf32, #tpu.memory_space<vmem>>, vector<2x128xf32>
    %cst_203 = arith.constant dense<0.000000e+00> : vector<2x128xf32>
    %467 = tpu.matmul %466, %6, %cst_203 {dimension_numbers = #tpu.dot_dimension_numbers<[1], [0], [0], [1], [0, 0, 1, 1], [], []>, precision = #tpu.contract_precision<fp32>} : vector<2x128xf32>, vector<128x128xf32>, vector<2x128xf32> -> vector<2x128xf32>
    %468 = vector.broadcast %8 : vector<1x128xf32> to vector<2x128xf32>
    %469 = arith.addf %467, %468 : vector<2x128xf32>
    %470 = vector.extract_strided_slice %469 {offsets = [0, 0], sizes = [2, 96], strides = [1, 1]} : vector<2x128xf32> to vector<2x96xf32>
    %471 = arith.negf %470 : vector<2x96xf32>
    %472 = math.exp %471 : vector<2x96xf32>
    %cst_204 = arith.constant 1.000000e+00 : f32
    %473 = vector.broadcast %cst_204 : f32 to vector<2x96xf32>
    %474 = arith.addf %473, %472 : vector<2x96xf32>
    %475 = arith.divf %473, %474 : vector<2x96xf32>
    %476 = vector.extract_strided_slice %475 {offsets = [0, 0], sizes = [2, 32], strides = [1, 1]} : vector<2x96xf32> to vector<2x32xf32>
    %477 = vector.extract_strided_slice %475 {offsets = [0, 32], sizes = [2, 32], strides = [1, 1]} : vector<2x96xf32> to vector<2x32xf32>
    %478 = vector.extract_strided_slice %475 {offsets = [0, 64], sizes = [2, 32], strides = [1, 1]} : vector<2x96xf32> to vector<2x32xf32>
    %479 = vector.extract_strided_slice %469 {offsets = [0, 96], sizes = [2, 32], strides = [1, 1]} : vector<2x128xf32> to vector<2x32xf32>
    %480 = math.tanh %479 : vector<2x32xf32>
    %cst_205 = arith.constant 5.000000e-01 : f32
    %481 = vector.broadcast %cst_205 : f32 to vector<2x1xf32>
    %482 = arith.cmpf ogt, %408, %481 : vector<2x1xf32>
    %cst_206 = arith.constant 5.000000e-01 : f32
    %483 = vector.broadcast %cst_206 : f32 to vector<2x1xf32>
    %484 = arith.cmpf ogt, %461, %483 : vector<2x1xf32>
    %485 = arith.mulf %477, %480 : vector<2x32xf32>
    %486 = arith.mulf %476, %392 : vector<2x32xf32>
    %487 = arith.addf %486, %485 : vector<2x32xf32>
    %488 = vector.shape_cast %484 : vector<2x1xi1> to vector<2x1xi1>
    %489 = vector.broadcast %488 : vector<2x1xi1> to vector<2x32xi1>
    %490 = arith.select %489, %487, %392 : vector<2x32xi1>, vector<2x32xf32>
    %491 = vector.shape_cast %482 : vector<2x1xi1> to vector<2x1xi1>
    %492 = vector.broadcast %491 : vector<2x1xi1> to vector<2x32xi1>
    %493 = arith.select %492, %485, %490 : vector<2x32xi1>, vector<2x32xf32>
    %494 = arith.ori %482, %484 : vector<2x1xi1>
    %495 = math.tanh %493 : vector<2x32xf32>
    %496 = arith.mulf %478, %495 : vector<2x32xf32>
    %497 = vector.shape_cast %494 : vector<2x1xi1> to vector<2x1xi1>
    %498 = vector.broadcast %497 : vector<2x1xi1> to vector<2x32xi1>
    %499 = arith.select %498, %496, %398 : vector<2x32xi1>, vector<2x32xf32>
    %500 = vector.broadcast %7 : vector<1x128xf32> to vector<2x128xf32>
    %501 = arith.mulf %466, %500 : vector<2x128xf32>
    %cst_207 = arith.constant dense<0.000000e+00> : vector<2xf32>
    %502 = vector.multi_reduction <add>, %501, %cst_207 [1] : vector<2x128xf32> to vector<2xf32>
    %503 = vector.shape_cast %502 : vector<2xf32> to vector<2x1xf32>
    %504 = vector.broadcast %10 : f32 to vector<2x1xf32>
    %505 = arith.addf %503, %504 : vector<2x1xf32>
    %cst_208 = arith.constant 0.000000e+00 : f32
    %506 = vector.broadcast %cst_208 : f32 to vector<2x1xf32>
    %507 = arith.cmpf ogt, %505, %506 : vector<2x1xf32>
    %508 = arith.extui %507 : vector<2x1xi1> to vector<2x1xi32>
    %509 = arith.sitofp %508 : vector<2x1xi32> to vector<2x1xf32>
    %c0_209 = arith.constant 0 : index
    %c4_210 = arith.constant 4 : index
    %c0_211 = arith.constant 0 : index
    %510 = vector.load %arg10[%c0_209, %c4_210, %c0_211] : memref<2x8x32xf32, #tpu.memory_space<vmem>>, vector<2x1x32xf32>
    %511 = vector.shape_cast %510 : vector<2x1x32xf32> to vector<2x32xf32>
    %512 = vector.shape_cast %451 : vector<2x32xf32> to vector<2x1x32xf32>
    tpu.vector_store %arg10[%c0_209, %c4_210, %c0_211], %512 {strides = array<i32>} : memref<2x8x32xf32, #tpu.memory_space<vmem>>, vector<2x1x32xf32>,
    %c0_212 = arith.constant 0 : index
    %c4_213 = arith.constant 4 : index
    %c0_214 = arith.constant 0 : index
    %513 = vector.load %arg11[%c0_212, %c4_213, %c0_214] : memref<2x8x32xf32, #tpu.memory_space<vmem>>, vector<2x1x32xf32>
    %514 = vector.shape_cast %513 : vector<2x1x32xf32> to vector<2x32xf32>
    %515 = vector.shape_cast %499 : vector<2x32xf32> to vector<2x1x32xf32>
    tpu.vector_store %arg11[%c0_212, %c4_213, %c0_214], %515 {strides = array<i32>} : memref<2x8x32xf32, #tpu.memory_space<vmem>>, vector<2x1x32xf32>,
    %c0_215 = arith.constant 0 : index
    %c4_216 = arith.constant 4 : index
    %c0_217 = arith.constant 0 : index
    %516 = vector.load %arg12[%c0_215, %c4_216, %c0_217] : memref<2x8x1xf32, #tpu.memory_space<vmem>>, vector<2x1x1xf32>
    %517 = vector.shape_cast %516 : vector<2x1x1xf32> to vector<2x1xf32>
    %518 = vector.shape_cast %461 : vector<2x1xf32> to vector<2x1x1xf32>
    tpu.vector_store %arg12[%c0_215, %c4_216, %c0_217], %518 {strides = array<i32>} : memref<2x8x1xf32, #tpu.memory_space<vmem>>, vector<2x1x1xf32>,
    %c0_218 = arith.constant 0 : index
    %c4_219 = arith.constant 4 : index
    %c0_220 = arith.constant 0 : index
    %519 = vector.load %arg13[%c0_218, %c4_219, %c0_220] : memref<2x8x1xf32, #tpu.memory_space<vmem>>, vector<2x1x1xf32>
    %520 = vector.shape_cast %519 : vector<2x1x1xf32> to vector<2x1xf32>
    %521 = vector.shape_cast %509 : vector<2x1xf32> to vector<2x1x1xf32>
    tpu.vector_store %arg13[%c0_218, %c4_219, %c0_220], %521 {strides = array<i32>} : memref<2x8x1xf32, #tpu.memory_space<vmem>>, vector<2x1x1xf32>,
    %c0_221 = arith.constant 0 : index
    %c0_222 = arith.constant 0 : index
    %522 = vector.load %arg16[%c0_221, %c0_222] : memref<2x128xf32, #tpu.memory_space<vmem>>, vector<2x32xf32>
    tpu.vector_store %arg16[%c0_221, %c0_222], %451 {strides = array<i32>} : memref<2x128xf32, #tpu.memory_space<vmem>>, vector<2x32xf32>,
    %523 = vector.broadcast %461 : vector<2x1xf32> to vector<2x32xf32>
    %524 = arith.mulf %523, %499 : vector<2x32xf32>
    %c0_223 = arith.constant 0 : index
    %c32_224 = arith.constant 32 : index
    %525 = vector.load %arg16[%c0_223, %c32_224] : memref<2x128xf32, #tpu.memory_space<vmem>>, vector<2x32xf32>
    tpu.vector_store %arg16[%c0_223, %c32_224], %524 {strides = array<i32>} : memref<2x128xf32, #tpu.memory_space<vmem>>, vector<2x32xf32>,
    %c0_225 = arith.constant 0 : index
    %c5 = arith.constant 5 : index
    %c0_226 = arith.constant 0 : index
    %526 = vector.load %arg2[%c0_225, %c5, %c0_226] : memref<2x8x4xf32, #tpu.memory_space<vmem>>, vector<2x1x4xf32>
    %527 = vector.shape_cast %526 : vector<2x1x4xf32> to vector<2x4xf32>
    %c0_227 = arith.constant 0 : index
    %c64_228 = arith.constant 64 : index
    %528 = vector.load %arg16[%c0_227, %c64_228] : memref<2x128xf32, #tpu.memory_space<vmem>>, vector<2x4xf32>
    tpu.vector_store %arg16[%c0_227, %c64_228], %527 {strides = array<i32>} : memref<2x128xf32, #tpu.memory_space<vmem>>, vector<2x4xf32>,
    %c0_229 = arith.constant 0 : index
    %c0_230 = arith.constant 0 : index
    %529 = vector.load %arg16[%c0_229, %c0_230] : memref<2x128xf32, #tpu.memory_space<vmem>>, vector<2x128xf32>
    %cst_231 = arith.constant dense<0.000000e+00> : vector<2x128xf32>
    %530 = tpu.matmul %529, %3, %cst_231 {dimension_numbers = #tpu.dot_dimension_numbers<[1], [0], [0], [1], [0, 0, 1, 1], [], []>, precision = #tpu.contract_precision<fp32>} : vector<2x128xf32>, vector<128x128xf32>, vector<2x128xf32> -> vector<2x128xf32>
    %531 = vector.broadcast %5 : vector<1x128xf32> to vector<2x128xf32>
    %532 = arith.addf %530, %531 : vector<2x128xf32>
    %533 = vector.extract_strided_slice %532 {offsets = [0, 0], sizes = [2, 96], strides = [1, 1]} : vector<2x128xf32> to vector<2x96xf32>
    %534 = arith.negf %533 : vector<2x96xf32>
    %535 = math.exp %534 : vector<2x96xf32>
    %cst_232 = arith.constant 1.000000e+00 : f32
    %536 = vector.broadcast %cst_232 : f32 to vector<2x96xf32>
    %537 = arith.addf %536, %535 : vector<2x96xf32>
    %538 = arith.divf %536, %537 : vector<2x96xf32>
    %539 = vector.extract_strided_slice %538 {offsets = [0, 0], sizes = [2, 32], strides = [1, 1]} : vector<2x96xf32> to vector<2x32xf32>
    %540 = vector.extract_strided_slice %538 {offsets = [0, 32], sizes = [2, 32], strides = [1, 1]} : vector<2x96xf32> to vector<2x32xf32>
    %541 = vector.extract_strided_slice %538 {offsets = [0, 64], sizes = [2, 32], strides = [1, 1]} : vector<2x96xf32> to vector<2x32xf32>
    %542 = vector.extract_strided_slice %532 {offsets = [0, 96], sizes = [2, 32], strides = [1, 1]} : vector<2x128xf32> to vector<2x32xf32>
    %543 = math.tanh %542 : vector<2x32xf32>
    %544 = arith.mulf %540, %543 : vector<2x32xf32>
    %cst_233 = arith.constant 1.000000e+00 : f32
    %545 = vector.broadcast %cst_233 : f32 to vector<2x1xf32>
    %546 = arith.subf %545, %461 : vector<2x1xf32>
    %547 = arith.mulf %539, %449 : vector<2x32xf32>
    %548 = vector.broadcast %546 : vector<2x1xf32> to vector<2x32xf32>
    %549 = arith.mulf %548, %547 : vector<2x32xf32>
    %550 = arith.addf %544, %549 : vector<2x32xf32>
    %551 = math.tanh %550 : vector<2x32xf32>
    %552 = arith.mulf %541, %551 : vector<2x32xf32>
    %553 = vector.broadcast %4 : vector<1x128xf32> to vector<2x128xf32>
    %554 = arith.mulf %529, %553 : vector<2x128xf32>
    %cst_234 = arith.constant dense<0.000000e+00> : vector<2xf32>
    %555 = vector.multi_reduction <add>, %554, %cst_234 [1] : vector<2x128xf32> to vector<2xf32>
    %556 = vector.shape_cast %555 : vector<2xf32> to vector<2x1xf32>
    %557 = vector.broadcast %9 : f32 to vector<2x1xf32>
    %558 = arith.addf %556, %557 : vector<2x1xf32>
    %cst_235 = arith.constant 0.000000e+00 : f32
    %559 = vector.broadcast %cst_235 : f32 to vector<2x1xf32>
    %560 = arith.cmpf ogt, %558, %559 : vector<2x1xf32>
    %561 = arith.extui %560 : vector<2x1xi1> to vector<2x1xi32>
    %562 = arith.sitofp %561 : vector<2x1xi32> to vector<2x1xf32>
    %563 = vector.broadcast %562 : vector<2x1xf32> to vector<2x32xf32>
    %564 = arith.mulf %563, %499 : vector<2x32xf32>
    %c0_236 = arith.constant 0 : index
    %c0_237 = arith.constant 0 : index
    %565 = vector.load %arg17[%c0_236, %c0_237] : memref<2x128xf32, #tpu.memory_space<vmem>>, vector<2x32xf32>
    tpu.vector_store %arg17[%c0_236, %c0_237], %564 {strides = array<i32>} : memref<2x128xf32, #tpu.memory_space<vmem>>, vector<2x32xf32>,
    %c0_238 = arith.constant 0 : index
    %c32_239 = arith.constant 32 : index
    %566 = vector.load %arg17[%c0_238, %c32_239] : memref<2x128xf32, #tpu.memory_space<vmem>>, vector<2x32xf32>
    tpu.vector_store %arg17[%c0_238, %c32_239], %552 {strides = array<i32>} : memref<2x128xf32, #tpu.memory_space<vmem>>, vector<2x32xf32>,
    %c0_240 = arith.constant 0 : index
    %c0_241 = arith.constant 0 : index
    %567 = vector.load %arg17[%c0_240, %c0_241] : memref<2x128xf32, #tpu.memory_space<vmem>>, vector<2x128xf32>
    %cst_242 = arith.constant dense<0.000000e+00> : vector<2x128xf32>
    %568 = tpu.matmul %567, %6, %cst_242 {dimension_numbers = #tpu.dot_dimension_numbers<[1], [0], [0], [1], [0, 0, 1, 1], [], []>, precision = #tpu.contract_precision<fp32>} : vector<2x128xf32>, vector<128x128xf32>, vector<2x128xf32> -> vector<2x128xf32>
    %569 = vector.broadcast %8 : vector<1x128xf32> to vector<2x128xf32>
    %570 = arith.addf %568, %569 : vector<2x128xf32>
    %571 = vector.extract_strided_slice %570 {offsets = [0, 0], sizes = [2, 96], strides = [1, 1]} : vector<2x128xf32> to vector<2x96xf32>
    %572 = arith.negf %571 : vector<2x96xf32>
    %573 = math.exp %572 : vector<2x96xf32>
    %cst_243 = arith.constant 1.000000e+00 : f32
    %574 = vector.broadcast %cst_243 : f32 to vector<2x96xf32>
    %575 = arith.addf %574, %573 : vector<2x96xf32>
    %576 = arith.divf %574, %575 : vector<2x96xf32>
    %577 = vector.extract_strided_slice %576 {offsets = [0, 0], sizes = [2, 32], strides = [1, 1]} : vector<2x96xf32> to vector<2x32xf32>
    %578 = vector.extract_strided_slice %576 {offsets = [0, 32], sizes = [2, 32], strides = [1, 1]} : vector<2x96xf32> to vector<2x32xf32>
    %579 = vector.extract_strided_slice %576 {offsets = [0, 64], sizes = [2, 32], strides = [1, 1]} : vector<2x96xf32> to vector<2x32xf32>
    %580 = vector.extract_strided_slice %570 {offsets = [0, 96], sizes = [2, 32], strides = [1, 1]} : vector<2x128xf32> to vector<2x32xf32>
    %581 = math.tanh %580 : vector<2x32xf32>
    %cst_244 = arith.constant 5.000000e-01 : f32
    %582 = vector.broadcast %cst_244 : f32 to vector<2x1xf32>
    %583 = arith.cmpf ogt, %509, %582 : vector<2x1xf32>
    %cst_245 = arith.constant 5.000000e-01 : f32
    %584 = vector.broadcast %cst_245 : f32 to vector<2x1xf32>
    %585 = arith.cmpf ogt, %562, %584 : vector<2x1xf32>
    %586 = arith.mulf %578, %581 : vector<2x32xf32>
    %587 = arith.mulf %577, %493 : vector<2x32xf32>
    %588 = arith.addf %587, %586 : vector<2x32xf32>
    %589 = vector.shape_cast %585 : vector<2x1xi1> to vector<2x1xi1>
    %590 = vector.broadcast %589 : vector<2x1xi1> to vector<2x32xi1>
    %591 = arith.select %590, %588, %493 : vector<2x32xi1>, vector<2x32xf32>
    %592 = vector.shape_cast %583 : vector<2x1xi1> to vector<2x1xi1>
    %593 = vector.broadcast %592 : vector<2x1xi1> to vector<2x32xi1>
    %594 = arith.select %593, %586, %591 : vector<2x32xi1>, vector<2x32xf32>
    %595 = arith.ori %583, %585 : vector<2x1xi1>
    %596 = math.tanh %594 : vector<2x32xf32>
    %597 = arith.mulf %579, %596 : vector<2x32xf32>
    %598 = vector.shape_cast %595 : vector<2x1xi1> to vector<2x1xi1>
    %599 = vector.broadcast %598 : vector<2x1xi1> to vector<2x32xi1>
    %600 = arith.select %599, %597, %499 : vector<2x32xi1>, vector<2x32xf32>
    %601 = vector.broadcast %7 : vector<1x128xf32> to vector<2x128xf32>
    %602 = arith.mulf %567, %601 : vector<2x128xf32>
    %cst_246 = arith.constant dense<0.000000e+00> : vector<2xf32>
    %603 = vector.multi_reduction <add>, %602, %cst_246 [1] : vector<2x128xf32> to vector<2xf32>
    %604 = vector.shape_cast %603 : vector<2xf32> to vector<2x1xf32>
    %605 = vector.broadcast %10 : f32 to vector<2x1xf32>
    %606 = arith.addf %604, %605 : vector<2x1xf32>
    %cst_247 = arith.constant 0.000000e+00 : f32
    %607 = vector.broadcast %cst_247 : f32 to vector<2x1xf32>
    %608 = arith.cmpf ogt, %606, %607 : vector<2x1xf32>
    %609 = arith.extui %608 : vector<2x1xi1> to vector<2x1xi32>
    %610 = arith.sitofp %609 : vector<2x1xi32> to vector<2x1xf32>
    %c0_248 = arith.constant 0 : index
    %c5_249 = arith.constant 5 : index
    %c0_250 = arith.constant 0 : index
    %611 = vector.load %arg10[%c0_248, %c5_249, %c0_250] : memref<2x8x32xf32, #tpu.memory_space<vmem>>, vector<2x1x32xf32>
    %612 = vector.shape_cast %611 : vector<2x1x32xf32> to vector<2x32xf32>
    %613 = vector.shape_cast %552 : vector<2x32xf32> to vector<2x1x32xf32>
    tpu.vector_store %arg10[%c0_248, %c5_249, %c0_250], %613 {strides = array<i32>} : memref<2x8x32xf32, #tpu.memory_space<vmem>>, vector<2x1x32xf32>,
    %c0_251 = arith.constant 0 : index
    %c5_252 = arith.constant 5 : index
    %c0_253 = arith.constant 0 : index
    %614 = vector.load %arg11[%c0_251, %c5_252, %c0_253] : memref<2x8x32xf32, #tpu.memory_space<vmem>>, vector<2x1x32xf32>
    %615 = vector.shape_cast %614 : vector<2x1x32xf32> to vector<2x32xf32>
    %616 = vector.shape_cast %600 : vector<2x32xf32> to vector<2x1x32xf32>
    tpu.vector_store %arg11[%c0_251, %c5_252, %c0_253], %616 {strides = array<i32>} : memref<2x8x32xf32, #tpu.memory_space<vmem>>, vector<2x1x32xf32>,
    %c0_254 = arith.constant 0 : index
    %c5_255 = arith.constant 5 : index
    %c0_256 = arith.constant 0 : index
    %617 = vector.load %arg12[%c0_254, %c5_255, %c0_256] : memref<2x8x1xf32, #tpu.memory_space<vmem>>, vector<2x1x1xf32>
    %618 = vector.shape_cast %617 : vector<2x1x1xf32> to vector<2x1xf32>
    %619 = vector.shape_cast %562 : vector<2x1xf32> to vector<2x1x1xf32>
    tpu.vector_store %arg12[%c0_254, %c5_255, %c0_256], %619 {strides = array<i32>} : memref<2x8x1xf32, #tpu.memory_space<vmem>>, vector<2x1x1xf32>,
    %c0_257 = arith.constant 0 : index
    %c5_258 = arith.constant 5 : index
    %c0_259 = arith.constant 0 : index
    %620 = vector.load %arg13[%c0_257, %c5_258, %c0_259] : memref<2x8x1xf32, #tpu.memory_space<vmem>>, vector<2x1x1xf32>
    %621 = vector.shape_cast %620 : vector<2x1x1xf32> to vector<2x1xf32>
    %622 = vector.shape_cast %610 : vector<2x1xf32> to vector<2x1x1xf32>
    tpu.vector_store %arg13[%c0_257, %c5_258, %c0_259], %622 {strides = array<i32>} : memref<2x8x1xf32, #tpu.memory_space<vmem>>, vector<2x1x1xf32>,
    %c0_260 = arith.constant 0 : index
    %c0_261 = arith.constant 0 : index
    %623 = vector.load %arg16[%c0_260, %c0_261] : memref<2x128xf32, #tpu.memory_space<vmem>>, vector<2x32xf32>
    tpu.vector_store %arg16[%c0_260, %c0_261], %552 {strides = array<i32>} : memref<2x128xf32, #tpu.memory_space<vmem>>, vector<2x32xf32>,
    %624 = vector.broadcast %562 : vector<2x1xf32> to vector<2x32xf32>
    %625 = arith.mulf %624, %600 : vector<2x32xf32>
    %c0_262 = arith.constant 0 : index
    %c32_263 = arith.constant 32 : index
    %626 = vector.load %arg16[%c0_262, %c32_263] : memref<2x128xf32, #tpu.memory_space<vmem>>, vector<2x32xf32>
    tpu.vector_store %arg16[%c0_262, %c32_263], %625 {strides = array<i32>} : memref<2x128xf32, #tpu.memory_space<vmem>>, vector<2x32xf32>,
    %c0_264 = arith.constant 0 : index
    %c6 = arith.constant 6 : index
    %c0_265 = arith.constant 0 : index
    %627 = vector.load %arg2[%c0_264, %c6, %c0_265] : memref<2x8x4xf32, #tpu.memory_space<vmem>>, vector<2x1x4xf32>
    %628 = vector.shape_cast %627 : vector<2x1x4xf32> to vector<2x4xf32>
    %c0_266 = arith.constant 0 : index
    %c64_267 = arith.constant 64 : index
    %629 = vector.load %arg16[%c0_266, %c64_267] : memref<2x128xf32, #tpu.memory_space<vmem>>, vector<2x4xf32>
    tpu.vector_store %arg16[%c0_266, %c64_267], %628 {strides = array<i32>} : memref<2x128xf32, #tpu.memory_space<vmem>>, vector<2x4xf32>,
    %c0_268 = arith.constant 0 : index
    %c0_269 = arith.constant 0 : index
    %630 = vector.load %arg16[%c0_268, %c0_269] : memref<2x128xf32, #tpu.memory_space<vmem>>, vector<2x128xf32>
    %cst_270 = arith.constant dense<0.000000e+00> : vector<2x128xf32>
    %631 = tpu.matmul %630, %3, %cst_270 {dimension_numbers = #tpu.dot_dimension_numbers<[1], [0], [0], [1], [0, 0, 1, 1], [], []>, precision = #tpu.contract_precision<fp32>} : vector<2x128xf32>, vector<128x128xf32>, vector<2x128xf32> -> vector<2x128xf32>
    %632 = vector.broadcast %5 : vector<1x128xf32> to vector<2x128xf32>
    %633 = arith.addf %631, %632 : vector<2x128xf32>
    %634 = vector.extract_strided_slice %633 {offsets = [0, 0], sizes = [2, 96], strides = [1, 1]} : vector<2x128xf32> to vector<2x96xf32>
    %635 = arith.negf %634 : vector<2x96xf32>
    %636 = math.exp %635 : vector<2x96xf32>
    %cst_271 = arith.constant 1.000000e+00 : f32
    %637 = vector.broadcast %cst_271 : f32 to vector<2x96xf32>
    %638 = arith.addf %637, %636 : vector<2x96xf32>
    %639 = arith.divf %637, %638 : vector<2x96xf32>
    %640 = vector.extract_strided_slice %639 {offsets = [0, 0], sizes = [2, 32], strides = [1, 1]} : vector<2x96xf32> to vector<2x32xf32>
    %641 = vector.extract_strided_slice %639 {offsets = [0, 32], sizes = [2, 32], strides = [1, 1]} : vector<2x96xf32> to vector<2x32xf32>
    %642 = vector.extract_strided_slice %639 {offsets = [0, 64], sizes = [2, 32], strides = [1, 1]} : vector<2x96xf32> to vector<2x32xf32>
    %643 = vector.extract_strided_slice %633 {offsets = [0, 96], sizes = [2, 32], strides = [1, 1]} : vector<2x128xf32> to vector<2x32xf32>
    %644 = math.tanh %643 : vector<2x32xf32>
    %645 = arith.mulf %641, %644 : vector<2x32xf32>
    %cst_272 = arith.constant 1.000000e+00 : f32
    %646 = vector.broadcast %cst_272 : f32 to vector<2x1xf32>
    %647 = arith.subf %646, %562 : vector<2x1xf32>
    %648 = arith.mulf %640, %550 : vector<2x32xf32>
    %649 = vector.broadcast %647 : vector<2x1xf32> to vector<2x32xf32>
    %650 = arith.mulf %649, %648 : vector<2x32xf32>
    %651 = arith.addf %645, %650 : vector<2x32xf32>
    %652 = math.tanh %651 : vector<2x32xf32>
    %653 = arith.mulf %642, %652 : vector<2x32xf32>
    %654 = vector.broadcast %4 : vector<1x128xf32> to vector<2x128xf32>
    %655 = arith.mulf %630, %654 : vector<2x128xf32>
    %cst_273 = arith.constant dense<0.000000e+00> : vector<2xf32>
    %656 = vector.multi_reduction <add>, %655, %cst_273 [1] : vector<2x128xf32> to vector<2xf32>
    %657 = vector.shape_cast %656 : vector<2xf32> to vector<2x1xf32>
    %658 = vector.broadcast %9 : f32 to vector<2x1xf32>
    %659 = arith.addf %657, %658 : vector<2x1xf32>
    %cst_274 = arith.constant 0.000000e+00 : f32
    %660 = vector.broadcast %cst_274 : f32 to vector<2x1xf32>
    %661 = arith.cmpf ogt, %659, %660 : vector<2x1xf32>
    %662 = arith.extui %661 : vector<2x1xi1> to vector<2x1xi32>
    %663 = arith.sitofp %662 : vector<2x1xi32> to vector<2x1xf32>
    %664 = vector.broadcast %663 : vector<2x1xf32> to vector<2x32xf32>
    %665 = arith.mulf %664, %600 : vector<2x32xf32>
    %c0_275 = arith.constant 0 : index
    %c0_276 = arith.constant 0 : index
    %666 = vector.load %arg17[%c0_275, %c0_276] : memref<2x128xf32, #tpu.memory_space<vmem>>, vector<2x32xf32>
    tpu.vector_store %arg17[%c0_275, %c0_276], %665 {strides = array<i32>} : memref<2x128xf32, #tpu.memory_space<vmem>>, vector<2x32xf32>,
    %c0_277 = arith.constant 0 : index
    %c32_278 = arith.constant 32 : index
    %667 = vector.load %arg17[%c0_277, %c32_278] : memref<2x128xf32, #tpu.memory_space<vmem>>, vector<2x32xf32>
    tpu.vector_store %arg17[%c0_277, %c32_278], %653 {strides = array<i32>} : memref<2x128xf32, #tpu.memory_space<vmem>>, vector<2x32xf32>,
    %c0_279 = arith.constant 0 : index
    %c0_280 = arith.constant 0 : index
    %668 = vector.load %arg17[%c0_279, %c0_280] : memref<2x128xf32, #tpu.memory_space<vmem>>, vector<2x128xf32>
    %cst_281 = arith.constant dense<0.000000e+00> : vector<2x128xf32>
    %669 = tpu.matmul %668, %6, %cst_281 {dimension_numbers = #tpu.dot_dimension_numbers<[1], [0], [0], [1], [0, 0, 1, 1], [], []>, precision = #tpu.contract_precision<fp32>} : vector<2x128xf32>, vector<128x128xf32>, vector<2x128xf32> -> vector<2x128xf32>
    %670 = vector.broadcast %8 : vector<1x128xf32> to vector<2x128xf32>
    %671 = arith.addf %669, %670 : vector<2x128xf32>
    %672 = vector.extract_strided_slice %671 {offsets = [0, 0], sizes = [2, 96], strides = [1, 1]} : vector<2x128xf32> to vector<2x96xf32>
    %673 = arith.negf %672 : vector<2x96xf32>
    %674 = math.exp %673 : vector<2x96xf32>
    %cst_282 = arith.constant 1.000000e+00 : f32
    %675 = vector.broadcast %cst_282 : f32 to vector<2x96xf32>
    %676 = arith.addf %675, %674 : vector<2x96xf32>
    %677 = arith.divf %675, %676 : vector<2x96xf32>
    %678 = vector.extract_strided_slice %677 {offsets = [0, 0], sizes = [2, 32], strides = [1, 1]} : vector<2x96xf32> to vector<2x32xf32>
    %679 = vector.extract_strided_slice %677 {offsets = [0, 32], sizes = [2, 32], strides = [1, 1]} : vector<2x96xf32> to vector<2x32xf32>
    %680 = vector.extract_strided_slice %677 {offsets = [0, 64], sizes = [2, 32], strides = [1, 1]} : vector<2x96xf32> to vector<2x32xf32>
    %681 = vector.extract_strided_slice %671 {offsets = [0, 96], sizes = [2, 32], strides = [1, 1]} : vector<2x128xf32> to vector<2x32xf32>
    %682 = math.tanh %681 : vector<2x32xf32>
    %cst_283 = arith.constant 5.000000e-01 : f32
    %683 = vector.broadcast %cst_283 : f32 to vector<2x1xf32>
    %684 = arith.cmpf ogt, %610, %683 : vector<2x1xf32>
    %cst_284 = arith.constant 5.000000e-01 : f32
    %685 = vector.broadcast %cst_284 : f32 to vector<2x1xf32>
    %686 = arith.cmpf ogt, %663, %685 : vector<2x1xf32>
    %687 = arith.mulf %679, %682 : vector<2x32xf32>
    %688 = arith.mulf %678, %594 : vector<2x32xf32>
    %689 = arith.addf %688, %687 : vector<2x32xf32>
    %690 = vector.shape_cast %686 : vector<2x1xi1> to vector<2x1xi1>
    %691 = vector.broadcast %690 : vector<2x1xi1> to vector<2x32xi1>
    %692 = arith.select %691, %689, %594 : vector<2x32xi1>, vector<2x32xf32>
    %693 = vector.shape_cast %684 : vector<2x1xi1> to vector<2x1xi1>
    %694 = vector.broadcast %693 : vector<2x1xi1> to vector<2x32xi1>
    %695 = arith.select %694, %687, %692 : vector<2x32xi1>, vector<2x32xf32>
    %696 = arith.ori %684, %686 : vector<2x1xi1>
    %697 = math.tanh %695 : vector<2x32xf32>
    %698 = arith.mulf %680, %697 : vector<2x32xf32>
    %699 = vector.shape_cast %696 : vector<2x1xi1> to vector<2x1xi1>
    %700 = vector.broadcast %699 : vector<2x1xi1> to vector<2x32xi1>
    %701 = arith.select %700, %698, %600 : vector<2x32xi1>, vector<2x32xf32>
    %702 = vector.broadcast %7 : vector<1x128xf32> to vector<2x128xf32>
    %703 = arith.mulf %668, %702 : vector<2x128xf32>
    %cst_285 = arith.constant dense<0.000000e+00> : vector<2xf32>
    %704 = vector.multi_reduction <add>, %703, %cst_285 [1] : vector<2x128xf32> to vector<2xf32>
    %705 = vector.shape_cast %704 : vector<2xf32> to vector<2x1xf32>
    %706 = vector.broadcast %10 : f32 to vector<2x1xf32>
    %707 = arith.addf %705, %706 : vector<2x1xf32>
    %cst_286 = arith.constant 0.000000e+00 : f32
    %708 = vector.broadcast %cst_286 : f32 to vector<2x1xf32>
    %709 = arith.cmpf ogt, %707, %708 : vector<2x1xf32>
    %710 = arith.extui %709 : vector<2x1xi1> to vector<2x1xi32>
    %711 = arith.sitofp %710 : vector<2x1xi32> to vector<2x1xf32>
    %c0_287 = arith.constant 0 : index
    %c6_288 = arith.constant 6 : index
    %c0_289 = arith.constant 0 : index
    %712 = vector.load %arg10[%c0_287, %c6_288, %c0_289] : memref<2x8x32xf32, #tpu.memory_space<vmem>>, vector<2x1x32xf32>
    %713 = vector.shape_cast %712 : vector<2x1x32xf32> to vector<2x32xf32>
    %714 = vector.shape_cast %653 : vector<2x32xf32> to vector<2x1x32xf32>
    tpu.vector_store %arg10[%c0_287, %c6_288, %c0_289], %714 {strides = array<i32>} : memref<2x8x32xf32, #tpu.memory_space<vmem>>, vector<2x1x32xf32>,
    %c0_290 = arith.constant 0 : index
    %c6_291 = arith.constant 6 : index
    %c0_292 = arith.constant 0 : index
    %715 = vector.load %arg11[%c0_290, %c6_291, %c0_292] : memref<2x8x32xf32, #tpu.memory_space<vmem>>, vector<2x1x32xf32>
    %716 = vector.shape_cast %715 : vector<2x1x32xf32> to vector<2x32xf32>
    %717 = vector.shape_cast %701 : vector<2x32xf32> to vector<2x1x32xf32>
    tpu.vector_store %arg11[%c0_290, %c6_291, %c0_292], %717 {strides = array<i32>} : memref<2x8x32xf32, #tpu.memory_space<vmem>>, vector<2x1x32xf32>,
    %c0_293 = arith.constant 0 : index
    %c6_294 = arith.constant 6 : index
    %c0_295 = arith.constant 0 : index
    %718 = vector.load %arg12[%c0_293, %c6_294, %c0_295] : memref<2x8x1xf32, #tpu.memory_space<vmem>>, vector<2x1x1xf32>
    %719 = vector.shape_cast %718 : vector<2x1x1xf32> to vector<2x1xf32>
    %720 = vector.shape_cast %663 : vector<2x1xf32> to vector<2x1x1xf32>
    tpu.vector_store %arg12[%c0_293, %c6_294, %c0_295], %720 {strides = array<i32>} : memref<2x8x1xf32, #tpu.memory_space<vmem>>, vector<2x1x1xf32>,
    %c0_296 = arith.constant 0 : index
    %c6_297 = arith.constant 6 : index
    %c0_298 = arith.constant 0 : index
    %721 = vector.load %arg13[%c0_296, %c6_297, %c0_298] : memref<2x8x1xf32, #tpu.memory_space<vmem>>, vector<2x1x1xf32>
    %722 = vector.shape_cast %721 : vector<2x1x1xf32> to vector<2x1xf32>
    %723 = vector.shape_cast %711 : vector<2x1xf32> to vector<2x1x1xf32>
    tpu.vector_store %arg13[%c0_296, %c6_297, %c0_298], %723 {strides = array<i32>} : memref<2x8x1xf32, #tpu.memory_space<vmem>>, vector<2x1x1xf32>,
    %c0_299 = arith.constant 0 : index
    %c0_300 = arith.constant 0 : index
    %724 = vector.load %arg16[%c0_299, %c0_300] : memref<2x128xf32, #tpu.memory_space<vmem>>, vector<2x32xf32>
    tpu.vector_store %arg16[%c0_299, %c0_300], %653 {strides = array<i32>} : memref<2x128xf32, #tpu.memory_space<vmem>>, vector<2x32xf32>,
    %725 = vector.broadcast %663 : vector<2x1xf32> to vector<2x32xf32>
    %726 = arith.mulf %725, %701 : vector<2x32xf32>
    %c0_301 = arith.constant 0 : index
    %c32_302 = arith.constant 32 : index
    %727 = vector.load %arg16[%c0_301, %c32_302] : memref<2x128xf32, #tpu.memory_space<vmem>>, vector<2x32xf32>
    tpu.vector_store %arg16[%c0_301, %c32_302], %726 {strides = array<i32>} : memref<2x128xf32, #tpu.memory_space<vmem>>, vector<2x32xf32>,
    %c0_303 = arith.constant 0 : index
    %c7 = arith.constant 7 : index
    %c0_304 = arith.constant 0 : index
    %728 = vector.load %arg2[%c0_303, %c7, %c0_304] : memref<2x8x4xf32, #tpu.memory_space<vmem>>, vector<2x1x4xf32>
    %729 = vector.shape_cast %728 : vector<2x1x4xf32> to vector<2x4xf32>
    %c0_305 = arith.constant 0 : index
    %c64_306 = arith.constant 64 : index
    %730 = vector.load %arg16[%c0_305, %c64_306] : memref<2x128xf32, #tpu.memory_space<vmem>>, vector<2x4xf32>
    tpu.vector_store %arg16[%c0_305, %c64_306], %729 {strides = array<i32>} : memref<2x128xf32, #tpu.memory_space<vmem>>, vector<2x4xf32>,
    %c0_307 = arith.constant 0 : index
    %c0_308 = arith.constant 0 : index
    %731 = vector.load %arg16[%c0_307, %c0_308] : memref<2x128xf32, #tpu.memory_space<vmem>>, vector<2x128xf32>
    %cst_309 = arith.constant dense<0.000000e+00> : vector<2x128xf32>
    %732 = tpu.matmul %731, %3, %cst_309 {dimension_numbers = #tpu.dot_dimension_numbers<[1], [0], [0], [1], [0, 0, 1, 1], [], []>, precision = #tpu.contract_precision<fp32>} : vector<2x128xf32>, vector<128x128xf32>, vector<2x128xf32> -> vector<2x128xf32>
    %733 = vector.broadcast %5 : vector<1x128xf32> to vector<2x128xf32>
    %734 = arith.addf %732, %733 : vector<2x128xf32>
    %735 = vector.extract_strided_slice %734 {offsets = [0, 0], sizes = [2, 96], strides = [1, 1]} : vector<2x128xf32> to vector<2x96xf32>
    %736 = arith.negf %735 : vector<2x96xf32>
    %737 = math.exp %736 : vector<2x96xf32>
    %cst_310 = arith.constant 1.000000e+00 : f32
    %738 = vector.broadcast %cst_310 : f32 to vector<2x96xf32>
    %739 = arith.addf %738, %737 : vector<2x96xf32>
    %740 = arith.divf %738, %739 : vector<2x96xf32>
    %741 = vector.extract_strided_slice %740 {offsets = [0, 0], sizes = [2, 32], strides = [1, 1]} : vector<2x96xf32> to vector<2x32xf32>
    %742 = vector.extract_strided_slice %740 {offsets = [0, 32], sizes = [2, 32], strides = [1, 1]} : vector<2x96xf32> to vector<2x32xf32>
    %743 = vector.extract_strided_slice %740 {offsets = [0, 64], sizes = [2, 32], strides = [1, 1]} : vector<2x96xf32> to vector<2x32xf32>
    %744 = vector.extract_strided_slice %734 {offsets = [0, 96], sizes = [2, 32], strides = [1, 1]} : vector<2x128xf32> to vector<2x32xf32>
    %745 = math.tanh %744 : vector<2x32xf32>
    %746 = arith.mulf %742, %745 : vector<2x32xf32>
    %cst_311 = arith.constant 1.000000e+00 : f32
    %747 = vector.broadcast %cst_311 : f32 to vector<2x1xf32>
    %748 = arith.subf %747, %663 : vector<2x1xf32>
    %749 = arith.mulf %741, %651 : vector<2x32xf32>
    %750 = vector.broadcast %748 : vector<2x1xf32> to vector<2x32xf32>
    %751 = arith.mulf %750, %749 : vector<2x32xf32>
    %752 = arith.addf %746, %751 : vector<2x32xf32>
    %753 = math.tanh %752 : vector<2x32xf32>
    %754 = arith.mulf %743, %753 : vector<2x32xf32>
    %755 = vector.broadcast %4 : vector<1x128xf32> to vector<2x128xf32>
    %756 = arith.mulf %731, %755 : vector<2x128xf32>
    %cst_312 = arith.constant dense<0.000000e+00> : vector<2xf32>
    %757 = vector.multi_reduction <add>, %756, %cst_312 [1] : vector<2x128xf32> to vector<2xf32>
    %758 = vector.shape_cast %757 : vector<2xf32> to vector<2x1xf32>
    %759 = vector.broadcast %9 : f32 to vector<2x1xf32>
    %760 = arith.addf %758, %759 : vector<2x1xf32>
    %cst_313 = arith.constant 0.000000e+00 : f32
    %761 = vector.broadcast %cst_313 : f32 to vector<2x1xf32>
    %762 = arith.cmpf ogt, %760, %761 : vector<2x1xf32>
    %763 = arith.extui %762 : vector<2x1xi1> to vector<2x1xi32>
    %764 = arith.sitofp %763 : vector<2x1xi32> to vector<2x1xf32>
    %765 = vector.broadcast %764 : vector<2x1xf32> to vector<2x32xf32>
    %766 = arith.mulf %765, %701 : vector<2x32xf32>
    %c0_314 = arith.constant 0 : index
    %c0_315 = arith.constant 0 : index
    %767 = vector.load %arg17[%c0_314, %c0_315] : memref<2x128xf32, #tpu.memory_space<vmem>>, vector<2x32xf32>
    tpu.vector_store %arg17[%c0_314, %c0_315], %766 {strides = array<i32>} : memref<2x128xf32, #tpu.memory_space<vmem>>, vector<2x32xf32>,
    %c0_316 = arith.constant 0 : index
    %c32_317 = arith.constant 32 : index
    %768 = vector.load %arg17[%c0_316, %c32_317] : memref<2x128xf32, #tpu.memory_space<vmem>>, vector<2x32xf32>
    tpu.vector_store %arg17[%c0_316, %c32_317], %754 {strides = array<i32>} : memref<2x128xf32, #tpu.memory_space<vmem>>, vector<2x32xf32>,
    %c0_318 = arith.constant 0 : index
    %c0_319 = arith.constant 0 : index
    %769 = vector.load %arg17[%c0_318, %c0_319] : memref<2x128xf32, #tpu.memory_space<vmem>>, vector<2x128xf32>
    %cst_320 = arith.constant dense<0.000000e+00> : vector<2x128xf32>
    %770 = tpu.matmul %769, %6, %cst_320 {dimension_numbers = #tpu.dot_dimension_numbers<[1], [0], [0], [1], [0, 0, 1, 1], [], []>, precision = #tpu.contract_precision<fp32>} : vector<2x128xf32>, vector<128x128xf32>, vector<2x128xf32> -> vector<2x128xf32>
    %771 = vector.broadcast %8 : vector<1x128xf32> to vector<2x128xf32>
    %772 = arith.addf %770, %771 : vector<2x128xf32>
    %773 = vector.extract_strided_slice %772 {offsets = [0, 0], sizes = [2, 96], strides = [1, 1]} : vector<2x128xf32> to vector<2x96xf32>
    %774 = arith.negf %773 : vector<2x96xf32>
    %775 = math.exp %774 : vector<2x96xf32>
    %cst_321 = arith.constant 1.000000e+00 : f32
    %776 = vector.broadcast %cst_321 : f32 to vector<2x96xf32>
    %777 = arith.addf %776, %775 : vector<2x96xf32>
    %778 = arith.divf %776, %777 : vector<2x96xf32>
    %779 = vector.extract_strided_slice %778 {offsets = [0, 0], sizes = [2, 32], strides = [1, 1]} : vector<2x96xf32> to vector<2x32xf32>
    %780 = vector.extract_strided_slice %778 {offsets = [0, 32], sizes = [2, 32], strides = [1, 1]} : vector<2x96xf32> to vector<2x32xf32>
    %781 = vector.extract_strided_slice %778 {offsets = [0, 64], sizes = [2, 32], strides = [1, 1]} : vector<2x96xf32> to vector<2x32xf32>
    %782 = vector.extract_strided_slice %772 {offsets = [0, 96], sizes = [2, 32], strides = [1, 1]} : vector<2x128xf32> to vector<2x32xf32>
    %783 = math.tanh %782 : vector<2x32xf32>
    %cst_322 = arith.constant 5.000000e-01 : f32
    %784 = vector.broadcast %cst_322 : f32 to vector<2x1xf32>
    %785 = arith.cmpf ogt, %711, %784 : vector<2x1xf32>
    %cst_323 = arith.constant 5.000000e-01 : f32
    %786 = vector.broadcast %cst_323 : f32 to vector<2x1xf32>
    %787 = arith.cmpf ogt, %764, %786 : vector<2x1xf32>
    %788 = arith.mulf %780, %783 : vector<2x32xf32>
    %789 = arith.mulf %779, %695 : vector<2x32xf32>
    %790 = arith.addf %789, %788 : vector<2x32xf32>
    %791 = vector.shape_cast %787 : vector<2x1xi1> to vector<2x1xi1>
    %792 = vector.broadcast %791 : vector<2x1xi1> to vector<2x32xi1>
    %793 = arith.select %792, %790, %695 : vector<2x32xi1>, vector<2x32xf32>
    %794 = vector.shape_cast %785 : vector<2x1xi1> to vector<2x1xi1>
    %795 = vector.broadcast %794 : vector<2x1xi1> to vector<2x32xi1>
    %796 = arith.select %795, %788, %793 : vector<2x32xi1>, vector<2x32xf32>
    %797 = arith.ori %785, %787 : vector<2x1xi1>
    %798 = math.tanh %796 : vector<2x32xf32>
    %799 = arith.mulf %781, %798 : vector<2x32xf32>
    %800 = vector.shape_cast %797 : vector<2x1xi1> to vector<2x1xi1>
    %801 = vector.broadcast %800 : vector<2x1xi1> to vector<2x32xi1>
    %802 = arith.select %801, %799, %701 : vector<2x32xi1>, vector<2x32xf32>
    %803 = vector.broadcast %7 : vector<1x128xf32> to vector<2x128xf32>
    %804 = arith.mulf %769, %803 : vector<2x128xf32>
    %cst_324 = arith.constant dense<0.000000e+00> : vector<2xf32>
    %805 = vector.multi_reduction <add>, %804, %cst_324 [1] : vector<2x128xf32> to vector<2xf32>
    %806 = vector.shape_cast %805 : vector<2xf32> to vector<2x1xf32>
    %807 = vector.broadcast %10 : f32 to vector<2x1xf32>
    %808 = arith.addf %806, %807 : vector<2x1xf32>
    %cst_325 = arith.constant 0.000000e+00 : f32
    %809 = vector.broadcast %cst_325 : f32 to vector<2x1xf32>
    %810 = arith.cmpf ogt, %808, %809 : vector<2x1xf32>
    %811 = arith.extui %810 : vector<2x1xi1> to vector<2x1xi32>
    %812 = arith.sitofp %811 : vector<2x1xi32> to vector<2x1xf32>
    %c0_326 = arith.constant 0 : index
    %c7_327 = arith.constant 7 : index
    %c0_328 = arith.constant 0 : index
    %813 = vector.load %arg10[%c0_326, %c7_327, %c0_328] : memref<2x8x32xf32, #tpu.memory_space<vmem>>, vector<2x1x32xf32>
    %814 = vector.shape_cast %813 : vector<2x1x32xf32> to vector<2x32xf32>
    %815 = vector.shape_cast %754 : vector<2x32xf32> to vector<2x1x32xf32>
    tpu.vector_store %arg10[%c0_326, %c7_327, %c0_328], %815 {strides = array<i32>} : memref<2x8x32xf32, #tpu.memory_space<vmem>>, vector<2x1x32xf32>,
    %c0_329 = arith.constant 0 : index
    %c7_330 = arith.constant 7 : index
    %c0_331 = arith.constant 0 : index
    %816 = vector.load %arg11[%c0_329, %c7_330, %c0_331] : memref<2x8x32xf32, #tpu.memory_space<vmem>>, vector<2x1x32xf32>
    %817 = vector.shape_cast %816 : vector<2x1x32xf32> to vector<2x32xf32>
    %818 = vector.shape_cast %802 : vector<2x32xf32> to vector<2x1x32xf32>
    tpu.vector_store %arg11[%c0_329, %c7_330, %c0_331], %818 {strides = array<i32>} : memref<2x8x32xf32, #tpu.memory_space<vmem>>, vector<2x1x32xf32>,
    %c0_332 = arith.constant 0 : index
    %c7_333 = arith.constant 7 : index
    %c0_334 = arith.constant 0 : index
    %819 = vector.load %arg12[%c0_332, %c7_333, %c0_334] : memref<2x8x1xf32, #tpu.memory_space<vmem>>, vector<2x1x1xf32>
    %820 = vector.shape_cast %819 : vector<2x1x1xf32> to vector<2x1xf32>
    %821 = vector.shape_cast %764 : vector<2x1xf32> to vector<2x1x1xf32>
    tpu.vector_store %arg12[%c0_332, %c7_333, %c0_334], %821 {strides = array<i32>} : memref<2x8x1xf32, #tpu.memory_space<vmem>>, vector<2x1x1xf32>,
    %c0_335 = arith.constant 0 : index
    %c7_336 = arith.constant 7 : index
    %c0_337 = arith.constant 0 : index
    %822 = vector.load %arg13[%c0_335, %c7_336, %c0_337] : memref<2x8x1xf32, #tpu.memory_space<vmem>>, vector<2x1x1xf32>
    %823 = vector.shape_cast %822 : vector<2x1x1xf32> to vector<2x1xf32>
    %824 = vector.shape_cast %812 : vector<2x1xf32> to vector<2x1x1xf32>
    tpu.vector_store %arg13[%c0_335, %c7_336, %c0_337], %824 {strides = array<i32>} : memref<2x8x1xf32, #tpu.memory_space<vmem>>, vector<2x1x1xf32>,
    %c0_i32_338 = arith.constant 0 : i32
    %825 = arith.cmpi eq, %arg1, %c0_i32_338 : i32
    %826 = arith.extui %825 : i1 to i32
    %c0_i32_339 = arith.constant 0 : i32
    %827 = arith.cmpi ne, %826, %c0_i32_339 : i32
    scf.if %827 {
      %c0_352 = arith.constant 0 : index
      %c0_353 = arith.constant 0 : index
      %c0_354 = arith.constant 0 : index
      %834 = vector.load %arg14[%c0_352, %c0_353, %c0_354] : memref<1x2x32xf32, #tpu.memory_space<vmem>>, vector<1x2x32xf32>
      %835 = vector.shape_cast %834 : vector<1x2x32xf32> to vector<2x32xf32>
      %836 = vector.shape_cast %752 : vector<2x32xf32> to vector<1x2x32xf32>
      tpu.vector_store %arg14[%c0_352, %c0_353, %c0_354], %836 {strides = array<i32>} : memref<1x2x32xf32, #tpu.memory_space<vmem>>, vector<1x2x32xf32>,
      %c0_355 = arith.constant 0 : index
      %c0_356 = arith.constant 0 : index
      %c0_357 = arith.constant 0 : index
      %837 = vector.load %arg15[%c0_355, %c0_356, %c0_357] : memref<1x2x32xf32, #tpu.memory_space<vmem>>, vector<1x2x32xf32>
      %838 = vector.shape_cast %837 : vector<1x2x32xf32> to vector<2x32xf32>
      %839 = vector.shape_cast %796 : vector<2x32xf32> to vector<1x2x32xf32>
      tpu.vector_store %arg15[%c0_355, %c0_356, %c0_357], %839 {strides = array<i32>} : memref<1x2x32xf32, #tpu.memory_space<vmem>>, vector<1x2x32xf32>,
    } else {
    }
    %c0_340 = arith.constant 0 : index
    %c0_341 = arith.constant 0 : index
    %828 = vector.load %arg18[%c0_340, %c0_341] : memref<2x32xf32, #tpu.memory_space<vmem>>, vector<2x32xf32>
    tpu.vector_store %arg18[%c0_340, %c0_341], %754 {strides = array<i32>} : memref<2x32xf32, #tpu.memory_space<vmem>>, vector<2x32xf32>,
    %c0_342 = arith.constant 0 : index
    %c0_343 = arith.constant 0 : index
    %829 = vector.load %arg19[%c0_342, %c0_343] : memref<2x32xf32, #tpu.memory_space<vmem>>, vector<2x32xf32>
    tpu.vector_store %arg19[%c0_342, %c0_343], %752 {strides = array<i32>} : memref<2x32xf32, #tpu.memory_space<vmem>>, vector<2x32xf32>,
    %c0_344 = arith.constant 0 : index
    %c0_345 = arith.constant 0 : index
    %830 = vector.load %arg22[%c0_344, %c0_345] : memref<2x1xf32, #tpu.memory_space<vmem>>, vector<2x1xf32>
    tpu.vector_store %arg22[%c0_344, %c0_345], %764 {strides = array<i32>} : memref<2x1xf32, #tpu.memory_space<vmem>>, vector<2x1xf32>,
    %c0_346 = arith.constant 0 : index
    %c0_347 = arith.constant 0 : index
    %831 = vector.load %arg20[%c0_346, %c0_347] : memref<2x32xf32, #tpu.memory_space<vmem>>, vector<2x32xf32>
    tpu.vector_store %arg20[%c0_346, %c0_347], %802 {strides = array<i32>} : memref<2x32xf32, #tpu.memory_space<vmem>>, vector<2x32xf32>,
    %c0_348 = arith.constant 0 : index
    %c0_349 = arith.constant 0 : index
    %832 = vector.load %arg21[%c0_348, %c0_349] : memref<2x32xf32, #tpu.memory_space<vmem>>, vector<2x32xf32>
    tpu.vector_store %arg21[%c0_348, %c0_349], %796 {strides = array<i32>} : memref<2x32xf32, #tpu.memory_space<vmem>>, vector<2x32xf32>,
    %c0_350 = arith.constant 0 : index
    %c0_351 = arith.constant 0 : index
    %833 = vector.load %arg23[%c0_350, %c0_351] : memref<2x1xf32, #tpu.memory_space<vmem>>, vector<2x1xf32>
    tpu.vector_store %arg23[%c0_350, %c0_351], %812 {strides = array<i32>} : memref<2x1xf32, #tpu.memory_space<vmem>>, vector<2x1xf32>,
    return
  }
  func.func @transform_0(%arg0: i32, %arg1: i32) -> (i32, i32, i32) {
    %c0_i32 = arith.constant 0 : i32
    %c0_i32_0 = arith.constant 0 : i32
    return %arg0, %arg1, %c0_i32 : i32, i32, i32
  }
  func.func @transform_1(%arg0: i32, %arg1: i32) -> (i32, i32) {
    %c0_i32 = arith.constant 0 : i32
    %c0_i32_0 = arith.constant 0 : i32
    %c0_i32_1 = arith.constant 0 : i32
    return %c0_i32, %c0_i32_0 : i32, i32
  }
  func.func @transform_2(%arg0: i32, %arg1: i32) -> (i32, i32) {
    %c0_i32 = arith.constant 0 : i32
    %c0_i32_0 = arith.constant 0 : i32
    %c0_i32_1 = arith.constant 0 : i32
    return %c0_i32, %c0_i32_0 : i32, i32
  }
  func.func @transform_3(%arg0: i32, %arg1: i32) -> (i32, i32) {
    %c0_i32 = arith.constant 0 : i32
    %c0_i32_0 = arith.constant 0 : i32
    %c0_i32_1 = arith.constant 0 : i32
    return %c0_i32, %c0_i32_0 : i32, i32
  }
  func.func @transform_4(%arg0: i32, %arg1: i32) -> (i32, i32) {
    %c0_i32 = arith.constant 0 : i32
    %c0_i32_0 = arith.constant 0 : i32
    %c0_i32_1 = arith.constant 0 : i32
    return %c0_i32, %c0_i32_0 : i32, i32
  }
  func.func @transform_5(%arg0: i32, %arg1: i32) -> (i32, i32) {
    %c0_i32 = arith.constant 0 : i32
    %c0_i32_0 = arith.constant 0 : i32
    %c0_i32_1 = arith.constant 0 : i32
    return %c0_i32, %c0_i32_0 : i32, i32
  }
  func.func @transform_6(%arg0: i32, %arg1: i32) -> (i32, i32) {
    %c0_i32 = arith.constant 0 : i32
    %c0_i32_0 = arith.constant 0 : i32
    %c0_i32_1 = arith.constant 0 : i32
    return %c0_i32, %c0_i32_0 : i32, i32
  }
  func.func @transform_7(%arg0: i32, %arg1: i32) -> (i32, i32) {
    %c0_i32 = arith.constant 0 : i32
    %c0_i32_0 = arith.constant 0 : i32
    %c0_i32_1 = arith.constant 0 : i32
    return %c0_i32, %c0_i32_0 : i32, i32
  }
  func.func @transform_8(%arg0: i32, %arg1: i32) -> (i32, i32, i32) {
    %c0_i32 = arith.constant 0 : i32
    %c0_i32_0 = arith.constant 0 : i32
    return %arg0, %arg1, %c0_i32 : i32, i32, i32
  }
  func.func @transform_9(%arg0: i32, %arg1: i32) -> (i32, i32, i32) {
    %c0_i32 = arith.constant 0 : i32
    %c0_i32_0 = arith.constant 0 : i32
    return %arg0, %arg1, %c0_i32 : i32, i32, i32
  }
  func.func @transform_10(%arg0: i32, %arg1: i32) -> (i32, i32, i32) {
    %c0_i32 = arith.constant 0 : i32
    %c0_i32_0 = arith.constant 0 : i32
    return %arg0, %arg1, %c0_i32 : i32, i32, i32
  }
  func.func @transform_11(%arg0: i32, %arg1: i32) -> (i32, i32, i32) {
    %c0_i32 = arith.constant 0 : i32
    %c0_i32_0 = arith.constant 0 : i32
    return %arg0, %arg1, %c0_i32 : i32, i32, i32
  }
  func.func @transform_12(%arg0: i32, %arg1: i32) -> (i32, i32, i32) {
    %c0_i32 = arith.constant 0 : i32
    %c0_i32_0 = arith.constant 0 : i32
    %c0_i32_1 = arith.constant 0 : i32
    return %arg0, %c0_i32, %c0_i32_0 : i32, i32, i32
  }
  func.func @transform_13(%arg0: i32, %arg1: i32) -> (i32, i32, i32) {
    %c0_i32 = arith.constant 0 : i32
    %c0_i32_0 = arith.constant 0 : i32
    %c0_i32_1 = arith.constant 0 : i32
    return %arg0, %c0_i32, %c0_i32_0 : i32, i32, i32
  }
}

</mosaic_0001>

<bundles_post_ra>
// kernel: tpu_custom_call.1
= control target key start
LH: loop header
LB: loop body
LE: loop exit
PB: predicated region body
PF: predicated region fallthrough
CT: control target
= control target key end

     0   :  { %19 = vsyncpa [#allocation11], 0  ;;  %s23842_s0 = inlined_call_operand.vmem [shape: f32[2,8,4], index: 0, kind: input, shape index: {}]   ;;  %s23843_s1 = inlined_call_operand.hbm [shape: f32[128,128], index: 1, kind: input, shape index: {}]   ;;  %s23844_s2 = inlined_call_operand.vmem [shape: f32[1,128], index: 2, kind: input, shape index: {}]   ;;  %s23845_s3 = inlined_call_operand.vmem [shape: f32[1,128], index: 3, kind: input, shape index: {}]   ;;  %s23846_s4 = inlined_call_operand.hbm [shape: f32[128,128], index: 4, kind: input, shape index: {}]   ;;  %s23847_s5 = inlined_call_operand.vmem [shape: f32[1,128], index: 5, kind: input, shape index: {}]   ;;  %s23848_s6 = inlined_call_operand.vmem [shape: f32[1,128], index: 6, kind: input, shape index: {}]   ;;  %s23849_s7 = inlined_call_operand.vmem [shape: f32[1,2], index: 7, kind: input, shape index: {}]   ;;  %s23850_s8 = inlined_call_operand.hbm [shape: f32[2,8,32], index: 8, kind: output, shape index: {0}]   ;;  %s23851_s9 = inlined_call_operand.hbm [shape: f32[2,8,32], index: 9, kind: output, shape index: {1}]   ;;  %s23852_s10 = inlined_call_operand.vmem [shape: f32[2,8,1], index: 10, kind: output, shape index: {2}]   ;;  %s23853_s11 = inlined_call_operand.vmem [shape: f32[2,8,1], index: 11, kind: output, shape index: {3}]   ;;  %s23854_s12 = inlined_call_operand.hbm [shape: f32[1,2,32], index: 12, kind: output, shape index: {4}]   ;;  %s23855_s13 = inlined_call_operand.hbm [shape: f32[1,2,32], index: 13, kind: output, shape index: {5}]  }
   0x1   :  { %20 = vsyncpa [#allocation15], 0 }
   0x2   :  { %21 = vsyncpa [#allocation13], 0 }
   0x3   :  { %22 = vsyncpa [#allocation12], 0 }
   0x4   :  { %23 = vsyncpa [#allocation19], 0 }
   0x5   :  { %24 = vsyncpa [#allocation22], 0  ;;  %s20168_s25 = smov [#allocation10]   ;;  %s20012_s29 = scalar_lea.hbm %s23843_s1, 2048 }
   0x6   :  { %s32_s26 = sshll.u32 %s20168_s25, 4  ;;  %p20013_p0 = scmp.ne.s32.totalorder %s23843_s1, %s20012_s29  ;;  %s33_s26 = int_to_ptr.vmem [resolvable:$true] %s32_s26 }
   0x7   :  { %p20016_p1 = scmp.lt.u32.totalorder %s20012_s29, %s23843_s1 }
   0x9   :  { %p20018_p2 = pnand %p20016_p1, %p20013_p0 }
   0xb   :  { %20021 = shalt.err (!%p20018_p2)
}
   0xc   :  { %s20022_s17 = scalar_lea.vmem %s33_s26, 2048  ;;  %p20027_p4 = scmp.lt.s32.totalorder %s33_s26, %s33_s26 }
   0xd   :  { %p20023_p3 = scmp.ne.s32.totalorder %s33_s26, %s20022_s17  ;;  %p20028_p5 = scmp.lt.s32.totalorder %s20022_s17, %s20022_s17 }
   0xf   :  { %p20029_p6 = por %p20028_p5, %p20027_p4 }
  0x11   :  { %p20030_p7 = pnand %p20029_p6, %p20023_p3 }
  0x13   :  { %20033 = shalt.err (!%p20030_p7)
}
  0x14   :  { %s20169_s18 = smov 128   ;;  %s20170_s19 = smov 8  }
  0x15   :  { %38 = dma.hbm_to_vmem [thread:$0]  %s23843_s1, 2048, %s33_s26, [#allocation11], %s20169_s18, %s20169_s18, %s20170_s19  }
  0x16   :  { %s20171_s22 = smov [#allocation14]   ;;  %s65_s27 = sshll.u32 %s23849_s7, 4  ;;  %s66_s27 = int_to_ptr.vmem [resolvable:$true] %s65_s27 }
  0x17   :  { %s48_s23 = sshll.u32 %s20171_s22, 4  ;;  %s20034_s30 = scalar_lea.hbm %s23846_s4, 2048  ;;  %s49_s23 = int_to_ptr.vmem [resolvable:$true] %s48_s23 }
  0x18   :  { %p20035_p8 = scmp.ne.s32.totalorder %s23846_s4, %s20034_s30  ;;  %p20038_p9 = scmp.lt.u32.totalorder %s20034_s30, %s23846_s4 }
  0x1a   :  { %p20040_p10 = pnand %p20038_p9, %p20035_p8 }
  0x1c   :  { %20043 = shalt.err (!%p20040_p10)
}
  0x1d   :  { %s20044_s1 = scalar_lea.vmem %s49_s23, 2048  ;;  %p20049_p12 = scmp.lt.s32.totalorder %s49_s23, %s49_s23 }
  0x1e   :  { %p20045_p11 = scmp.ne.s32.totalorder %s49_s23, %s20044_s1  ;;  %p20050_p13 = scmp.lt.s32.totalorder %s20044_s1, %s20044_s1 }
  0x20   :  { %p20051_p0 = por %p20050_p13, %p20049_p12 }
  0x22   :  { %p20052_p1 = pnand %p20051_p0, %p20045_p11 }
  0x24   :  { %20055 = shalt.err (!%p20052_p1)
}
  0x25   :  { %54 = dma.hbm_to_vmem [thread:$0]  %s23846_s4, 2048, %s49_s23, [#allocation15], %s20169_s18, %s20169_s18, %s20170_s19  }
  0x26   :  { %s20056_s20 = scalar_lea.vmem %s66_s27, 16  ;;  %p20061_p3 = scmp.lt.s32.totalorder %s66_s27, %s66_s27 }
  0x27   :  { %p20057_p2 = scmp.ne.s32.totalorder %s66_s27, %s20056_s20  ;;  %p20062_p4 = scmp.lt.s32.totalorder %s20056_s20, %s20056_s20 }
  0x29   :  { %p20063_p5 = por %p20062_p4, %p20061_p3 }
  0x2b   :  { %p20064_p6 = pnand %p20063_p5, %p20057_p2 }
  0x2d   :  { %20067 = shalt.err (!%p20064_p6)
}
  0x2e   :  { %s20172_s21 = smov [#allocation16]  }
  0x2f   :  { %68 = dma.vmem_to_smem %s66_s27, 16, %s20172_s21, [#allocation13]  }
  0x30   :  { %20156 = dma.done.wait [#allocation11], 2048  }
  0x31   :  { %20157 = vsyncadd [#allocation11], 4294965248 }
  0x32   :  { %20158 = dma.done.wait [#allocation15], 2048  }
  0x33   :  { %20159 = vsyncadd [#allocation15], 4294965248 }
  0x34   :  { %20160 = dma.done.wait [#allocation13], 16  }
  0x35   :  { %20161 = vsyncadd [#allocation13], 4294967280 }
  0x36   :  { %78 = sfence }
  0x37   :  { %vm90_vm0 = vcmask 1024   ;;  %vm85_vm1 = vcmask 254976   ;;  %v23856_v0 = vmov 0   ;;  %v23867_v1 = vmov 0.0   ;;  %v152_v3 = vld [vmem:[%s23842_s0 + $0x8] sm:$0x1] }
  0x38   :  { %19869 = vset.pattern.permute.xlu0 %v23856_v0  ;;  %91 = vst.msk [vmem:[#allocation8] sm:$0x3] %vm90_vm0, %v23867_v1  ;;  %83 = vst [vmem:[#allocation2] sm:$0x3] %v23867_v1  ;;  %19870 = vset.pattern.permute.xlu1 %v23856_v0  ;;  %v155_v4 = vrot.slane %v152_v3, 7  ;;  %vm156_vm2 = vcmask 1041409  }
  0x39   :  { %84 = vst [vmem:[#allocation3] sm:$0x3] %v23867_v1  ;;  %92 = vst.msk [vmem:[#allocation9] sm:$0x3] %vm90_vm0, %v23867_v1  ;;  %v151_v5 = vld [vmem:[%s23842_s0] sm:$0x1] }
  0x3a   :  { %88 = vst.msk [vmem:[#allocation6] sm:$0x3] %vm85_vm1, %v23867_v1  ;;  %86 = vst.msk [vmem:[#allocation4] sm:$0x3] %vm85_vm1, %v23867_v1  ;;  %v157_v6 = vsel %vm156_vm2, %v155_v4, %v151_v5  ;;  %v20314_v7 = vld [vmem:[#allocation10] sm:$0xff]  ;;  %v20316_v8 = vld [vmem:[#allocation10 + $0x8] sm:$0xff] }
  0x3b   :  { %87 = vst.msk [vmem:[#allocation5] sm:$0x3] %vm85_vm1, %v23867_v1  ;;  %89 = vst.msk [vmem:[#allocation7] sm:$0x3] %vm85_vm1, %v23867_v1  ;;  %v20318_v9 = vld [vmem:[#allocation10 + $0x10] sm:$0xff]  ;;  %s20175_s25 = smov 64  }
  0x3c   :  { %158 = vrot.lane.b32.xlu1 %v157_v6, %s20175_s25  ;;  %v23872_v10 = vmov 0.0|0.0   ;;  %v171_v11 = vand.u32 4294901760, %v20314_v7  ;;  %v174_v12 = vand.u32 4294901760, %v20316_v8  ;;  %v20324_v13 = vld [vmem:[#allocation10 + $0x18] sm:$0xff]  ;;  %v177_v14 = vand.u32 4294901760, %v20318_v9  ;;  %v20328_v16 = vld [vmem:[#allocation10 + $0x20] sm:$0xff] }
  0x3d   :  { %17372 = vmatprep.subr.bf16.mxu0 %v23872_v10  ;;  %v180_v15 = vand.u32 4294901760, %v20324_v13  ;;  %v20330_v17 = vld [vmem:[#allocation10 + $0x28] sm:$0xff]  ;;  %17516 = vmatprep.subr.bf16.mxu1 %v23872_v10  ;;  %v183_v20 = vand.u32 4294901760, %v20328_v16  ;;  %v20349_v22 = vld [vmem:[#allocation10 + $0x30] sm:$0xff]  ;;  %v20351_v23 = vld [vmem:[#allocation10 + $0x38] sm:$0xff]  ;;  %vm20177_vm3 = vmmov 0  }
  0x3e   :  { %v20337_v18 = vpack.c.bf16 %v174_v12, %v171_v11  ;;  %v186_v21 = vand.u32 4294901760, %v20330_v17  ;;  %v189_v25 = vand.u32 4294901760, %v20349_v22  ;;  %v192_v26 = vand.u32 4294901760, %v20351_v23  ;;  %v101_v29 = vld [vmem:[#allocation10 + $0x40] sm:$0xff]  ;;  %v102_v30 = vld [vmem:[#allocation10 + $0x48] sm:$0xff]  ;;  %v103_v34 = vld [vmem:[#allocation10 + $0x50] sm:$0xff]  ;;  %14044 = vmatprep.mubr.msk.f32.mxu0 %vm20177_vm3, %v23867_v1  ;;  %14254 = vmatprep.mubr.msk.f32.mxu1 %vm20177_vm3, %v23867_v1 }
  0x3f   :  { %v20304_v2 = vld [vmem:[#allocation8] sm:$0x3]  ;;  %v20344_v19 = vpack.c.bf16 %v180_v15, %v177_v14  ;;  %v195_v31 = vand.u32 4294901760, %v101_v29  ;;  %v198_v32 = vand.u32 4294901760, %v102_v30  ;;  %v201_v36 = vand.u32 4294901760, %v103_v34  ;;  %v105_v39 = vld [vmem:[#allocation10 + $0x60] sm:$0xff] }
  0x40   :  { %141 = vperm.xlu0 %19869, %v20304_v2   ;;  %24018 = vst [vmem:[#allocation29_spill] sm:$0xff] %v20337_v18  ;;  %17374 = vmatpush3.bf16.msra.mxu0 %v20337_v18  ;;  %v20358_v24 = vpack.c.bf16 %v186_v21, %v183_v20  ;;  %v20368_v27 = vpack.c.bf16 %v192_v26, %v189_v25  ;;  %v104_v35 = vld [vmem:[#allocation10 + $0x58] sm:$0xff]  ;;  %v106_v40 = vld [vmem:[#allocation10 + $0x68] sm:$0xff]  ;;  %v207_v41 = vand.u32 4294901760, %v105_v39  ;;  %v107_v44 = vld [vmem:[#allocation10 + $0x70] sm:$0xff]  ;;  %s20178_s27 = smov 32  }
  0x41   :  { %24019 = vst [vmem:[#allocation30_spill] sm:$0xff] %v20344_v19  ;;  %17375 = vmatprep.subr.bf16.mxu0 %v23872_v10  ;;  %v131_v28 = vld [vmem:[#allocation4] sm:$0x3]  ;;  %v20374_v33 = vpack.c.bf16 %v198_v32, %v195_v31  ;;  %v204_v37 = vand.u32 4294901760, %v104_v35  ;;  %v210_v42 = vand.u32 4294901760, %v106_v40  ;;  %v108_v45 = vld [vmem:[#allocation10 + $0x78] sm:$0xff]  ;;  %v20398_v52 = vsub.f32 %v101_v29, %v195_v31 }
  0x42   :  { %24020 = vst [vmem:[#allocation31_spill] sm:$0xff] %v20358_v24  ;;  %24021 = vst [vmem:[#allocation32_spill] sm:$0xff] %v20368_v27  ;;  %v20381_v43 = vld [vmem:[#allocation6] sm:$0x3]  ;;  %v213_v47 = vand.u32 4294901760, %v107_v44  ;;  %v216_v48 = vand.u32 4294901760, %v108_v45  ;;  %v20400_v53 = vsub.f32 %v102_v30, %v198_v32  ;;  %v20410_v58 = vsub.f32 %v103_v34, %v201_v36 }
  0x43   :  { %138 = vst.msk [vmem:[#allocation2] sm:$0x3] %vm85_vm1, %v131_v28  ;;  %24022 = vst [vmem:[#allocation33_spill] sm:$0xff] %v20374_v33  ;;  %v20378_v38 = vpack.c.bf16 %v204_v37, %v201_v36  ;;  %v20384_v46 = vpack.c.bf16 %v210_v42, %v207_v41  ;;  %v320_v54 = vand.u32 4294901760, %v20398_v52  ;;  %v20412_v59 = vsub.f32 %v104_v35, %v204_v37  ;;  %s129_s15 = sld [smem:[#allocation16]]  ;;  %s20179_s26 = smov 96  }
  0x44   :  { %17377 = vmatpush3.bf16.msra.mxu0 %v20344_v19  ;;  %v20392_v51 = vpack.c.bf16 %v216_v48, %v213_v47  ;;  %v327_v55 = vand.u32 4294901760, %v20400_v53  ;;  %v334_v62 = vand.u32 4294901760, %v20410_v58  ;;  %v20421_v5 = vsub.f32 %v105_v39, %v207_v41  ;;  %s12343_s17 = sld [smem:[#allocation16 + $0x1]] }
  0x45   :  { %17378 = vmatprep.subr.bf16.mxu0 %v23872_v10  ;;  %24023 = vst [vmem:[#allocation34_spill] sm:$0xff] %v20378_v38  ;;  %24024 = vst [vmem:[#allocation35_spill] sm:$0xff] %v20384_v46  ;;  %v321_v56 = vsub.f32 %v20398_v52, %v320_v54  ;;  %v341_v63 = vand.u32 4294901760, %v20412_v59  ;;  %v20423_v6 = vsub.f32 %v106_v40, %v210_v42  ;;  %vm149_vm4 = vcmask 517376  }
  0x46   :  { %24025 = vst [vmem:[#allocation36_spill] sm:$0xff] %v20392_v51  ;;  %v328_v57 = vsub.f32 %v20400_v53, %v327_v55  ;;  %v335_v4 = vsub.f32 %v20410_v58, %v334_v62  ;;  %v23861_v30 = vand.u32 4294901760, %v20421_v5  ;;  %v20436_v36 = vsub.f32 %v107_v44, %v213_v47 }
  0x47   :  { %v322_v60 = vand.u32 4294901760, %v321_v56  ;;  %v342_v28 = vsub.f32 %v20412_v59, %v341_v63  ;;  %v23860_v31 = vand.u32 4294901760, %v20423_v6  ;;  %v20438_v37 = vsub.f32 %v108_v45, %v216_v48 }
  0x48   :  { %17380 = vmatpush3.bf16.msra.mxu0 %v20358_v24  ;;  %v329_v61 = vand.u32 4294901760, %v328_v57  ;;  %v336_v29 = vand.u32 4294901760, %v335_v4  ;;  %v349_v34 = vsub.f32 %v20421_v5, %v23861_v30  ;;  %v23859_v42 = vand.u32 4294901760, %v20436_v36 }
  0x49   :  { %17381 = vmatprep.subr.bf16.mxu0 %v23872_v10  ;;  %v343_v32 = vand.u32 4294901760, %v342_v28  ;;  %v356_v35 = vsub.f32 %v20423_v6, %v23860_v31  ;;  %v20456_v57 = vpack.c.bf16 %v20400_v53, %v20398_v52  ;;  %v20468_v4 = vpack.c.bf16 %v20438_v37, %v20436_v36 }
  0x4a   :  { %v20416_v3 = vpack.c.bf16 %v329_v61, %v322_v60  ;;  %v350_v40 = vand.u32 4294901760, %v349_v34  ;;  %v363_v56 = vsub.f32 %v20436_v36, %v23859_v42  ;;  %v20460_v60 = vpack.c.bf16 %v20412_v59, %v20410_v58 }
  0x4b   :  { %v20440_v39 = vpack.c.bf16 %v343_v32, %v336_v29  ;;  %v357_v41 = vand.u32 4294901760, %v356_v35  ;;  %24028 = vst [vmem:[#allocation39_spill] sm:$0xff] %v20456_v57  ;;  %v20464_v61 = vpack.c.bf16 %v20423_v6, %v20421_v5  ;;  %24031 = vst [vmem:[#allocation42_spill] sm:$0xff] %v20468_v4  ;;  %vm161_vm5 = vcmask 550400  }
  0x4c   :  { %17383 = vmatpush3.bf16.msra.mxu0 %v20368_v27  ;;  %v364_v45 = vand.u32 4294901760, %v363_v56  ;;  %24029 = vst [vmem:[#allocation40_spill] sm:$0xff] %v20460_v60  ;;  %v20473_v29 = vsub.f32 %v20314_v7, %v171_v11  ;;  %v20478_v34 = vsub.f32 %v20316_v8, %v174_v12  ;;  %v20492_v7 = vsub.f32 %v20324_v13, %v180_v15 }
  0x4d   :  { %17384 = vmatprep.subr.bf16.mxu0 %v23872_v10  ;;  %24030 = vst [vmem:[#allocation41_spill] sm:$0xff] %v20464_v61  ;;  %v20512_v13 = vsub.f32 %v20330_v17, %v186_v21  ;;  %v20532_v21 = vsub.f32 %v20349_v22, %v189_v25  ;;  %v24042_v52 = vand.u32 4294901760, %v20421_v5  ;;  %v24043_v53 = vand.u32 4294901760, %v20423_v6 }
  0x4e   :  { %v264_v35 = vand.u32 4294901760, %v20473_v29  ;;  %v285_v56 = vand.u32 4294901760, %v20492_v7  ;;  %v24046_v58 = vand.u32 4294901760, %v20438_v37  ;;  %vm849_vm6 = vcmask 1041408  }
  0x4f   :  { %vm1667_vm8 = vcmask 0  }
  0x50   :  { %17386 = vmatpush3.bf16.msra.mxu0 %v20374_v33  ;;  %v265_v8 = vsub.f32 %v20473_v29, %v264_v35 }
  0x51   :  { %17387 = vmatprep.subr.bf16.mxu0 %v23872_v10 }
  0x52   :  { %v266_v15 = vand.u32 4294901760, %v265_v8 }
  0x54   :  { %17389 = vmatpush3.bf16.msra.mxu0 %v20378_v38 }
  0x55   :  { %17390 = vmatprep.subr.bf16.mxu0 %v23872_v10 }
  0x58   :  { %17392 = vmatpush3.bf16.msra.mxu0 %v20384_v46 }
  0x59   :  { %17393 = vmatprep.subr.bf16.mxu0 %v23872_v10 }
  0x5c   :  { %17395 = vmatpush3.bf16.msra.mxu0 %v20392_v51 }
  0x5d   :  { %17396 = vmatprep.subr.bf16.mxu0 %v23872_v10 }
  0xae   :  { %v159_v28 = vpop.permute.xlu1 %158 }
  0xbf   :  { %v142_v49 = vpop.permute.xlu0 %141 }
  0xc0   :  { %v144_v50 = vmul.f32 %v142_v49, %v20381_v43  ;;  %v23858_v49 = vand.u32 4294901760, %v20438_v37 }
  0xc2   :  { %146 = vrot.lane.b32.xlu0 %v144_v50, %s20178_s27  ;;  %v20444_v50 = vpack.c.bf16 %v357_v41, %v350_v40  ;;  %v370_v44 = vsub.f32 %v20438_v37, %v23858_v49  ;;  %v271_v40 = vand.u32 4294901760, %v20478_v34  ;;  %v20487_v41 = vsub.f32 %v20318_v9, %v177_v14 }
  0xc3   :  { %v20507_v9 = vsub.f32 %v20328_v16, %v183_v20  ;;  %v286_v16 = vsub.f32 %v20492_v7, %v285_v56  ;;  %v299_v20 = vand.u32 4294901760, %v20512_v13 }
  0xc4   :  { %24026 = vst [vmem:[#allocation37_spill] sm:$0xff] %v20444_v50  ;;  %v371_v47 = vand.u32 4294901760, %v370_v44  ;;  %v272_v11 = vsub.f32 %v20478_v34, %v271_v40  ;;  %v278_v12 = vand.u32 4294901760, %v20487_v41 }
  0xc5   :  { %v292_v17 = vand.u32 4294901760, %v20507_v9  ;;  %v287_v42 = vand.u32 4294901760, %v286_v16  ;;  %v300_v25 = vsub.f32 %v20512_v13, %v299_v20 }
  0xc6   :  { %v20452_v48 = vpack.c.bf16 %v371_v47, %v364_v45  ;;  %v273_v47 = vand.u32 4294901760, %v272_v11 }
  0xc7   :  { %v293_v22 = vsub.f32 %v20507_v9, %v292_v17 }
  0xc8   :  { %24027 = vst [vmem:[#allocation38_spill] sm:$0xff] %v20452_v48  ;;  %v20543_v0 = vpack.c.bf16 %v273_v47, %v266_v15  ;;  %v301_v47 = vand.u32 4294901760, %v300_v25  ;;  %v823_v25 = vsub.f32 1.0, %v20304_v2 }
  0xc9   :  { %v294_v15 = vand.u32 4294901760, %v293_v22  ;;  %v20584_v22 = vpack.c.bf16 %v20478_v34, %v20473_v29  ;;  %v20661_v29 = vpack.c.bf16 %v299_v20, %v292_v17 }
  0xca   :  { %827 = vperm.xlu1 %19870, %v823_v25  }
  0xcb   :  { %24032 = vst [vmem:[#allocation43_spill] sm:$0xff] %v20584_v22  ;;  %24038 = vst [vmem:[#allocation49_spill] sm:$0xff] %v20661_v29 }
 0x134   :  { %v147_v32 = vpop.permute.xlu0 %146 }
 0x135   :  { %150 = vst.msk [vmem:[#allocation2] sm:$0x3] %vm149_vm4, %v147_v32  ;;  %v20537_v32 = vsub.f32 %v20351_v23, %v192_v26  ;;  %v306_v23 = vand.u32 4294901760, %v20532_v21 }
 0x136   :  { %162 = vst.msk [vmem:[#allocation2] sm:$0x3] %vm161_vm5, %v159_v28  ;;  %v279_v28 = vsub.f32 %v20487_v41, %v278_v12 }
 0x137   :  { %v313_v26 = vand.u32 4294901760, %v20537_v32  ;;  %v20606_v2 = vpack.c.bf16 %v20537_v32, %v20532_v21 }
 0x138   :  { %v280_v49 = vand.u32 4294901760, %v279_v28  ;;  %v307_v28 = vsub.f32 %v20532_v21, %v306_v23 }
 0x139   :  { %v314_v16 = vsub.f32 %v20537_v32, %v313_v26  ;;  %24035 = vst [vmem:[#allocation46_spill] sm:$0xff] %v20606_v2  ;;  %v20669_v34 = vpack.c.bf16 %v313_v26, %v306_v23  ;;  %v20767_v26 = vld [vmem:[#allocation14] sm:$0xff] }
 0x13a   :  { %v20553_v30 = vpack.c.bf16 %v287_v42, %v280_v49  ;;  %v308_v42 = vand.u32 4294901760, %v307_v28  ;;  %v20641_v28 = vpack.c.bf16 %v271_v40, %v264_v35  ;;  %v20677_v35 = vpack.c.bf16 %v327_v55, %v320_v54 }
 0x13b   :  { %v315_v49 = vand.u32 4294901760, %v314_v16  ;;  %v20651_v16 = vpack.c.bf16 %v285_v56, %v278_v12  ;;  %24039 = vst [vmem:[#allocation50_spill] sm:$0xff] %v20669_v34  ;;  %v20685_v40 = vpack.c.bf16 %v341_v63, %v334_v62  ;;  %v20693_v54 = vpack.c.bf16 %v24043_v53, %v24042_v52  ;;  %v20747_v62 = vld [vmem:[%s23845_s3] ss:$0 sm:$0xff]  ;;  %v132_v12 = vld [vmem:[#allocation5] sm:$0x3] }
 0x13c   :  { %24036 = vst [vmem:[#allocation47_spill] sm:$0xff] %v20641_v28  ;;  %24040 = vst [vmem:[#allocation51_spill] sm:$0xff] %v20677_v35  ;;  %v24045_v55 = vand.u32 4294901760, %v20436_v36  ;;  %v20775_v52 = vld [vmem:[#allocation14 + $0x18] sm:$0xff] }
 0x13d   :  { %v20502_v44 = vld [vmem:[#allocation2] sm:$0x3]  ;;  %24037 = vst [vmem:[#allocation48_spill] sm:$0xff] %v20651_v16  ;;  %24041 = vst [vmem:[#allocation52_spill] sm:$0xff] %v20685_v40 }
 0x13e   :  { %v20515_v14 = vand.u32 4294901760, %v20502_v44  ;;  %24044 = vst [vmem:[#allocation53_spill] sm:$0xff] %v20693_v54  ;;  %v20701_v59 = vpack.c.bf16 %v24046_v58, %v24045_v55  ;;  %24048 = vst [vmem:[#allocation55_spill] sm:$0xff] %v20747_v62  ;;  %v23866_v55 = vand.u32 4294901760, %v20775_v52  ;;  %v20779_v58 = vld [vmem:[#allocation14 + $0x20] sm:$0xff] }
 0x140   :  { %v20519_v45 = vsub.f32 %v20502_v44, %v20515_v14  ;;  %24047 = vst [vmem:[#allocation54_spill] sm:$0xff] %v20701_v59 }
 0x142   :  { %v253_v8 = vand.u32 4294901760, %v20519_v45 }
 0x144   :  { %v254_v11 = vsub.f32 %v20519_v45, %v253_v8 }
 0x146   :  { %v255_v31 = vand.u32 4294901760, %v254_v11  ;;  %v20570_v11 = vpack.c.bf16 %v315_v49, %v308_v42  ;;  %v20769_v42 = vld [vmem:[#allocation14 + $0x8] sm:$0xff]  ;;  %v20771_v49 = vld [vmem:[#allocation14 + $0x10] sm:$0xff] }
 0x147   :  { %v23870_v25 = vand.u32 4294901760, %v20769_v42  ;;  %v23869_v53 = vand.u32 4294901760, %v20771_v49 }
 0x148   :  { %14045 = vmatmul.mubr.f32.vlgmr.msra.gmra.mrb[0].mxu0 %v255_v31  ;;  %v20566_v31 = vpack.c.bf16 %v301_v47, %v294_v15  ;;  %v20592_v15 = vpack.c.bf16 %v20492_v7, %v20487_v41  ;;  %v20600_v47 = vpack.c.bf16 %v20512_v13, %v20507_v9 }
 0x149   :  { %17398 = vmatpush3.bf16.msra.mxu0 %v20543_v0  ;;  %14079 = vmatprep.mubr.msk.f32.mxu0 %vm20177_vm3, %v23867_v1  ;;  %v828_v9 = vpop.permute.xlu1 %827 }
 0x14a   :  { %17399 = vmatprep.subr.bf16.mxu0 %v23872_v10  ;;  %24033 = vst [vmem:[#allocation44_spill] sm:$0xff] %v20592_v15  ;;  %24034 = vst [vmem:[#allocation45_spill] sm:$0xff] %v20600_v47 }
 0x14d   :  { %17401 = vmatpush3.bf16.msra.mxu0 %v20553_v30 }
 0x14e   :  { %17402 = vmatprep.subr.bf16.mxu0 %v23872_v10 }
 0x151   :  { %17404 = vmatpush3.bf16.msra.mxu0 %v20566_v31 }
 0x152   :  { %17405 = vmatprep.subr.bf16.mxu0 %v23872_v10 }
 0x155   :  { %17407 = vmatpush3.bf16.msra.mxu0 %v20570_v11 }
 0x156   :  { %17408 = vmatprep.subr.bf16.mxu0 %v23872_v10 }
 0x159   :  { %17410 = vmatpush3.bf16.msra.mxu0 %v20416_v3 }
 0x15a   :  { %17411 = vmatprep.subr.bf16.mxu0 %v23872_v10 }
 0x15d   :  { %17413 = vmatpush3.bf16.msra.mxu0 %v20440_v39 }
 0x15e   :  { %17414 = vmatprep.subr.bf16.mxu0 %v23872_v10 }
 0x161   :  { %17416 = vmatpush3.bf16.msra.mxu0 %v20444_v50 }
 0x162   :  { %17417 = vmatprep.subr.bf16.mxu0 %v23872_v10 }
 0x165   :  { %17419 = vmatpush3.bf16.msra.mxu0 %v20452_v48 }
 0x166   :  { %17420 = vmatprep.subr.bf16.mxu0 %v23872_v10 }
 0x168   :  { %14080 = vmatmul.mubr.f32.vlgmr.msra.gmra.mrb[0].mxu0 %v20515_v14 }
 0x169   :  { %17422 = vmatpush3.bf16.msra.mxu0 %v20584_v22  ;;  %14114 = vmatprep.mubr.msk.f32.mxu0 %vm20177_vm3, %v23867_v1 }
 0x16a   :  { %17423 = vmatprep.subr.bf16.mxu0 %v23872_v10 }
 0x16d   :  { %17425 = vmatpush3.bf16.msra.mxu0 %v20592_v15 }
 0x16e   :  { %17426 = vmatprep.subr.bf16.mxu0 %v23872_v10 }
 0x171   :  { %17428 = vmatpush3.bf16.msra.mxu0 %v20600_v47 }
 0x172   :  { %17429 = vmatprep.subr.bf16.mxu0 %v23872_v10 }
 0x175   :  { %17431 = vmatpush3.bf16.msra.mxu0 %v20606_v2 }
 0x176   :  { %17432 = vmatprep.subr.bf16.mxu0 %v23872_v10 }
 0x179   :  { %17434 = vmatpush3.bf16.msra.mxu0 %v20456_v57 }
 0x17a   :  { %17435 = vmatprep.subr.bf16.mxu0 %v23872_v10 }
 0x17d   :  { %17437 = vmatpush3.bf16.msra.mxu0 %v20460_v60 }
 0x17e   :  { %17438 = vmatprep.subr.bf16.mxu0 %v23872_v10 }
 0x181   :  { %17440 = vmatpush3.bf16.msra.mxu0 %v20464_v61 }
 0x182   :  { %17441 = vmatprep.subr.bf16.mxu0 %v23872_v10 }
 0x185   :  { %17443 = vmatpush3.bf16.msra.mxu0 %v20468_v4 }
 0x186   :  { %17444 = vmatprep.subr.bf16.mxu0 %v23872_v10 }
 0x188   :  { %14115 = vmatmul.mubr.f32.vlgmr.msra.gmra.mrb[0].mxu0 %v20519_v45  ;;  %v20758_v45 = vld [vmem:[%s23844_s2] ss:$0 sm:$0xff] }
 0x189   :  { %17446 = vmatpush3.bf16.msra.mxu0 %v20337_v18  ;;  %14149 = vmatprep.mubr.msk.f32.mxu0 %vm20177_vm3, %v23867_v1  ;;  %v848_v17 = vmul.f32 %v20758_v45, %v20502_v44  ;;  %v23871_v44 = vand.u32 4294901760, %v20767_v26 }
 0x18a   :  { %17447 = vmatprep.subr.bf16.mxu0 %v23872_v10 }
 0x18b   :  { %v850_v20 = vsel %vm849_vm6, %v848_v17, 0.0 }
 0x18d   :  { %17449 = vmatpush3.bf16.msra.mxu0 %v20344_v19 }
 0x18e   :  { %17450 = vmatprep.subr.bf16.mxu0 %v23872_v10 }
 0x191   :  { %17452 = vmatpush3.bf16.msra.mxu0 %v20358_v24 }
 0x192   :  { %17453 = vmatprep.subr.bf16.mxu0 %v23872_v10 }
 0x195   :  { %17455 = vmatpush3.bf16.msra.mxu0 %v20368_v27 }
 0x196   :  { %17456 = vmatprep.subr.bf16.mxu0 %v23872_v10 }
 0x199   :  { %17458 = vmatpush3.bf16.msra.mxu0 %v20374_v33 }
 0x19a   :  { %17459 = vmatprep.subr.bf16.mxu0 %v23872_v10 }
 0x19d   :  { %17461 = vmatpush3.bf16.msra.mxu0 %v20378_v38 }
 0x19e   :  { %17462 = vmatprep.subr.bf16.mxu0 %v23872_v10 }
 0x1a1   :  { %17464 = vmatpush3.bf16.msra.mxu0 %v20384_v46 }
 0x1a2   :  { %17465 = vmatprep.subr.bf16.mxu0 %v23872_v10 }
 0x1a5   :  { %17467 = vmatpush3.bf16.msra.mxu0 %v20392_v51 }
 0x1a6   :  { %17468 = vmatprep.subr.bf16.mxu0 %v23872_v10 }
 0x1a8   :  { %14150 = vmatmul.mubr.f32.vlgmr.msra.gmra.mrb[0].mxu0 %v253_v8 }
 0x1a9   :  { %17470 = vmatpush3.bf16.msra.mxu0 %v20641_v28  ;;  %14184 = vmatprep.mubr.msk.f32.mxu0 %vm20177_vm3, %v23867_v1 }
 0x1aa   :  { %17471 = vmatprep.subr.bf16.mxu0 %v23872_v10 }
 0x1ad   :  { %17473 = vmatpush3.bf16.msra.mxu0 %v20651_v16 }
 0x1ae   :  { %17474 = vmatprep.subr.bf16.mxu0 %v23872_v10 }
 0x1b1   :  { %17476 = vmatpush3.bf16.msra.mxu0 %v20661_v29 }
 0x1b2   :  { %17477 = vmatprep.subr.bf16.mxu0 %v23872_v10 }
 0x1b5   :  { %17479 = vmatpush3.bf16.msra.mxu0 %v20669_v34 }
 0x1b6   :  { %17480 = vmatprep.subr.bf16.mxu0 %v23872_v10 }
 0x1b9   :  { %17482 = vmatpush3.bf16.msra.mxu0 %v20677_v35 }
 0x1ba   :  { %17483 = vmatprep.subr.bf16.mxu0 %v23872_v10 }
 0x1bd   :  { %17485 = vmatpush3.bf16.msra.mxu0 %v20685_v40 }
 0x1be   :  { %17486 = vmatprep.subr.bf16.mxu0 %v23872_v10 }
 0x1c1   :  { %17488 = vmatpush3.bf16.msra.mxu0 %v20693_v54 }
 0x1c2   :  { %17489 = vmatprep.subr.bf16.mxu0 %v23872_v10 }
 0x1c5   :  { %17491 = vmatpush3.bf16.msra.mxu0 %v20701_v59  ;;  %v126_v59 = vld [vmem:[#allocation14 + $0x78] sm:$0xff] }
 0x1c6   :  { %17492 = vmatprep.subr.bf16.mxu0 %v23872_v10  ;;  %v918_v35 = vand.u32 4294901760, %v126_v59 }
 0x1c8   :  { %14185 = vmatmul.mubr.f32.vlgmr.msra.gmra.mrb[0].mxu0 %v20515_v14 }
 0x1c9   :  { %17494 = vmatpush3.bf16.msra.mxu0 %v20337_v18  ;;  %14219 = vmatprep.mubr.msk.f32.mxu0 %vm20177_vm3, %v23867_v1 }
 0x1ca   :  { %17495 = vmatprep.subr.bf16.mxu0 %v23872_v10 }
 0x1cd   :  { %17497 = vmatpush3.bf16.msra.mxu0 %v20344_v19 }
 0x1ce   :  { %17498 = vmatprep.subr.bf16.mxu0 %v23872_v10 }
 0x1d1   :  { %17500 = vmatpush3.bf16.msra.mxu0 %v20358_v24 }
 0x1d2   :  { %17501 = vmatprep.subr.bf16.mxu0 %v23872_v10 }
 0x1d5   :  { %17503 = vmatpush3.bf16.msra.mxu0 %v20368_v27 }
 0x1d6   :  { %17504 = vmatprep.subr.bf16.mxu0 %v23872_v10 }
 0x1d9   :  { %17506 = vmatpush3.bf16.msra.mxu0 %v20374_v33 }
 0x1da   :  { %17507 = vmatprep.subr.bf16.mxu0 %v23872_v10 }
 0x1dd   :  { %17509 = vmatpush3.bf16.msra.mxu0 %v20378_v38 }
 0x1de   :  { %17510 = vmatprep.subr.bf16.mxu0 %v23872_v10 }
 0x1e1   :  { %17512 = vmatpush3.bf16.msra.mxu0 %v20384_v46 }
 0x1e2   :  { %17513 = vmatprep.subr.bf16.mxu0 %v23872_v10 }
 0x1e5   :  { %17515 = vmatpush3.bf16.msra.mxu0 %v20392_v51 }
 0x1e6   :  { %17660 = vmatprep.subr.bf16.mxu0 %v23872_v10 }
 0x1e8   :  { %14220 = vmatmul.mubr.f32.vlgmr.msra.gmra.mrb[0].mxu0 %v20515_v14 }
 0x1e9   :  { %17662 = vmatpush3.bf16.msra.mxu0 %v20337_v18  ;;  %14464 = vmatprep.mubr.msk.f32.mxu0 %vm20177_vm3, %v23867_v1 }
 0x1ea   :  { %17663 = vmatprep.subr.bf16.mxu0 %v23872_v10 }
 0x1ed   :  { %17665 = vmatpush3.bf16.msra.mxu0 %v20344_v19 }
 0x1ee   :  { %17666 = vmatprep.subr.bf16.mxu0 %v23872_v10 }
 0x1f1   :  { %17668 = vmatpush3.bf16.msra.mxu0 %v20358_v24 }
 0x1f2   :  { %17669 = vmatprep.subr.bf16.mxu0 %v23872_v10 }
 0x1f5   :  { %17671 = vmatpush3.bf16.msra.mxu0 %v20368_v27 }
 0x1f6   :  { %17672 = vmatprep.subr.bf16.mxu0 %v23872_v10 }
 0x1f9   :  { %17674 = vmatpush3.bf16.msra.mxu0 %v20374_v33 }
 0x1fa   :  { %17675 = vmatprep.subr.bf16.mxu0 %v23872_v10 }
 0x1fd   :  { %17677 = vmatpush3.bf16.msra.mxu0 %v20378_v38 }
 0x1fe   :  { %17678 = vmatprep.subr.bf16.mxu0 %v23872_v10 }
 0x201   :  { %17680 = vmatpush3.bf16.msra.mxu0 %v20384_v46 }
 0x202   :  { %17681 = vmatprep.subr.bf16.mxu0 %v23872_v10 }
 0x205   :  { %17683 = vmatpush3.bf16.msra.mxu0 %v20392_v51 }
 0x206   :  { %17684 = vmatprep.subr.bf16.mxu0 %v23872_v10 }
 0x2bb   :  { %v807_v63 = vpop.f32.mrb[0].mxu0 }
 0x2bc   :  { %v19676_v5 = vadd.f32 %v20747_v62, %v807_v63  ;;  %v14221_v6 = vpop.f32.mrb[1].mxu0  ;;  %v20781_v63 = vld [vmem:[#allocation14 + $0x28] sm:$0xff] }
 0x2bd   :  { %v20794_v6 = vpack.c.bf16 %v23866_v55, %v23869_v53 }
 0x2be   :  { %v12345_v36 = vmul.f32 -1.442695, %v19676_v5  ;;  %19871 = vtanh.f32 %v19676_v5  ;;  %v20787_v5 = vpack.c.bf16 %v23870_v25, %v23871_v44  ;;  %v121_v44 = vld [vmem:[#allocation14 + $0x50] sm:$0xff] }
 0x2c0   :  { %19873 = vpow2.f32 %v12345_v36  ;;  %17518 = vmatpush3.bf16.msra.mxu1 %v20787_v5  ;;  %v23865_v36 = vand.u32 4294901760, %v20779_v58 }
 0x2c1   :  { %17519 = vmatprep.subr.bf16.mxu1 %v23872_v10 }
 0x2c4   :  { %17521 = vmatpush3.bf16.msra.mxu1 %v20794_v6 }
 0x2c5   :  { %17522 = vmatprep.subr.bf16.mxu1 %v23872_v10 }
 0x2c8   :  { %v19872_v37 = vpop.eup %19871 }
 0x2c9   :  { %819 = vrot.lane.b32.xlu0 %v19872_v37, %s20175_s25  ;;  %v23862_v37 = vand.u32 4294901760, %v20781_v63 }
 0x2ca   :  { %v19874_v41 = vpop.eup %19873 }
 0x2cb   :  { %v814_v7 = vadd.f32 1.0, %v19874_v41  ;;  %v20799_v41 = vld [vmem:[#allocation14 + $0x30] sm:$0xff] }
 0x2cc   :  { %v24065_v60 = vand.u32 4294901760, %v20799_v41 }
 0x2cd   :  { %19875 = vrcp.f32 %v814_v7  ;;  %v20801_v7 = vld [vmem:[#allocation14 + $0x38] sm:$0xff] }
 0x2d7   :  { %v20751_v56 = vpop.eup %19875 }
 0x2d8   :  { %v824_v13 = vmul.f32 %v20751_v56, %v132_v12 }
 0x2da   :  { %v830_v14 = vmul.f32 %v828_v9, %v824_v13  ;;  %v20809_v9 = vpack.c.bf16 %v23862_v37, %v23865_v36  ;;  %v23864_v13 = vand.u32 4294901760, %v20799_v41 }
 0x2dc   :  { %832 = vrot.lane.b32.xlu1 %v830_v14, %s20178_s27  ;;  %v23863_v14 = vand.u32 4294901760, %v20801_v7  ;;  %17524 = vmatpush3.bf16.msra.mxu1 %v20809_v9 }
 0x2dd   :  { %17525 = vmatprep.subr.bf16.mxu1 %v23872_v10 }
 0x2de   :  { %v20819_v17 = vpack.c.bf16 %v23863_v14, %v23864_v13 }
 0x2e0   :  { %17527 = vmatpush3.bf16.msra.mxu1 %v20819_v17 }
 0x2e1   :  { %17528 = vmatprep.subr.bf16.mxu1 %v23872_v10  ;;  %v903_v10 = vand.u32 4294901760, %v121_v44 }
 0x300   :  { %851 = vadd.xlane.f32.xlu1 %v850_v20  ;;  %v1581_v20 = vlaneseq }
 0x33b   :  { %v820_v21 = vpop.permute.xlu0 %819 }
 0x33c   :  { %v822_v32 = vmul.f32 %v20751_v56, %v820_v21  ;;  %v20824_v21 = vshrl.u32 %v1581_v20, 7 }
 0x33e   :  { %24049 = vst [vmem:[#allocation56_spill] sm:$0xff] %v20824_v21  ;;  %v20832_v37 = vsub.s32 1, %v20824_v21 }
 0x340   :  { %24052 = vst [vmem:[#allocation59_spill] sm:$0xff] %v20832_v37 }
 0x34e   :  { %v833_v8 = vpop.permute.xlu1 %832 }
 0x34f   :  { %v20764_v23 = vadd.f32 %v833_v8, %v822_v32  ;;  %v20826_v32 = vstv %s129_s15 }
 0x350   :  { %24050 = vst [vmem:[#allocation57_spill] sm:$0xff] %v20826_v32 }
 0x351   :  { %19877 = vtanh.f32 %v20764_v23 }
 0x35b   :  { %v19878_v12 = vpop.eup %19877 }
 0x35c   :  { %838 = vrot.lane.b32.xlu0 %v19878_v12, %s20178_s27  ;;  %v20829_v12 = vsub.s32 0, %v20824_v21 }
 0x35e   :  { %24051 = vst [vmem:[#allocation58_spill] sm:$0xff] %v20829_v12 }
 0x38d   :  { %v852_v8 = vpop.xlane.xlu1 %851 }
 0x38e   :  { %v854_v14 = vadd.f32 %v20826_v32, %v852_v8  ;;  %v120_v8 = vld [vmem:[#allocation14 + $0x48] sm:$0xff]  ;;  %v125_v32 = vld [vmem:[#allocation14 + $0x70] sm:$0xff] }
 0x38f   :  { %v900_v53 = vand.u32 4294901760, %v120_v8  ;;  %v915_v40 = vand.u32 4294901760, %v125_v32 }
 0x390   :  { %vm855_vm7 = vcmp.gt.f32.partialorder %v854_v14, 0.0  ;;  %v119_v14 = vld [vmem:[#allocation14 + $0x40] sm:$0xff] }
 0x391   :  { %v20836_v13 = vsel %vm855_vm7, 1.0, %v23867_v1  ;;  %v897_v1 = vand.u32 4294901760, %v119_v14  ;;  %v20864_v29 = vpack.c.bf16 %v918_v35, %v915_v40  ;;  %v20876_v51 = vsub.f32 %v120_v8, %v900_v53 }
 0x392   :  { %v1660_v20 = vrot.slane %v20836_v13, %v20829_v12  ;;  %v1664_v36 = vrot.slane %v20836_v13, %v20832_v37  ;;  %v858_v55 = vmul.f32 %v20836_v13, %v20381_v43  ;;  %v122_v43 = vld [vmem:[#allocation14 + $0x58] sm:$0xff]  ;;  %v123_v37 = vld [vmem:[#allocation14 + $0x60] sm:$0xff]  ;;  %vm1521_vm10 = vcmp.gt.f32.partialorder %v20836_v13, 0.5 }
 0x393   :  { %v20853_v25 = vpack.c.bf16 %v900_v53, %v897_v1  ;;  %v906_v21 = vand.u32 4294901760, %v122_v43  ;;  %24054 = vst [vmem:[#allocation60_spill] sm:$0xff] %v20864_v29  ;;  %v20874_v28 = vsub.f32 %v119_v14, %v897_v1  ;;  %v23910_v38 = vand.u32 4294901760, %v20876_v51 }
 0x394   :  { %1668 = vst.msk [vmem:[%s23852_s10] sm:$0x1] %vm1667_vm8, %v1660_v20  ;;  %1669 = vst.msk [vmem:[%s23852_s10 + $0x8] sm:$0x1] %vm1667_vm8, %v1664_v36  ;;  %v24053_v20 = vmov 0.0|0.0   ;;  %v124_v36 = vld [vmem:[#allocation14 + $0x68] sm:$0xff] }
 0x395   :  { %859 = vst.msk [vmem:[#allocation3] sm:$0x3] %vm85_vm1, %v858_v55  ;;  %17530 = vmatpush3.bf16.msra.mxu1 %v20853_v25  ;;  %v20857_v62 = vpack.c.bf16 %v906_v21, %v903_v10  ;;  %v909_v55 = vand.u32 4294901760, %v123_v37  ;;  %v912_v12 = vand.u32 4294901760, %v124_v36  ;;  %v23911_v46 = vand.u32 4294901760, %v20874_v28 }
 0x396   :  { %17531 = vmatprep.subr.bf16.mxu1 %v24053_v20  ;;  %v20885_v33 = vsub.f32 %v122_v43, %v906_v21  ;;  %v1030_v27 = vsub.f32 %v20876_v51, %v23910_v38 }
 0x397   :  { %v20861_v54 = vpack.c.bf16 %v912_v12, %v909_v55  ;;  %v20900_v21 = vsub.f32 %v124_v36, %v912_v12  ;;  %v20914_v12 = vsub.f32 %v125_v32, %v915_v40  ;;  %v20916_v36 = vsub.f32 %v126_v59, %v918_v35 }
 0x398   :  { %v23919_v14 = vand.u32 4294901760, %v20885_v33  ;;  %v1031_v8 = vand.u32 4294901760, %v1030_v27  ;;  %v20932_v59 = vpack.c.bf16 %v20876_v51, %v20874_v28 }
 0x399   :  { %17533 = vmatpush3.bf16.msra.mxu1 %v20857_v62  ;;  %v23917_v27 = vand.u32 4294901760, %v20900_v21 }
 0x39a   :  { %17534 = vmatprep.subr.bf16.mxu1 %v24053_v20 }
 0x39d   :  { %17536 = vmatpush3.bf16.msra.mxu1 %v20861_v54 }
 0x39e   :  { %17537 = vmatprep.subr.bf16.mxu1 %v24053_v20 }
 0x3a1   :  { %17539 = vmatpush3.bf16.msra.mxu1 %v20864_v29 }
 0x3a2   :  { %17540 = vmatprep.subr.bf16.mxu1 %v24053_v20 }
 0x3ce   :  { %v839_v34 = vpop.permute.xlu0 %838 }
 0x3cf   :  { %v20867_v16 = vmul.f32 %v20751_v56, %v839_v34  ;;  %v1023_v34 = vsub.f32 %v20874_v28, %v23911_v46  ;;  %v20883_v56 = vsub.f32 %v121_v44, %v903_v10  ;;  %v1044_v10 = vsub.f32 %v20885_v33, %v23919_v14 }
 0x3d0   :  { %v20898_v44 = vsub.f32 %v123_v37, %v909_v55  ;;  %v1058_v37 = vsub.f32 %v20900_v21, %v23917_v27  ;;  %v24058_v27 = vand.u32 4294901760, %v20771_v49 }
 0x3d1   :  { %24055 = vst [vmem:[#allocation61_spill] sm:$0xff] %v20867_v16  ;;  %861 = vrot.lane.b32.xlu0 %v20867_v16, %s20179_s26  ;;  %v1024_v1 = vand.u32 4294901760, %v1023_v34  ;;  %v23914_v53 = vand.u32 4294901760, %v20883_v56  ;;  %v1045_v38 = vand.u32 4294901760, %v1044_v10 }
 0x3d2   :  { %v23918_v46 = vand.u32 4294901760, %v20898_v44  ;;  %v1059_v55 = vand.u32 4294901760, %v1058_v37  ;;  %v20940_v37 = vpack.c.bf16 %v20900_v21, %v20898_v44 }
 0x3d3   :  { %v1037_v24 = vsub.f32 %v20883_v56, %v23914_v53  ;;  %v20902_v43 = vpack.c.bf16 %v1031_v8, %v1024_v1  ;;  %v23916_v1 = vand.u32 4294901760, %v20914_v12  ;;  %v23915_v8 = vand.u32 4294901760, %v20916_v36 }
 0x3d4   :  { %v1051_v53 = vsub.f32 %v20898_v44, %v23918_v46  ;;  %v20962_v46 = vsub.f32 %v20771_v49, %v24058_v27  ;;  %v24061_v49 = vand.u32 4294901760, %v20779_v58 }
 0x3d5   :  { %v1038_v34 = vand.u32 4294901760, %v1037_v24  ;;  %v1065_v10 = vsub.f32 %v20914_v12, %v23916_v1 }
 0x3d6   :  { %v1052_v24 = vand.u32 4294901760, %v1051_v53  ;;  %v20936_v53 = vpack.c.bf16 %v20885_v33, %v20883_v56  ;;  %v20982_v27 = vsub.f32 %v20779_v58, %v24061_v49  ;;  %v24063_v4 = vand.u32 4294901760, %v20962_v46 }
 0x3d7   :  { %v20906_v19 = vpack.c.bf16 %v1045_v38, %v1038_v34  ;;  %v1072_v34 = vsub.f32 %v20916_v36, %v23915_v8  ;;  %v1066_v40 = vand.u32 4294901760, %v1065_v10 }
 0x3d8   :  { %v20920_v38 = vpack.c.bf16 %v1059_v55, %v1052_v24  ;;  %v20944_v24 = vpack.c.bf16 %v20916_v36, %v20914_v12  ;;  %v24056_v55 = vand.u32 4294901760, %v20767_v26  ;;  %v981_v61 = vsub.f32 %v20962_v46, %v24063_v4 }
 0x3d9   :  { %v1073_v32 = vand.u32 4294901760, %v1072_v34  ;;  %v24057_v34 = vand.u32 4294901760, %v20769_v42  ;;  %v24067_v2 = vand.u32 4294901760, %v20982_v27 }
 0x3da   :  { %v20949_v10 = vsub.f32 %v20767_v26, %v24056_v55  ;;  %v24059_v26 = vand.u32 4294901760, %v20775_v52 }
 0x3db   :  { %v20928_v35 = vpack.c.bf16 %v1073_v32, %v1066_v40  ;;  %v20954_v40 = vsub.f32 %v20769_v42, %v24057_v34 }
 0x3dc   :  { %v23922_v8 = vand.u32 4294901760, %v20949_v10  ;;  %v20967_v55 = vsub.f32 %v20775_v52, %v24059_v26  ;;  %v24062_v52 = vand.u32 4294901760, %v20781_v63 }
 0x3dd   :  { %v23923_v1 = vand.u32 4294901760, %v20954_v40 }
 0x3de   :  { %v967_v42 = vsub.f32 %v20949_v10, %v23922_v8  ;;  %v20987_v26 = vsub.f32 %v20781_v63, %v24062_v52  ;;  %v24064_v58 = vand.u32 4294901760, %v20967_v55  ;;  %v982_v63 = vand.u32 4294901760, %v981_v61 }
 0x3df   :  { %v974_v34 = vsub.f32 %v20954_v40, %v23923_v1 }
 0x3e0   :  { %v968_v1 = vand.u32 4294901760, %v967_v42  ;;  %v988_v49 = vsub.f32 %v20967_v55, %v24064_v58  ;;  %v21007_v42 = vsub.f32 %v20799_v41, %v24065_v60  ;;  %v995_v60 = vsub.f32 %v20982_v27, %v24067_v2 }
 0x3e1   :  { %v975_v14 = vand.u32 4294901760, %v974_v34  ;;  %v24068_v41 = vand.u32 4294901760, %v20987_v26 }
 0x3e2   :  { %v989_v52 = vand.u32 4294901760, %v988_v49  ;;  %v996_v61 = vand.u32 4294901760, %v995_v60  ;;  %v24069_v49 = vmov 0.0   ;;  %v21066_v60 = vpack.c.bf16 %v20967_v55, %v20962_v46 }
 0x3e3   :  { %v21018_v57 = vpack.c.bf16 %v975_v14, %v968_v1  ;;  %v1002_v47 = vsub.f32 %v20987_v26, %v24068_v41  ;;  %v21074_v41 = vpack.c.bf16 %v20987_v26, %v20982_v27 }
 0x3e4   :  { %v21028_v22 = vpack.c.bf16 %v989_v52, %v982_v63 }
 0x3e5   :  { %v1003_v14 = vand.u32 4294901760, %v1002_v47 }
 0x443   :  { %v862_v32 = vpop.permute.xlu0 %861 }
 0x444   :  { %864 = vst.msk [vmem:[#allocation3] sm:$0x3] %vm149_vm4, %v862_v32 }
 0x44b   :  { %v20977_v18 = vld [vmem:[#allocation3] sm:$0x3] }
 0x44c   :  { %24060 = vst [vmem:[#allocation62_spill] sm:$0xff] %v20977_v18  ;;  %v20990_v8 = vand.u32 4294901760, %v20977_v18 }
 0x44e   :  { %v20994_v32 = vsub.f32 %v20977_v18, %v20990_v8  ;;  %v24066_v18 = vand.u32 4294901760, %v20801_v7 }
 0x450   :  { %v21012_v34 = vsub.f32 %v20801_v7, %v24066_v18  ;;  %v955_v4 = vand.u32 4294901760, %v20994_v32  ;;  %v1008_v18 = vand.u32 4294901760, %v21007_v42 }
 0x452   :  { %v956_v58 = vsub.f32 %v20994_v32, %v955_v4  ;;  %v23941_v7 = vand.u32 4294901760, %v21012_v34  ;;  %v1009_v2 = vsub.f32 %v21007_v42, %v1008_v18 }
 0x454   :  { %v957_v15 = vand.u32 4294901760, %v956_v58  ;;  %v1016_v1 = vsub.f32 %v21012_v34, %v23941_v7  ;;  %v1010_v63 = vand.u32 4294901760, %v1009_v2  ;;  %v21059_v58 = vpack.c.bf16 %v20954_v40, %v20949_v10 }
 0x455   :  { %v24071_v2 = vand.u32 4294901760, %v20954_v40  ;;  %v24077_v40 = vand.u32 4294901760, %v20987_v26  ;;  %v24082_v26 = vand.u32 4294901760, %v20876_v51  ;;  %v24088_v51 = vand.u32 4294901760, %v20900_v21 }
 0x456   :  { %14255 = vmatmul.mubr.f32.vlgmr.msra.gmra.mrb[0].mxu1 %v957_v15  ;;  %v21041_v15 = vpack.c.bf16 %v1003_v14, %v996_v61  ;;  %v1017_v52 = vand.u32 4294901760, %v1016_v1  ;;  %v21080_v61 = vpack.c.bf16 %v21012_v34, %v21007_v42  ;;  %v24070_v14 = vand.u32 4294901760, %v20949_v10 }
 0x457   :  { %17542 = vmatpush3.bf16.msra.mxu1 %v21018_v57  ;;  %14289 = vmatprep.mubr.msk.f32.mxu1 %vm20177_vm3, %v24069_v49  ;;  %v24076_v10 = vand.u32 4294901760, %v20982_v27  ;;  %v24081_v27 = vand.u32 4294901760, %v20874_v28  ;;  %v24084_v42 = vand.u32 4294901760, %v20883_v56  ;;  %v24087_v28 = vand.u32 4294901760, %v20898_v44  ;;  %v21221_v44 = vld [vmem:[%s23848_s6] ss:$0 sm:$0xff] }
 0x458   :  { %17543 = vmatprep.subr.bf16.mxu1 %v24053_v20  ;;  %v21045_v47 = vpack.c.bf16 %v1017_v52, %v1010_v63  ;;  %v21115_v1 = vpack.c.bf16 %v24071_v2, %v24070_v14  ;;  %v24073_v63 = vand.u32 4294901760, %v20962_v46  ;;  %v24074_v52 = vand.u32 4294901760, %v20967_v55 }
 0x459   :  { %v24079_v46 = vand.u32 4294901760, %v21012_v34  ;;  %v24085_v34 = vand.u32 4294901760, %v20885_v33  ;;  %v21167_v14 = vpack.c.bf16 %v24088_v51, %v24087_v28  ;;  %v24090_v56 = vand.u32 4294901760, %v20914_v12  ;;  %v135_v28 = vld [vmem:[#allocation7] sm:$0x3] }
 0x45a   :  { %24072 = vst [vmem:[#allocation63_spill] sm:$0xff] %v21115_v1  ;;  %v21125_v7 = vpack.c.bf16 %v24074_v52, %v24073_v63  ;;  %v24091_v33 = vand.u32 4294901760, %v20916_v36 }
 0x45b   :  { %17545 = vmatpush3.bf16.msra.mxu1 %v21028_v22  ;;  %v21143_v55 = vpack.c.bf16 %v24079_v46, %v1008_v18  ;;  %v21159_v18 = vpack.c.bf16 %v24085_v34, %v24084_v42  ;;  %24089 = vst [vmem:[#allocation69_spill] sm:$0xff] %v21167_v14  ;;  %v24093_v42 = vmov 0  }
 0x45c   :  { %17546 = vmatprep.subr.bf16.mxu1 %v24053_v20  ;;  %24075 = vst [vmem:[#allocation64_spill] sm:$0xff] %v21125_v7  ;;  %v21175_v2 = vpack.c.bf16 %v24091_v33, %v24090_v56 }
 0x45d   :  { %24080 = vst [vmem:[#allocation66_spill] sm:$0xff] %v21143_v55  ;;  %24086 = vst [vmem:[#allocation68_spill] sm:$0xff] %v21159_v18 }
 0x45e   :  { %24092 = vst [vmem:[#allocation70_spill] sm:$0xff] %v21175_v2 }
 0x45f   :  { %17548 = vmatpush3.bf16.msra.mxu1 %v21041_v15 }
 0x460   :  { %17549 = vmatprep.subr.bf16.mxu1 %v24053_v20 }
 0x463   :  { %17551 = vmatpush3.bf16.msra.mxu1 %v21045_v47 }
 0x464   :  { %17552 = vmatprep.subr.bf16.mxu1 %v24053_v20 }
 0x467   :  { %17554 = vmatpush3.bf16.msra.mxu1 %v20902_v43 }
 0x468   :  { %17555 = vmatprep.subr.bf16.mxu1 %v24053_v20 }
 0x46b   :  { %17557 = vmatpush3.bf16.msra.mxu1 %v20906_v19 }
 0x46c   :  { %17558 = vmatprep.subr.bf16.mxu1 %v24053_v20 }
 0x46f   :  { %17560 = vmatpush3.bf16.msra.mxu1 %v20920_v38 }
 0x470   :  { %17561 = vmatprep.subr.bf16.mxu1 %v24053_v20 }
 0x473   :  { %17563 = vmatpush3.bf16.msra.mxu1 %v20928_v35 }
 0x474   :  { %17564 = vmatprep.subr.bf16.mxu1 %v24053_v20 }
 0x476   :  { %14290 = vmatmul.mubr.f32.vlgmr.msra.gmra.mrb[0].mxu1 %v20990_v8 }
 0x477   :  { %17566 = vmatpush3.bf16.msra.mxu1 %v21059_v58  ;;  %14324 = vmatprep.mubr.msk.f32.mxu1 %vm20177_vm3, %v24069_v49 }
 0x478   :  { %17567 = vmatprep.subr.bf16.mxu1 %v24053_v20 }
 0x47b   :  { %17569 = vmatpush3.bf16.msra.mxu1 %v21066_v60 }
 0x47c   :  { %17570 = vmatprep.subr.bf16.mxu1 %v24053_v20 }
 0x47f   :  { %17572 = vmatpush3.bf16.msra.mxu1 %v21074_v41 }
 0x480   :  { %17573 = vmatprep.subr.bf16.mxu1 %v24053_v20 }
 0x483   :  { %17575 = vmatpush3.bf16.msra.mxu1 %v21080_v61 }
 0x484   :  { %17576 = vmatprep.subr.bf16.mxu1 %v24053_v20 }
 0x487   :  { %17578 = vmatpush3.bf16.msra.mxu1 %v20932_v59 }
 0x488   :  { %17579 = vmatprep.subr.bf16.mxu1 %v24053_v20 }
 0x48b   :  { %17581 = vmatpush3.bf16.msra.mxu1 %v20936_v53 }
 0x48c   :  { %17582 = vmatprep.subr.bf16.mxu1 %v24053_v20 }
 0x48f   :  { %17584 = vmatpush3.bf16.msra.mxu1 %v20940_v37 }
 0x490   :  { %17585 = vmatprep.subr.bf16.mxu1 %v24053_v20 }
 0x493   :  { %17587 = vmatpush3.bf16.msra.mxu1 %v20944_v24 }
 0x494   :  { %17588 = vmatprep.subr.bf16.mxu1 %v24053_v20 }
 0x496   :  { %14325 = vmatmul.mubr.f32.vlgmr.msra.gmra.mrb[0].mxu1 %v20994_v32  ;;  %v21135_v32 = vpack.c.bf16 %v24077_v40, %v24076_v10 }
 0x497   :  { %17590 = vmatpush3.bf16.msra.mxu1 %v20787_v5  ;;  %14359 = vmatprep.mubr.msk.f32.mxu1 %vm20177_vm3, %v24069_v49 }
 0x498   :  { %17591 = vmatprep.subr.bf16.mxu1 %v24053_v20  ;;  %24078 = vst [vmem:[#allocation65_spill] sm:$0xff] %v21135_v32 }
 0x49b   :  { %17593 = vmatpush3.bf16.msra.mxu1 %v20794_v6 }
 0x49c   :  { %17594 = vmatprep.subr.bf16.mxu1 %v24053_v20 }
 0x49f   :  { %17596 = vmatpush3.bf16.msra.mxu1 %v20809_v9 }
 0x4a0   :  { %17597 = vmatprep.subr.bf16.mxu1 %v24053_v20 }
 0x4a3   :  { %17599 = vmatpush3.bf16.msra.mxu1 %v20819_v17 }
 0x4a4   :  { %17600 = vmatprep.subr.bf16.mxu1 %v24053_v20 }
 0x4a7   :  { %17602 = vmatpush3.bf16.msra.mxu1 %v20853_v25 }
 0x4a8   :  { %17603 = vmatprep.subr.bf16.mxu1 %v24053_v20 }
 0x4ab   :  { %17605 = vmatpush3.bf16.msra.mxu1 %v20857_v62 }
 0x4ac   :  { %17606 = vmatprep.subr.bf16.mxu1 %v24053_v20 }
 0x4af   :  { %17608 = vmatpush3.bf16.msra.mxu1 %v20861_v54 }
 0x4b0   :  { %17609 = vmatprep.subr.bf16.mxu1 %v24053_v20 }
 0x4b3   :  { %17611 = vmatpush3.bf16.msra.mxu1 %v20864_v29 }
 0x4b4   :  { %17612 = vmatprep.subr.bf16.mxu1 %v24053_v20 }
 0x4b6   :  { %14360 = vmatmul.mubr.f32.vlgmr.msra.gmra.mrb[0].mxu1 %v955_v4  ;;  %v21151_v4 = vpack.c.bf16 %v24082_v26, %v24081_v27  ;;  %v136_v27 = vld [vmem:[#allocation9] sm:$0x3] }
 0x4b7   :  { %17614 = vmatpush3.bf16.msra.mxu1 %v21115_v1  ;;  %14394 = vmatprep.mubr.msk.f32.mxu1 %vm20177_vm3, %v24069_v49  ;;  %vm1520_vm9 = vcmp.gt.f32.partialorder %v136_v27, 0.5 }
 0x4b8   :  { %17615 = vmatprep.subr.bf16.mxu1 %v24053_v20  ;;  %24083 = vst [vmem:[#allocation67_spill] sm:$0xff] %v21151_v4  ;;  %v1536_v34 = vsel %vm1520_vm9, 1, %v24093_v42  ;;  %vm1546_vm11 = vmor %vm1520_vm9, %vm1521_vm10 }
 0x4bb   :  { %17617 = vmatpush3.bf16.msra.mxu1 %v21125_v7 }
 0x4bc   :  { %17618 = vmatprep.subr.bf16.mxu1 %v24053_v20 }
 0x4bf   :  { %17620 = vmatpush3.bf16.msra.mxu1 %v21135_v32 }
 0x4c0   :  { %17621 = vmatprep.subr.bf16.mxu1 %v24053_v20 }
 0x4c3   :  { %17623 = vmatpush3.bf16.msra.mxu1 %v21143_v55 }
 0x4c4   :  { %17624 = vmatprep.subr.bf16.mxu1 %v24053_v20 }
 0x4c7   :  { %17626 = vmatpush3.bf16.msra.mxu1 %v21151_v4 }
 0x4c8   :  { %17627 = vmatprep.subr.bf16.mxu1 %v24053_v20 }
 0x4cb   :  { %17629 = vmatpush3.bf16.msra.mxu1 %v21159_v18 }
 0x4cc   :  { %17630 = vmatprep.subr.bf16.mxu1 %v24053_v20 }
 0x4cf   :  { %17632 = vmatpush3.bf16.msra.mxu1 %v21167_v14 }
 0x4d0   :  { %17633 = vmatprep.subr.bf16.mxu1 %v24053_v20 }
 0x4d3   :  { %17635 = vmatpush3.bf16.msra.mxu1 %v21175_v2 }
 0x4d4   :  { %17636 = vmatprep.subr.bf16.mxu1 %v24053_v20 }
 0x4d6   :  { %14395 = vmatmul.mubr.f32.vlgmr.msra.gmra.mrb[0].mxu1 %v20990_v8 }
 0x4d7   :  { %17638 = vmatpush3.bf16.msra.mxu1 %v20787_v5  ;;  %14429 = vmatprep.mubr.msk.f32.mxu1 %vm20177_vm3, %v24069_v49 }
 0x4d8   :  { %17639 = vmatprep.subr.bf16.mxu1 %v24053_v20 }
 0x4db   :  { %17641 = vmatpush3.bf16.msra.mxu1 %v20794_v6 }
 0x4dc   :  { %17642 = vmatprep.subr.bf16.mxu1 %v24053_v20 }
 0x4df   :  { %17644 = vmatpush3.bf16.msra.mxu1 %v20809_v9 }
 0x4e0   :  { %17645 = vmatprep.subr.bf16.mxu1 %v24053_v20 }
 0x4e3   :  { %17647 = vmatpush3.bf16.msra.mxu1 %v20819_v17 }
 0x4e4   :  { %17648 = vmatprep.subr.bf16.mxu1 %v24053_v20 }
 0x4e7   :  { %17650 = vmatpush3.bf16.msra.mxu1 %v20853_v25 }
 0x4e8   :  { %17651 = vmatprep.subr.bf16.mxu1 %v24053_v20 }
 0x4eb   :  { %17653 = vmatpush3.bf16.msra.mxu1 %v20857_v62 }
 0x4ec   :  { %17654 = vmatprep.subr.bf16.mxu1 %v24053_v20 }
 0x4ef   :  { %17656 = vmatpush3.bf16.msra.mxu1 %v20861_v54 }
 0x4f0   :  { %17657 = vmatprep.subr.bf16.mxu1 %v24053_v20 }
 0x4f3   :  { %17659 = vmatpush3.bf16.msra.mxu1 %v20864_v29 }
 0x4f4   :  { %17804 = vmatprep.subr.bf16.mxu1 %v24053_v20 }
 0x4f6   :  { %14430 = vmatmul.mubr.f32.vlgmr.msra.gmra.mrb[0].mxu1 %v20990_v8 }
 0x4f7   :  { %17806 = vmatpush3.bf16.msra.mxu1 %v20787_v5  ;;  %14674 = vmatprep.mubr.msk.f32.mxu1 %vm20177_vm3, %v24069_v49 }
 0x4f8   :  { %17807 = vmatprep.subr.bf16.mxu1 %v24053_v20 }
 0x4fb   :  { %17809 = vmatpush3.bf16.msra.mxu1 %v20794_v6 }
 0x4fc   :  { %17810 = vmatprep.subr.bf16.mxu1 %v24053_v20 }
 0x4ff   :  { %17812 = vmatpush3.bf16.msra.mxu1 %v20809_v9 }
 0x500   :  { %17813 = vmatprep.subr.bf16.mxu1 %v24053_v20 }
 0x503   :  { %17815 = vmatpush3.bf16.msra.mxu1 %v20819_v17 }
 0x504   :  { %17816 = vmatprep.subr.bf16.mxu1 %v24053_v20 }
 0x507   :  { %17818 = vmatpush3.bf16.msra.mxu1 %v20853_v25 }
 0x508   :  { %17819 = vmatprep.subr.bf16.mxu1 %v24053_v20 }
 0x50b   :  { %17821 = vmatpush3.bf16.msra.mxu1 %v20857_v62 }
 0x50c   :  { %17822 = vmatprep.subr.bf16.mxu1 %v24053_v20 }
 0x50f   :  { %17824 = vmatpush3.bf16.msra.mxu1 %v20861_v54 }
 0x510   :  { %17825 = vmatprep.subr.bf16.mxu1 %v24053_v20 }
 0x513   :  { %17827 = vmatpush3.bf16.msra.mxu1 %v20864_v29 }
 0x514   :  { %17828 = vmatprep.subr.bf16.mxu1 %v24053_v20 }
 0x5c9   :  { %v1509_v21 = vpop.f32.mrb[0].mxu1 }
 0x5ca   :  { %v19677_v12 = vadd.f32 %v21221_v44, %v1509_v21  ;;  %v14431_v36 = vpop.f32.mrb[1].mxu1 }
 0x5cc   :  { %19879 = vtanh.f32 %v19677_v12  ;;  %v12349_v63 = vmul.f32 -1.442695, %v19677_v12  ;;  %v1553_v12 = vsel %vm1546_vm11, 1, %v24093_v42  ;;  %v1693_v42 = vld [vmem:[%s23842_s0 + $0x1] sm:$0x1] }
 0x5ce   :  { %19881 = vpow2.f32 %v12349_v63 }
 0x5d6   :  { %v19880_v8 = vpop.eup %19879 }
 0x5d7   :  { %1523 = vrot.lane.b32.xlu0 %v19880_v8, %s20175_s25 }
 0x5d8   :  { %v19882_v52 = vpop.eup %19881 }
 0x5d9   :  { %v1516_v10 = vadd.f32 1.0, %v19882_v52 }
 0x5db   :  { %19883 = vrcp.f32 %v1516_v10  ;;  %v1694_v10 = vld [vmem:[%s23842_s0 + $0x9] sm:$0x1] }
 0x5dc   :  { %v1697_v27 = vrot.slane %v1694_v10, 7 }
 0x5e5   :  { %v19884_v40 = vpop.eup %19883 }
 0x5e6   :  { %v1527_v51 = vmul.f32 %v19884_v40, %v135_v28 }
 0x649   :  { %v1524_v46 = vpop.permute.xlu0 %1523 }
 0x64a   :  { %v1526_v26 = vmul.f32 %v19884_v40, %v1524_v46  ;;  %v19999_v46 = vld [vmem:[#allocation6] sm:$0x3] }
 0x64c   :  { %1529 = vrot.lane.b32.xlu0 %v1526_v26, %s20179_s26 }
 0x650   :  { %1538 = vperm.xlu0 %19869, %v1536_v34  }
 0x6be   :  { %v1530_v56 = vpop.permute.xlu0 %1529 }
 0x6bf   :  { %v1532_v33 = vadd.f32 %v1530_v56, %v1527_v51 }
 0x6c1   :  { %v1535_v21 = vsel %vm1521_vm10, %v1532_v33, %v135_v28 }
 0x6c2   :  { %1542 = vrot.lane.b32.xlu0 %v1535_v21, %s20178_s27 }
 0x6c6   :  { %1555 = vperm.xlu0 %19869, %v1553_v12  }
 0x6cf   :  { %v1539_v36 = vpop.permute.xlu0 %1538 }
 0x6d0   :  { %vm1540_vm12 = vcmp.eq.s32.totalorder %v1539_v36, 1 }
 0x734   :  { %v1543_v8 = vpop.permute.xlu0 %1542 }
 0x735   :  { %v21230_v63 = vsel %vm1540_vm12, %v1526_v26, %v1543_v8  ;;  %v1698_v26 = vsel %vm156_vm2, %v1697_v27, %v1693_v42 }
 0x736   :  { %19885 = vtanh.f32 %v21230_v63 }
 0x740   :  { %v19886_v52 = vpop.eup %19885 }
 0x741   :  { %1549 = vrot.lane.b32.xlu0 %v19886_v52, %s20178_s27 }
 0x745   :  { %1559 = vrot.lane.b32.xlu0 %v19999_v46, %s20175_s25  ;;  %v1556_v34 = vpop.permute.xlu0 %1555 }
 0x746   :  { %vm1557_vm13 = vcmp.eq.s32.totalorder %v1556_v34, 1  ;;  %v24096_v34 = vld [vmem:[#allocation44_spill] sm:$0xff] }
 0x749   :  { %1683 = vrot.lane.b32.xlu0 %v20867_v16, %s20175_s25  ;;  %v24110_v16 = vld [vmem:[#allocation36_spill] sm:$0xff] }
 0x74d   :  { %1699 = vrot.lane.b32.xlu0 %v1698_v26, %s20175_s25 }
 0x751   :  { %2359 = vrot.lane.b32.xlu0 %v20764_v23, %s20179_s26 }
 0x7b3   :  { %v1550_v28 = vpop.permute.xlu0 %1549 }
 0x7b4   :  { %v1552_v51 = vmul.f32 %v19884_v40, %v1550_v28  ;;  %v24097_v28 = vld [vmem:[#allocation45_spill] sm:$0xff] }
 0x7b7   :  { %v1560_v56 = vpop.permute.xlu0 %1559 }
 0x7b8   :  { %v21247_v33 = vsel %vm1557_vm13, %v1552_v51, %v1560_v56  ;;  %v24098_v51 = vld [vmem:[#allocation46_spill] sm:$0xff]  ;;  %v24099_v56 = vld [vmem:[#allocation39_spill] sm:$0xff] }
 0x7b9   :  { %24094 = vst [vmem:[#allocation71_spill] sm:$0xff] %v21247_v33  ;;  %v1687_v21 = vmul.f32 %v20836_v13, %v21247_v33 }
 0x7bb   :  { %1689 = vrot.lane.b32.xlu1 %v1687_v21, %s20179_s26  ;;  %v1684_v12 = vpop.permute.xlu0 %1683  ;;  %v24100_v21 = vld [vmem:[#allocation40_spill] sm:$0xff] }
 0x7bc   :  { %1686 = vst.msk [vmem:[#allocation2] sm:$0x3] %vm85_vm1, %v1684_v12  ;;  %v24101_v12 = vld [vmem:[#allocation41_spill] sm:$0xff] }
 0x7bf   :  { %v1700_v8 = vpop.permute.xlu0 %1699 }
 0x82d   :  { %v1690_v36 = vpop.permute.xlu1 %1689 }
 0x82e   :  { %1692 = vst.msk [vmem:[#allocation2] sm:$0x3] %vm149_vm4, %v1690_v36  ;;  %v24102_v36 = vld [vmem:[#allocation42_spill] sm:$0xff] }
 0x82f   :  { %1702 = vst.msk [vmem:[#allocation2] sm:$0x3] %vm161_vm5, %v1700_v8  ;;  %v24103_v8 = vld [vmem:[#allocation29_spill] sm:$0xff] }
 0x836   :  { %v1703_v23 = vld [vmem:[#allocation2] sm:$0x3] }
 0x837   :  { %v2375_v40 = vmul.f32 %v20758_v45, %v1703_v23  ;;  %v21256_v52 = vand.u32 4294901760, %v1703_v23  ;;  %v24095_v45 = vld [vmem:[#allocation43_spill] sm:$0xff] }
 0x839   :  { %v2376_v10 = vsel %vm849_vm6, %v2375_v40, 0.0  ;;  %v1786_v46 = vsub.f32 %v1703_v23, %v21256_v52  ;;  %v24104_v23 = vld [vmem:[#allocation30_spill] sm:$0xff]  ;;  %v24105_v40 = vld [vmem:[#allocation31_spill] sm:$0xff] }
 0x83a   :  { %2377 = vadd.xlane.f32.xlu1 %v2376_v10  ;;  %v24106_v10 = vld [vmem:[#allocation32_spill] sm:$0xff] }
 0x83b   :  { %v1787_v27 = vand.u32 4294901760, %v1786_v46 }
 0x83d   :  { %v1788_v42 = vsub.f32 %v1786_v46, %v1787_v27 }
 0x83f   :  { %v1789_v26 = vand.u32 4294901760, %v1788_v42  ;;  %v24108_v42 = vld [vmem:[#allocation34_spill] sm:$0xff] }
 0x841   :  { %14465 = vmatmul.mubr.f32.vlgmr.msra.gmra.mrb[2].mxu0 %v1789_v26  ;;  %v24109_v26 = vld [vmem:[#allocation35_spill] sm:$0xff] }
 0x842   :  { %17686 = vmatpush3.bf16.msra.mxu0 %v20543_v0  ;;  %14499 = vmatprep.mubr.msk.f32.mxu0 %vm20177_vm3, %v24069_v49 }
 0x843   :  { %17687 = vmatprep.subr.bf16.mxu0 %v24053_v20 }
 0x846   :  { %17689 = vmatpush3.bf16.msra.mxu0 %v20553_v30 }
 0x847   :  { %17690 = vmatprep.subr.bf16.mxu0 %v24053_v20 }
 0x84a   :  { %17692 = vmatpush3.bf16.msra.mxu0 %v20566_v31 }
 0x84b   :  { %17693 = vmatprep.subr.bf16.mxu0 %v24053_v20 }
 0x84e   :  { %17695 = vmatpush3.bf16.msra.mxu0 %v20570_v11 }
 0x84f   :  { %17696 = vmatprep.subr.bf16.mxu0 %v24053_v20 }
 0x852   :  { %17698 = vmatpush3.bf16.msra.mxu0 %v20416_v3 }
 0x853   :  { %17699 = vmatprep.subr.bf16.mxu0 %v24053_v20 }
 0x856   :  { %17701 = vmatpush3.bf16.msra.mxu0 %v20440_v39 }
 0x857   :  { %17702 = vmatprep.subr.bf16.mxu0 %v24053_v20 }
 0x85a   :  { %17704 = vmatpush3.bf16.msra.mxu0 %v20444_v50 }
 0x85b   :  { %17705 = vmatprep.subr.bf16.mxu0 %v24053_v20 }
 0x85e   :  { %17707 = vmatpush3.bf16.msra.mxu0 %v20452_v48 }
 0x85f   :  { %17708 = vmatprep.subr.bf16.mxu0 %v24053_v20 }
 0x861   :  { %14500 = vmatmul.mubr.f32.vlgmr.msra.gmra.mrb[2].mxu0 %v21256_v52 }
 0x862   :  { %17710 = vmatpush3.bf16.msra.mxu0 %v24095_v45  ;;  %14534 = vmatprep.mubr.msk.f32.mxu0 %vm20177_vm3, %v24069_v49 }
 0x863   :  { %17711 = vmatprep.subr.bf16.mxu0 %v24053_v20 }
 0x866   :  { %17713 = vmatpush3.bf16.msra.mxu0 %v24096_v34 }
 0x867   :  { %17714 = vmatprep.subr.bf16.mxu0 %v24053_v20 }
 0x86a   :  { %17716 = vmatpush3.bf16.msra.mxu0 %v24097_v28  ;;  %v24121_v28 = vld [vmem:[#allocation59_spill] sm:$0xff] }
 0x86b   :  { %17717 = vmatprep.subr.bf16.mxu0 %v24053_v20 }
 0x86e   :  { %17719 = vmatpush3.bf16.msra.mxu0 %v24098_v51  ;;  %v24117_v51 = vld [vmem:[#allocation53_spill] sm:$0xff] }
 0x86f   :  { %17720 = vmatprep.subr.bf16.mxu0 %v24053_v20 }
 0x872   :  { %17722 = vmatpush3.bf16.msra.mxu0 %v24099_v56  ;;  %v24114_v56 = vld [vmem:[#allocation50_spill] sm:$0xff] }
 0x873   :  { %17723 = vmatprep.subr.bf16.mxu0 %v24053_v20 }
 0x876   :  { %17725 = vmatpush3.bf16.msra.mxu0 %v24100_v21  ;;  %v24113_v21 = vld [vmem:[#allocation49_spill] sm:$0xff] }
 0x877   :  { %17726 = vmatprep.subr.bf16.mxu0 %v24053_v20 }
 0x87a   :  { %17728 = vmatpush3.bf16.msra.mxu0 %v24101_v12  ;;  %v24112_v12 = vld [vmem:[#allocation48_spill] sm:$0xff] }
 0x87b   :  { %17729 = vmatprep.subr.bf16.mxu0 %v24053_v20 }
 0x87e   :  { %17731 = vmatpush3.bf16.msra.mxu0 %v24102_v36  ;;  %v24111_v36 = vld [vmem:[#allocation47_spill] sm:$0xff] }
 0x87f   :  { %17732 = vmatprep.subr.bf16.mxu0 %v24053_v20 }
 0x881   :  { %14535 = vmatmul.mubr.f32.vlgmr.msra.gmra.mrb[2].mxu0 %v1786_v46  ;;  %v24107_v46 = vld [vmem:[#allocation33_spill] sm:$0xff] }
 0x882   :  { %17734 = vmatpush3.bf16.msra.mxu0 %v24103_v8  ;;  %14569 = vmatprep.mubr.msk.f32.mxu0 %vm20177_vm3, %v24069_v49 }
 0x883   :  { %17735 = vmatprep.subr.bf16.mxu0 %v24053_v20 }
 0x886   :  { %17737 = vmatpush3.bf16.msra.mxu0 %v24104_v23 }
 0x887   :  { %17738 = vmatprep.subr.bf16.mxu0 %v24053_v20 }
 0x88a   :  { %17740 = vmatpush3.bf16.msra.mxu0 %v24105_v40 }
 0x88b   :  { %17741 = vmatprep.subr.bf16.mxu0 %v24053_v20 }
 0x88e   :  { %17743 = vmatpush3.bf16.msra.mxu0 %v24106_v10 }
 0x88f   :  { %17744 = vmatprep.subr.bf16.mxu0 %v24053_v20 }
 0x892   :  { %17746 = vmatpush3.bf16.msra.mxu0 %v24107_v46 }
 0x893   :  { %17747 = vmatprep.subr.bf16.mxu0 %v24053_v20 }
 0x896   :  { %17749 = vmatpush3.bf16.msra.mxu0 %v24108_v42 }
 0x897   :  { %17750 = vmatprep.subr.bf16.mxu0 %v24053_v20 }
 0x89a   :  { %17752 = vmatpush3.bf16.msra.mxu0 %v24109_v26 }
 0x89b   :  { %17753 = vmatprep.subr.bf16.mxu0 %v24053_v20 }
 0x89e   :  { %17755 = vmatpush3.bf16.msra.mxu0 %v24110_v16 }
 0x89f   :  { %17756 = vmatprep.subr.bf16.mxu0 %v24053_v20 }
 0x8a1   :  { %14570 = vmatmul.mubr.f32.vlgmr.msra.gmra.mrb[2].mxu0 %v1787_v27  ;;  %v24115_v27 = vld [vmem:[#allocation51_spill] sm:$0xff] }
 0x8a2   :  { %17758 = vmatpush3.bf16.msra.mxu0 %v24111_v36  ;;  %14604 = vmatprep.mubr.msk.f32.mxu0 %vm20177_vm3, %v24069_v49  ;;  %v24116_v36 = vld [vmem:[#allocation52_spill] sm:$0xff] }
 0x8a3   :  { %17759 = vmatprep.subr.bf16.mxu0 %v24053_v20 }
 0x8a6   :  { %17761 = vmatpush3.bf16.msra.mxu0 %v24112_v12  ;;  %v24118_v12 = vld [vmem:[#allocation54_spill] sm:$0xff] }
 0x8a7   :  { %17762 = vmatprep.subr.bf16.mxu0 %v24053_v20 }
 0x8aa   :  { %17764 = vmatpush3.bf16.msra.mxu0 %v24113_v21 }
 0x8ab   :  { %17765 = vmatprep.subr.bf16.mxu0 %v24053_v20 }
 0x8ae   :  { %17767 = vmatpush3.bf16.msra.mxu0 %v24114_v56  ;;  %v24120_v56 = vld [vmem:[#allocation58_spill] sm:$0xff] }
 0x8af   :  { %17768 = vmatprep.subr.bf16.mxu0 %v24053_v20 }
 0x8b2   :  { %17770 = vmatpush3.bf16.msra.mxu0 %v24115_v27 }
 0x8b3   :  { %17771 = vmatprep.subr.bf16.mxu0 %v24053_v20 }
 0x8b6   :  { %17773 = vmatpush3.bf16.msra.mxu0 %v24116_v36 }
 0x8b7   :  { %17774 = vmatprep.subr.bf16.mxu0 %v24053_v20 }
 0x8ba   :  { %17776 = vmatpush3.bf16.msra.mxu0 %v24117_v51  ;;  %v24119_v51 = vld [vmem:[#allocation57_spill] sm:$0xff] }
 0x8bb   :  { %17777 = vmatprep.subr.bf16.mxu0 %v24053_v20 }
 0x8be   :  { %17779 = vmatpush3.bf16.msra.mxu0 %v24118_v12 }
 0x8bf   :  { %17780 = vmatprep.subr.bf16.mxu0 %v24053_v20 }
 0x8c1   :  { %14605 = vmatmul.mubr.f32.vlgmr.msra.gmra.mrb[2].mxu0 %v21256_v52 }
 0x8c2   :  { %17782 = vmatpush3.bf16.msra.mxu0 %v24103_v8  ;;  %14639 = vmatprep.mubr.msk.f32.mxu0 %vm20177_vm3, %v24069_v49 }
 0x8c3   :  { %17783 = vmatprep.subr.bf16.mxu0 %v24053_v20 }
 0x8c6   :  { %17785 = vmatpush3.bf16.msra.mxu0 %v24104_v23 }
 0x8c7   :  { %v2378_v36 = vpop.xlane.xlu1 %2377  ;;  %17786 = vmatprep.subr.bf16.mxu0 %v24053_v20 }
 0x8c8   :  { %v2379_v27 = vadd.f32 %v2378_v36, %v24119_v51 }
 0x8ca   :  { %vm2380_vm14 = vcmp.gt.f32.partialorder %v2379_v27, 0.0  ;;  %17788 = vmatpush3.bf16.msra.mxu0 %v24105_v40 }
 0x8cb   :  { %v21343_v12 = vsel %vm2380_vm14, 1.0, %v24069_v49  ;;  %17789 = vmatprep.subr.bf16.mxu0 %v24053_v20 }
 0x8cc   :  { %v3169_v21 = vrot.slane %v21343_v12, %v24120_v56  ;;  %v3173_v34 = vrot.slane %v21343_v12, %v24121_v28  ;;  %vm3044_vm15 = vcmp.gt.f32.partialorder %v21343_v12, 0.5 }
 0x8ce   :  { %3176 = vst.msk [vmem:[%s23852_s10 + $0x1] sm:$0x1] %vm1667_vm8, %v3169_v21  ;;  %3177 = vst.msk [vmem:[%s23852_s10 + $0x9] sm:$0x1] %vm1667_vm8, %v3173_v34  ;;  %17791 = vmatpush3.bf16.msra.mxu0 %v24106_v10  ;;  %v24122_v34 = vld [vmem:[#allocation55_spill] sm:$0xff] }
 0x8cf   :  { %17792 = vmatprep.subr.bf16.mxu0 %v24053_v20 }
 0x8d2   :  { %17794 = vmatpush3.bf16.msra.mxu0 %v24107_v46 }
 0x8d3   :  { %17795 = vmatprep.subr.bf16.mxu0 %v24053_v20 }
 0x8d6   :  { %17797 = vmatpush3.bf16.msra.mxu0 %v24108_v42 }
 0x8d7   :  { %17798 = vmatprep.subr.bf16.mxu0 %v24053_v20 }
 0x8da   :  { %17800 = vmatpush3.bf16.msra.mxu0 %v24109_v26 }
 0x8db   :  { %17801 = vmatprep.subr.bf16.mxu0 %v24053_v20 }
 0x8de   :  { %17803 = vmatpush3.bf16.msra.mxu0 %v24110_v16 }
 0x8df   :  { %17948 = vmatprep.subr.bf16.mxu0 %v24053_v20 }
 0x8e1   :  { %14640 = vmatmul.mubr.f32.vlgmr.msra.gmra.mrb[2].mxu0 %v21256_v52 }
 0x8e2   :  { %17950 = vmatpush3.bf16.msra.mxu0 %v24103_v8  ;;  %14884 = vmatprep.mubr.msk.f32.mxu0 %vm20177_vm3, %v24069_v49 }
 0x8e3   :  { %17951 = vmatprep.subr.bf16.mxu0 %v24053_v20 }
 0x8e6   :  { %17953 = vmatpush3.bf16.msra.mxu0 %v24104_v23 }
 0x8e7   :  { %17954 = vmatprep.subr.bf16.mxu0 %v24053_v20 }
 0x8ea   :  { %17956 = vmatpush3.bf16.msra.mxu0 %v24105_v40  ;;  %v2357_v40 = vsub.f32 1.0, %v20836_v13 }
 0x8eb   :  { %17957 = vmatprep.subr.bf16.mxu0 %v24053_v20 }
 0x8ee   :  { %17959 = vmatpush3.bf16.msra.mxu0 %v24106_v10  ;;  %v2360_v10 = vpop.permute.xlu0 %2359 }
 0x8ef   :  { %17960 = vmatprep.subr.bf16.mxu0 %v24053_v20 }
 0x8f2   :  { %17962 = vmatpush3.bf16.msra.mxu0 %v24107_v46 }
 0x8f3   :  { %17963 = vmatprep.subr.bf16.mxu0 %v24053_v20 }
 0x8f6   :  { %17965 = vmatpush3.bf16.msra.mxu0 %v24108_v42 }
 0x8f7   :  { %17966 = vmatprep.subr.bf16.mxu0 %v24053_v20 }
 0x8fa   :  { %17968 = vmatpush3.bf16.msra.mxu0 %v24109_v26 }
 0x8fb   :  { %17969 = vmatprep.subr.bf16.mxu0 %v24053_v20 }
 0x8fe   :  { %17971 = vmatpush3.bf16.msra.mxu0 %v24110_v16 }
 0x8ff   :  { %17972 = vmatprep.subr.bf16.mxu0 %v24053_v20 }
 0x9b4   :  { %v2341_v52 = vpop.f32.mrb[2].mxu0 }
 0x9b5   :  { %v19678_v21 = vadd.f32 %v24122_v34, %v2341_v52  ;;  %v14641_v36 = vpop.f32.mrb[3].mxu0 }
 0x9b7   :  { %v12352_v27 = vmul.f32 -1.442695, %v19678_v21  ;;  %19887 = vtanh.f32 %v19678_v21 }
 0x9b9   :  { %19889 = vpow2.f32 %v12352_v27 }
 0x9c1   :  { %v19888_v51 = vpop.eup %19887 }
 0x9c2   :  { %2353 = vrot.lane.b32.xlu0 %v19888_v51, %s20175_s25  ;;  %v2383_v51 = vmul.f32 %v21343_v12, %v21247_v33 }
 0x9c3   :  { %v19890_v42 = vpop.eup %19889 }
 0x9c4   :  { %v2348_v46 = vadd.f32 1.0, %v19890_v42 }
 0x9c6   :  { %19891 = vrcp.f32 %v2348_v46 }
 0x9d0   :  { %v19892_v26 = vpop.eup %19891 }
 0x9d1   :  { %v2362_v16 = vmul.f32 %v19892_v26, %v2360_v10 }
 0x9d3   :  { %v2363_v23 = vmul.f32 %v2362_v16, %v2357_v40 }
 0x9d5   :  { %2365 = vrot.lane.b32.xlu0 %v2363_v23, %s20178_s27 }
 0xa34   :  { %v2354_v8 = vpop.permute.xlu0 %2353 }
 0xa35   :  { %v2356_v52 = vmul.f32 %v19892_v26, %v2354_v8 }
 0xa47   :  { %v2366_v34 = vpop.permute.xlu0 %2365 }
 0xa48   :  { %v21391_v36 = vadd.f32 %v2366_v34, %v2356_v52 }
 0xa4a   :  { %19893 = vtanh.f32 %v21391_v36 }
 0xa54   :  { %v19894_v21 = vpop.eup %19893 }
 0xa55   :  { %2371 = vrot.lane.b32.xlu0 %v19894_v21, %s20178_s27 }
 0xa59   :  { %2385 = vrot.lane.b32.xlu0 %v2383_v51, %s20175_s25 }
 0xac7   :  { %v2372_v13 = vpop.permute.xlu0 %2371 }
 0xac8   :  { %v21398_v10 = vmul.f32 %v19892_v26, %v2372_v13 }
 0xaca   :  { %24123 = vst [vmem:[#allocation58_spill] sm:$0xff] %v21398_v10  ;;  %2390 = vrot.lane.b32.xlu0 %v21398_v10, %s20179_s26 }
 0xacb   :  { %v2386_v16 = vpop.permute.xlu0 %2385 }
 0xacc   :  { %2388 = vst.msk [vmem:[#allocation3] sm:$0x3] %vm85_vm1, %v2386_v16 }
 0xb3c   :  { %v2391_v8 = vpop.permute.xlu0 %2390 }
 0xb3d   :  { %2393 = vst.msk [vmem:[#allocation3] sm:$0x3] %vm149_vm4, %v2391_v8 }
 0xb44   :  { %v21404_v23 = vld [vmem:[#allocation3] sm:$0x3] }
 0xb45   :  { %v21407_v40 = vand.u32 4294901760, %v21404_v23 }
 0xb47   :  { %v2477_v46 = vsub.f32 %v21404_v23, %v21407_v40 }
 0xb49   :  { %v2478_v42 = vand.u32 4294901760, %v2477_v46 }
 0xb4b   :  { %v2479_v26 = vsub.f32 %v2477_v46, %v2478_v42 }
 0xb4d   :  { %v2480_v27 = vand.u32 4294901760, %v2479_v26  ;;  %v24124_v26 = vld [vmem:[#allocation62_spill] sm:$0xff] }
 0xb4f   :  { %14675 = vmatmul.mubr.f32.vlgmr.msra.gmra.mrb[2].mxu1 %v2480_v27 }
 0xb50   :  { %17830 = vmatpush3.bf16.msra.mxu1 %v21018_v57  ;;  %14709 = vmatprep.mubr.msk.f32.mxu1 %vm20177_vm3, %v24069_v49 }
 0xb51   :  { %17831 = vmatprep.subr.bf16.mxu1 %v24053_v20 }
 0xb54   :  { %17833 = vmatpush3.bf16.msra.mxu1 %v21028_v22 }
 0xb55   :  { %17834 = vmatprep.subr.bf16.mxu1 %v24053_v20 }
 0xb58   :  { %17836 = vmatpush3.bf16.msra.mxu1 %v21041_v15 }
 0xb59   :  { %17837 = vmatprep.subr.bf16.mxu1 %v24053_v20 }
 0xb5c   :  { %17839 = vmatpush3.bf16.msra.mxu1 %v21045_v47 }
 0xb5d   :  { %17840 = vmatprep.subr.bf16.mxu1 %v24053_v20 }
 0xb60   :  { %17842 = vmatpush3.bf16.msra.mxu1 %v20902_v43 }
 0xb61   :  { %17843 = vmatprep.subr.bf16.mxu1 %v24053_v20 }
 0xb64   :  { %17845 = vmatpush3.bf16.msra.mxu1 %v20906_v19 }
 0xb65   :  { %17846 = vmatprep.subr.bf16.mxu1 %v24053_v20 }
 0xb68   :  { %17848 = vmatpush3.bf16.msra.mxu1 %v20920_v38 }
 0xb69   :  { %17849 = vmatprep.subr.bf16.mxu1 %v24053_v20 }
 0xb6c   :  { %17851 = vmatpush3.bf16.msra.mxu1 %v20928_v35 }
 0xb6d   :  { %17852 = vmatprep.subr.bf16.mxu1 %v24053_v20 }
 0xb6f   :  { %14710 = vmatmul.mubr.f32.vlgmr.msra.gmra.mrb[2].mxu1 %v21407_v40 }
 0xb70   :  { %17854 = vmatpush3.bf16.msra.mxu1 %v21059_v58  ;;  %14744 = vmatprep.mubr.msk.f32.mxu1 %vm20177_vm3, %v24069_v49 }
 0xb71   :  { %17855 = vmatprep.subr.bf16.mxu1 %v24053_v20 }
 0xb74   :  { %17857 = vmatpush3.bf16.msra.mxu1 %v21066_v60 }
 0xb75   :  { %17858 = vmatprep.subr.bf16.mxu1 %v24053_v20 }
 0xb78   :  { %17860 = vmatpush3.bf16.msra.mxu1 %v21074_v41 }
 0xb79   :  { %17861 = vmatprep.subr.bf16.mxu1 %v24053_v20 }
 0xb7c   :  { %17863 = vmatpush3.bf16.msra.mxu1 %v21080_v61 }
 0xb7d   :  { %17864 = vmatprep.subr.bf16.mxu1 %v24053_v20 }
 0xb80   :  { %17866 = vmatpush3.bf16.msra.mxu1 %v20932_v59 }
 0xb81   :  { %17867 = vmatprep.subr.bf16.mxu1 %v24053_v20 }
 0xb84   :  { %17869 = vmatpush3.bf16.msra.mxu1 %v20936_v53 }
 0xb85   :  { %17870 = vmatprep.subr.bf16.mxu1 %v24053_v20 }
 0xb88   :  { %17872 = vmatpush3.bf16.msra.mxu1 %v20940_v37 }
 0xb89   :  { %17873 = vmatprep.subr.bf16.mxu1 %v24053_v20 }
 0xb8c   :  { %17875 = vmatpush3.bf16.msra.mxu1 %v20944_v24 }
 0xb8d   :  { %17876 = vmatprep.subr.bf16.mxu1 %v24053_v20 }
 0xb8f   :  { %14745 = vmatmul.mubr.f32.vlgmr.msra.gmra.mrb[2].mxu1 %v2477_v46 }
 0xb90   :  { %17878 = vmatpush3.bf16.msra.mxu1 %v20787_v5  ;;  %14779 = vmatprep.mubr.msk.f32.mxu1 %vm20177_vm3, %v24069_v49 }
 0xb91   :  { %17879 = vmatprep.subr.bf16.mxu1 %v24053_v20 }
 0xb94   :  { %17881 = vmatpush3.bf16.msra.mxu1 %v20794_v6 }
 0xb95   :  { %17882 = vmatprep.subr.bf16.mxu1 %v24053_v20 }
 0xb98   :  { %17884 = vmatpush3.bf16.msra.mxu1 %v20809_v9 }
 0xb99   :  { %17885 = vmatprep.subr.bf16.mxu1 %v24053_v20 }
 0xb9c   :  { %17887 = vmatpush3.bf16.msra.mxu1 %v20819_v17 }
 0xb9d   :  { %17888 = vmatprep.subr.bf16.mxu1 %v24053_v20 }
 0xba0   :  { %17890 = vmatpush3.bf16.msra.mxu1 %v20853_v25 }
 0xba1   :  { %17891 = vmatprep.subr.bf16.mxu1 %v24053_v20 }
 0xba4   :  { %17893 = vmatpush3.bf16.msra.mxu1 %v20857_v62 }
 0xba5   :  { %17894 = vmatprep.subr.bf16.mxu1 %v24053_v20 }
 0xba8   :  { %17896 = vmatpush3.bf16.msra.mxu1 %v20861_v54 }
 0xba9   :  { %17897 = vmatprep.subr.bf16.mxu1 %v24053_v20 }
 0xbac   :  { %17899 = vmatpush3.bf16.msra.mxu1 %v20864_v29 }
 0xbad   :  { %17900 = vmatprep.subr.bf16.mxu1 %v24053_v20 }
 0xbaf   :  { %14780 = vmatmul.mubr.f32.vlgmr.msra.gmra.mrb[2].mxu1 %v2478_v42 }
 0xbb0   :  { %17902 = vmatpush3.bf16.msra.mxu1 %v21115_v1  ;;  %14814 = vmatprep.mubr.msk.f32.mxu1 %vm20177_vm3, %v24069_v49 }
 0xbb1   :  { %17903 = vmatprep.subr.bf16.mxu1 %v24053_v20 }
 0xbb4   :  { %17905 = vmatpush3.bf16.msra.mxu1 %v21125_v7 }
 0xbb5   :  { %17906 = vmatprep.subr.bf16.mxu1 %v24053_v20 }
 0xbb8   :  { %17908 = vmatpush3.bf16.msra.mxu1 %v21135_v32 }
 0xbb9   :  { %17909 = vmatprep.subr.bf16.mxu1 %v24053_v20 }
 0xbbc   :  { %17911 = vmatpush3.bf16.msra.mxu1 %v21143_v55 }
 0xbbd   :  { %17912 = vmatprep.subr.bf16.mxu1 %v24053_v20 }
 0xbc0   :  { %17914 = vmatpush3.bf16.msra.mxu1 %v21151_v4 }
 0xbc1   :  { %17915 = vmatprep.subr.bf16.mxu1 %v24053_v20 }
 0xbc4   :  { %17917 = vmatpush3.bf16.msra.mxu1 %v21159_v18 }
 0xbc5   :  { %17918 = vmatprep.subr.bf16.mxu1 %v24053_v20 }
 0xbc8   :  { %17920 = vmatpush3.bf16.msra.mxu1 %v21167_v14 }
 0xbc9   :  { %17921 = vmatprep.subr.bf16.mxu1 %v24053_v20 }
 0xbcc   :  { %17923 = vmatpush3.bf16.msra.mxu1 %v21175_v2 }
 0xbcd   :  { %17924 = vmatprep.subr.bf16.mxu1 %v24053_v20 }
 0xbcf   :  { %14815 = vmatmul.mubr.f32.vlgmr.msra.gmra.mrb[2].mxu1 %v21407_v40 }
 0xbd0   :  { %17926 = vmatpush3.bf16.msra.mxu1 %v20787_v5  ;;  %14849 = vmatprep.mubr.msk.f32.mxu1 %vm20177_vm3, %v24069_v49 }
 0xbd1   :  { %17927 = vmatprep.subr.bf16.mxu1 %v24053_v20 }
 0xbd4   :  { %17929 = vmatpush3.bf16.msra.mxu1 %v20794_v6 }
 0xbd5   :  { %17930 = vmatprep.subr.bf16.mxu1 %v24053_v20 }
 0xbd8   :  { %17932 = vmatpush3.bf16.msra.mxu1 %v20809_v9 }
 0xbd9   :  { %17933 = vmatprep.subr.bf16.mxu1 %v24053_v20 }
 0xbdc   :  { %17935 = vmatpush3.bf16.msra.mxu1 %v20819_v17 }
 0xbdd   :  { %17936 = vmatprep.subr.bf16.mxu1 %v24053_v20 }
 0xbe0   :  { %17938 = vmatpush3.bf16.msra.mxu1 %v20853_v25 }
 0xbe1   :  { %17939 = vmatprep.subr.bf16.mxu1 %v24053_v20 }
 0xbe4   :  { %17941 = vmatpush3.bf16.msra.mxu1 %v20857_v62 }
 0xbe5   :  { %17942 = vmatprep.subr.bf16.mxu1 %v24053_v20 }
 0xbe8   :  { %17944 = vmatpush3.bf16.msra.mxu1 %v20861_v54 }
 0xbe9   :  { %17945 = vmatprep.subr.bf16.mxu1 %v24053_v20 }
 0xbec   :  { %17947 = vmatpush3.bf16.msra.mxu1 %v20864_v29 }
 0xbed   :  { %18092 = vmatprep.subr.bf16.mxu1 %v24053_v20 }
 0xbef   :  { %14850 = vmatmul.mubr.f32.vlgmr.msra.gmra.mrb[2].mxu1 %v21407_v40 }
 0xbf0   :  { %18094 = vmatpush3.bf16.msra.mxu1 %v20787_v5  ;;  %15094 = vmatprep.mubr.msk.f32.mxu1 %vm20177_vm3, %v24069_v49 }
 0xbf1   :  { %18095 = vmatprep.subr.bf16.mxu1 %v24053_v20 }
 0xbf4   :  { %18097 = vmatpush3.bf16.msra.mxu1 %v20794_v6 }
 0xbf5   :  { %18098 = vmatprep.subr.bf16.mxu1 %v24053_v20 }
 0xbf8   :  { %18100 = vmatpush3.bf16.msra.mxu1 %v20809_v9 }
 0xbf9   :  { %18101 = vmatprep.subr.bf16.mxu1 %v24053_v20 }
 0xbfc   :  { %18103 = vmatpush3.bf16.msra.mxu1 %v20819_v17 }
 0xbfd   :  { %18104 = vmatprep.subr.bf16.mxu1 %v24053_v20 }
 0xc00   :  { %18106 = vmatpush3.bf16.msra.mxu1 %v20853_v25 }
 0xc01   :  { %18107 = vmatprep.subr.bf16.mxu1 %v24053_v20 }
 0xc04   :  { %18109 = vmatpush3.bf16.msra.mxu1 %v20857_v62 }
 0xc05   :  { %18110 = vmatprep.subr.bf16.mxu1 %v24053_v20 }
 0xc08   :  { %18112 = vmatpush3.bf16.msra.mxu1 %v20861_v54 }
 0xc09   :  { %18113 = vmatprep.subr.bf16.mxu1 %v24053_v20 }
 0xc0c   :  { %18115 = vmatpush3.bf16.msra.mxu1 %v20864_v29 }
 0xc0d   :  { %18116 = vmatprep.subr.bf16.mxu1 %v24053_v20 }
 0xcc2   :  { %v3032_v52 = vpop.f32.mrb[2].mxu1 }
 0xcc3   :  { %v19679_v34 = vadd.f32 %v21221_v44, %v3032_v52  ;;  %v14851_v21 = vpop.f32.mrb[3].mxu1  ;;  %v21530_v44 = vld [vmem:[%s23847_s5] ss:$0 sm:$0xff] }
 0xcc4   :  { %v1569_v27 = vmul.f32 %v21530_v44, %v24124_v26 }
 0xcc5   :  { %19895 = vtanh.f32 %v19679_v34  ;;  %v12354_v13 = vmul.f32 -1.442695, %v19679_v34 }
 0xcc7   :  { %19897 = vpow2.f32 %v12354_v13 }
 0xccf   :  { %v19896_v51 = vpop.eup %19895 }
 0xcd0   :  { %3046 = vrot.lane.b32.xlu0 %v19896_v51, %s20175_s25 }
 0xcd1   :  { %v19898_v16 = vpop.eup %19897 }
 0xcd2   :  { %v3039_v8 = vadd.f32 1.0, %v19898_v16  ;;  %v21537_v16 = vstv %s12343_s17 }
 0xcd4   :  { %3051 = vrot.lane.b32.xlu0 %v21230_v63, %s20179_s26  ;;  %19899 = vrcp.f32 %v3039_v8  ;;  %v1570_v63 = vsel %vm849_vm6, %v1569_v27, 0.0 }
 0xcde   :  { %v19900_v40 = vpop.eup %19899 }
 0xd42   :  { %v3047_v46 = vpop.permute.xlu0 %3046 }
 0xd43   :  { %v3049_v42 = vmul.f32 %v19900_v40, %v3047_v46 }
 0xd45   :  { %3056 = vrot.lane.b32.xlu0 %v3049_v42, %s20179_s26 }
 0xd46   :  { %v3052_v52 = vpop.permute.xlu0 %3051 }
 0xd47   :  { %v3054_v34 = vmul.f32 %v19900_v40, %v3052_v52 }
 0xd64   :  { %1571 = vadd.xlane.f32.xlu0 %v1570_v63 }
 0xdb7   :  { %v3057_v21 = vpop.permute.xlu0 %3056 }
 0xdb8   :  { %v3059_v51 = vadd.f32 %v3057_v21, %v3054_v34 }
 0xdba   :  { %v3062_v13 = vsel %vm3044_vm15, %v3059_v51, %v3052_v52  ;;  %v3202_v51 = vld [vmem:[%s23842_s0 + $0xa] sm:$0x1] }
 0xdbb   :  { %3066 = vrot.lane.b32.xlu1 %v3062_v13, %s20178_s27 }
 0xdf1   :  { %v1572_v8 = vpop.xlane.xlu0 %1571 }
 0xdf2   :  { %v1574_v46 = vadd.f32 %v21537_v16, %v1572_v8  ;;  %v3205_v8 = vrot.slane %v3202_v51, 7 }
 0xdf4   :  { %vm1575_vm7 = vcmp.gt.f32.partialorder %v1574_v46, 0.0  ;;  %v3201_v46 = vld [vmem:[%s23842_s0 + $0x2] sm:$0x1] }
 0xdf5   :  { %v12351_v26 = vsel %vm1575_vm7, 1.0, %v24069_v49 }
 0xdf6   :  { %v1674_v27 = vrot.slane %v12351_v26, %v24120_v56  ;;  %v1678_v63 = vrot.slane %v12351_v26, %v24121_v28  ;;  %vm3043_vm9 = vcmp.gt.f32.partialorder %v12351_v26, 0.5 }
 0xdf7   :  { %vm21543_vm10 = vmor %vm3043_vm9, %vm3044_vm15 }
 0xdf8   :  { %1681 = vst.msk [vmem:[%s23853_s11] sm:$0x1] %vm1667_vm8, %v1674_v27  ;;  %1682 = vst.msk [vmem:[%s23853_s11 + $0x8] sm:$0x1] %vm1667_vm8, %v1678_v63 }
 0xe2d   :  { %v3067_v52 = vpop.permute.xlu1 %3066 }
 0xe2e   :  { %v21555_v21 = vsel %vm3043_vm9, %v3049_v42, %v3067_v52  ;;  %v3206_v42 = vsel %vm156_vm2, %v3205_v8, %v3201_v46 }
 0xe2f   :  { %19901 = vtanh.f32 %v21555_v21 }
 0xe39   :  { %v19902_v13 = vpop.eup %19901 }
 0xe3a   :  { %3073 = vrot.lane.b32.xlu1 %v19902_v13, %s20178_s27 }
 0xe3e   :  { %3191 = vrot.lane.b32.xlu1 %v21398_v10, %s20175_s25  ;;  %v24135_v10 = vld [vmem:[#allocation29_spill] sm:$0xff] }
 0xe42   :  { %3207 = vrot.lane.b32.xlu1 %v3206_v42, %s20175_s25 }
 0xe46   :  { %3867 = vrot.lane.b32.xlu1 %v21391_v36, %s20179_s26 }
 0xeac   :  { %v3074_v26 = vpop.permute.xlu1 %3073 }
 0xead   :  { %v3076_v27 = vmul.f32 %v19900_v40, %v3074_v26 }
 0xeaf   :  { %v21574_v63 = vsel %vm21543_vm10, %v3076_v27, %v21247_v33  ;;  %v24128_v27 = vld [vmem:[#allocation44_spill] sm:$0xff]  ;;  %v24136_v33 = vld [vmem:[#allocation30_spill] sm:$0xff] }
 0xeb0   :  { %24127 = vst [vmem:[#allocation59_spill] sm:$0xff] %v21574_v63  ;;  %v3192_v52 = vpop.permute.xlu1 %3191  ;;  %v3195_v51 = vmul.f32 %v21343_v12, %v21574_v63 }
 0xeb1   :  { %3194 = vst.msk [vmem:[#allocation2] sm:$0x3] %vm85_vm1, %v3192_v52  ;;  %v24129_v52 = vld [vmem:[#allocation45_spill] sm:$0xff] }
 0xeb2   :  { %3197 = vrot.lane.b32.xlu0 %v3195_v51, %s20179_s26  ;;  %v24130_v51 = vld [vmem:[#allocation46_spill] sm:$0xff] }
 0xeb4   :  { %v3208_v8 = vpop.permute.xlu1 %3207 }
 0xf24   :  { %v3198_v13 = vpop.permute.xlu0 %3197 }
 0xf25   :  { %3200 = vst.msk [vmem:[#allocation2] sm:$0x3] %vm149_vm4, %v3198_v13  ;;  %v24131_v13 = vld [vmem:[#allocation39_spill] sm:$0xff] }
 0xf26   :  { %3210 = vst.msk [vmem:[#allocation2] sm:$0x3] %vm161_vm5, %v3208_v8  ;;  %v24132_v8 = vld [vmem:[#allocation40_spill] sm:$0xff] }
 0xf2d   :  { %v21582_v36 = vld [vmem:[#allocation2] sm:$0x3] }
 0xf2e   :  { %v21585_v40 = vand.u32 4294901760, %v21582_v36 }
 0xf30   :  { %v3294_v34 = vsub.f32 %v21582_v36, %v21585_v40 }
 0xf32   :  { %v3295_v46 = vand.u32 4294901760, %v3294_v34 }
 0xf34   :  { %v3296_v42 = vsub.f32 %v3294_v34, %v3295_v46 }
 0xf36   :  { %v3297_v26 = vand.u32 4294901760, %v3296_v42  ;;  %v24133_v42 = vld [vmem:[#allocation41_spill] sm:$0xff] }
 0xf38   :  { %14885 = vmatmul.mubr.f32.vlgmr.msra.gmra.mrb[4].mxu0 %v3297_v26  ;;  %v24134_v26 = vld [vmem:[#allocation42_spill] sm:$0xff] }
 0xf39   :  { %17974 = vmatpush3.bf16.msra.mxu0 %v20543_v0  ;;  %14919 = vmatprep.mubr.msk.f32.mxu0 %vm20177_vm3, %v24069_v49 }
 0xf3a   :  { %17975 = vmatprep.subr.bf16.mxu0 %v24053_v20 }
 0xf3d   :  { %17977 = vmatpush3.bf16.msra.mxu0 %v20553_v30 }
 0xf3e   :  { %17978 = vmatprep.subr.bf16.mxu0 %v24053_v20 }
 0xf41   :  { %17980 = vmatpush3.bf16.msra.mxu0 %v20566_v31 }
 0xf42   :  { %17981 = vmatprep.subr.bf16.mxu0 %v24053_v20 }
 0xf45   :  { %17983 = vmatpush3.bf16.msra.mxu0 %v20570_v11 }
 0xf46   :  { %17984 = vmatprep.subr.bf16.mxu0 %v24053_v20 }
 0xf49   :  { %17986 = vmatpush3.bf16.msra.mxu0 %v20416_v3 }
 0xf4a   :  { %17987 = vmatprep.subr.bf16.mxu0 %v24053_v20 }
 0xf4d   :  { %17989 = vmatpush3.bf16.msra.mxu0 %v20440_v39 }
 0xf4e   :  { %17990 = vmatprep.subr.bf16.mxu0 %v24053_v20 }
 0xf51   :  { %17992 = vmatpush3.bf16.msra.mxu0 %v20444_v50  ;;  %v24149_v50 = vld [vmem:[#allocation53_spill] sm:$0xff] }
 0xf52   :  { %17993 = vmatprep.subr.bf16.mxu0 %v24053_v20 }
 0xf55   :  { %17995 = vmatpush3.bf16.msra.mxu0 %v20452_v48  ;;  %v24146_v48 = vld [vmem:[#allocation50_spill] sm:$0xff] }
 0xf56   :  { %17996 = vmatprep.subr.bf16.mxu0 %v24053_v20 }
 0xf58   :  { %14920 = vmatmul.mubr.f32.vlgmr.msra.gmra.mrb[4].mxu0 %v21585_v40 }
 0xf59   :  { %17998 = vmatpush3.bf16.msra.mxu0 %v24095_v45  ;;  %14954 = vmatprep.mubr.msk.f32.mxu0 %vm20177_vm3, %v24069_v49  ;;  %v24145_v45 = vld [vmem:[#allocation49_spill] sm:$0xff] }
 0xf5a   :  { %17999 = vmatprep.subr.bf16.mxu0 %v24053_v20 }
 0xf5d   :  { %18001 = vmatpush3.bf16.msra.mxu0 %v24128_v27  ;;  %v24144_v27 = vld [vmem:[#allocation48_spill] sm:$0xff] }
 0xf5e   :  { %18002 = vmatprep.subr.bf16.mxu0 %v24053_v20 }
 0xf61   :  { %18004 = vmatpush3.bf16.msra.mxu0 %v24129_v52  ;;  %v24143_v52 = vld [vmem:[#allocation47_spill] sm:$0xff] }
 0xf62   :  { %18005 = vmatprep.subr.bf16.mxu0 %v24053_v20 }
 0xf65   :  { %18007 = vmatpush3.bf16.msra.mxu0 %v24130_v51  ;;  %v24142_v51 = vld [vmem:[#allocation36_spill] sm:$0xff] }
 0xf66   :  { %18008 = vmatprep.subr.bf16.mxu0 %v24053_v20 }
 0xf69   :  { %18010 = vmatpush3.bf16.msra.mxu0 %v24131_v13  ;;  %v24141_v13 = vld [vmem:[#allocation35_spill] sm:$0xff] }
 0xf6a   :  { %18011 = vmatprep.subr.bf16.mxu0 %v24053_v20 }
 0xf6d   :  { %18013 = vmatpush3.bf16.msra.mxu0 %v24132_v8  ;;  %v24137_v8 = vld [vmem:[#allocation31_spill] sm:$0xff] }
 0xf6e   :  { %18014 = vmatprep.subr.bf16.mxu0 %v24053_v20 }
 0xf71   :  { %18016 = vmatpush3.bf16.msra.mxu0 %v24133_v42  ;;  %v24138_v42 = vld [vmem:[#allocation32_spill] sm:$0xff] }
 0xf72   :  { %18017 = vmatprep.subr.bf16.mxu0 %v24053_v20 }
 0xf75   :  { %18019 = vmatpush3.bf16.msra.mxu0 %v24134_v26  ;;  %v24140_v26 = vld [vmem:[#allocation34_spill] sm:$0xff] }
 0xf76   :  { %18020 = vmatprep.subr.bf16.mxu0 %v24053_v20 }
 0xf78   :  { %14955 = vmatmul.mubr.f32.vlgmr.msra.gmra.mrb[4].mxu0 %v3294_v34  ;;  %v24139_v34 = vld [vmem:[#allocation33_spill] sm:$0xff] }
 0xf79   :  { %18022 = vmatpush3.bf16.msra.mxu0 %v24135_v10  ;;  %14989 = vmatprep.mubr.msk.f32.mxu0 %vm20177_vm3, %v24069_v49 }
 0xf7a   :  { %18023 = vmatprep.subr.bf16.mxu0 %v24053_v20 }
 0xf7d   :  { %18025 = vmatpush3.bf16.msra.mxu0 %v24136_v33 }
 0xf7e   :  { %18026 = vmatprep.subr.bf16.mxu0 %v24053_v20 }
 0xf81   :  { %18028 = vmatpush3.bf16.msra.mxu0 %v24137_v8 }
 0xf82   :  { %18029 = vmatprep.subr.bf16.mxu0 %v24053_v20 }
 0xf85   :  { %18031 = vmatpush3.bf16.msra.mxu0 %v24138_v42 }
 0xf86   :  { %18032 = vmatprep.subr.bf16.mxu0 %v24053_v20 }
 0xf89   :  { %18034 = vmatpush3.bf16.msra.mxu0 %v24139_v34 }
 0xf8a   :  { %18035 = vmatprep.subr.bf16.mxu0 %v24053_v20 }
 0xf8d   :  { %18037 = vmatpush3.bf16.msra.mxu0 %v24140_v26 }
 0xf8e   :  { %18038 = vmatprep.subr.bf16.mxu0 %v24053_v20 }
 0xf91   :  { %18040 = vmatpush3.bf16.msra.mxu0 %v24141_v13 }
 0xf92   :  { %18041 = vmatprep.subr.bf16.mxu0 %v24053_v20 }
 0xf95   :  { %18043 = vmatpush3.bf16.msra.mxu0 %v24142_v51 }
 0xf96   :  { %18044 = vmatprep.subr.bf16.mxu0 %v24053_v20 }
 0xf98   :  { %14990 = vmatmul.mubr.f32.vlgmr.msra.gmra.mrb[4].mxu0 %v3295_v46  ;;  %v24147_v46 = vld [vmem:[#allocation51_spill] sm:$0xff] }
 0xf99   :  { %18046 = vmatpush3.bf16.msra.mxu0 %v24143_v52  ;;  %15024 = vmatprep.mubr.msk.f32.mxu0 %vm20177_vm3, %v24069_v49  ;;  %v24148_v52 = vld [vmem:[#allocation52_spill] sm:$0xff] }
 0xf9a   :  { %18047 = vmatprep.subr.bf16.mxu0 %v24053_v20 }
 0xf9d   :  { %18049 = vmatpush3.bf16.msra.mxu0 %v24144_v27  ;;  %v24150_v27 = vld [vmem:[#allocation54_spill] sm:$0xff] }
 0xf9e   :  { %18050 = vmatprep.subr.bf16.mxu0 %v24053_v20 }
 0xfa1   :  { %18052 = vmatpush3.bf16.msra.mxu0 %v24145_v45 }
 0xfa2   :  { %18053 = vmatprep.subr.bf16.mxu0 %v24053_v20 }
 0xfa5   :  { %18055 = vmatpush3.bf16.msra.mxu0 %v24146_v48 }
 0xfa6   :  { %18056 = vmatprep.subr.bf16.mxu0 %v24053_v20 }
 0xfa9   :  { %18058 = vmatpush3.bf16.msra.mxu0 %v24147_v46 }
 0xfaa   :  { %18059 = vmatprep.subr.bf16.mxu0 %v24053_v20 }
 0xfad   :  { %18061 = vmatpush3.bf16.msra.mxu0 %v24148_v52 }
 0xfae   :  { %18062 = vmatprep.subr.bf16.mxu0 %v24053_v20 }
 0xfb1   :  { %18064 = vmatpush3.bf16.msra.mxu0 %v24149_v50 }
 0xfb2   :  { %18065 = vmatprep.subr.bf16.mxu0 %v24053_v20 }
 0xfb5   :  { %18067 = vmatpush3.bf16.msra.mxu0 %v24150_v27  ;;  %v21703_v27 = vld [vmem:[%s23845_s3] ss:$0 sm:$0xff] }
 0xfb6   :  { %18068 = vmatprep.subr.bf16.mxu0 %v24053_v20 }
 0xfb8   :  { %15025 = vmatmul.mubr.f32.vlgmr.msra.gmra.mrb[4].mxu0 %v21585_v40 }
 0xfb9   :  { %18070 = vmatpush3.bf16.msra.mxu0 %v24135_v10  ;;  %15059 = vmatprep.mubr.msk.f32.mxu0 %vm20177_vm3, %v24069_v49 }
 0xfba   :  { %18071 = vmatprep.subr.bf16.mxu0 %v24053_v20 }
 0xfbd   :  { %18073 = vmatpush3.bf16.msra.mxu0 %v24136_v33 }
 0xfbe   :  { %18074 = vmatprep.subr.bf16.mxu0 %v24053_v20 }
 0xfc1   :  { %18076 = vmatpush3.bf16.msra.mxu0 %v24137_v8 }
 0xfc2   :  { %18077 = vmatprep.subr.bf16.mxu0 %v24053_v20 }
 0xfc5   :  { %18079 = vmatpush3.bf16.msra.mxu0 %v24138_v42 }
 0xfc6   :  { %18080 = vmatprep.subr.bf16.mxu0 %v24053_v20 }
 0xfc9   :  { %18082 = vmatpush3.bf16.msra.mxu0 %v24139_v34 }
 0xfca   :  { %18083 = vmatprep.subr.bf16.mxu0 %v24053_v20 }
 0xfcd   :  { %18085 = vmatpush3.bf16.msra.mxu0 %v24140_v26 }
 0xfce   :  { %18086 = vmatprep.subr.bf16.mxu0 %v24053_v20 }
 0xfd1   :  { %18088 = vmatpush3.bf16.msra.mxu0 %v24141_v13 }
 0xfd2   :  { %18089 = vmatprep.subr.bf16.mxu0 %v24053_v20 }
 0xfd5   :  { %18091 = vmatpush3.bf16.msra.mxu0 %v24142_v51 }
 0xfd6   :  { %18236 = vmatprep.subr.bf16.mxu0 %v24053_v20 }
 0xfd8   :  { %15060 = vmatmul.mubr.f32.vlgmr.msra.gmra.mrb[4].mxu0 %v21585_v40 }
 0xfd9   :  { %18238 = vmatpush3.bf16.msra.mxu0 %v24135_v10  ;;  %15304 = vmatprep.mubr.msk.f32.mxu0 %vm20177_vm3, %v24069_v49 }
 0xfda   :  { %18239 = vmatprep.subr.bf16.mxu0 %v24053_v20 }
 0xfdd   :  { %18241 = vmatpush3.bf16.msra.mxu0 %v24136_v33 }
 0xfde   :  { %18242 = vmatprep.subr.bf16.mxu0 %v24053_v20 }
 0xfe1   :  { %18244 = vmatpush3.bf16.msra.mxu0 %v24137_v8 }
 0xfe2   :  { %18245 = vmatprep.subr.bf16.mxu0 %v24053_v20 }
 0xfe5   :  { %18247 = vmatpush3.bf16.msra.mxu0 %v24138_v42 }
 0xfe6   :  { %18248 = vmatprep.subr.bf16.mxu0 %v24053_v20 }
 0xfe9   :  { %18250 = vmatpush3.bf16.msra.mxu0 %v24139_v34  ;;  %v3865_v34 = vsub.f32 1.0, %v21343_v12 }
 0xfea   :  { %18251 = vmatprep.subr.bf16.mxu0 %v24053_v20 }
 0xfed   :  { %18253 = vmatpush3.bf16.msra.mxu0 %v24140_v26  ;;  %v3868_v26 = vpop.permute.xlu1 %3867 }
 0xfee   :  { %18254 = vmatprep.subr.bf16.mxu0 %v24053_v20 }
 0xff1   :  { %18256 = vmatpush3.bf16.msra.mxu0 %v24141_v13 }
 0xff2   :  { %18257 = vmatprep.subr.bf16.mxu0 %v24053_v20 }
 0xff5   :  { %18259 = vmatpush3.bf16.msra.mxu0 %v24142_v51 }
 0xff6   :  { %18260 = vmatprep.subr.bf16.mxu0 %v24053_v20 }
0x10ab   :  { %v3849_v40 = vpop.f32.mrb[4].mxu0 }
0x10ac   :  { %v19680_v50 = vadd.f32 %v21703_v27, %v3849_v40  ;;  %v15061_v52 = vpop.f32.mrb[5].mxu0 }
0x10ad   :  { %v21712_v52 = vld [vmem:[%s23844_s2] ss:$0 sm:$0xff] }
0x10ae   :  { %v12356_v46 = vmul.f32 -1.442695, %v19680_v50  ;;  %19903 = vtanh.f32 %v19680_v50  ;;  %v3883_v50 = vmul.f32 %v21712_v52, %v21582_v36 }
0x10b0   :  { %19905 = vpow2.f32 %v12356_v46 }
0x10b8   :  { %v19904_v48 = vpop.eup %19903 }
0x10b9   :  { %3861 = vrot.lane.b32.xlu1 %v19904_v48, %s20175_s25  ;;  %v3884_v48 = vsel %vm849_vm6, %v3883_v50, 0.0 }
0x10ba   :  { %v19906_v45 = vpop.eup %19905 }
0x10bb   :  { %v3856_v13 = vadd.f32 1.0, %v19906_v45 }
0x10bd   :  { %19907 = vrcp.f32 %v3856_v13 }
0x10c7   :  { %v19908_v51 = vpop.eup %19907 }
0x10c8   :  { %v3870_v42 = vmul.f32 %v19908_v51, %v3868_v26 }
0x10ca   :  { %v3871_v8 = vmul.f32 %v3870_v42, %v3865_v34  ;;  %v24151_v42 = vld [vmem:[#allocation57_spill] sm:$0xff] }
0x10cc   :  { %3873 = vrot.lane.b32.xlu1 %v3871_v8, %s20178_s27 }
0x10f0   :  { %3885 = vadd.xlane.f32.xlu1 %v3884_v48 }
0x112b   :  { %v3862_v45 = vpop.permute.xlu1 %3861 }
0x112c   :  { %v3864_v13 = vmul.f32 %v19908_v51, %v3862_v45 }
0x113e   :  { %v3874_v46 = vpop.permute.xlu1 %3873 }
0x113f   :  { %v21717_v40 = vadd.f32 %v3874_v46, %v3864_v13 }
0x1141   :  { %19909 = vtanh.f32 %v21717_v40 }
0x114b   :  { %v19910_v12 = vpop.eup %19909 }
0x114c   :  { %3879 = vrot.lane.b32.xlu0 %v19910_v12, %s20178_s27 }
0x117d   :  { %v3886_v8 = vpop.xlane.xlu1 %3885 }
0x117e   :  { %v3887_v26 = vadd.f32 %v3886_v8, %v24151_v42 }
0x1180   :  { %vm3888_vm11 = vcmp.gt.f32.partialorder %v3887_v26, 0.0 }
0x1181   :  { %v21723_v34 = vsel %vm3888_vm11, 1.0, %v24069_v49 }
0x1182   :  { %v4677_v36 = vrot.slane %v21723_v34, %v24120_v56  ;;  %v4681_v50 = vrot.slane %v21723_v34, %v24121_v28  ;;  %v3891_v48 = vmul.f32 %v21723_v34, %v21574_v63  ;;  %vm4552_vm12 = vcmp.gt.f32.partialorder %v21723_v34, 0.5 }
0x1184   :  { %4684 = vst.msk [vmem:[%s23852_s10 + $0x2] sm:$0x1] %vm1667_vm8, %v4677_v36  ;;  %4685 = vst.msk [vmem:[%s23852_s10 + $0xa] sm:$0x1] %vm1667_vm8, %v4681_v50  ;;  %3893 = vrot.lane.b32.xlu0 %v3891_v48, %s20175_s25 }
0x11be   :  { %v3880_v45 = vpop.permute.xlu0 %3879 }
0x11bf   :  { %v21740_v13 = vmul.f32 %v19908_v51, %v3880_v45 }
0x11c1   :  { %24152 = vst [vmem:[#allocation55_spill] sm:$0xff] %v21740_v13  ;;  %3898 = vrot.lane.b32.xlu0 %v21740_v13, %s20179_s26 }
0x11f6   :  { %v3894_v46 = vpop.permute.xlu0 %3893 }
0x11f7   :  { %3896 = vst.msk [vmem:[#allocation3] sm:$0x3] %vm85_vm1, %v3894_v46  ;;  %v21867_v46 = vld [vmem:[%s23848_s6] ss:$0 sm:$0xff] }
0x11f8   :  { %24154 = vst [vmem:[#allocation29_spill] sm:$0xff] %v21867_v46 }
0x1233   :  { %v3899_v12 = vpop.permute.xlu0 %3898 }
0x1234   :  { %3901 = vst.msk [vmem:[#allocation3] sm:$0x3] %vm149_vm4, %v3899_v12 }
0x123b   :  { %v21746_v8 = vld [vmem:[#allocation3] sm:$0x3] }
0x123c   :  { %24153 = vst [vmem:[#allocation62_spill] sm:$0xff] %v21746_v8  ;;  %v21749_v26 = vand.u32 4294901760, %v21746_v8 }
0x123e   :  { %v3985_v36 = vsub.f32 %v21746_v8, %v21749_v26 }
0x1240   :  { %v3986_v50 = vand.u32 4294901760, %v3985_v36 }
0x1242   :  { %v3987_v51 = vsub.f32 %v3985_v36, %v3986_v50 }
0x1244   :  { %v3988_v48 = vand.u32 4294901760, %v3987_v51 }
0x1246   :  { %15095 = vmatmul.mubr.f32.vlgmr.msra.gmra.mrb[4].mxu1 %v3988_v48 }
0x1247   :  { %18118 = vmatpush3.bf16.msra.mxu1 %v21018_v57  ;;  %15129 = vmatprep.mubr.msk.f32.mxu1 %vm20177_vm3, %v24069_v49 }
0x1248   :  { %18119 = vmatprep.subr.bf16.mxu1 %v24053_v20 }
0x124b   :  { %18121 = vmatpush3.bf16.msra.mxu1 %v21028_v22 }
0x124c   :  { %18122 = vmatprep.subr.bf16.mxu1 %v24053_v20 }
0x124f   :  { %18124 = vmatpush3.bf16.msra.mxu1 %v21041_v15 }
0x1250   :  { %18125 = vmatprep.subr.bf16.mxu1 %v24053_v20 }
0x1253   :  { %18127 = vmatpush3.bf16.msra.mxu1 %v21045_v47 }
0x1254   :  { %18128 = vmatprep.subr.bf16.mxu1 %v24053_v20 }
0x1257   :  { %18130 = vmatpush3.bf16.msra.mxu1 %v20902_v43 }
0x1258   :  { %18131 = vmatprep.subr.bf16.mxu1 %v24053_v20 }
0x125b   :  { %18133 = vmatpush3.bf16.msra.mxu1 %v20906_v19 }
0x125c   :  { %18134 = vmatprep.subr.bf16.mxu1 %v24053_v20 }
0x125f   :  { %18136 = vmatpush3.bf16.msra.mxu1 %v20920_v38 }
0x1260   :  { %18137 = vmatprep.subr.bf16.mxu1 %v24053_v20 }
0x1263   :  { %18139 = vmatpush3.bf16.msra.mxu1 %v20928_v35 }
0x1264   :  { %18140 = vmatprep.subr.bf16.mxu1 %v24053_v20 }
0x1266   :  { %15130 = vmatmul.mubr.f32.vlgmr.msra.gmra.mrb[4].mxu1 %v21749_v26 }
0x1267   :  { %18142 = vmatpush3.bf16.msra.mxu1 %v21059_v58  ;;  %15164 = vmatprep.mubr.msk.f32.mxu1 %vm20177_vm3, %v24069_v49 }
0x1268   :  { %18143 = vmatprep.subr.bf16.mxu1 %v24053_v20 }
0x126b   :  { %18145 = vmatpush3.bf16.msra.mxu1 %v21066_v60 }
0x126c   :  { %18146 = vmatprep.subr.bf16.mxu1 %v24053_v20 }
0x126f   :  { %18148 = vmatpush3.bf16.msra.mxu1 %v21074_v41 }
0x1270   :  { %18149 = vmatprep.subr.bf16.mxu1 %v24053_v20 }
0x1273   :  { %18151 = vmatpush3.bf16.msra.mxu1 %v21080_v61 }
0x1274   :  { %18152 = vmatprep.subr.bf16.mxu1 %v24053_v20 }
0x1277   :  { %18154 = vmatpush3.bf16.msra.mxu1 %v20932_v59 }
0x1278   :  { %18155 = vmatprep.subr.bf16.mxu1 %v24053_v20 }
0x127b   :  { %18157 = vmatpush3.bf16.msra.mxu1 %v20936_v53 }
0x127c   :  { %18158 = vmatprep.subr.bf16.mxu1 %v24053_v20 }
0x127f   :  { %18160 = vmatpush3.bf16.msra.mxu1 %v20940_v37 }
0x1280   :  { %18161 = vmatprep.subr.bf16.mxu1 %v24053_v20 }
0x1283   :  { %18163 = vmatpush3.bf16.msra.mxu1 %v20944_v24 }
0x1284   :  { %18164 = vmatprep.subr.bf16.mxu1 %v24053_v20 }
0x1286   :  { %15165 = vmatmul.mubr.f32.vlgmr.msra.gmra.mrb[4].mxu1 %v3985_v36 }
0x1287   :  { %18166 = vmatpush3.bf16.msra.mxu1 %v20787_v5  ;;  %15199 = vmatprep.mubr.msk.f32.mxu1 %vm20177_vm3, %v24069_v49 }
0x1288   :  { %18167 = vmatprep.subr.bf16.mxu1 %v24053_v20 }
0x128b   :  { %18169 = vmatpush3.bf16.msra.mxu1 %v20794_v6 }
0x128c   :  { %18170 = vmatprep.subr.bf16.mxu1 %v24053_v20 }
0x128f   :  { %18172 = vmatpush3.bf16.msra.mxu1 %v20809_v9 }
0x1290   :  { %18173 = vmatprep.subr.bf16.mxu1 %v24053_v20 }
0x1293   :  { %18175 = vmatpush3.bf16.msra.mxu1 %v20819_v17 }
0x1294   :  { %18176 = vmatprep.subr.bf16.mxu1 %v24053_v20 }
0x1297   :  { %18178 = vmatpush3.bf16.msra.mxu1 %v20853_v25 }
0x1298   :  { %18179 = vmatprep.subr.bf16.mxu1 %v24053_v20 }
0x129b   :  { %18181 = vmatpush3.bf16.msra.mxu1 %v20857_v62 }
0x129c   :  { %18182 = vmatprep.subr.bf16.mxu1 %v24053_v20 }
0x129f   :  { %18184 = vmatpush3.bf16.msra.mxu1 %v20861_v54 }
0x12a0   :  { %18185 = vmatprep.subr.bf16.mxu1 %v24053_v20 }
0x12a3   :  { %18187 = vmatpush3.bf16.msra.mxu1 %v20864_v29 }
0x12a4   :  { %18188 = vmatprep.subr.bf16.mxu1 %v24053_v20 }
0x12a6   :  { %15200 = vmatmul.mubr.f32.vlgmr.msra.gmra.mrb[4].mxu1 %v3986_v50 }
0x12a7   :  { %18190 = vmatpush3.bf16.msra.mxu1 %v21115_v1  ;;  %15234 = vmatprep.mubr.msk.f32.mxu1 %vm20177_vm3, %v24069_v49 }
0x12a8   :  { %18191 = vmatprep.subr.bf16.mxu1 %v24053_v20 }
0x12ab   :  { %18193 = vmatpush3.bf16.msra.mxu1 %v21125_v7 }
0x12ac   :  { %18194 = vmatprep.subr.bf16.mxu1 %v24053_v20 }
0x12af   :  { %18196 = vmatpush3.bf16.msra.mxu1 %v21135_v32 }
0x12b0   :  { %18197 = vmatprep.subr.bf16.mxu1 %v24053_v20 }
0x12b3   :  { %18199 = vmatpush3.bf16.msra.mxu1 %v21143_v55 }
0x12b4   :  { %18200 = vmatprep.subr.bf16.mxu1 %v24053_v20 }
0x12b7   :  { %18202 = vmatpush3.bf16.msra.mxu1 %v21151_v4 }
0x12b8   :  { %18203 = vmatprep.subr.bf16.mxu1 %v24053_v20 }
0x12bb   :  { %18205 = vmatpush3.bf16.msra.mxu1 %v21159_v18 }
0x12bc   :  { %18206 = vmatprep.subr.bf16.mxu1 %v24053_v20 }
0x12bf   :  { %18208 = vmatpush3.bf16.msra.mxu1 %v21167_v14 }
0x12c0   :  { %18209 = vmatprep.subr.bf16.mxu1 %v24053_v20 }
0x12c3   :  { %18211 = vmatpush3.bf16.msra.mxu1 %v21175_v2 }
0x12c4   :  { %18212 = vmatprep.subr.bf16.mxu1 %v24053_v20 }
0x12c6   :  { %15235 = vmatmul.mubr.f32.vlgmr.msra.gmra.mrb[4].mxu1 %v21749_v26 }
0x12c7   :  { %18214 = vmatpush3.bf16.msra.mxu1 %v20787_v5  ;;  %15269 = vmatprep.mubr.msk.f32.mxu1 %vm20177_vm3, %v24069_v49 }
0x12c8   :  { %18215 = vmatprep.subr.bf16.mxu1 %v24053_v20 }
0x12cb   :  { %18217 = vmatpush3.bf16.msra.mxu1 %v20794_v6 }
0x12cc   :  { %18218 = vmatprep.subr.bf16.mxu1 %v24053_v20 }
0x12cf   :  { %18220 = vmatpush3.bf16.msra.mxu1 %v20809_v9 }
0x12d0   :  { %18221 = vmatprep.subr.bf16.mxu1 %v24053_v20 }
0x12d3   :  { %18223 = vmatpush3.bf16.msra.mxu1 %v20819_v17 }
0x12d4   :  { %18224 = vmatprep.subr.bf16.mxu1 %v24053_v20 }
0x12d7   :  { %18226 = vmatpush3.bf16.msra.mxu1 %v20853_v25 }
0x12d8   :  { %18227 = vmatprep.subr.bf16.mxu1 %v24053_v20 }
0x12db   :  { %18229 = vmatpush3.bf16.msra.mxu1 %v20857_v62 }
0x12dc   :  { %18230 = vmatprep.subr.bf16.mxu1 %v24053_v20 }
0x12df   :  { %18232 = vmatpush3.bf16.msra.mxu1 %v20861_v54 }
0x12e0   :  { %18233 = vmatprep.subr.bf16.mxu1 %v24053_v20 }
0x12e3   :  { %18235 = vmatpush3.bf16.msra.mxu1 %v20864_v29 }
0x12e4   :  { %18380 = vmatprep.subr.bf16.mxu1 %v24053_v20 }
0x12e6   :  { %15270 = vmatmul.mubr.f32.vlgmr.msra.gmra.mrb[4].mxu1 %v21749_v26 }
0x12e7   :  { %18382 = vmatpush3.bf16.msra.mxu1 %v20787_v5  ;;  %15514 = vmatprep.mubr.msk.f32.mxu1 %vm20177_vm3, %v24069_v49 }
0x12e8   :  { %18383 = vmatprep.subr.bf16.mxu1 %v24053_v20 }
0x12eb   :  { %18385 = vmatpush3.bf16.msra.mxu1 %v20794_v6 }
0x12ec   :  { %18386 = vmatprep.subr.bf16.mxu1 %v24053_v20 }
0x12ef   :  { %18388 = vmatpush3.bf16.msra.mxu1 %v20809_v9 }
0x12f0   :  { %18389 = vmatprep.subr.bf16.mxu1 %v24053_v20 }
0x12f3   :  { %18391 = vmatpush3.bf16.msra.mxu1 %v20819_v17 }
0x12f4   :  { %18392 = vmatprep.subr.bf16.mxu1 %v24053_v20 }
0x12f7   :  { %18394 = vmatpush3.bf16.msra.mxu1 %v20853_v25 }
0x12f8   :  { %18395 = vmatprep.subr.bf16.mxu1 %v24053_v20 }
0x12fb   :  { %18397 = vmatpush3.bf16.msra.mxu1 %v20857_v62 }
0x12fc   :  { %18398 = vmatprep.subr.bf16.mxu1 %v24053_v20 }
0x12ff   :  { %18400 = vmatpush3.bf16.msra.mxu1 %v20861_v54 }
0x1300   :  { %18401 = vmatprep.subr.bf16.mxu1 %v24053_v20 }
0x1303   :  { %18403 = vmatpush3.bf16.msra.mxu1 %v20864_v29 }
0x1304   :  { %18404 = vmatprep.subr.bf16.mxu1 %v24053_v20 }
0x13b9   :  { %v4540_v45 = vpop.f32.mrb[4].mxu1 }
0x13ba   :  { %v19681_v12 = vadd.f32 %v21867_v46, %v4540_v45  ;;  %v15271_v26 = vpop.f32.mrb[5].mxu1  ;;  %v3080_v45 = vmul.f32 %v21530_v44, %v21404_v23 }
0x13bc   :  { %19911 = vtanh.f32 %v19681_v12  ;;  %v12358_v50 = vmul.f32 -1.442695, %v19681_v12  ;;  %v3081_v26 = vsel %vm849_vm6, %v3080_v45, 0.0  ;;  %v4710_v45 = vld [vmem:[%s23842_s0 + $0xb] sm:$0x1] }
0x13be   :  { %19913 = vpow2.f32 %v12358_v50 }
0x13c6   :  { %v19912_v36 = vpop.eup %19911 }
0x13c7   :  { %4554 = vrot.lane.b32.xlu0 %v19912_v36, %s20175_s25 }
0x13c8   :  { %v19914_v51 = vpop.eup %19913 }
0x13c9   :  { %v4547_v48 = vadd.f32 1.0, %v19914_v51 }
0x13cb   :  { %4559 = vrot.lane.b32.xlu0 %v21555_v21, %s20179_s26  ;;  %19915 = vrcp.f32 %v4547_v48 }
0x13d5   :  { %v19916_v8 = vpop.eup %19915 }
0x1439   :  { %v4555_v2 = vpop.permute.xlu0 %4554 }
0x143a   :  { %v4557_v14 = vmul.f32 %v19916_v8, %v4555_v2 }
0x143c   :  { %4564 = vrot.lane.b32.xlu0 %v4557_v14, %s20179_s26 }
0x143d   :  { %v4560_v36 = vpop.permute.xlu0 %4559 }
0x143e   :  { %v4562_v46 = vmul.f32 %v19916_v8, %v4560_v36 }
0x145b   :  { %3082 = vadd.xlane.f32.xlu0 %v3081_v26 }
0x14ae   :  { %v4565_v18 = vpop.permute.xlu0 %4564 }
0x14af   :  { %v4567_v21 = vadd.f32 %v4565_v18, %v4562_v46 }
0x14b1   :  { %v4570_v12 = vsel %vm4552_vm12, %v4567_v21, %v4560_v36  ;;  %v4713_v36 = vrot.slane %v4710_v45, 7  ;;  %v4709_v21 = vld [vmem:[%s23842_s0 + $0x3] sm:$0x1] }
0x14b2   :  { %4574 = vrot.lane.b32.xlu1 %v4570_v12, %s20178_s27 }
0x14e8   :  { %v3083_v50 = vpop.xlane.xlu0 %3082 }
0x14e9   :  { %v3084_v2 = vadd.f32 %v3083_v50, %v21537_v16 }
0x14eb   :  { %vm3085_vm13 = vcmp.gt.f32.partialorder %v3084_v2, 0.0 }
0x14ec   :  { %v12355_v51 = vsel %vm3085_vm13, 1.0, %v24069_v49 }
0x14ed   :  { %v3182_v23 = vrot.slane %v12355_v51, %v24120_v56  ;;  %v3186_v44 = vrot.slane %v12355_v51, %v24121_v28  ;;  %vm4551_vm14 = vcmp.gt.f32.partialorder %v12355_v51, 0.5 }
0x14ee   :  { %vm21883_vm15 = vmor %vm4551_vm14, %vm4552_vm12 }
0x14ef   :  { %3189 = vst.msk [vmem:[%s23853_s11 + $0x1] sm:$0x1] %vm1667_vm8, %v3182_v23  ;;  %3190 = vst.msk [vmem:[%s23853_s11 + $0x9] sm:$0x1] %vm1667_vm8, %v3186_v44 }
0x1524   :  { %v4575_v18 = vpop.permute.xlu1 %4574 }
0x1525   :  { %v21895_v46 = vsel %vm4551_vm14, %v4557_v14, %v4575_v18  ;;  %v4714_v14 = vsel %vm156_vm2, %v4713_v36, %v4709_v21  ;;  %v24158_v21 = vld [vmem:[#allocation37_spill] sm:$0xff] }
0x1526   :  { %19917 = vtanh.f32 %v21895_v46 }
0x1530   :  { %v19918_v26 = vpop.eup %19917 }
0x1531   :  { %4581 = vrot.lane.b32.xlu1 %v19918_v26, %s20178_s27 }
0x1535   :  { %4699 = vrot.lane.b32.xlu1 %v21740_v13, %s20175_s25  ;;  %v24168_v13 = vld [vmem:[#allocation31_spill] sm:$0xff] }
0x1539   :  { %4715 = vrot.lane.b32.xlu1 %v4714_v14, %s20175_s25  ;;  %v24159_v14 = vld [vmem:[#allocation38_spill] sm:$0xff] }
0x153d   :  { %5375 = vrot.lane.b32.xlu1 %v21717_v40, %s20179_s26 }
0x15a3   :  { %v4582_v12 = vpop.permute.xlu1 %4581 }
0x15a4   :  { %v4584_v50 = vmul.f32 %v19916_v8, %v4582_v12  ;;  %v24160_v12 = vld [vmem:[#allocation43_spill] sm:$0xff] }
0x15a6   :  { %v21914_v2 = vsel %vm21883_vm15, %v4584_v50, %v21574_v63  ;;  %v24161_v50 = vld [vmem:[#allocation44_spill] sm:$0xff] }
0x15a7   :  { %24157 = vst [vmem:[#allocation30_spill] sm:$0xff] %v21914_v2  ;;  %v4700_v51 = vpop.permute.xlu1 %4699  ;;  %v4703_v23 = vmul.f32 %v21723_v34, %v21914_v2  ;;  %v24169_v63 = vld [vmem:[#allocation32_spill] sm:$0xff] }
0x15a8   :  { %4702 = vst.msk [vmem:[#allocation2] sm:$0x3] %vm85_vm1, %v4700_v51  ;;  %v24162_v51 = vld [vmem:[#allocation45_spill] sm:$0xff] }
0x15a9   :  { %4705 = vrot.lane.b32.xlu0 %v4703_v23, %s20179_s26  ;;  %v24163_v23 = vld [vmem:[#allocation46_spill] sm:$0xff] }
0x15ab   :  { %v4716_v18 = vpop.permute.xlu1 %4715 }
0x161b   :  { %v4706_v44 = vpop.permute.xlu0 %4705 }
0x161c   :  { %4708 = vst.msk [vmem:[#allocation2] sm:$0x3] %vm149_vm4, %v4706_v44  ;;  %v24164_v44 = vld [vmem:[#allocation39_spill] sm:$0xff] }
0x161d   :  { %4718 = vst.msk [vmem:[#allocation2] sm:$0x3] %vm161_vm5, %v4716_v18  ;;  %v24165_v18 = vld [vmem:[#allocation40_spill] sm:$0xff] }
0x1624   :  { %v21922_v40 = vld [vmem:[#allocation2] sm:$0x3] }
0x1625   :  { %v21925_v8 = vand.u32 4294901760, %v21922_v40 }
0x1627   :  { %v4802_v48 = vsub.f32 %v21922_v40, %v21925_v8 }
0x1629   :  { %v4803_v45 = vand.u32 4294901760, %v4802_v48 }
0x162b   :  { %v4804_v26 = vsub.f32 %v4802_v48, %v4803_v45 }
0x162d   :  { %v4805_v36 = vand.u32 4294901760, %v4804_v26  ;;  %v24166_v26 = vld [vmem:[#allocation41_spill] sm:$0xff] }
0x162f   :  { %15305 = vmatmul.mubr.f32.vlgmr.msra.gmra.mrb[6].mxu0 %v4805_v36  ;;  %v24167_v36 = vld [vmem:[#allocation42_spill] sm:$0xff] }
0x1630   :  { %18262 = vmatpush3.bf16.msra.mxu0 %v20543_v0  ;;  %15339 = vmatprep.mubr.msk.f32.mxu0 %vm20177_vm3, %v24069_v49 }
0x1631   :  { %18263 = vmatprep.subr.bf16.mxu0 %v24053_v20 }
0x1634   :  { %18265 = vmatpush3.bf16.msra.mxu0 %v20553_v30 }
0x1635   :  { %18266 = vmatprep.subr.bf16.mxu0 %v24053_v20 }
0x1638   :  { %18268 = vmatpush3.bf16.msra.mxu0 %v20566_v31 }
0x1639   :  { %18269 = vmatprep.subr.bf16.mxu0 %v24053_v20 }
0x163c   :  { %18271 = vmatpush3.bf16.msra.mxu0 %v20570_v11 }
0x163d   :  { %18272 = vmatprep.subr.bf16.mxu0 %v24053_v20 }
0x1640   :  { %18274 = vmatpush3.bf16.msra.mxu0 %v20416_v3 }
0x1641   :  { %18275 = vmatprep.subr.bf16.mxu0 %v24053_v20 }
0x1644   :  { %18277 = vmatpush3.bf16.msra.mxu0 %v20440_v39 }
0x1645   :  { %18278 = vmatprep.subr.bf16.mxu0 %v24053_v20 }
0x1648   :  { %18280 = vmatpush3.bf16.msra.mxu0 %v24158_v21 }
0x1649   :  { %18281 = vmatprep.subr.bf16.mxu0 %v24053_v20 }
0x164c   :  { %18283 = vmatpush3.bf16.msra.mxu0 %v24159_v14 }
0x164d   :  { %18284 = vmatprep.subr.bf16.mxu0 %v24053_v20 }
0x164f   :  { %15340 = vmatmul.mubr.f32.vlgmr.msra.gmra.mrb[6].mxu0 %v21925_v8 }
0x1650   :  { %18286 = vmatpush3.bf16.msra.mxu0 %v24160_v12  ;;  %15374 = vmatprep.mubr.msk.f32.mxu0 %vm20177_vm3, %v24069_v49  ;;  %v24180_v12 = vld [vmem:[#allocation53_spill] sm:$0xff] }
0x1651   :  { %18287 = vmatprep.subr.bf16.mxu0 %v24053_v20 }
0x1654   :  { %18289 = vmatpush3.bf16.msra.mxu0 %v24161_v50  ;;  %v24177_v50 = vld [vmem:[#allocation50_spill] sm:$0xff] }
0x1655   :  { %18290 = vmatprep.subr.bf16.mxu0 %v24053_v20 }
0x1658   :  { %18292 = vmatpush3.bf16.msra.mxu0 %v24162_v51  ;;  %v24176_v51 = vld [vmem:[#allocation49_spill] sm:$0xff] }
0x1659   :  { %18293 = vmatprep.subr.bf16.mxu0 %v24053_v20 }
0x165c   :  { %18295 = vmatpush3.bf16.msra.mxu0 %v24163_v23  ;;  %v24175_v23 = vld [vmem:[#allocation48_spill] sm:$0xff] }
0x165d   :  { %18296 = vmatprep.subr.bf16.mxu0 %v24053_v20 }
0x1660   :  { %18298 = vmatpush3.bf16.msra.mxu0 %v24164_v44  ;;  %v24174_v44 = vld [vmem:[#allocation47_spill] sm:$0xff] }
0x1661   :  { %18299 = vmatprep.subr.bf16.mxu0 %v24053_v20 }
0x1664   :  { %18301 = vmatpush3.bf16.msra.mxu0 %v24165_v18  ;;  %v24173_v18 = vld [vmem:[#allocation36_spill] sm:$0xff] }
0x1665   :  { %18302 = vmatprep.subr.bf16.mxu0 %v24053_v20 }
0x1668   :  { %18304 = vmatpush3.bf16.msra.mxu0 %v24166_v26  ;;  %v24172_v26 = vld [vmem:[#allocation35_spill] sm:$0xff] }
0x1669   :  { %18305 = vmatprep.subr.bf16.mxu0 %v24053_v20 }
0x166c   :  { %18307 = vmatpush3.bf16.msra.mxu0 %v24167_v36  ;;  %v24171_v36 = vld [vmem:[#allocation34_spill] sm:$0xff] }
0x166d   :  { %18308 = vmatprep.subr.bf16.mxu0 %v24053_v20 }
0x166f   :  { %15375 = vmatmul.mubr.f32.vlgmr.msra.gmra.mrb[6].mxu0 %v4802_v48  ;;  %v24170_v48 = vld [vmem:[#allocation33_spill] sm:$0xff] }
0x1670   :  { %18310 = vmatpush3.bf16.msra.mxu0 %v24135_v10  ;;  %15409 = vmatprep.mubr.msk.f32.mxu0 %vm20177_vm3, %v24069_v49 }
0x1671   :  { %18311 = vmatprep.subr.bf16.mxu0 %v24053_v20 }
0x1674   :  { %18313 = vmatpush3.bf16.msra.mxu0 %v24136_v33 }
0x1675   :  { %18314 = vmatprep.subr.bf16.mxu0 %v24053_v20 }
0x1678   :  { %18316 = vmatpush3.bf16.msra.mxu0 %v24168_v13 }
0x1679   :  { %18317 = vmatprep.subr.bf16.mxu0 %v24053_v20 }
0x167c   :  { %18319 = vmatpush3.bf16.msra.mxu0 %v24169_v63 }
0x167d   :  { %18320 = vmatprep.subr.bf16.mxu0 %v24053_v20 }
0x1680   :  { %18322 = vmatpush3.bf16.msra.mxu0 %v24170_v48 }
0x1681   :  { %18323 = vmatprep.subr.bf16.mxu0 %v24053_v20 }
0x1684   :  { %18325 = vmatpush3.bf16.msra.mxu0 %v24171_v36 }
0x1685   :  { %18326 = vmatprep.subr.bf16.mxu0 %v24053_v20 }
0x1688   :  { %18328 = vmatpush3.bf16.msra.mxu0 %v24172_v26 }
0x1689   :  { %18329 = vmatprep.subr.bf16.mxu0 %v24053_v20 }
0x168c   :  { %18331 = vmatpush3.bf16.msra.mxu0 %v24173_v18 }
0x168d   :  { %18332 = vmatprep.subr.bf16.mxu0 %v24053_v20 }
0x168f   :  { %15410 = vmatmul.mubr.f32.vlgmr.msra.gmra.mrb[6].mxu0 %v4803_v45  ;;  %v24178_v45 = vld [vmem:[#allocation51_spill] sm:$0xff] }
0x1690   :  { %18334 = vmatpush3.bf16.msra.mxu0 %v24174_v44  ;;  %15444 = vmatprep.mubr.msk.f32.mxu0 %vm20177_vm3, %v24069_v49  ;;  %v24179_v44 = vld [vmem:[#allocation52_spill] sm:$0xff] }
0x1691   :  { %18335 = vmatprep.subr.bf16.mxu0 %v24053_v20 }
0x1694   :  { %18337 = vmatpush3.bf16.msra.mxu0 %v24175_v23  ;;  %v24181_v23 = vld [vmem:[#allocation54_spill] sm:$0xff] }
0x1695   :  { %18338 = vmatprep.subr.bf16.mxu0 %v24053_v20 }
0x1698   :  { %18340 = vmatpush3.bf16.msra.mxu0 %v24176_v51 }
0x1699   :  { %18341 = vmatprep.subr.bf16.mxu0 %v24053_v20 }
0x169c   :  { %18343 = vmatpush3.bf16.msra.mxu0 %v24177_v50 }
0x169d   :  { %18344 = vmatprep.subr.bf16.mxu0 %v24053_v20 }
0x16a0   :  { %18346 = vmatpush3.bf16.msra.mxu0 %v24178_v45 }
0x16a1   :  { %18347 = vmatprep.subr.bf16.mxu0 %v24053_v20 }
0x16a4   :  { %18349 = vmatpush3.bf16.msra.mxu0 %v24179_v44 }
0x16a5   :  { %18350 = vmatprep.subr.bf16.mxu0 %v24053_v20 }
0x16a8   :  { %18352 = vmatpush3.bf16.msra.mxu0 %v24180_v12 }
0x16a9   :  { %18353 = vmatprep.subr.bf16.mxu0 %v24053_v20 }
0x16ac   :  { %18355 = vmatpush3.bf16.msra.mxu0 %v24181_v23 }
0x16ad   :  { %18356 = vmatprep.subr.bf16.mxu0 %v24053_v20 }
0x16af   :  { %15445 = vmatmul.mubr.f32.vlgmr.msra.gmra.mrb[6].mxu0 %v21925_v8 }
0x16b0   :  { %18358 = vmatpush3.bf16.msra.mxu0 %v24135_v10  ;;  %15479 = vmatprep.mubr.msk.f32.mxu0 %vm20177_vm3, %v24069_v49 }
0x16b1   :  { %18359 = vmatprep.subr.bf16.mxu0 %v24053_v20 }
0x16b4   :  { %18361 = vmatpush3.bf16.msra.mxu0 %v24136_v33 }
0x16b5   :  { %18362 = vmatprep.subr.bf16.mxu0 %v24053_v20 }
0x16b8   :  { %18364 = vmatpush3.bf16.msra.mxu0 %v24168_v13 }
0x16b9   :  { %18365 = vmatprep.subr.bf16.mxu0 %v24053_v20 }
0x16bc   :  { %18367 = vmatpush3.bf16.msra.mxu0 %v24169_v63 }
0x16bd   :  { %18368 = vmatprep.subr.bf16.mxu0 %v24053_v20 }
0x16c0   :  { %18370 = vmatpush3.bf16.msra.mxu0 %v24170_v48 }
0x16c1   :  { %18371 = vmatprep.subr.bf16.mxu0 %v24053_v20 }
0x16c4   :  { %18373 = vmatpush3.bf16.msra.mxu0 %v24171_v36 }
0x16c5   :  { %18374 = vmatprep.subr.bf16.mxu0 %v24053_v20 }
0x16c8   :  { %18376 = vmatpush3.bf16.msra.mxu0 %v24172_v26 }
0x16c9   :  { %18377 = vmatprep.subr.bf16.mxu0 %v24053_v20 }
0x16cc   :  { %18379 = vmatpush3.bf16.msra.mxu0 %v24173_v18 }
0x16cd   :  { %18524 = vmatprep.subr.bf16.mxu0 %v24053_v20 }
0x16cf   :  { %15480 = vmatmul.mubr.f32.vlgmr.msra.gmra.mrb[6].mxu0 %v21925_v8 }
0x16d0   :  { %18526 = vmatpush3.bf16.msra.mxu0 %v24135_v10  ;;  %15724 = vmatprep.mubr.msk.f32.mxu0 %vm20177_vm3, %v24069_v49 }
0x16d1   :  { %18527 = vmatprep.subr.bf16.mxu0 %v24053_v20 }
0x16d4   :  { %18529 = vmatpush3.bf16.msra.mxu0 %v24136_v33 }
0x16d5   :  { %18530 = vmatprep.subr.bf16.mxu0 %v24053_v20 }
0x16d8   :  { %18532 = vmatpush3.bf16.msra.mxu0 %v24168_v13 }
0x16d9   :  { %18533 = vmatprep.subr.bf16.mxu0 %v24053_v20 }
0x16dc   :  { %18535 = vmatpush3.bf16.msra.mxu0 %v24169_v63 }
0x16dd   :  { %18536 = vmatprep.subr.bf16.mxu0 %v24053_v20 }
0x16e0   :  { %18538 = vmatpush3.bf16.msra.mxu0 %v24170_v48  ;;  %v5373_v48 = vsub.f32 1.0, %v21723_v34 }
0x16e1   :  { %18539 = vmatprep.subr.bf16.mxu0 %v24053_v20 }
0x16e4   :  { %18541 = vmatpush3.bf16.msra.mxu0 %v24171_v36  ;;  %v5376_v36 = vpop.permute.xlu1 %5375 }
0x16e5   :  { %18542 = vmatprep.subr.bf16.mxu0 %v24053_v20 }
0x16e8   :  { %18544 = vmatpush3.bf16.msra.mxu0 %v24172_v26 }
0x16e9   :  { %18545 = vmatprep.subr.bf16.mxu0 %v24053_v20 }
0x16ec   :  { %18547 = vmatpush3.bf16.msra.mxu0 %v24173_v18 }
0x16ed   :  { %18548 = vmatprep.subr.bf16.mxu0 %v24053_v20 }
0x17a2   :  { %v5357_v8 = vpop.f32.mrb[6].mxu0 }
0x17a3   :  { %v19682_v23 = vadd.f32 %v21703_v27, %v5357_v8  ;;  %v15481_v12 = vpop.f32.mrb[7].mxu0  ;;  %v5391_v27 = vmul.f32 %v21712_v52, %v21922_v40 }
0x17a5   :  { %v12360_v44 = vmul.f32 -1.442695, %v19682_v23  ;;  %19919 = vtanh.f32 %v19682_v23  ;;  %v5392_v12 = vsel %vm849_vm6, %v5391_v27, 0.0 }
0x17a7   :  { %19921 = vpow2.f32 %v12360_v44 }
0x17af   :  { %v19920_v45 = vpop.eup %19919 }
0x17b0   :  { %5369 = vrot.lane.b32.xlu1 %v19920_v45, %s20175_s25 }
0x17b1   :  { %v19922_v50 = vpop.eup %19921 }
0x17b2   :  { %v5364_v51 = vadd.f32 1.0, %v19922_v50 }
0x17b4   :  { %19923 = vrcp.f32 %v5364_v51 }
0x17be   :  { %v19924_v26 = vpop.eup %19923 }
0x17bf   :  { %v5378_v18 = vmul.f32 %v19924_v26, %v5376_v36 }
0x17c1   :  { %v5379_v63 = vmul.f32 %v5378_v18, %v5373_v48 }
0x17c3   :  { %5381 = vrot.lane.b32.xlu1 %v5379_v63, %s20178_s27 }
0x17e7   :  { %5393 = vadd.xlane.f32.xlu1 %v5392_v12 }
0x1822   :  { %v5370_v23 = vpop.permute.xlu1 %5369 }
0x1823   :  { %v5372_v44 = vmul.f32 %v19924_v26, %v5370_v23 }
0x1835   :  { %v5382_v45 = vpop.permute.xlu1 %5381 }
0x1836   :  { %v22047_v8 = vadd.f32 %v5382_v45, %v5372_v44 }
0x1838   :  { %19925 = vtanh.f32 %v22047_v8 }
0x1842   :  { %v19926_v50 = vpop.eup %19925 }
0x1843   :  { %5387 = vrot.lane.b32.xlu0 %v19926_v50, %s20178_s27 }
0x1874   :  { %v5394_v34 = vpop.xlane.xlu1 %5393 }
0x1875   :  { %v5395_v51 = vadd.f32 %v5394_v34, %v24151_v42 }
0x1877   :  { %vm5396_vm7 = vcmp.gt.f32.partialorder %v5395_v51, 0.0  ;;  %v24184_v51 = vld [vmem:[#allocation68_spill] sm:$0xff] }
0x1878   :  { %v22053_v63 = vsel %vm5396_vm7, 1.0, %v24069_v49 }
0x1879   :  { %v6185_v52 = vrot.slane %v22053_v63, %v24120_v56  ;;  %v6189_v40 = vrot.slane %v22053_v63, %v24121_v28  ;;  %v5399_v18 = vmul.f32 %v22053_v63, %v21914_v2  ;;  %vm6060_vm9 = vcmp.gt.f32.partialorder %v22053_v63, 0.5 }
0x187b   :  { %6192 = vst.msk [vmem:[%s23852_s10 + $0x3] sm:$0x1] %vm1667_vm8, %v6185_v52  ;;  %6193 = vst.msk [vmem:[%s23852_s10 + $0xb] sm:$0x1] %vm1667_vm8, %v6189_v40  ;;  %5401 = vrot.lane.b32.xlu0 %v5399_v18, %s20175_s25  ;;  %v24185_v52 = vld [vmem:[#allocation69_spill] sm:$0xff]  ;;  %v24186_v40 = vld [vmem:[#allocation70_spill] sm:$0xff] }
0x18b5   :  { %v5388_v36 = vpop.permute.xlu0 %5387 }
0x18b6   :  { %v22070_v48 = vmul.f32 %v19924_v26, %v5388_v36  ;;  %v24187_v36 = vld [vmem:[#allocation29_spill] sm:$0xff] }
0x18b8   :  { %24182 = vst [vmem:[#allocation57_spill] sm:$0xff] %v22070_v48  ;;  %5406 = vrot.lane.b32.xlu0 %v22070_v48, %s20179_s26 }
0x18ed   :  { %v5402_v27 = vpop.permute.xlu0 %5401 }
0x18ee   :  { %5404 = vst.msk [vmem:[#allocation3] sm:$0x3] %vm85_vm1, %v5402_v27 }
0x192a   :  { %v5407_v12 = vpop.permute.xlu0 %5406 }
0x192b   :  { %5409 = vst.msk [vmem:[#allocation3] sm:$0x3] %vm149_vm4, %v5407_v12 }
0x1932   :  { %v22076_v23 = vld [vmem:[#allocation3] sm:$0x3] }
0x1933   :  { %24183 = vst [vmem:[#allocation37_spill] sm:$0xff] %v22076_v23  ;;  %v22079_v44 = vand.u32 4294901760, %v22076_v23 }
0x1935   :  { %v5493_v45 = vsub.f32 %v22076_v23, %v22079_v44 }
0x1937   :  { %v5494_v50 = vand.u32 4294901760, %v5493_v45 }
0x1939   :  { %v5495_v26 = vsub.f32 %v5493_v45, %v5494_v50 }
0x193b   :  { %v5496_v34 = vand.u32 4294901760, %v5495_v26 }
0x193d   :  { %15515 = vmatmul.mubr.f32.vlgmr.msra.gmra.mrb[6].mxu1 %v5496_v34 }
0x193e   :  { %18406 = vmatpush3.bf16.msra.mxu1 %v21018_v57  ;;  %15549 = vmatprep.mubr.msk.f32.mxu1 %vm20177_vm3, %v24069_v49 }
0x193f   :  { %18407 = vmatprep.subr.bf16.mxu1 %v24053_v20 }
0x1942   :  { %18409 = vmatpush3.bf16.msra.mxu1 %v21028_v22 }
0x1943   :  { %18410 = vmatprep.subr.bf16.mxu1 %v24053_v20 }
0x1946   :  { %18412 = vmatpush3.bf16.msra.mxu1 %v21041_v15 }
0x1947   :  { %18413 = vmatprep.subr.bf16.mxu1 %v24053_v20 }
0x194a   :  { %18415 = vmatpush3.bf16.msra.mxu1 %v21045_v47 }
0x194b   :  { %18416 = vmatprep.subr.bf16.mxu1 %v24053_v20 }
0x194e   :  { %18418 = vmatpush3.bf16.msra.mxu1 %v20902_v43 }
0x194f   :  { %18419 = vmatprep.subr.bf16.mxu1 %v24053_v20 }
0x1952   :  { %18421 = vmatpush3.bf16.msra.mxu1 %v20906_v19 }
0x1953   :  { %18422 = vmatprep.subr.bf16.mxu1 %v24053_v20 }
0x1956   :  { %18424 = vmatpush3.bf16.msra.mxu1 %v20920_v38 }
0x1957   :  { %18425 = vmatprep.subr.bf16.mxu1 %v24053_v20 }
0x195a   :  { %18427 = vmatpush3.bf16.msra.mxu1 %v20928_v35 }
0x195b   :  { %18428 = vmatprep.subr.bf16.mxu1 %v24053_v20 }
0x195d   :  { %15550 = vmatmul.mubr.f32.vlgmr.msra.gmra.mrb[6].mxu1 %v22079_v44 }
0x195e   :  { %18430 = vmatpush3.bf16.msra.mxu1 %v21059_v58  ;;  %15584 = vmatprep.mubr.msk.f32.mxu1 %vm20177_vm3, %v24069_v49 }
0x195f   :  { %18431 = vmatprep.subr.bf16.mxu1 %v24053_v20 }
0x1962   :  { %18433 = vmatpush3.bf16.msra.mxu1 %v21066_v60 }
0x1963   :  { %18434 = vmatprep.subr.bf16.mxu1 %v24053_v20 }
0x1966   :  { %18436 = vmatpush3.bf16.msra.mxu1 %v21074_v41 }
0x1967   :  { %18437 = vmatprep.subr.bf16.mxu1 %v24053_v20 }
0x196a   :  { %18439 = vmatpush3.bf16.msra.mxu1 %v21080_v61 }
0x196b   :  { %18440 = vmatprep.subr.bf16.mxu1 %v24053_v20 }
0x196e   :  { %18442 = vmatpush3.bf16.msra.mxu1 %v20932_v59 }
0x196f   :  { %18443 = vmatprep.subr.bf16.mxu1 %v24053_v20 }
0x1972   :  { %18445 = vmatpush3.bf16.msra.mxu1 %v20936_v53 }
0x1973   :  { %18446 = vmatprep.subr.bf16.mxu1 %v24053_v20 }
0x1976   :  { %18448 = vmatpush3.bf16.msra.mxu1 %v20940_v37 }
0x1977   :  { %18449 = vmatprep.subr.bf16.mxu1 %v24053_v20 }
0x197a   :  { %18451 = vmatpush3.bf16.msra.mxu1 %v20944_v24 }
0x197b   :  { %18452 = vmatprep.subr.bf16.mxu1 %v24053_v20 }
0x197d   :  { %15585 = vmatmul.mubr.f32.vlgmr.msra.gmra.mrb[6].mxu1 %v5493_v45 }
0x197e   :  { %18454 = vmatpush3.bf16.msra.mxu1 %v20787_v5  ;;  %15619 = vmatprep.mubr.msk.f32.mxu1 %vm20177_vm3, %v24069_v49 }
0x197f   :  { %18455 = vmatprep.subr.bf16.mxu1 %v24053_v20 }
0x1982   :  { %18457 = vmatpush3.bf16.msra.mxu1 %v20794_v6 }
0x1983   :  { %18458 = vmatprep.subr.bf16.mxu1 %v24053_v20 }
0x1986   :  { %18460 = vmatpush3.bf16.msra.mxu1 %v20809_v9 }
0x1987   :  { %18461 = vmatprep.subr.bf16.mxu1 %v24053_v20 }
0x198a   :  { %18463 = vmatpush3.bf16.msra.mxu1 %v20819_v17 }
0x198b   :  { %18464 = vmatprep.subr.bf16.mxu1 %v24053_v20 }
0x198e   :  { %18466 = vmatpush3.bf16.msra.mxu1 %v20853_v25 }
0x198f   :  { %18467 = vmatprep.subr.bf16.mxu1 %v24053_v20 }
0x1992   :  { %18469 = vmatpush3.bf16.msra.mxu1 %v20857_v62 }
0x1993   :  { %18470 = vmatprep.subr.bf16.mxu1 %v24053_v20 }
0x1996   :  { %18472 = vmatpush3.bf16.msra.mxu1 %v20861_v54 }
0x1997   :  { %18473 = vmatprep.subr.bf16.mxu1 %v24053_v20 }
0x199a   :  { %18475 = vmatpush3.bf16.msra.mxu1 %v20864_v29 }
0x199b   :  { %18476 = vmatprep.subr.bf16.mxu1 %v24053_v20 }
0x199d   :  { %15620 = vmatmul.mubr.f32.vlgmr.msra.gmra.mrb[6].mxu1 %v5494_v50 }
0x199e   :  { %18478 = vmatpush3.bf16.msra.mxu1 %v21115_v1  ;;  %15654 = vmatprep.mubr.msk.f32.mxu1 %vm20177_vm3, %v24069_v49 }
0x199f   :  { %18479 = vmatprep.subr.bf16.mxu1 %v24053_v20 }
0x19a2   :  { %18481 = vmatpush3.bf16.msra.mxu1 %v21125_v7 }
0x19a3   :  { %18482 = vmatprep.subr.bf16.mxu1 %v24053_v20 }
0x19a6   :  { %18484 = vmatpush3.bf16.msra.mxu1 %v21135_v32 }
0x19a7   :  { %18485 = vmatprep.subr.bf16.mxu1 %v24053_v20 }
0x19aa   :  { %18487 = vmatpush3.bf16.msra.mxu1 %v21143_v55 }
0x19ab   :  { %18488 = vmatprep.subr.bf16.mxu1 %v24053_v20 }
0x19ae   :  { %18490 = vmatpush3.bf16.msra.mxu1 %v21151_v4 }
0x19af   :  { %18491 = vmatprep.subr.bf16.mxu1 %v24053_v20 }
0x19b2   :  { %18493 = vmatpush3.bf16.msra.mxu1 %v24184_v51 }
0x19b3   :  { %18494 = vmatprep.subr.bf16.mxu1 %v24053_v20 }
0x19b6   :  { %18496 = vmatpush3.bf16.msra.mxu1 %v24185_v52 }
0x19b7   :  { %18497 = vmatprep.subr.bf16.mxu1 %v24053_v20 }
0x19ba   :  { %18499 = vmatpush3.bf16.msra.mxu1 %v24186_v40 }
0x19bb   :  { %18500 = vmatprep.subr.bf16.mxu1 %v24053_v20 }
0x19bd   :  { %15655 = vmatmul.mubr.f32.vlgmr.msra.gmra.mrb[6].mxu1 %v22079_v44 }
0x19be   :  { %18502 = vmatpush3.bf16.msra.mxu1 %v20787_v5  ;;  %15689 = vmatprep.mubr.msk.f32.mxu1 %vm20177_vm3, %v24069_v49 }
0x19bf   :  { %18503 = vmatprep.subr.bf16.mxu1 %v24053_v20 }
0x19c2   :  { %18505 = vmatpush3.bf16.msra.mxu1 %v20794_v6 }
0x19c3   :  { %18506 = vmatprep.subr.bf16.mxu1 %v24053_v20 }
0x19c6   :  { %18508 = vmatpush3.bf16.msra.mxu1 %v20809_v9 }
0x19c7   :  { %18509 = vmatprep.subr.bf16.mxu1 %v24053_v20 }
0x19ca   :  { %18511 = vmatpush3.bf16.msra.mxu1 %v20819_v17 }
0x19cb   :  { %18512 = vmatprep.subr.bf16.mxu1 %v24053_v20 }
0x19ce   :  { %18514 = vmatpush3.bf16.msra.mxu1 %v20853_v25 }
0x19cf   :  { %18515 = vmatprep.subr.bf16.mxu1 %v24053_v20 }
0x19d2   :  { %18517 = vmatpush3.bf16.msra.mxu1 %v20857_v62 }
0x19d3   :  { %18518 = vmatprep.subr.bf16.mxu1 %v24053_v20 }
0x19d6   :  { %18520 = vmatpush3.bf16.msra.mxu1 %v20861_v54 }
0x19d7   :  { %18521 = vmatprep.subr.bf16.mxu1 %v24053_v20 }
0x19da   :  { %18523 = vmatpush3.bf16.msra.mxu1 %v20864_v29 }
0x19db   :  { %18668 = vmatprep.subr.bf16.mxu1 %v24053_v20 }
0x19dd   :  { %15690 = vmatmul.mubr.f32.vlgmr.msra.gmra.mrb[6].mxu1 %v22079_v44 }
0x19de   :  { %18670 = vmatpush3.bf16.msra.mxu1 %v20787_v5  ;;  %15934 = vmatprep.mubr.msk.f32.mxu1 %vm20177_vm3, %v24069_v49 }
0x19df   :  { %18671 = vmatprep.subr.bf16.mxu1 %v24053_v20 }
0x19e2   :  { %18673 = vmatpush3.bf16.msra.mxu1 %v20794_v6 }
0x19e3   :  { %18674 = vmatprep.subr.bf16.mxu1 %v24053_v20 }
0x19e6   :  { %18676 = vmatpush3.bf16.msra.mxu1 %v20809_v9 }
0x19e7   :  { %18677 = vmatprep.subr.bf16.mxu1 %v24053_v20 }
0x19ea   :  { %18679 = vmatpush3.bf16.msra.mxu1 %v20819_v17 }
0x19eb   :  { %18680 = vmatprep.subr.bf16.mxu1 %v24053_v20 }
0x19ee   :  { %18682 = vmatpush3.bf16.msra.mxu1 %v20853_v25 }
0x19ef   :  { %18683 = vmatprep.subr.bf16.mxu1 %v24053_v20 }
0x19f2   :  { %18685 = vmatpush3.bf16.msra.mxu1 %v20857_v62 }
0x19f3   :  { %18686 = vmatprep.subr.bf16.mxu1 %v24053_v20 }
0x19f6   :  { %18688 = vmatpush3.bf16.msra.mxu1 %v20861_v54 }
0x19f7   :  { %18689 = vmatprep.subr.bf16.mxu1 %v24053_v20 }
0x19fa   :  { %18691 = vmatpush3.bf16.msra.mxu1 %v20864_v29 }
0x19fb   :  { %18692 = vmatprep.subr.bf16.mxu1 %v24053_v20 }
0x1ab0   :  { %v6048_v18 = vpop.f32.mrb[6].mxu1 }
0x1ab1   :  { %v19683_v27 = vadd.f32 %v24187_v36, %v6048_v18  ;;  %v15691_v12 = vpop.f32.mrb[7].mxu1  ;;  %v22202_v18 = vld [vmem:[%s23847_s5] ss:$0 sm:$0xff] }
0x1ab2   :  { %v24188_v36 = vld [vmem:[#allocation62_spill] sm:$0xff] }
0x1ab3   :  { %19927 = vtanh.f32 %v19683_v27  ;;  %v12362_v45 = vmul.f32 -1.442695, %v19683_v27  ;;  %v4588_v12 = vmul.f32 %v22202_v18, %v24188_v36 }
0x1ab5   :  { %19929 = vpow2.f32 %v12362_v45 }
0x1abd   :  { %v19928_v44 = vpop.eup %19927 }
0x1abe   :  { %6062 = vrot.lane.b32.xlu0 %v19928_v44, %s20175_s25 }
0x1abf   :  { %v19930_v50 = vpop.eup %19929 }
0x1ac0   :  { %v6055_v26 = vadd.f32 1.0, %v19930_v50 }
0x1ac2   :  { %6067 = vrot.lane.b32.xlu0 %v21895_v46, %s20179_s26  ;;  %19931 = vrcp.f32 %v6055_v26  ;;  %v4589_v46 = vsel %vm849_vm6, %v4588_v12, 0.0 }
0x1acc   :  { %v19932_v34 = vpop.eup %19931 }
0x1b30   :  { %v6063_v23 = vpop.permute.xlu0 %6062 }
0x1b31   :  { %v6065_v40 = vmul.f32 %v19932_v34, %v6063_v23 }
0x1b33   :  { %6072 = vrot.lane.b32.xlu0 %v6065_v40, %s20179_s26 }
0x1b34   :  { %v6068_v27 = vpop.permute.xlu0 %6067 }
0x1b35   :  { %v6070_v44 = vmul.f32 %v19932_v34, %v6068_v27 }
0x1b52   :  { %4590 = vadd.xlane.f32.xlu0 %v4589_v46 }
0x1ba5   :  { %v6073_v45 = vpop.permute.xlu0 %6072 }
0x1ba6   :  { %v6075_v50 = vadd.f32 %v6073_v45, %v6070_v44 }
0x1ba8   :  { %v6078_v23 = vsel %vm6060_vm9, %v6075_v50, %v6068_v27  ;;  %v6217_v50 = vld [vmem:[%s23842_s0 + $0x4] sm:$0x1] }
0x1ba9   :  { %6082 = vrot.lane.b32.xlu1 %v6078_v23, %s20178_s27 }
0x1bdf   :  { %v4591_v26 = vpop.xlane.xlu0 %4590 }
0x1be0   :  { %v4592_v52 = vadd.f32 %v4591_v26, %v21537_v16 }
0x1be2   :  { %vm4593_vm10 = vcmp.gt.f32.partialorder %v4592_v52, 0.0 }
0x1be3   :  { %v12359_v51 = vsel %vm4593_vm10, 1.0, %v24069_v49 }
0x1be4   :  { %v4690_v36 = vrot.slane %v12359_v51, %v24120_v56  ;;  %v4694_v12 = vrot.slane %v12359_v51, %v24121_v28  ;;  %vm6059_vm11 = vcmp.gt.f32.partialorder %v12359_v51, 0.5  ;;  %v6218_v51 = vld [vmem:[%s23842_s0 + $0xc] sm:$0x1] }
0x1be5   :  { %vm22213_vm12 = vmor %vm6059_vm11, %vm6060_vm9  ;;  %v6221_v45 = vrot.slane %v6218_v51, 7 }
0x1be6   :  { %4697 = vst.msk [vmem:[%s23853_s11 + $0x2] sm:$0x1] %vm1667_vm8, %v4690_v36  ;;  %4698 = vst.msk [vmem:[%s23853_s11 + $0xa] sm:$0x1] %vm1667_vm8, %v4694_v12 }
0x1c1b   :  { %v6083_v52 = vpop.permute.xlu1 %6082 }
0x1c1c   :  { %v22225_v27 = vsel %vm6059_vm11, %v6065_v40, %v6083_v52  ;;  %v6222_v40 = vsel %vm156_vm2, %v6221_v45, %v6217_v50 }
0x1c1d   :  { %19933 = vtanh.f32 %v22225_v27 }
0x1c27   :  { %v19934_v44 = vpop.eup %19933 }
0x1c28   :  { %6089 = vrot.lane.b32.xlu1 %v19934_v44, %s20178_s27 }
0x1c2c   :  { %6207 = vrot.lane.b32.xlu1 %v22070_v48, %s20175_s25  ;;  %v24200_v48 = vld [vmem:[#allocation32_spill] sm:$0xff] }
0x1c30   :  { %6223 = vrot.lane.b32.xlu1 %v6222_v40, %s20175_s25 }
0x1c34   :  { %6883 = vrot.lane.b32.xlu1 %v22047_v8, %s20179_s26 }
0x1c9a   :  { %v6090_v23 = vpop.permute.xlu1 %6089 }
0x1c9b   :  { %v6092_v26 = vmul.f32 %v19932_v34, %v6090_v23  ;;  %v24192_v23 = vld [vmem:[#allocation43_spill] sm:$0xff] }
0x1c9d   :  { %v22244_v36 = vsel %vm22213_vm12, %v6092_v26, %v21914_v2  ;;  %v24193_v26 = vld [vmem:[#allocation44_spill] sm:$0xff]  ;;  %v24202_v2 = vld [vmem:[#allocation34_spill] sm:$0xff] }
0x1c9e   :  { %24191 = vst [vmem:[#allocation38_spill] sm:$0xff] %v22244_v36  ;;  %v6208_v12 = vpop.permute.xlu1 %6207  ;;  %v6211_v52 = vmul.f32 %v22053_v63, %v22244_v36 }
0x1c9f   :  { %6210 = vst.msk [vmem:[#allocation2] sm:$0x3] %vm85_vm1, %v6208_v12  ;;  %v24194_v12 = vld [vmem:[#allocation45_spill] sm:$0xff] }
0x1ca0   :  { %6213 = vrot.lane.b32.xlu0 %v6211_v52, %s20179_s26  ;;  %v24195_v52 = vld [vmem:[#allocation46_spill] sm:$0xff] }
0x1ca2   :  { %v6224_v44 = vpop.permute.xlu1 %6223 }
0x1d12   :  { %v6214_v51 = vpop.permute.xlu0 %6213 }
0x1d13   :  { %6216 = vst.msk [vmem:[#allocation2] sm:$0x3] %vm149_vm4, %v6214_v51  ;;  %v24196_v51 = vld [vmem:[#allocation39_spill] sm:$0xff] }
0x1d14   :  { %6226 = vst.msk [vmem:[#allocation2] sm:$0x3] %vm161_vm5, %v6224_v44  ;;  %v24197_v44 = vld [vmem:[#allocation40_spill] sm:$0xff] }
0x1d1b   :  { %v22252_v8 = vld [vmem:[#allocation2] sm:$0x3] }
0x1d1c   :  { %v22255_v34 = vand.u32 4294901760, %v22252_v8 }
0x1d1e   :  { %v6310_v46 = vsub.f32 %v22252_v8, %v22255_v34 }
0x1d20   :  { %v6311_v45 = vand.u32 4294901760, %v6310_v46 }
0x1d22   :  { %v6312_v50 = vsub.f32 %v6310_v46, %v6311_v45 }
0x1d24   :  { %v6313_v40 = vand.u32 4294901760, %v6312_v50  ;;  %v24198_v50 = vld [vmem:[#allocation41_spill] sm:$0xff] }
0x1d26   :  { %15725 = vmatmul.mubr.f32.vlgmr.msra.gmra.mrb[8].mxu0 %v6313_v40  ;;  %v24199_v40 = vld [vmem:[#allocation42_spill] sm:$0xff] }
0x1d27   :  { %18550 = vmatpush3.bf16.msra.mxu0 %v20543_v0  ;;  %15759 = vmatprep.mubr.msk.f32.mxu0 %vm20177_vm3, %v24069_v49 }
0x1d28   :  { %18551 = vmatprep.subr.bf16.mxu0 %v24053_v20 }
0x1d2b   :  { %18553 = vmatpush3.bf16.msra.mxu0 %v20553_v30 }
0x1d2c   :  { %18554 = vmatprep.subr.bf16.mxu0 %v24053_v20 }
0x1d2f   :  { %18556 = vmatpush3.bf16.msra.mxu0 %v20566_v31 }
0x1d30   :  { %18557 = vmatprep.subr.bf16.mxu0 %v24053_v20 }
0x1d33   :  { %18559 = vmatpush3.bf16.msra.mxu0 %v20570_v11 }
0x1d34   :  { %18560 = vmatprep.subr.bf16.mxu0 %v24053_v20 }
0x1d37   :  { %18562 = vmatpush3.bf16.msra.mxu0 %v20416_v3 }
0x1d38   :  { %18563 = vmatprep.subr.bf16.mxu0 %v24053_v20 }
0x1d3b   :  { %18565 = vmatpush3.bf16.msra.mxu0 %v20440_v39 }
0x1d3c   :  { %18566 = vmatprep.subr.bf16.mxu0 %v24053_v20 }
0x1d3f   :  { %18568 = vmatpush3.bf16.msra.mxu0 %v24158_v21 }
0x1d40   :  { %18569 = vmatprep.subr.bf16.mxu0 %v24053_v20 }
0x1d43   :  { %18571 = vmatpush3.bf16.msra.mxu0 %v24159_v14 }
0x1d44   :  { %18572 = vmatprep.subr.bf16.mxu0 %v24053_v20 }
0x1d46   :  { %15760 = vmatmul.mubr.f32.vlgmr.msra.gmra.mrb[8].mxu0 %v22255_v34 }
0x1d47   :  { %18574 = vmatpush3.bf16.msra.mxu0 %v24192_v23  ;;  %15794 = vmatprep.mubr.msk.f32.mxu0 %vm20177_vm3, %v24069_v49 }
0x1d48   :  { %18575 = vmatprep.subr.bf16.mxu0 %v24053_v20 }
0x1d4b   :  { %18577 = vmatpush3.bf16.msra.mxu0 %v24193_v26  ;;  %v24211_v26 = vld [vmem:[#allocation53_spill] sm:$0xff] }
0x1d4c   :  { %18578 = vmatprep.subr.bf16.mxu0 %v24053_v20 }
0x1d4f   :  { %18580 = vmatpush3.bf16.msra.mxu0 %v24194_v12  ;;  %v24208_v12 = vld [vmem:[#allocation50_spill] sm:$0xff] }
0x1d50   :  { %18581 = vmatprep.subr.bf16.mxu0 %v24053_v20 }
0x1d53   :  { %18583 = vmatpush3.bf16.msra.mxu0 %v24195_v52  ;;  %v24207_v52 = vld [vmem:[#allocation49_spill] sm:$0xff] }
0x1d54   :  { %18584 = vmatprep.subr.bf16.mxu0 %v24053_v20 }
0x1d57   :  { %18586 = vmatpush3.bf16.msra.mxu0 %v24196_v51  ;;  %v24206_v51 = vld [vmem:[#allocation48_spill] sm:$0xff] }
0x1d58   :  { %18587 = vmatprep.subr.bf16.mxu0 %v24053_v20 }
0x1d5b   :  { %18589 = vmatpush3.bf16.msra.mxu0 %v24197_v44  ;;  %v24205_v44 = vld [vmem:[#allocation47_spill] sm:$0xff] }
0x1d5c   :  { %18590 = vmatprep.subr.bf16.mxu0 %v24053_v20 }
0x1d5f   :  { %18592 = vmatpush3.bf16.msra.mxu0 %v24198_v50  ;;  %v24204_v50 = vld [vmem:[#allocation36_spill] sm:$0xff] }
0x1d60   :  { %18593 = vmatprep.subr.bf16.mxu0 %v24053_v20 }
0x1d63   :  { %18595 = vmatpush3.bf16.msra.mxu0 %v24199_v40  ;;  %v24203_v40 = vld [vmem:[#allocation35_spill] sm:$0xff] }
0x1d64   :  { %18596 = vmatprep.subr.bf16.mxu0 %v24053_v20 }
0x1d66   :  { %15795 = vmatmul.mubr.f32.vlgmr.msra.gmra.mrb[8].mxu0 %v6310_v46  ;;  %v24201_v46 = vld [vmem:[#allocation33_spill] sm:$0xff] }
0x1d67   :  { %18598 = vmatpush3.bf16.msra.mxu0 %v24135_v10  ;;  %15829 = vmatprep.mubr.msk.f32.mxu0 %vm20177_vm3, %v24069_v49 }
0x1d68   :  { %18599 = vmatprep.subr.bf16.mxu0 %v24053_v20 }
0x1d6b   :  { %18601 = vmatpush3.bf16.msra.mxu0 %v24136_v33 }
0x1d6c   :  { %18602 = vmatprep.subr.bf16.mxu0 %v24053_v20 }
0x1d6f   :  { %18604 = vmatpush3.bf16.msra.mxu0 %v24168_v13 }
0x1d70   :  { %18605 = vmatprep.subr.bf16.mxu0 %v24053_v20 }
0x1d73   :  { %18607 = vmatpush3.bf16.msra.mxu0 %v24200_v48 }
0x1d74   :  { %18608 = vmatprep.subr.bf16.mxu0 %v24053_v20 }
0x1d77   :  { %18610 = vmatpush3.bf16.msra.mxu0 %v24201_v46 }
0x1d78   :  { %18611 = vmatprep.subr.bf16.mxu0 %v24053_v20 }
0x1d7b   :  { %18613 = vmatpush3.bf16.msra.mxu0 %v24202_v2 }
0x1d7c   :  { %18614 = vmatprep.subr.bf16.mxu0 %v24053_v20 }
0x1d7f   :  { %18616 = vmatpush3.bf16.msra.mxu0 %v24203_v40 }
0x1d80   :  { %18617 = vmatprep.subr.bf16.mxu0 %v24053_v20 }
0x1d83   :  { %18619 = vmatpush3.bf16.msra.mxu0 %v24204_v50 }
0x1d84   :  { %18620 = vmatprep.subr.bf16.mxu0 %v24053_v20 }
0x1d86   :  { %15830 = vmatmul.mubr.f32.vlgmr.msra.gmra.mrb[8].mxu0 %v6311_v45  ;;  %v24209_v45 = vld [vmem:[#allocation51_spill] sm:$0xff] }
0x1d87   :  { %18622 = vmatpush3.bf16.msra.mxu0 %v24205_v44  ;;  %15864 = vmatprep.mubr.msk.f32.mxu0 %vm20177_vm3, %v24069_v49  ;;  %v24210_v44 = vld [vmem:[#allocation52_spill] sm:$0xff] }
0x1d88   :  { %18623 = vmatprep.subr.bf16.mxu0 %v24053_v20 }
0x1d8b   :  { %18625 = vmatpush3.bf16.msra.mxu0 %v24206_v51  ;;  %v24212_v51 = vld [vmem:[#allocation54_spill] sm:$0xff] }
0x1d8c   :  { %18626 = vmatprep.subr.bf16.mxu0 %v24053_v20 }
0x1d8f   :  { %18628 = vmatpush3.bf16.msra.mxu0 %v24207_v52 }
0x1d90   :  { %18629 = vmatprep.subr.bf16.mxu0 %v24053_v20 }
0x1d93   :  { %18631 = vmatpush3.bf16.msra.mxu0 %v24208_v12 }
0x1d94   :  { %18632 = vmatprep.subr.bf16.mxu0 %v24053_v20 }
0x1d97   :  { %18634 = vmatpush3.bf16.msra.mxu0 %v24209_v45 }
0x1d98   :  { %18635 = vmatprep.subr.bf16.mxu0 %v24053_v20 }
0x1d9b   :  { %18637 = vmatpush3.bf16.msra.mxu0 %v24210_v44 }
0x1d9c   :  { %18638 = vmatprep.subr.bf16.mxu0 %v24053_v20 }
0x1d9f   :  { %18640 = vmatpush3.bf16.msra.mxu0 %v24211_v26 }
0x1da0   :  { %18641 = vmatprep.subr.bf16.mxu0 %v24053_v20 }
0x1da3   :  { %18643 = vmatpush3.bf16.msra.mxu0 %v24212_v51  ;;  %v22373_v51 = vld [vmem:[%s23845_s3] ss:$0 sm:$0xff] }
0x1da4   :  { %18644 = vmatprep.subr.bf16.mxu0 %v24053_v20 }
0x1da6   :  { %15865 = vmatmul.mubr.f32.vlgmr.msra.gmra.mrb[8].mxu0 %v22255_v34 }
0x1da7   :  { %18646 = vmatpush3.bf16.msra.mxu0 %v24135_v10  ;;  %15899 = vmatprep.mubr.msk.f32.mxu0 %vm20177_vm3, %v24069_v49 }
0x1da8   :  { %18647 = vmatprep.subr.bf16.mxu0 %v24053_v20 }
0x1dab   :  { %18649 = vmatpush3.bf16.msra.mxu0 %v24136_v33 }
0x1dac   :  { %18650 = vmatprep.subr.bf16.mxu0 %v24053_v20 }
0x1daf   :  { %18652 = vmatpush3.bf16.msra.mxu0 %v24168_v13 }
0x1db0   :  { %18653 = vmatprep.subr.bf16.mxu0 %v24053_v20 }
0x1db3   :  { %18655 = vmatpush3.bf16.msra.mxu0 %v24200_v48 }
0x1db4   :  { %18656 = vmatprep.subr.bf16.mxu0 %v24053_v20 }
0x1db7   :  { %18658 = vmatpush3.bf16.msra.mxu0 %v24201_v46 }
0x1db8   :  { %18659 = vmatprep.subr.bf16.mxu0 %v24053_v20 }
0x1dbb   :  { %18661 = vmatpush3.bf16.msra.mxu0 %v24202_v2 }
0x1dbc   :  { %18662 = vmatprep.subr.bf16.mxu0 %v24053_v20 }
0x1dbf   :  { %18664 = vmatpush3.bf16.msra.mxu0 %v24203_v40 }
0x1dc0   :  { %18665 = vmatprep.subr.bf16.mxu0 %v24053_v20 }
0x1dc3   :  { %18667 = vmatpush3.bf16.msra.mxu0 %v24204_v50 }
0x1dc4   :  { %18812 = vmatprep.subr.bf16.mxu0 %v24053_v20 }
0x1dc6   :  { %15900 = vmatmul.mubr.f32.vlgmr.msra.gmra.mrb[8].mxu0 %v22255_v34 }
0x1dc7   :  { %18814 = vmatpush3.bf16.msra.mxu0 %v24135_v10  ;;  %16144 = vmatprep.mubr.msk.f32.mxu0 %vm20177_vm3, %v24069_v49 }
0x1dc8   :  { %18815 = vmatprep.subr.bf16.mxu0 %v24053_v20 }
0x1dcb   :  { %18817 = vmatpush3.bf16.msra.mxu0 %v24136_v33 }
0x1dcc   :  { %18818 = vmatprep.subr.bf16.mxu0 %v24053_v20 }
0x1dcf   :  { %18820 = vmatpush3.bf16.msra.mxu0 %v24168_v13 }
0x1dd0   :  { %18821 = vmatprep.subr.bf16.mxu0 %v24053_v20 }
0x1dd3   :  { %18823 = vmatpush3.bf16.msra.mxu0 %v24200_v48 }
0x1dd4   :  { %18824 = vmatprep.subr.bf16.mxu0 %v24053_v20 }
0x1dd7   :  { %18826 = vmatpush3.bf16.msra.mxu0 %v24201_v46  ;;  %v6881_v46 = vsub.f32 1.0, %v22053_v63 }
0x1dd8   :  { %18827 = vmatprep.subr.bf16.mxu0 %v24053_v20 }
0x1ddb   :  { %18829 = vmatpush3.bf16.msra.mxu0 %v24202_v2  ;;  %v6884_v2 = vpop.permute.xlu1 %6883 }
0x1ddc   :  { %18830 = vmatprep.subr.bf16.mxu0 %v24053_v20 }
0x1ddf   :  { %18832 = vmatpush3.bf16.msra.mxu0 %v24203_v40 }
0x1de0   :  { %18833 = vmatprep.subr.bf16.mxu0 %v24053_v20 }
0x1de3   :  { %18835 = vmatpush3.bf16.msra.mxu0 %v24204_v50 }
0x1de4   :  { %18836 = vmatprep.subr.bf16.mxu0 %v24053_v20 }
0x1e99   :  { %v6865_v34 = vpop.f32.mrb[8].mxu0 }
0x1e9a   :  { %v19684_v26 = vadd.f32 %v22373_v51, %v6865_v34  ;;  %v15901_v44 = vpop.f32.mrb[9].mxu0 }
0x1e9b   :  { %v22382_v44 = vld [vmem:[%s23844_s2] ss:$0 sm:$0xff] }
0x1e9c   :  { %v12364_v45 = vmul.f32 -1.442695, %v19684_v26  ;;  %19935 = vtanh.f32 %v19684_v26  ;;  %v6899_v26 = vmul.f32 %v22382_v44, %v22252_v8 }
0x1e9e   :  { %19937 = vpow2.f32 %v12364_v45 }
0x1ea6   :  { %v19936_v12 = vpop.eup %19935 }
0x1ea7   :  { %6877 = vrot.lane.b32.xlu1 %v19936_v12, %s20175_s25  ;;  %v6900_v12 = vsel %vm849_vm6, %v6899_v26, 0.0 }
0x1ea8   :  { %v19938_v52 = vpop.eup %19937 }
0x1ea9   :  { %v6872_v40 = vadd.f32 1.0, %v19938_v52 }
0x1eab   :  { %19939 = vrcp.f32 %v6872_v40 }
0x1eb5   :  { %v19940_v50 = vpop.eup %19939 }
0x1eb6   :  { %v6886_v48 = vmul.f32 %v19940_v50, %v6884_v2 }
0x1eb8   :  { %v6887_v13 = vmul.f32 %v6886_v48, %v6881_v46 }
0x1eba   :  { %6889 = vrot.lane.b32.xlu1 %v6887_v13, %s20178_s27 }
0x1ede   :  { %6901 = vadd.xlane.f32.xlu1 %v6900_v12 }
0x1f19   :  { %v6878_v52 = vpop.permute.xlu1 %6877 }
0x1f1a   :  { %v6880_v40 = vmul.f32 %v19940_v50, %v6878_v52 }
0x1f2c   :  { %v6890_v45 = vpop.permute.xlu1 %6889 }
0x1f2d   :  { %v22387_v34 = vadd.f32 %v6890_v45, %v6880_v40 }
0x1f2f   :  { %19941 = vtanh.f32 %v22387_v34 }
0x1f39   :  { %v19942_v2 = vpop.eup %19941 }
0x1f3a   :  { %6895 = vrot.lane.b32.xlu0 %v19942_v2, %s20178_s27 }
0x1f6b   :  { %v6902_v13 = vpop.xlane.xlu1 %6901 }
0x1f6c   :  { %v6903_v63 = vadd.f32 %v6902_v13, %v24151_v42 }
0x1f6e   :  { %vm6904_vm13 = vcmp.gt.f32.partialorder %v6903_v63, 0.0 }
0x1f6f   :  { %v22393_v48 = vsel %vm6904_vm13, 1.0, %v24069_v49 }
0x1f70   :  { %v7693_v8 = vrot.slane %v22393_v48, %v24120_v56  ;;  %v7697_v46 = vrot.slane %v22393_v48, %v24121_v28  ;;  %v6907_v26 = vmul.f32 %v22393_v48, %v22244_v36  ;;  %vm7568_vm14 = vcmp.gt.f32.partialorder %v22393_v48, 0.5 }
0x1f72   :  { %7700 = vst.msk [vmem:[%s23852_s10 + $0x4] sm:$0x1] %vm1667_vm8, %v7693_v8  ;;  %7701 = vst.msk [vmem:[%s23852_s10 + $0xc] sm:$0x1] %vm1667_vm8, %v7697_v46  ;;  %6909 = vrot.lane.b32.xlu0 %v6907_v26, %s20175_s25  ;;  %v24215_v26 = vld [vmem:[#allocation68_spill] sm:$0xff] }
0x1fac   :  { %v6896_v12 = vpop.permute.xlu0 %6895 }
0x1fad   :  { %v22410_v52 = vmul.f32 %v19940_v50, %v6896_v12  ;;  %v24216_v12 = vld [vmem:[#allocation69_spill] sm:$0xff] }
0x1faf   :  { %24213 = vst [vmem:[#allocation29_spill] sm:$0xff] %v22410_v52  ;;  %6914 = vrot.lane.b32.xlu0 %v22410_v52, %s20179_s26 }
0x1fe4   :  { %v6910_v40 = vpop.permute.xlu0 %6909 }
0x1fe5   :  { %6912 = vst.msk [vmem:[#allocation3] sm:$0x3] %vm85_vm1, %v6910_v40  ;;  %v24217_v40 = vld [vmem:[#allocation70_spill] sm:$0xff] }
0x2021   :  { %v6915_v45 = vpop.permute.xlu0 %6914 }
0x2022   :  { %6917 = vst.msk [vmem:[#allocation3] sm:$0x3] %vm149_vm4, %v6915_v45 }
0x2029   :  { %v22416_v2 = vld [vmem:[#allocation3] sm:$0x3] }
0x202a   :  { %24214 = vst [vmem:[#allocation62_spill] sm:$0xff] %v22416_v2  ;;  %v22419_v13 = vand.u32 4294901760, %v22416_v2 }
0x202c   :  { %v7001_v63 = vsub.f32 %v22416_v2, %v22419_v13 }
0x202e   :  { %v7002_v8 = vand.u32 4294901760, %v7001_v63 }
0x2030   :  { %v7003_v50 = vsub.f32 %v7001_v63, %v7002_v8 }
0x2032   :  { %v7004_v46 = vand.u32 4294901760, %v7003_v50 }
0x2034   :  { %15935 = vmatmul.mubr.f32.vlgmr.msra.gmra.mrb[8].mxu1 %v7004_v46 }
0x2035   :  { %18694 = vmatpush3.bf16.msra.mxu1 %v21018_v57  ;;  %15969 = vmatprep.mubr.msk.f32.mxu1 %vm20177_vm3, %v24069_v49 }
0x2036   :  { %18695 = vmatprep.subr.bf16.mxu1 %v24053_v20 }
0x2039   :  { %18697 = vmatpush3.bf16.msra.mxu1 %v21028_v22 }
0x203a   :  { %18698 = vmatprep.subr.bf16.mxu1 %v24053_v20 }
0x203d   :  { %18700 = vmatpush3.bf16.msra.mxu1 %v21041_v15 }
0x203e   :  { %18701 = vmatprep.subr.bf16.mxu1 %v24053_v20 }
0x2041   :  { %18703 = vmatpush3.bf16.msra.mxu1 %v21045_v47 }
0x2042   :  { %18704 = vmatprep.subr.bf16.mxu1 %v24053_v20 }
0x2045   :  { %18706 = vmatpush3.bf16.msra.mxu1 %v20902_v43 }
0x2046   :  { %18707 = vmatprep.subr.bf16.mxu1 %v24053_v20 }
0x2049   :  { %18709 = vmatpush3.bf16.msra.mxu1 %v20906_v19 }
0x204a   :  { %18710 = vmatprep.subr.bf16.mxu1 %v24053_v20 }
0x204d   :  { %18712 = vmatpush3.bf16.msra.mxu1 %v20920_v38 }
0x204e   :  { %18713 = vmatprep.subr.bf16.mxu1 %v24053_v20 }
0x2051   :  { %18715 = vmatpush3.bf16.msra.mxu1 %v20928_v35 }
0x2052   :  { %18716 = vmatprep.subr.bf16.mxu1 %v24053_v20 }
0x2054   :  { %15970 = vmatmul.mubr.f32.vlgmr.msra.gmra.mrb[8].mxu1 %v22419_v13 }
0x2055   :  { %18718 = vmatpush3.bf16.msra.mxu1 %v21059_v58  ;;  %16004 = vmatprep.mubr.msk.f32.mxu1 %vm20177_vm3, %v24069_v49 }
0x2056   :  { %18719 = vmatprep.subr.bf16.mxu1 %v24053_v20 }
0x2059   :  { %18721 = vmatpush3.bf16.msra.mxu1 %v21066_v60 }
0x205a   :  { %18722 = vmatprep.subr.bf16.mxu1 %v24053_v20 }
0x205d   :  { %18724 = vmatpush3.bf16.msra.mxu1 %v21074_v41 }
0x205e   :  { %18725 = vmatprep.subr.bf16.mxu1 %v24053_v20 }
0x2061   :  { %18727 = vmatpush3.bf16.msra.mxu1 %v21080_v61 }
0x2062   :  { %18728 = vmatprep.subr.bf16.mxu1 %v24053_v20 }
0x2065   :  { %18730 = vmatpush3.bf16.msra.mxu1 %v20932_v59 }
0x2066   :  { %18731 = vmatprep.subr.bf16.mxu1 %v24053_v20 }
0x2069   :  { %18733 = vmatpush3.bf16.msra.mxu1 %v20936_v53 }
0x206a   :  { %18734 = vmatprep.subr.bf16.mxu1 %v24053_v20 }
0x206d   :  { %18736 = vmatpush3.bf16.msra.mxu1 %v20940_v37 }
0x206e   :  { %18737 = vmatprep.subr.bf16.mxu1 %v24053_v20 }
0x2071   :  { %18739 = vmatpush3.bf16.msra.mxu1 %v20944_v24 }
0x2072   :  { %18740 = vmatprep.subr.bf16.mxu1 %v24053_v20 }
0x2074   :  { %16005 = vmatmul.mubr.f32.vlgmr.msra.gmra.mrb[8].mxu1 %v7001_v63 }
0x2075   :  { %18742 = vmatpush3.bf16.msra.mxu1 %v20787_v5  ;;  %16039 = vmatprep.mubr.msk.f32.mxu1 %vm20177_vm3, %v24069_v49 }
0x2076   :  { %18743 = vmatprep.subr.bf16.mxu1 %v24053_v20 }
0x2079   :  { %18745 = vmatpush3.bf16.msra.mxu1 %v20794_v6 }
0x207a   :  { %18746 = vmatprep.subr.bf16.mxu1 %v24053_v20 }
0x207d   :  { %18748 = vmatpush3.bf16.msra.mxu1 %v20809_v9 }
0x207e   :  { %18749 = vmatprep.subr.bf16.mxu1 %v24053_v20 }
0x2081   :  { %18751 = vmatpush3.bf16.msra.mxu1 %v20819_v17 }
0x2082   :  { %18752 = vmatprep.subr.bf16.mxu1 %v24053_v20 }
0x2085   :  { %18754 = vmatpush3.bf16.msra.mxu1 %v20853_v25 }
0x2086   :  { %18755 = vmatprep.subr.bf16.mxu1 %v24053_v20 }
0x2089   :  { %18757 = vmatpush3.bf16.msra.mxu1 %v20857_v62 }
0x208a   :  { %18758 = vmatprep.subr.bf16.mxu1 %v24053_v20 }
0x208d   :  { %18760 = vmatpush3.bf16.msra.mxu1 %v20861_v54 }
0x208e   :  { %18761 = vmatprep.subr.bf16.mxu1 %v24053_v20 }
0x2091   :  { %18763 = vmatpush3.bf16.msra.mxu1 %v20864_v29 }
0x2092   :  { %18764 = vmatprep.subr.bf16.mxu1 %v24053_v20 }
0x2094   :  { %16040 = vmatmul.mubr.f32.vlgmr.msra.gmra.mrb[8].mxu1 %v7002_v8 }
0x2095   :  { %18766 = vmatpush3.bf16.msra.mxu1 %v21115_v1  ;;  %16074 = vmatprep.mubr.msk.f32.mxu1 %vm20177_vm3, %v24069_v49 }
0x2096   :  { %18767 = vmatprep.subr.bf16.mxu1 %v24053_v20 }
0x2099   :  { %18769 = vmatpush3.bf16.msra.mxu1 %v21125_v7 }
0x209a   :  { %18770 = vmatprep.subr.bf16.mxu1 %v24053_v20 }
0x209d   :  { %18772 = vmatpush3.bf16.msra.mxu1 %v21135_v32 }
0x209e   :  { %18773 = vmatprep.subr.bf16.mxu1 %v24053_v20 }
0x20a1   :  { %18775 = vmatpush3.bf16.msra.mxu1 %v21143_v55  ;;  %v24219_v55 = vld [vmem:[#allocation37_spill] sm:$0xff] }
0x20a2   :  { %18776 = vmatprep.subr.bf16.mxu1 %v24053_v20 }
0x20a5   :  { %18778 = vmatpush3.bf16.msra.mxu1 %v21151_v4 }
0x20a6   :  { %18779 = vmatprep.subr.bf16.mxu1 %v24053_v20 }
0x20a9   :  { %18781 = vmatpush3.bf16.msra.mxu1 %v24215_v26 }
0x20aa   :  { %18782 = vmatprep.subr.bf16.mxu1 %v24053_v20 }
0x20ad   :  { %18784 = vmatpush3.bf16.msra.mxu1 %v24216_v12 }
0x20ae   :  { %18785 = vmatprep.subr.bf16.mxu1 %v24053_v20 }
0x20b1   :  { %18787 = vmatpush3.bf16.msra.mxu1 %v24217_v40 }
0x20b2   :  { %18788 = vmatprep.subr.bf16.mxu1 %v24053_v20 }
0x20b4   :  { %16075 = vmatmul.mubr.f32.vlgmr.msra.gmra.mrb[8].mxu1 %v22419_v13 }
0x20b5   :  { %18790 = vmatpush3.bf16.msra.mxu1 %v20787_v5  ;;  %16109 = vmatprep.mubr.msk.f32.mxu1 %vm20177_vm3, %v24069_v49 }
0x20b6   :  { %18791 = vmatprep.subr.bf16.mxu1 %v24053_v20 }
0x20b9   :  { %18793 = vmatpush3.bf16.msra.mxu1 %v20794_v6 }
0x20ba   :  { %18794 = vmatprep.subr.bf16.mxu1 %v24053_v20 }
0x20bd   :  { %18796 = vmatpush3.bf16.msra.mxu1 %v20809_v9 }
0x20be   :  { %18797 = vmatprep.subr.bf16.mxu1 %v24053_v20 }
0x20c1   :  { %18799 = vmatpush3.bf16.msra.mxu1 %v20819_v17 }
0x20c2   :  { %18800 = vmatprep.subr.bf16.mxu1 %v24053_v20 }
0x20c5   :  { %18802 = vmatpush3.bf16.msra.mxu1 %v20853_v25 }
0x20c6   :  { %18803 = vmatprep.subr.bf16.mxu1 %v24053_v20 }
0x20c9   :  { %18805 = vmatpush3.bf16.msra.mxu1 %v20857_v62 }
0x20ca   :  { %18806 = vmatprep.subr.bf16.mxu1 %v24053_v20 }
0x20cd   :  { %18808 = vmatpush3.bf16.msra.mxu1 %v20861_v54 }
0x20ce   :  { %18809 = vmatprep.subr.bf16.mxu1 %v24053_v20 }
0x20d1   :  { %18811 = vmatpush3.bf16.msra.mxu1 %v20864_v29 }
0x20d2   :  { %18956 = vmatprep.subr.bf16.mxu1 %v24053_v20 }
0x20d4   :  { %16110 = vmatmul.mubr.f32.vlgmr.msra.gmra.mrb[8].mxu1 %v22419_v13  ;;  %v22537_v13 = vld [vmem:[%s23848_s6] ss:$0 sm:$0xff] }
0x20d5   :  { %18958 = vmatpush3.bf16.msra.mxu1 %v20787_v5  ;;  %16354 = vmatprep.mubr.msk.f32.mxu1 %vm20177_vm3, %v24069_v49  ;;  %24218 = vst [vmem:[#allocation43_spill] sm:$0xff] %v22537_v13 }
0x20d6   :  { %18959 = vmatprep.subr.bf16.mxu1 %v24053_v20 }
0x20d9   :  { %18961 = vmatpush3.bf16.msra.mxu1 %v20794_v6 }
0x20da   :  { %18962 = vmatprep.subr.bf16.mxu1 %v24053_v20 }
0x20dd   :  { %18964 = vmatpush3.bf16.msra.mxu1 %v20809_v9 }
0x20de   :  { %18965 = vmatprep.subr.bf16.mxu1 %v24053_v20 }
0x20e1   :  { %18967 = vmatpush3.bf16.msra.mxu1 %v20819_v17 }
0x20e2   :  { %18968 = vmatprep.subr.bf16.mxu1 %v24053_v20 }
0x20e5   :  { %18970 = vmatpush3.bf16.msra.mxu1 %v20853_v25 }
0x20e6   :  { %18971 = vmatprep.subr.bf16.mxu1 %v24053_v20 }
0x20e9   :  { %18973 = vmatpush3.bf16.msra.mxu1 %v20857_v62 }
0x20ea   :  { %18974 = vmatprep.subr.bf16.mxu1 %v24053_v20 }
0x20ed   :  { %18976 = vmatpush3.bf16.msra.mxu1 %v20861_v54 }
0x20ee   :  { %18977 = vmatprep.subr.bf16.mxu1 %v24053_v20 }
0x20f1   :  { %18979 = vmatpush3.bf16.msra.mxu1 %v20864_v29 }
0x20f2   :  { %18980 = vmatprep.subr.bf16.mxu1 %v24053_v20 }
0x21a7   :  { %v7556_v45 = vpop.f32.mrb[8].mxu1 }
0x21a8   :  { %v19685_v63 = vadd.f32 %v22537_v13, %v7556_v45  ;;  %v16111_v8 = vpop.f32.mrb[9].mxu1  ;;  %v6096_v45 = vmul.f32 %v22202_v18, %v24219_v55 }
0x21aa   :  { %19943 = vtanh.f32 %v19685_v63  ;;  %v12366_v46 = vmul.f32 -1.442695, %v19685_v63  ;;  %v6097_v8 = vsel %vm849_vm6, %v6096_v45, 0.0  ;;  %v7726_v45 = vld [vmem:[%s23842_s0 + $0xd] sm:$0x1] }
0x21ac   :  { %19945 = vpow2.f32 %v12366_v46 }
0x21b4   :  { %v19944_v50 = vpop.eup %19943 }
0x21b5   :  { %7570 = vrot.lane.b32.xlu0 %v19944_v50, %s20175_s25 }
0x21b6   :  { %v19946_v2 = vpop.eup %19945 }
0x21b7   :  { %v7563_v40 = vadd.f32 1.0, %v19946_v2 }
0x21b9   :  { %7575 = vrot.lane.b32.xlu0 %v22225_v27, %s20179_s26  ;;  %19947 = vrcp.f32 %v7563_v40 }
0x21c3   :  { %v19948_v12 = vpop.eup %19947 }
0x2227   :  { %v7571_v26 = vpop.permute.xlu0 %7570 }
0x2228   :  { %v7573_v4 = vmul.f32 %v19948_v12, %v7571_v26 }
0x222a   :  { %7580 = vrot.lane.b32.xlu0 %v7573_v4, %s20179_s26 }
0x222b   :  { %v7576_v50 = vpop.permute.xlu0 %7575 }
0x222c   :  { %v7578_v13 = vmul.f32 %v19948_v12, %v7576_v50 }
0x2249   :  { %6098 = vadd.xlane.f32.xlu0 %v6097_v8 }
0x229c   :  { %v7581_v32 = vpop.permute.xlu0 %7580 }
0x229d   :  { %v7583_v27 = vadd.f32 %v7581_v32, %v7578_v13 }
0x229f   :  { %v7586_v63 = vsel %vm7568_vm14, %v7583_v27, %v7576_v50  ;;  %v7729_v50 = vrot.slane %v7726_v45, 7  ;;  %v7725_v27 = vld [vmem:[%s23842_s0 + $0x5] sm:$0x1] }
0x22a0   :  { %7590 = vrot.lane.b32.xlu1 %v7586_v63, %s20178_s27 }
0x22d6   :  { %v6099_v2 = vpop.xlane.xlu0 %6098 }
0x22d7   :  { %v6100_v26 = vadd.f32 %v6099_v2, %v21537_v16 }
0x22d9   :  { %vm6101_vm15 = vcmp.gt.f32.partialorder %v6100_v26, 0.0 }
0x22da   :  { %v12363_v40 = vsel %vm6101_vm15, 1.0, %v24069_v49 }
0x22db   :  { %v6198_v55 = vrot.slane %v12363_v40, %v24120_v56  ;;  %v6202_v18 = vrot.slane %v12363_v40, %v24121_v28  ;;  %vm7567_vm7 = vcmp.gt.f32.partialorder %v12363_v40, 0.5 }
0x22dc   :  { %vm22553_vm9 = vmor %vm7567_vm7, %vm7568_vm14 }
0x22dd   :  { %6205 = vst.msk [vmem:[%s23853_s11 + $0x3] sm:$0x1] %vm1667_vm8, %v6198_v55  ;;  %6206 = vst.msk [vmem:[%s23853_s11 + $0xb] sm:$0x1] %vm1667_vm8, %v6202_v18 }
0x2312   :  { %v7591_v32 = vpop.permute.xlu1 %7590 }
0x2313   :  { %v22565_v13 = vsel %vm7567_vm7, %v7573_v4, %v7591_v32  ;;  %v7730_v4 = vsel %vm156_vm2, %v7729_v50, %v7725_v27  ;;  %v24223_v27 = vld [vmem:[#allocation44_spill] sm:$0xff] }
0x2314   :  { %19949 = vtanh.f32 %v22565_v13 }
0x231e   :  { %v19950_v8 = vpop.eup %19949 }
0x231f   :  { %7597 = vrot.lane.b32.xlu1 %v19950_v8, %s20178_s27 }
0x2323   :  { %7715 = vrot.lane.b32.xlu1 %v22410_v52, %s20175_s25  ;;  %v24234_v52 = vld [vmem:[#allocation35_spill] sm:$0xff] }
0x2327   :  { %7731 = vrot.lane.b32.xlu1 %v7730_v4, %s20175_s25  ;;  %v24224_v4 = vld [vmem:[#allocation45_spill] sm:$0xff] }
0x232b   :  { %8391 = vrot.lane.b32.xlu1 %v22387_v34, %s20179_s26 }
0x2391   :  { %v7598_v63 = vpop.permute.xlu1 %7597 }
0x2392   :  { %v7600_v2 = vmul.f32 %v19948_v12, %v7598_v63  ;;  %v24225_v63 = vld [vmem:[#allocation46_spill] sm:$0xff] }
0x2394   :  { %v22584_v26 = vsel %vm22553_vm9, %v7600_v2, %v22244_v36  ;;  %v24226_v2 = vld [vmem:[#allocation39_spill] sm:$0xff]  ;;  %v24235_v36 = vld [vmem:[#allocation36_spill] sm:$0xff] }
0x2395   :  { %24222 = vst [vmem:[#allocation37_spill] sm:$0xff] %v22584_v26  ;;  %v7716_v40 = vpop.permute.xlu1 %7715  ;;  %v7719_v55 = vmul.f32 %v22393_v48, %v22584_v26 }
0x2396   :  { %7718 = vst.msk [vmem:[#allocation2] sm:$0x3] %vm85_vm1, %v7716_v40  ;;  %v24227_v40 = vld [vmem:[#allocation40_spill] sm:$0xff] }
0x2397   :  { %7721 = vrot.lane.b32.xlu0 %v7719_v55, %s20179_s26  ;;  %v24228_v55 = vld [vmem:[#allocation41_spill] sm:$0xff] }
0x2399   :  { %v7732_v32 = vpop.permute.xlu1 %7731 }
0x2409   :  { %v7722_v18 = vpop.permute.xlu0 %7721 }
0x240a   :  { %7724 = vst.msk [vmem:[#allocation2] sm:$0x3] %vm149_vm4, %v7722_v18  ;;  %v24229_v18 = vld [vmem:[#allocation42_spill] sm:$0xff] }
0x240b   :  { %7734 = vst.msk [vmem:[#allocation2] sm:$0x3] %vm161_vm5, %v7732_v32  ;;  %v24230_v32 = vld [vmem:[#allocation31_spill] sm:$0xff] }
0x2412   :  { %v22592_v34 = vld [vmem:[#allocation2] sm:$0x3] }
0x2413   :  { %v22595_v12 = vand.u32 4294901760, %v22592_v34 }
0x2415   :  { %v7818_v46 = vsub.f32 %v22592_v34, %v22595_v12 }
0x2417   :  { %v7819_v45 = vand.u32 4294901760, %v7818_v46 }
0x2419   :  { %v7820_v8 = vsub.f32 %v7818_v46, %v7819_v45 }
0x241b   :  { %v7821_v50 = vand.u32 4294901760, %v7820_v8  ;;  %v24231_v8 = vld [vmem:[#allocation32_spill] sm:$0xff] }
0x241d   :  { %16145 = vmatmul.mubr.f32.vlgmr.msra.gmra.mrb[10].mxu0 %v7821_v50  ;;  %v24233_v50 = vld [vmem:[#allocation34_spill] sm:$0xff] }
0x241e   :  { %18838 = vmatpush3.bf16.msra.mxu0 %v20543_v0  ;;  %16179 = vmatprep.mubr.msk.f32.mxu0 %vm20177_vm3, %v24069_v49 }
0x241f   :  { %18839 = vmatprep.subr.bf16.mxu0 %v24053_v20 }
0x2422   :  { %18841 = vmatpush3.bf16.msra.mxu0 %v20553_v30 }
0x2423   :  { %18842 = vmatprep.subr.bf16.mxu0 %v24053_v20 }
0x2426   :  { %18844 = vmatpush3.bf16.msra.mxu0 %v20566_v31 }
0x2427   :  { %18845 = vmatprep.subr.bf16.mxu0 %v24053_v20 }
0x242a   :  { %18847 = vmatpush3.bf16.msra.mxu0 %v20570_v11 }
0x242b   :  { %18848 = vmatprep.subr.bf16.mxu0 %v24053_v20 }
0x242e   :  { %18850 = vmatpush3.bf16.msra.mxu0 %v20416_v3 }
0x242f   :  { %18851 = vmatprep.subr.bf16.mxu0 %v24053_v20 }
0x2432   :  { %18853 = vmatpush3.bf16.msra.mxu0 %v20440_v39 }
0x2433   :  { %18854 = vmatprep.subr.bf16.mxu0 %v24053_v20 }
0x2436   :  { %18856 = vmatpush3.bf16.msra.mxu0 %v24158_v21 }
0x2437   :  { %18857 = vmatprep.subr.bf16.mxu0 %v24053_v20 }
0x243a   :  { %18859 = vmatpush3.bf16.msra.mxu0 %v24159_v14 }
0x243b   :  { %18860 = vmatprep.subr.bf16.mxu0 %v24053_v20 }
0x243d   :  { %16180 = vmatmul.mubr.f32.vlgmr.msra.gmra.mrb[10].mxu0 %v22595_v12 }
0x243e   :  { %18862 = vmatpush3.bf16.msra.mxu0 %v24192_v23  ;;  %16214 = vmatprep.mubr.msk.f32.mxu0 %vm20177_vm3, %v24069_v49 }
0x243f   :  { %18863 = vmatprep.subr.bf16.mxu0 %v24053_v20 }
0x2442   :  { %18865 = vmatpush3.bf16.msra.mxu0 %v24223_v27 }
0x2443   :  { %18866 = vmatprep.subr.bf16.mxu0 %v24053_v20 }
0x2446   :  { %18868 = vmatpush3.bf16.msra.mxu0 %v24224_v4 }
0x2447   :  { %18869 = vmatprep.subr.bf16.mxu0 %v24053_v20 }
0x244a   :  { %18871 = vmatpush3.bf16.msra.mxu0 %v24225_v63  ;;  %v24242_v63 = vld [vmem:[#allocation53_spill] sm:$0xff] }
0x244b   :  { %18872 = vmatprep.subr.bf16.mxu0 %v24053_v20 }
0x244e   :  { %18874 = vmatpush3.bf16.msra.mxu0 %v24226_v2  ;;  %v24239_v2 = vld [vmem:[#allocation50_spill] sm:$0xff] }
0x244f   :  { %18875 = vmatprep.subr.bf16.mxu0 %v24053_v20 }
0x2452   :  { %18877 = vmatpush3.bf16.msra.mxu0 %v24227_v40  ;;  %v24238_v40 = vld [vmem:[#allocation49_spill] sm:$0xff] }
0x2453   :  { %18878 = vmatprep.subr.bf16.mxu0 %v24053_v20 }
0x2456   :  { %18880 = vmatpush3.bf16.msra.mxu0 %v24228_v55  ;;  %v24237_v55 = vld [vmem:[#allocation48_spill] sm:$0xff] }
0x2457   :  { %18881 = vmatprep.subr.bf16.mxu0 %v24053_v20 }
0x245a   :  { %18883 = vmatpush3.bf16.msra.mxu0 %v24229_v18  ;;  %v24236_v18 = vld [vmem:[#allocation47_spill] sm:$0xff] }
0x245b   :  { %18884 = vmatprep.subr.bf16.mxu0 %v24053_v20 }
0x245d   :  { %16215 = vmatmul.mubr.f32.vlgmr.msra.gmra.mrb[10].mxu0 %v7818_v46  ;;  %v24232_v46 = vld [vmem:[#allocation33_spill] sm:$0xff] }
0x245e   :  { %18886 = vmatpush3.bf16.msra.mxu0 %v24135_v10  ;;  %16249 = vmatprep.mubr.msk.f32.mxu0 %vm20177_vm3, %v24069_v49 }
0x245f   :  { %18887 = vmatprep.subr.bf16.mxu0 %v24053_v20 }
0x2462   :  { %18889 = vmatpush3.bf16.msra.mxu0 %v24136_v33 }
0x2463   :  { %18890 = vmatprep.subr.bf16.mxu0 %v24053_v20 }
0x2466   :  { %18892 = vmatpush3.bf16.msra.mxu0 %v24230_v32 }
0x2467   :  { %18893 = vmatprep.subr.bf16.mxu0 %v24053_v20 }
0x246a   :  { %18895 = vmatpush3.bf16.msra.mxu0 %v24231_v8 }
0x246b   :  { %18896 = vmatprep.subr.bf16.mxu0 %v24053_v20 }
0x246e   :  { %18898 = vmatpush3.bf16.msra.mxu0 %v24232_v46 }
0x246f   :  { %18899 = vmatprep.subr.bf16.mxu0 %v24053_v20 }
0x2472   :  { %18901 = vmatpush3.bf16.msra.mxu0 %v24233_v50 }
0x2473   :  { %18902 = vmatprep.subr.bf16.mxu0 %v24053_v20 }
0x2476   :  { %18904 = vmatpush3.bf16.msra.mxu0 %v24234_v52 }
0x2477   :  { %18905 = vmatprep.subr.bf16.mxu0 %v24053_v20 }
0x247a   :  { %18907 = vmatpush3.bf16.msra.mxu0 %v24235_v36 }
0x247b   :  { %18908 = vmatprep.subr.bf16.mxu0 %v24053_v20 }
0x247d   :  { %16250 = vmatmul.mubr.f32.vlgmr.msra.gmra.mrb[10].mxu0 %v7819_v45  ;;  %v24240_v45 = vld [vmem:[#allocation51_spill] sm:$0xff] }
0x247e   :  { %18910 = vmatpush3.bf16.msra.mxu0 %v24236_v18  ;;  %16284 = vmatprep.mubr.msk.f32.mxu0 %vm20177_vm3, %v24069_v49  ;;  %v24241_v18 = vld [vmem:[#allocation52_spill] sm:$0xff] }
0x247f   :  { %18911 = vmatprep.subr.bf16.mxu0 %v24053_v20 }
0x2482   :  { %18913 = vmatpush3.bf16.msra.mxu0 %v24237_v55  ;;  %v24243_v55 = vld [vmem:[#allocation54_spill] sm:$0xff] }
0x2483   :  { %18914 = vmatprep.subr.bf16.mxu0 %v24053_v20 }
0x2486   :  { %18916 = vmatpush3.bf16.msra.mxu0 %v24238_v40 }
0x2487   :  { %18917 = vmatprep.subr.bf16.mxu0 %v24053_v20 }
0x248a   :  { %18919 = vmatpush3.bf16.msra.mxu0 %v24239_v2 }
0x248b   :  { %18920 = vmatprep.subr.bf16.mxu0 %v24053_v20 }
0x248e   :  { %18922 = vmatpush3.bf16.msra.mxu0 %v24240_v45 }
0x248f   :  { %18923 = vmatprep.subr.bf16.mxu0 %v24053_v20 }
0x2492   :  { %18925 = vmatpush3.bf16.msra.mxu0 %v24241_v18 }
0x2493   :  { %18926 = vmatprep.subr.bf16.mxu0 %v24053_v20 }
0x2496   :  { %18928 = vmatpush3.bf16.msra.mxu0 %v24242_v63 }
0x2497   :  { %18929 = vmatprep.subr.bf16.mxu0 %v24053_v20 }
0x249a   :  { %18931 = vmatpush3.bf16.msra.mxu0 %v24243_v55 }
0x249b   :  { %18932 = vmatprep.subr.bf16.mxu0 %v24053_v20 }
0x249d   :  { %16285 = vmatmul.mubr.f32.vlgmr.msra.gmra.mrb[10].mxu0 %v22595_v12 }
0x249e   :  { %18934 = vmatpush3.bf16.msra.mxu0 %v24135_v10  ;;  %16319 = vmatprep.mubr.msk.f32.mxu0 %vm20177_vm3, %v24069_v49 }
0x249f   :  { %18935 = vmatprep.subr.bf16.mxu0 %v24053_v20 }
0x24a2   :  { %18937 = vmatpush3.bf16.msra.mxu0 %v24136_v33 }
0x24a3   :  { %18938 = vmatprep.subr.bf16.mxu0 %v24053_v20 }
0x24a6   :  { %18940 = vmatpush3.bf16.msra.mxu0 %v24230_v32 }
0x24a7   :  { %18941 = vmatprep.subr.bf16.mxu0 %v24053_v20 }
0x24aa   :  { %18943 = vmatpush3.bf16.msra.mxu0 %v24231_v8 }
0x24ab   :  { %18944 = vmatprep.subr.bf16.mxu0 %v24053_v20 }
0x24ae   :  { %18946 = vmatpush3.bf16.msra.mxu0 %v24232_v46 }
0x24af   :  { %18947 = vmatprep.subr.bf16.mxu0 %v24053_v20 }
0x24b2   :  { %18949 = vmatpush3.bf16.msra.mxu0 %v24233_v50 }
0x24b3   :  { %18950 = vmatprep.subr.bf16.mxu0 %v24053_v20 }
0x24b6   :  { %18952 = vmatpush3.bf16.msra.mxu0 %v24234_v52 }
0x24b7   :  { %18953 = vmatprep.subr.bf16.mxu0 %v24053_v20 }
0x24ba   :  { %18955 = vmatpush3.bf16.msra.mxu0 %v24235_v36 }
0x24bb   :  { %19100 = vmatprep.subr.bf16.mxu0 %v24053_v20 }
0x24bd   :  { %16320 = vmatmul.mubr.f32.vlgmr.msra.gmra.mrb[10].mxu0 %v22595_v12 }
0x24be   :  { %19102 = vmatpush3.bf16.msra.mxu0 %v24135_v10  ;;  %16564 = vmatprep.mubr.msk.f32.mxu0 %vm20177_vm3, %v24069_v49 }
0x24bf   :  { %19103 = vmatprep.subr.bf16.mxu0 %v24053_v20 }
0x24c2   :  { %19105 = vmatpush3.bf16.msra.mxu0 %v24136_v33 }
0x24c3   :  { %19106 = vmatprep.subr.bf16.mxu0 %v24053_v20 }
0x24c6   :  { %19108 = vmatpush3.bf16.msra.mxu0 %v24230_v32 }
0x24c7   :  { %19109 = vmatprep.subr.bf16.mxu0 %v24053_v20 }
0x24ca   :  { %19111 = vmatpush3.bf16.msra.mxu0 %v24231_v8 }
0x24cb   :  { %19112 = vmatprep.subr.bf16.mxu0 %v24053_v20 }
0x24ce   :  { %19114 = vmatpush3.bf16.msra.mxu0 %v24232_v46  ;;  %v8389_v46 = vsub.f32 1.0, %v22393_v48 }
0x24cf   :  { %19115 = vmatprep.subr.bf16.mxu0 %v24053_v20 }
0x24d2   :  { %19117 = vmatpush3.bf16.msra.mxu0 %v24233_v50  ;;  %v8392_v50 = vpop.permute.xlu1 %8391 }
0x24d3   :  { %19118 = vmatprep.subr.bf16.mxu0 %v24053_v20 }
0x24d6   :  { %19120 = vmatpush3.bf16.msra.mxu0 %v24234_v52 }
0x24d7   :  { %19121 = vmatprep.subr.bf16.mxu0 %v24053_v20 }
0x24da   :  { %19123 = vmatpush3.bf16.msra.mxu0 %v24235_v36 }
0x24db   :  { %19124 = vmatprep.subr.bf16.mxu0 %v24053_v20 }
0x2590   :  { %v8373_v12 = vpop.f32.mrb[10].mxu0 }
0x2591   :  { %v19686_v55 = vadd.f32 %v22373_v51, %v8373_v12  ;;  %v16321_v63 = vpop.f32.mrb[11].mxu0  ;;  %v8407_v51 = vmul.f32 %v22382_v44, %v22592_v34 }
0x2593   :  { %v12368_v18 = vmul.f32 -1.442695, %v19686_v55  ;;  %19951 = vtanh.f32 %v19686_v55  ;;  %v8408_v63 = vsel %vm849_vm6, %v8407_v51, 0.0 }
0x2595   :  { %19953 = vpow2.f32 %v12368_v18 }
0x259d   :  { %v19952_v45 = vpop.eup %19951 }
0x259e   :  { %8385 = vrot.lane.b32.xlu1 %v19952_v45, %s20175_s25 }
0x259f   :  { %v19954_v2 = vpop.eup %19953 }
0x25a0   :  { %v8380_v40 = vadd.f32 1.0, %v19954_v2 }
0x25a2   :  { %19955 = vrcp.f32 %v8380_v40 }
0x25ac   :  { %v19956_v52 = vpop.eup %19955 }
0x25ad   :  { %v8394_v36 = vmul.f32 %v19956_v52, %v8392_v50 }
0x25af   :  { %v8395_v8 = vmul.f32 %v8394_v36, %v8389_v46 }
0x25b1   :  { %8397 = vrot.lane.b32.xlu1 %v8395_v8, %s20178_s27 }
0x25d5   :  { %8409 = vadd.xlane.f32.xlu1 %v8408_v63 }
0x2610   :  { %v8386_v55 = vpop.permute.xlu1 %8385 }
0x2611   :  { %v8388_v18 = vmul.f32 %v19956_v52, %v8386_v55 }
0x2623   :  { %v8398_v45 = vpop.permute.xlu1 %8397 }
0x2624   :  { %v22717_v12 = vadd.f32 %v8398_v45, %v8388_v18 }
0x2626   :  { %19957 = vtanh.f32 %v22717_v12 }
0x2630   :  { %v19958_v2 = vpop.eup %19957 }
0x2631   :  { %8403 = vrot.lane.b32.xlu0 %v19958_v2, %s20178_s27 }
0x2662   :  { %v8410_v48 = vpop.xlane.xlu1 %8409 }
0x2663   :  { %v8411_v36 = vadd.f32 %v8410_v48, %v24151_v42 }
0x2665   :  { %vm8412_vm10 = vcmp.gt.f32.partialorder %v8411_v36, 0.0  ;;  %v24246_v36 = vld [vmem:[#allocation65_spill] sm:$0xff] }
0x2666   :  { %v22723_v40 = vsel %vm8412_vm10, 1.0, %v24069_v49 }
0x2667   :  { %v9201_v44 = vrot.slane %v22723_v40, %v24120_v56  ;;  %v9205_v34 = vrot.slane %v22723_v40, %v24121_v28  ;;  %v8415_v8 = vmul.f32 %v22723_v40, %v22584_v26  ;;  %vm9076_vm11 = vcmp.gt.f32.partialorder %v22723_v40, 0.5 }
0x2669   :  { %9208 = vst.msk [vmem:[%s23852_s10 + $0x5] sm:$0x1] %vm1667_vm8, %v9201_v44  ;;  %9209 = vst.msk [vmem:[%s23852_s10 + $0xd] sm:$0x1] %vm1667_vm8, %v9205_v34  ;;  %8417 = vrot.lane.b32.xlu0 %v8415_v8, %s20175_s25  ;;  %v24247_v44 = vld [vmem:[#allocation66_spill] sm:$0xff]  ;;  %v24248_v34 = vld [vmem:[#allocation67_spill] sm:$0xff] }
0x266a   :  { %v24249_v8 = vld [vmem:[#allocation68_spill] sm:$0xff] }
0x26a3   :  { %v8404_v46 = vpop.permute.xlu0 %8403 }
0x26a4   :  { %v22740_v50 = vmul.f32 %v19956_v52, %v8404_v46  ;;  %v24250_v46 = vld [vmem:[#allocation69_spill] sm:$0xff] }
0x26a6   :  { %24244 = vst [vmem:[#allocation44_spill] sm:$0xff] %v22740_v50  ;;  %8422 = vrot.lane.b32.xlu0 %v22740_v50, %s20179_s26 }
0x26db   :  { %v8418_v51 = vpop.permute.xlu0 %8417 }
0x26dc   :  { %8420 = vst.msk [vmem:[#allocation3] sm:$0x3] %vm85_vm1, %v8418_v51  ;;  %v24251_v51 = vld [vmem:[#allocation70_spill] sm:$0xff] }
0x2718   :  { %v8423_v63 = vpop.permute.xlu0 %8422 }
0x2719   :  { %8425 = vst.msk [vmem:[#allocation3] sm:$0x3] %vm149_vm4, %v8423_v63 }
0x2720   :  { %v22746_v55 = vld [vmem:[#allocation3] sm:$0x3] }
0x2721   :  { %24245 = vst [vmem:[#allocation45_spill] sm:$0xff] %v22746_v55  ;;  %v22749_v18 = vand.u32 4294901760, %v22746_v55 }
0x2723   :  { %v8509_v45 = vsub.f32 %v22746_v55, %v22749_v18 }
0x2725   :  { %v8510_v2 = vand.u32 4294901760, %v8509_v45 }
0x2727   :  { %v8511_v52 = vsub.f32 %v8509_v45, %v8510_v2 }
0x2729   :  { %v8512_v48 = vand.u32 4294901760, %v8511_v52 }
0x272b   :  { %16355 = vmatmul.mubr.f32.vlgmr.msra.gmra.mrb[10].mxu1 %v8512_v48 }
0x272c   :  { %18982 = vmatpush3.bf16.msra.mxu1 %v21018_v57  ;;  %16389 = vmatprep.mubr.msk.f32.mxu1 %vm20177_vm3, %v24069_v49 }
0x272d   :  { %18983 = vmatprep.subr.bf16.mxu1 %v24053_v20 }
0x2730   :  { %18985 = vmatpush3.bf16.msra.mxu1 %v21028_v22 }
0x2731   :  { %18986 = vmatprep.subr.bf16.mxu1 %v24053_v20 }
0x2734   :  { %18988 = vmatpush3.bf16.msra.mxu1 %v21041_v15 }
0x2735   :  { %18989 = vmatprep.subr.bf16.mxu1 %v24053_v20 }
0x2738   :  { %18991 = vmatpush3.bf16.msra.mxu1 %v21045_v47 }
0x2739   :  { %18992 = vmatprep.subr.bf16.mxu1 %v24053_v20 }
0x273c   :  { %18994 = vmatpush3.bf16.msra.mxu1 %v20902_v43 }
0x273d   :  { %18995 = vmatprep.subr.bf16.mxu1 %v24053_v20 }
0x2740   :  { %18997 = vmatpush3.bf16.msra.mxu1 %v20906_v19 }
0x2741   :  { %18998 = vmatprep.subr.bf16.mxu1 %v24053_v20 }
0x2744   :  { %19000 = vmatpush3.bf16.msra.mxu1 %v20920_v38 }
0x2745   :  { %19001 = vmatprep.subr.bf16.mxu1 %v24053_v20 }
0x2748   :  { %19003 = vmatpush3.bf16.msra.mxu1 %v20928_v35 }
0x2749   :  { %19004 = vmatprep.subr.bf16.mxu1 %v24053_v20 }
0x274b   :  { %16390 = vmatmul.mubr.f32.vlgmr.msra.gmra.mrb[10].mxu1 %v22749_v18 }
0x274c   :  { %19006 = vmatpush3.bf16.msra.mxu1 %v21059_v58  ;;  %16424 = vmatprep.mubr.msk.f32.mxu1 %vm20177_vm3, %v24069_v49 }
0x274d   :  { %19007 = vmatprep.subr.bf16.mxu1 %v24053_v20 }
0x2750   :  { %19009 = vmatpush3.bf16.msra.mxu1 %v21066_v60 }
0x2751   :  { %19010 = vmatprep.subr.bf16.mxu1 %v24053_v20 }
0x2754   :  { %19012 = vmatpush3.bf16.msra.mxu1 %v21074_v41 }
0x2755   :  { %19013 = vmatprep.subr.bf16.mxu1 %v24053_v20 }
0x2758   :  { %19015 = vmatpush3.bf16.msra.mxu1 %v21080_v61 }
0x2759   :  { %19016 = vmatprep.subr.bf16.mxu1 %v24053_v20 }
0x275c   :  { %19018 = vmatpush3.bf16.msra.mxu1 %v20932_v59 }
0x275d   :  { %19019 = vmatprep.subr.bf16.mxu1 %v24053_v20 }
0x2760   :  { %19021 = vmatpush3.bf16.msra.mxu1 %v20936_v53 }
0x2761   :  { %19022 = vmatprep.subr.bf16.mxu1 %v24053_v20 }
0x2764   :  { %19024 = vmatpush3.bf16.msra.mxu1 %v20940_v37 }
0x2765   :  { %19025 = vmatprep.subr.bf16.mxu1 %v24053_v20 }
0x2768   :  { %19027 = vmatpush3.bf16.msra.mxu1 %v20944_v24 }
0x2769   :  { %19028 = vmatprep.subr.bf16.mxu1 %v24053_v20 }
0x276b   :  { %16425 = vmatmul.mubr.f32.vlgmr.msra.gmra.mrb[10].mxu1 %v8509_v45 }
0x276c   :  { %19030 = vmatpush3.bf16.msra.mxu1 %v20787_v5  ;;  %16459 = vmatprep.mubr.msk.f32.mxu1 %vm20177_vm3, %v24069_v49 }
0x276d   :  { %19031 = vmatprep.subr.bf16.mxu1 %v24053_v20 }
0x2770   :  { %19033 = vmatpush3.bf16.msra.mxu1 %v20794_v6 }
0x2771   :  { %19034 = vmatprep.subr.bf16.mxu1 %v24053_v20 }
0x2774   :  { %19036 = vmatpush3.bf16.msra.mxu1 %v20809_v9 }
0x2775   :  { %19037 = vmatprep.subr.bf16.mxu1 %v24053_v20 }
0x2778   :  { %19039 = vmatpush3.bf16.msra.mxu1 %v20819_v17 }
0x2779   :  { %19040 = vmatprep.subr.bf16.mxu1 %v24053_v20 }
0x277c   :  { %19042 = vmatpush3.bf16.msra.mxu1 %v20853_v25 }
0x277d   :  { %19043 = vmatprep.subr.bf16.mxu1 %v24053_v20 }
0x2780   :  { %19045 = vmatpush3.bf16.msra.mxu1 %v20857_v62 }
0x2781   :  { %19046 = vmatprep.subr.bf16.mxu1 %v24053_v20 }
0x2784   :  { %19048 = vmatpush3.bf16.msra.mxu1 %v20861_v54 }
0x2785   :  { %19049 = vmatprep.subr.bf16.mxu1 %v24053_v20 }
0x2788   :  { %19051 = vmatpush3.bf16.msra.mxu1 %v20864_v29 }
0x2789   :  { %19052 = vmatprep.subr.bf16.mxu1 %v24053_v20 }
0x278b   :  { %16460 = vmatmul.mubr.f32.vlgmr.msra.gmra.mrb[10].mxu1 %v8510_v2 }
0x278c   :  { %19054 = vmatpush3.bf16.msra.mxu1 %v21115_v1  ;;  %16494 = vmatprep.mubr.msk.f32.mxu1 %vm20177_vm3, %v24069_v49 }
0x278d   :  { %19055 = vmatprep.subr.bf16.mxu1 %v24053_v20 }
0x2790   :  { %19057 = vmatpush3.bf16.msra.mxu1 %v21125_v7 }
0x2791   :  { %19058 = vmatprep.subr.bf16.mxu1 %v24053_v20 }
0x2794   :  { %19060 = vmatpush3.bf16.msra.mxu1 %v24246_v36 }
0x2795   :  { %19061 = vmatprep.subr.bf16.mxu1 %v24053_v20 }
0x2798   :  { %19063 = vmatpush3.bf16.msra.mxu1 %v24247_v44 }
0x2799   :  { %19064 = vmatprep.subr.bf16.mxu1 %v24053_v20 }
0x279c   :  { %19066 = vmatpush3.bf16.msra.mxu1 %v24248_v34 }
0x279d   :  { %19067 = vmatprep.subr.bf16.mxu1 %v24053_v20 }
0x27a0   :  { %19069 = vmatpush3.bf16.msra.mxu1 %v24249_v8 }
0x27a1   :  { %19070 = vmatprep.subr.bf16.mxu1 %v24053_v20 }
0x27a4   :  { %19072 = vmatpush3.bf16.msra.mxu1 %v24250_v46 }
0x27a5   :  { %19073 = vmatprep.subr.bf16.mxu1 %v24053_v20 }
0x27a8   :  { %19075 = vmatpush3.bf16.msra.mxu1 %v24251_v51 }
0x27a9   :  { %19076 = vmatprep.subr.bf16.mxu1 %v24053_v20 }
0x27ab   :  { %16495 = vmatmul.mubr.f32.vlgmr.msra.gmra.mrb[10].mxu1 %v22749_v18 }
0x27ac   :  { %19078 = vmatpush3.bf16.msra.mxu1 %v20787_v5  ;;  %16529 = vmatprep.mubr.msk.f32.mxu1 %vm20177_vm3, %v24069_v49 }
0x27ad   :  { %19079 = vmatprep.subr.bf16.mxu1 %v24053_v20 }
0x27b0   :  { %19081 = vmatpush3.bf16.msra.mxu1 %v20794_v6 }
0x27b1   :  { %19082 = vmatprep.subr.bf16.mxu1 %v24053_v20 }
0x27b4   :  { %19084 = vmatpush3.bf16.msra.mxu1 %v20809_v9 }
0x27b5   :  { %19085 = vmatprep.subr.bf16.mxu1 %v24053_v20 }
0x27b8   :  { %19087 = vmatpush3.bf16.msra.mxu1 %v20819_v17 }
0x27b9   :  { %19088 = vmatprep.subr.bf16.mxu1 %v24053_v20 }
0x27bc   :  { %19090 = vmatpush3.bf16.msra.mxu1 %v20853_v25 }
0x27bd   :  { %19091 = vmatprep.subr.bf16.mxu1 %v24053_v20 }
0x27c0   :  { %19093 = vmatpush3.bf16.msra.mxu1 %v20857_v62 }
0x27c1   :  { %19094 = vmatprep.subr.bf16.mxu1 %v24053_v20 }
0x27c4   :  { %19096 = vmatpush3.bf16.msra.mxu1 %v20861_v54 }
0x27c5   :  { %19097 = vmatprep.subr.bf16.mxu1 %v24053_v20 }
0x27c8   :  { %19099 = vmatpush3.bf16.msra.mxu1 %v20864_v29 }
0x27c9   :  { %19244 = vmatprep.subr.bf16.mxu1 %v24053_v20 }
0x27cb   :  { %16530 = vmatmul.mubr.f32.vlgmr.msra.gmra.mrb[10].mxu1 %v22749_v18  ;;  %v24252_v18 = vld [vmem:[#allocation43_spill] sm:$0xff] }
0x27cc   :  { %19246 = vmatpush3.bf16.msra.mxu1 %v20787_v5  ;;  %16774 = vmatprep.mubr.msk.f32.mxu1 %vm20177_vm3, %v24069_v49 }
0x27cd   :  { %19247 = vmatprep.subr.bf16.mxu1 %v24053_v20 }
0x27d0   :  { %19249 = vmatpush3.bf16.msra.mxu1 %v20794_v6 }
0x27d1   :  { %19250 = vmatprep.subr.bf16.mxu1 %v24053_v20 }
0x27d4   :  { %19252 = vmatpush3.bf16.msra.mxu1 %v20809_v9 }
0x27d5   :  { %19253 = vmatprep.subr.bf16.mxu1 %v24053_v20 }
0x27d8   :  { %19255 = vmatpush3.bf16.msra.mxu1 %v20819_v17 }
0x27d9   :  { %19256 = vmatprep.subr.bf16.mxu1 %v24053_v20 }
0x27dc   :  { %19258 = vmatpush3.bf16.msra.mxu1 %v20853_v25 }
0x27dd   :  { %19259 = vmatprep.subr.bf16.mxu1 %v24053_v20 }
0x27e0   :  { %19261 = vmatpush3.bf16.msra.mxu1 %v20857_v62 }
0x27e1   :  { %19262 = vmatprep.subr.bf16.mxu1 %v24053_v20 }
0x27e4   :  { %19264 = vmatpush3.bf16.msra.mxu1 %v20861_v54 }
0x27e5   :  { %19265 = vmatprep.subr.bf16.mxu1 %v24053_v20 }
0x27e8   :  { %19267 = vmatpush3.bf16.msra.mxu1 %v20864_v29 }
0x27e9   :  { %19268 = vmatprep.subr.bf16.mxu1 %v24053_v20 }
0x289e   :  { %v9064_v63 = vpop.f32.mrb[10].mxu1 }
0x289f   :  { %v19687_v45 = vadd.f32 %v24252_v18, %v9064_v63  ;;  %v16531_v2 = vpop.f32.mrb[11].mxu1  ;;  %v22872_v63 = vld [vmem:[%s23847_s5] ss:$0 sm:$0xff] }
0x28a0   :  { %v24253_v18 = vld [vmem:[#allocation62_spill] sm:$0xff] }
0x28a1   :  { %19959 = vtanh.f32 %v19687_v45  ;;  %v12370_v48 = vmul.f32 -1.442695, %v19687_v45  ;;  %v7604_v2 = vmul.f32 %v22872_v63, %v24253_v18 }
0x28a3   :  { %19961 = vpow2.f32 %v12370_v48 }
0x28ab   :  { %v19960_v52 = vpop.eup %19959 }
0x28ac   :  { %9078 = vrot.lane.b32.xlu0 %v19960_v52, %s20175_s25 }
0x28ad   :  { %v19962_v55 = vpop.eup %19961 }
0x28ae   :  { %v9071_v51 = vadd.f32 1.0, %v19962_v55 }
0x28b0   :  { %9083 = vrot.lane.b32.xlu0 %v22565_v13, %s20179_s26  ;;  %19963 = vrcp.f32 %v9071_v51  ;;  %v7605_v13 = vsel %vm849_vm6, %v7604_v2, 0.0 }
0x28ba   :  { %v19964_v46 = vpop.eup %19963 }
0x291e   :  { %v9079_v8 = vpop.permute.xlu0 %9078 }
0x291f   :  { %v9081_v34 = vmul.f32 %v19964_v46, %v9079_v8 }
0x2921   :  { %9088 = vrot.lane.b32.xlu0 %v9081_v34, %s20179_s26 }
0x2922   :  { %v9084_v45 = vpop.permute.xlu0 %9083 }
0x2923   :  { %v9086_v52 = vmul.f32 %v19964_v46, %v9084_v45 }
0x2940   :  { %7606 = vadd.xlane.f32.xlu0 %v7605_v13 }
0x2993   :  { %v9089_v55 = vpop.permute.xlu0 %9088 }
0x2994   :  { %v9091_v51 = vadd.f32 %v9089_v55, %v9086_v52 }
0x2996   :  { %v9094_v8 = vsel %vm9076_vm11, %v9091_v51, %v9084_v45  ;;  %v9233_v51 = vld [vmem:[%s23842_s0 + $0x6] sm:$0x1] }
0x2997   :  { %9098 = vrot.lane.b32.xlu1 %v9094_v8, %s20178_s27 }
0x29cd   :  { %v7607_v48 = vpop.xlane.xlu0 %7606 }
0x29ce   :  { %v7608_v44 = vadd.f32 %v7607_v48, %v21537_v16 }
0x29d0   :  { %vm7609_vm12 = vcmp.gt.f32.partialorder %v7608_v44, 0.0 }
0x29d1   :  { %v12367_v36 = vsel %vm7609_vm12, 1.0, %v24069_v49 }
0x29d2   :  { %v7706_v18 = vrot.slane %v12367_v36, %v24120_v56  ;;  %v7710_v2 = vrot.slane %v12367_v36, %v24121_v28  ;;  %vm9075_vm13 = vcmp.gt.f32.partialorder %v12367_v36, 0.5  ;;  %v9234_v36 = vld [vmem:[%s23842_s0 + $0xe] sm:$0x1] }
0x29d3   :  { %vm22883_vm14 = vmor %vm9075_vm13, %vm9076_vm11  ;;  %v9237_v55 = vrot.slane %v9234_v36, 7 }
0x29d4   :  { %7713 = vst.msk [vmem:[%s23853_s11 + $0x4] sm:$0x1] %vm1667_vm8, %v7706_v18  ;;  %7714 = vst.msk [vmem:[%s23853_s11 + $0xc] sm:$0x1] %vm1667_vm8, %v7710_v2 }
0x2a09   :  { %v9099_v44 = vpop.permute.xlu1 %9098 }
0x2a0a   :  { %v22895_v45 = vsel %vm9075_vm13, %v9081_v34, %v9099_v44  ;;  %v9238_v34 = vsel %vm156_vm2, %v9237_v55, %v9233_v51 }
0x2a0b   :  { %19965 = vtanh.f32 %v22895_v45 }
0x2a15   :  { %v19966_v52 = vpop.eup %19965 }
0x2a16   :  { %9105 = vrot.lane.b32.xlu1 %v19966_v52, %s20178_s27 }
0x2a1a   :  { %9223 = vrot.lane.b32.xlu1 %v22740_v50, %s20175_s25  ;;  %v24265_v50 = vld [vmem:[#allocation36_spill] sm:$0xff] }
0x2a1e   :  { %9239 = vrot.lane.b32.xlu1 %v9238_v34, %s20175_s25 }
0x2a22   :  { %9899 = vrot.lane.b32.xlu1 %v22717_v12, %s20179_s26 }
0x2a88   :  { %v9106_v8 = vpop.permute.xlu1 %9105 }
0x2a89   :  { %v9108_v48 = vmul.f32 %v19964_v46, %v9106_v8  ;;  %v24256_v8 = vld [vmem:[#allocation46_spill] sm:$0xff] }
0x2a8b   :  { %v22914_v18 = vsel %vm22883_vm14, %v9108_v48, %v22584_v26  ;;  %v24257_v48 = vld [vmem:[#allocation39_spill] sm:$0xff] }
0x2a8c   :  { %v9224_v2 = vpop.permute.xlu1 %9223  ;;  %v9227_v44 = vmul.f32 %v22723_v40, %v22914_v18  ;;  %v24266_v26 = vld [vmem:[#allocation47_spill] sm:$0xff] }
0x2a8d   :  { %9226 = vst.msk [vmem:[#allocation2] sm:$0x3] %vm85_vm1, %v9224_v2  ;;  %v24258_v2 = vld [vmem:[#allocation40_spill] sm:$0xff] }
0x2a8e   :  { %9229 = vrot.lane.b32.xlu0 %v9227_v44, %s20179_s26  ;;  %v24259_v44 = vld [vmem:[#allocation41_spill] sm:$0xff] }
0x2a90   :  { %v9240_v52 = vpop.permute.xlu1 %9239 }
0x2b00   :  { %v9230_v36 = vpop.permute.xlu0 %9229 }
0x2b01   :  { %9232 = vst.msk [vmem:[#allocation2] sm:$0x3] %vm149_vm4, %v9230_v36  ;;  %v24260_v36 = vld [vmem:[#allocation42_spill] sm:$0xff] }
0x2b02   :  { %9242 = vst.msk [vmem:[#allocation2] sm:$0x3] %vm161_vm5, %v9240_v52  ;;  %v24261_v52 = vld [vmem:[#allocation32_spill] sm:$0xff] }
0x2b09   :  { %v22922_v12 = vld [vmem:[#allocation2] sm:$0x3] }
0x2b0a   :  { %v22925_v46 = vand.u32 4294901760, %v22922_v12 }
0x2b0c   :  { %v9326_v13 = vsub.f32 %v22922_v12, %v22925_v46 }
0x2b0e   :  { %v9327_v55 = vand.u32 4294901760, %v9326_v13 }
0x2b10   :  { %v9328_v51 = vsub.f32 %v9326_v13, %v9327_v55 }
0x2b12   :  { %v9329_v34 = vand.u32 4294901760, %v9328_v51  ;;  %v24263_v51 = vld [vmem:[#allocation34_spill] sm:$0xff] }
0x2b14   :  { %16565 = vmatmul.mubr.f32.vlgmr.msra.gmra.mrb[12].mxu0 %v9329_v34  ;;  %v24264_v34 = vld [vmem:[#allocation35_spill] sm:$0xff] }
0x2b15   :  { %19126 = vmatpush3.bf16.msra.mxu0 %v20543_v0  ;;  %16599 = vmatprep.mubr.msk.f32.mxu0 %vm20177_vm3, %v24069_v49 }
0x2b16   :  { %19127 = vmatprep.subr.bf16.mxu0 %v24053_v20 }
0x2b19   :  { %19129 = vmatpush3.bf16.msra.mxu0 %v20553_v30 }
0x2b1a   :  { %19130 = vmatprep.subr.bf16.mxu0 %v24053_v20 }
0x2b1d   :  { %19132 = vmatpush3.bf16.msra.mxu0 %v20566_v31 }
0x2b1e   :  { %19133 = vmatprep.subr.bf16.mxu0 %v24053_v20 }
0x2b21   :  { %19135 = vmatpush3.bf16.msra.mxu0 %v20570_v11 }
0x2b22   :  { %19136 = vmatprep.subr.bf16.mxu0 %v24053_v20 }
0x2b25   :  { %19138 = vmatpush3.bf16.msra.mxu0 %v20416_v3 }
0x2b26   :  { %19139 = vmatprep.subr.bf16.mxu0 %v24053_v20 }
0x2b29   :  { %19141 = vmatpush3.bf16.msra.mxu0 %v20440_v39 }
0x2b2a   :  { %19142 = vmatprep.subr.bf16.mxu0 %v24053_v20 }
0x2b2d   :  { %19144 = vmatpush3.bf16.msra.mxu0 %v24158_v21 }
0x2b2e   :  { %19145 = vmatprep.subr.bf16.mxu0 %v24053_v20 }
0x2b31   :  { %19147 = vmatpush3.bf16.msra.mxu0 %v24159_v14 }
0x2b32   :  { %19148 = vmatprep.subr.bf16.mxu0 %v24053_v20 }
0x2b34   :  { %16600 = vmatmul.mubr.f32.vlgmr.msra.gmra.mrb[12].mxu0 %v22925_v46 }
0x2b35   :  { %19150 = vmatpush3.bf16.msra.mxu0 %v24192_v23  ;;  %16634 = vmatprep.mubr.msk.f32.mxu0 %vm20177_vm3, %v24069_v49 }
0x2b36   :  { %19151 = vmatprep.subr.bf16.mxu0 %v24053_v20 }
0x2b39   :  { %19153 = vmatpush3.bf16.msra.mxu0 %v24223_v27 }
0x2b3a   :  { %19154 = vmatprep.subr.bf16.mxu0 %v24053_v20 }
0x2b3d   :  { %19156 = vmatpush3.bf16.msra.mxu0 %v24224_v4 }
0x2b3e   :  { %19157 = vmatprep.subr.bf16.mxu0 %v24053_v20 }
0x2b41   :  { %19159 = vmatpush3.bf16.msra.mxu0 %v24256_v8 }
0x2b42   :  { %19160 = vmatprep.subr.bf16.mxu0 %v24053_v20 }
0x2b45   :  { %19162 = vmatpush3.bf16.msra.mxu0 %v24257_v48  ;;  %v24272_v48 = vld [vmem:[#allocation53_spill] sm:$0xff] }
0x2b46   :  { %19163 = vmatprep.subr.bf16.mxu0 %v24053_v20 }
0x2b49   :  { %19165 = vmatpush3.bf16.msra.mxu0 %v24258_v2  ;;  %v24269_v2 = vld [vmem:[#allocation50_spill] sm:$0xff] }
0x2b4a   :  { %19166 = vmatprep.subr.bf16.mxu0 %v24053_v20 }
0x2b4d   :  { %19168 = vmatpush3.bf16.msra.mxu0 %v24259_v44  ;;  %v24268_v44 = vld [vmem:[#allocation49_spill] sm:$0xff] }
0x2b4e   :  { %19169 = vmatprep.subr.bf16.mxu0 %v24053_v20 }
0x2b51   :  { %19171 = vmatpush3.bf16.msra.mxu0 %v24260_v36  ;;  %v24267_v36 = vld [vmem:[#allocation48_spill] sm:$0xff] }
0x2b52   :  { %19172 = vmatprep.subr.bf16.mxu0 %v24053_v20 }
0x2b54   :  { %16635 = vmatmul.mubr.f32.vlgmr.msra.gmra.mrb[12].mxu0 %v9326_v13  ;;  %v24262_v13 = vld [vmem:[#allocation33_spill] sm:$0xff] }
0x2b55   :  { %19174 = vmatpush3.bf16.msra.mxu0 %v24135_v10  ;;  %16669 = vmatprep.mubr.msk.f32.mxu0 %vm20177_vm3, %v24069_v49 }
0x2b56   :  { %19175 = vmatprep.subr.bf16.mxu0 %v24053_v20 }
0x2b59   :  { %19177 = vmatpush3.bf16.msra.mxu0 %v24136_v33 }
0x2b5a   :  { %19178 = vmatprep.subr.bf16.mxu0 %v24053_v20 }
0x2b5d   :  { %19180 = vmatpush3.bf16.msra.mxu0 %v24230_v32 }
0x2b5e   :  { %19181 = vmatprep.subr.bf16.mxu0 %v24053_v20 }
0x2b61   :  { %19183 = vmatpush3.bf16.msra.mxu0 %v24261_v52 }
0x2b62   :  { %19184 = vmatprep.subr.bf16.mxu0 %v24053_v20 }
0x2b65   :  { %19186 = vmatpush3.bf16.msra.mxu0 %v24262_v13 }
0x2b66   :  { %19187 = vmatprep.subr.bf16.mxu0 %v24053_v20 }
0x2b69   :  { %19189 = vmatpush3.bf16.msra.mxu0 %v24263_v51 }
0x2b6a   :  { %19190 = vmatprep.subr.bf16.mxu0 %v24053_v20 }
0x2b6d   :  { %19192 = vmatpush3.bf16.msra.mxu0 %v24264_v34 }
0x2b6e   :  { %19193 = vmatprep.subr.bf16.mxu0 %v24053_v20 }
0x2b71   :  { %19195 = vmatpush3.bf16.msra.mxu0 %v24265_v50 }
0x2b72   :  { %19196 = vmatprep.subr.bf16.mxu0 %v24053_v20 }
0x2b74   :  { %16670 = vmatmul.mubr.f32.vlgmr.msra.gmra.mrb[12].mxu0 %v9327_v55  ;;  %v24270_v55 = vld [vmem:[#allocation51_spill] sm:$0xff] }
0x2b75   :  { %19198 = vmatpush3.bf16.msra.mxu0 %v24266_v26  ;;  %16704 = vmatprep.mubr.msk.f32.mxu0 %vm20177_vm3, %v24069_v49  ;;  %v24271_v26 = vld [vmem:[#allocation52_spill] sm:$0xff] }
0x2b76   :  { %19199 = vmatprep.subr.bf16.mxu0 %v24053_v20 }
0x2b79   :  { %19201 = vmatpush3.bf16.msra.mxu0 %v24267_v36  ;;  %v24273_v36 = vld [vmem:[#allocation54_spill] sm:$0xff] }
0x2b7a   :  { %19202 = vmatprep.subr.bf16.mxu0 %v24053_v20 }
0x2b7d   :  { %19204 = vmatpush3.bf16.msra.mxu0 %v24268_v44 }
0x2b7e   :  { %19205 = vmatprep.subr.bf16.mxu0 %v24053_v20 }
0x2b81   :  { %19207 = vmatpush3.bf16.msra.mxu0 %v24269_v2 }
0x2b82   :  { %19208 = vmatprep.subr.bf16.mxu0 %v24053_v20 }
0x2b85   :  { %19210 = vmatpush3.bf16.msra.mxu0 %v24270_v55 }
0x2b86   :  { %19211 = vmatprep.subr.bf16.mxu0 %v24053_v20 }
0x2b89   :  { %19213 = vmatpush3.bf16.msra.mxu0 %v24271_v26 }
0x2b8a   :  { %19214 = vmatprep.subr.bf16.mxu0 %v24053_v20 }
0x2b8d   :  { %19216 = vmatpush3.bf16.msra.mxu0 %v24272_v48 }
0x2b8e   :  { %19217 = vmatprep.subr.bf16.mxu0 %v24053_v20 }
0x2b91   :  { %19219 = vmatpush3.bf16.msra.mxu0 %v24273_v36  ;;  %v23043_v36 = vld [vmem:[%s23845_s3] ss:$0 sm:$0xff] }
0x2b92   :  { %19220 = vmatprep.subr.bf16.mxu0 %v24053_v20 }
0x2b94   :  { %16705 = vmatmul.mubr.f32.vlgmr.msra.gmra.mrb[12].mxu0 %v22925_v46 }
0x2b95   :  { %19222 = vmatpush3.bf16.msra.mxu0 %v24135_v10  ;;  %16739 = vmatprep.mubr.msk.f32.mxu0 %vm20177_vm3, %v24069_v49 }
0x2b96   :  { %19223 = vmatprep.subr.bf16.mxu0 %v24053_v20 }
0x2b99   :  { %19225 = vmatpush3.bf16.msra.mxu0 %v24136_v33 }
0x2b9a   :  { %19226 = vmatprep.subr.bf16.mxu0 %v24053_v20 }
0x2b9d   :  { %19228 = vmatpush3.bf16.msra.mxu0 %v24230_v32 }
0x2b9e   :  { %19229 = vmatprep.subr.bf16.mxu0 %v24053_v20 }
0x2ba1   :  { %19231 = vmatpush3.bf16.msra.mxu0 %v24261_v52 }
0x2ba2   :  { %19232 = vmatprep.subr.bf16.mxu0 %v24053_v20 }
0x2ba5   :  { %19234 = vmatpush3.bf16.msra.mxu0 %v24262_v13 }
0x2ba6   :  { %19235 = vmatprep.subr.bf16.mxu0 %v24053_v20 }
0x2ba9   :  { %19237 = vmatpush3.bf16.msra.mxu0 %v24263_v51 }
0x2baa   :  { %19238 = vmatprep.subr.bf16.mxu0 %v24053_v20 }
0x2bad   :  { %19240 = vmatpush3.bf16.msra.mxu0 %v24264_v34 }
0x2bae   :  { %19241 = vmatprep.subr.bf16.mxu0 %v24053_v20 }
0x2bb1   :  { %19243 = vmatpush3.bf16.msra.mxu0 %v24265_v50 }
0x2bb2   :  { %19388 = vmatprep.subr.bf16.mxu0 %v24053_v20 }
0x2bb4   :  { %16740 = vmatmul.mubr.f32.vlgmr.msra.gmra.mrb[12].mxu0 %v22925_v46 }
0x2bb5   :  { %19390 = vmatpush3.bf16.msra.mxu0 %v24135_v10  ;;  %16984 = vmatprep.mubr.msk.f32.mxu0 %vm20177_vm3, %v24069_v49 }
0x2bb6   :  { %19391 = vmatprep.subr.bf16.mxu0 %v24053_v20 }
0x2bb9   :  { %19393 = vmatpush3.bf16.msra.mxu0 %v24136_v33 }
0x2bba   :  { %19394 = vmatprep.subr.bf16.mxu0 %v24053_v20 }
0x2bbd   :  { %19396 = vmatpush3.bf16.msra.mxu0 %v24230_v32 }
0x2bbe   :  { %19397 = vmatprep.subr.bf16.mxu0 %v24053_v20 }
0x2bc1   :  { %19399 = vmatpush3.bf16.msra.mxu0 %v24261_v52 }
0x2bc2   :  { %19400 = vmatprep.subr.bf16.mxu0 %v24053_v20 }
0x2bc5   :  { %19402 = vmatpush3.bf16.msra.mxu0 %v24262_v13  ;;  %v9897_v13 = vsub.f32 1.0, %v22723_v40 }
0x2bc6   :  { %19403 = vmatprep.subr.bf16.mxu0 %v24053_v20 }
0x2bc9   :  { %19405 = vmatpush3.bf16.msra.mxu0 %v24263_v51  ;;  %v9900_v51 = vpop.permute.xlu1 %9899 }
0x2bca   :  { %19406 = vmatprep.subr.bf16.mxu0 %v24053_v20 }
0x2bcd   :  { %19408 = vmatpush3.bf16.msra.mxu0 %v24264_v34 }
0x2bce   :  { %19409 = vmatprep.subr.bf16.mxu0 %v24053_v20 }
0x2bd1   :  { %19411 = vmatpush3.bf16.msra.mxu0 %v24265_v50 }
0x2bd2   :  { %19412 = vmatprep.subr.bf16.mxu0 %v24053_v20 }
0x2c87   :  { %v9881_v46 = vpop.f32.mrb[12].mxu0 }
0x2c88   :  { %v19688_v48 = vadd.f32 %v23043_v36, %v9881_v46  ;;  %v16741_v26 = vpop.f32.mrb[13].mxu0 }
0x2c89   :  { %v23052_v26 = vld [vmem:[%s23844_s2] ss:$0 sm:$0xff] }
0x2c8a   :  { %v12372_v55 = vmul.f32 -1.442695, %v19688_v48  ;;  %19967 = vtanh.f32 %v19688_v48  ;;  %v9915_v48 = vmul.f32 %v23052_v26, %v22922_v12 }
0x2c8c   :  { %19969 = vpow2.f32 %v12372_v55 }
0x2c94   :  { %v19968_v2 = vpop.eup %19967 }
0x2c95   :  { %9893 = vrot.lane.b32.xlu1 %v19968_v2, %s20175_s25  ;;  %v9916_v2 = vsel %vm849_vm6, %v9915_v48, 0.0 }
0x2c96   :  { %v19970_v44 = vpop.eup %19969 }
0x2c97   :  { %v9888_v34 = vadd.f32 1.0, %v19970_v44 }
0x2c99   :  { %19971 = vrcp.f32 %v9888_v34 }
0x2ca3   :  { %v19972_v50 = vpop.eup %19971 }
0x2ca4   :  { %v9902_v52 = vmul.f32 %v19972_v50, %v9900_v51 }
0x2ca6   :  { %v9903_v32 = vmul.f32 %v9902_v52, %v9897_v13 }
0x2ca8   :  { %9905 = vrot.lane.b32.xlu1 %v9903_v32, %s20178_s27 }
0x2ccc   :  { %9917 = vadd.xlane.f32.xlu1 %v9916_v2 }
0x2d07   :  { %v9894_v44 = vpop.permute.xlu1 %9893 }
0x2d08   :  { %v9896_v34 = vmul.f32 %v19972_v50, %v9894_v44 }
0x2d1a   :  { %v9906_v55 = vpop.permute.xlu1 %9905 }
0x2d1b   :  { %v23057_v46 = vadd.f32 %v9906_v55, %v9896_v34 }
0x2d1d   :  { %19973 = vtanh.f32 %v23057_v46 }
0x2d27   :  { %v19974_v40 = vpop.eup %19973 }
0x2d28   :  { %9911 = vrot.lane.b32.xlu0 %v19974_v40, %s20178_s27 }
0x2d59   :  { %v9918_v32 = vpop.xlane.xlu1 %9917 }
0x2d5a   :  { %v9919_v52 = vadd.f32 %v9918_v32, %v24151_v42 }
0x2d5c   :  { %vm9920_vm15 = vcmp.gt.f32.partialorder %v9919_v52, 0.0 }
0x2d5d   :  { %v23063_v13 = vsel %vm9920_vm15, 1.0, %v24069_v49 }
0x2d5e   :  { %v10709_v12 = vrot.slane %v23063_v13, %v24120_v56  ;;  %v10713_v51 = vrot.slane %v23063_v13, %v24121_v28  ;;  %v9923_v48 = vmul.f32 %v23063_v13, %v22914_v18  ;;  %vm10584_vm7 = vcmp.gt.f32.partialorder %v23063_v13, 0.5 }
0x2d60   :  { %10716 = vst.msk [vmem:[%s23852_s10 + $0x6] sm:$0x1] %vm1667_vm8, %v10709_v12  ;;  %10717 = vst.msk [vmem:[%s23852_s10 + $0xe] sm:$0x1] %vm1667_vm8, %v10713_v51  ;;  %9925 = vrot.lane.b32.xlu0 %v9923_v48, %s20175_s25  ;;  %v24275_v48 = vld [vmem:[#allocation65_spill] sm:$0xff] }
0x2d9a   :  { %v9912_v2 = vpop.permute.xlu0 %9911 }
0x2d9b   :  { %v23080_v44 = vmul.f32 %v19972_v50, %v9912_v2  ;;  %v24276_v2 = vld [vmem:[#allocation66_spill] sm:$0xff] }
0x2d9d   :  { %9930 = vrot.lane.b32.xlu0 %v23080_v44, %s20179_s26 }
0x2dd2   :  { %v9926_v34 = vpop.permute.xlu0 %9925 }
0x2dd3   :  { %9928 = vst.msk [vmem:[#allocation3] sm:$0x3] %vm85_vm1, %v9926_v34  ;;  %v24277_v34 = vld [vmem:[#allocation67_spill] sm:$0xff] }
0x2e0f   :  { %v9931_v55 = vpop.permute.xlu0 %9930 }
0x2e10   :  { %9933 = vst.msk [vmem:[#allocation3] sm:$0x3] %vm149_vm4, %v9931_v55  ;;  %v24278_v55 = vld [vmem:[#allocation68_spill] sm:$0xff] }
0x2e17   :  { %v23086_v40 = vld [vmem:[#allocation3] sm:$0x3] }
0x2e18   :  { %24274 = vst [vmem:[#allocation43_spill] sm:$0xff] %v23086_v40  ;;  %v23089_v32 = vand.u32 4294901760, %v23086_v40 }
0x2e1a   :  { %v10017_v52 = vsub.f32 %v23086_v40, %v23089_v32 }
0x2e1c   :  { %v10018_v12 = vand.u32 4294901760, %v10017_v52 }
0x2e1e   :  { %v10019_v50 = vsub.f32 %v10017_v52, %v10018_v12 }
0x2e20   :  { %v10020_v51 = vand.u32 4294901760, %v10019_v50  ;;  %v23207_v50 = vld [vmem:[%s23848_s6] ss:$0 sm:$0xff] }
0x2e21   :  { %24281 = vst [vmem:[#allocation62_spill] sm:$0xff] %v23207_v50 }
0x2e22   :  { %16775 = vmatmul.mubr.f32.vlgmr.msra.gmra.mrb[12].mxu1 %v10020_v51 }
0x2e23   :  { %19270 = vmatpush3.bf16.msra.mxu1 %v21018_v57  ;;  %16809 = vmatprep.mubr.msk.f32.mxu1 %vm20177_vm3, %v24069_v49 }
0x2e24   :  { %19271 = vmatprep.subr.bf16.mxu1 %v24053_v20 }
0x2e27   :  { %19273 = vmatpush3.bf16.msra.mxu1 %v21028_v22 }
0x2e28   :  { %19274 = vmatprep.subr.bf16.mxu1 %v24053_v20 }
0x2e2b   :  { %19276 = vmatpush3.bf16.msra.mxu1 %v21041_v15 }
0x2e2c   :  { %19277 = vmatprep.subr.bf16.mxu1 %v24053_v20 }
0x2e2f   :  { %19279 = vmatpush3.bf16.msra.mxu1 %v21045_v47 }
0x2e30   :  { %19280 = vmatprep.subr.bf16.mxu1 %v24053_v20 }
0x2e33   :  { %19282 = vmatpush3.bf16.msra.mxu1 %v20902_v43 }
0x2e34   :  { %19283 = vmatprep.subr.bf16.mxu1 %v24053_v20 }
0x2e37   :  { %19285 = vmatpush3.bf16.msra.mxu1 %v20906_v19 }
0x2e38   :  { %19286 = vmatprep.subr.bf16.mxu1 %v24053_v20 }
0x2e3b   :  { %19288 = vmatpush3.bf16.msra.mxu1 %v20920_v38 }
0x2e3c   :  { %19289 = vmatprep.subr.bf16.mxu1 %v24053_v20 }
0x2e3f   :  { %19291 = vmatpush3.bf16.msra.mxu1 %v20928_v35 }
0x2e40   :  { %19292 = vmatprep.subr.bf16.mxu1 %v24053_v20 }
0x2e42   :  { %16810 = vmatmul.mubr.f32.vlgmr.msra.gmra.mrb[12].mxu1 %v23089_v32 }
0x2e43   :  { %19294 = vmatpush3.bf16.msra.mxu1 %v21059_v58  ;;  %16844 = vmatprep.mubr.msk.f32.mxu1 %vm20177_vm3, %v24069_v49 }
0x2e44   :  { %19295 = vmatprep.subr.bf16.mxu1 %v24053_v20 }
0x2e47   :  { %19297 = vmatpush3.bf16.msra.mxu1 %v21066_v60 }
0x2e48   :  { %19298 = vmatprep.subr.bf16.mxu1 %v24053_v20 }
0x2e4b   :  { %19300 = vmatpush3.bf16.msra.mxu1 %v21074_v41 }
0x2e4c   :  { %19301 = vmatprep.subr.bf16.mxu1 %v24053_v20 }
0x2e4f   :  { %19303 = vmatpush3.bf16.msra.mxu1 %v21080_v61 }
0x2e50   :  { %19304 = vmatprep.subr.bf16.mxu1 %v24053_v20 }
0x2e53   :  { %19306 = vmatpush3.bf16.msra.mxu1 %v20932_v59 }
0x2e54   :  { %19307 = vmatprep.subr.bf16.mxu1 %v24053_v20 }
0x2e57   :  { %19309 = vmatpush3.bf16.msra.mxu1 %v20936_v53 }
0x2e58   :  { %19310 = vmatprep.subr.bf16.mxu1 %v24053_v20 }
0x2e5b   :  { %19312 = vmatpush3.bf16.msra.mxu1 %v20940_v37 }
0x2e5c   :  { %19313 = vmatprep.subr.bf16.mxu1 %v24053_v20 }
0x2e5f   :  { %19315 = vmatpush3.bf16.msra.mxu1 %v20944_v24 }
0x2e60   :  { %19316 = vmatprep.subr.bf16.mxu1 %v24053_v20 }
0x2e62   :  { %16845 = vmatmul.mubr.f32.vlgmr.msra.gmra.mrb[12].mxu1 %v10017_v52  ;;  %v24279_v52 = vld [vmem:[#allocation69_spill] sm:$0xff] }
0x2e63   :  { %19318 = vmatpush3.bf16.msra.mxu1 %v20787_v5  ;;  %16879 = vmatprep.mubr.msk.f32.mxu1 %vm20177_vm3, %v24069_v49 }
0x2e64   :  { %19319 = vmatprep.subr.bf16.mxu1 %v24053_v20 }
0x2e67   :  { %19321 = vmatpush3.bf16.msra.mxu1 %v20794_v6 }
0x2e68   :  { %19322 = vmatprep.subr.bf16.mxu1 %v24053_v20 }
0x2e6b   :  { %19324 = vmatpush3.bf16.msra.mxu1 %v20809_v9 }
0x2e6c   :  { %19325 = vmatprep.subr.bf16.mxu1 %v24053_v20 }
0x2e6f   :  { %19327 = vmatpush3.bf16.msra.mxu1 %v20819_v17 }
0x2e70   :  { %19328 = vmatprep.subr.bf16.mxu1 %v24053_v20 }
0x2e73   :  { %19330 = vmatpush3.bf16.msra.mxu1 %v20853_v25 }
0x2e74   :  { %19331 = vmatprep.subr.bf16.mxu1 %v24053_v20 }
0x2e77   :  { %19333 = vmatpush3.bf16.msra.mxu1 %v20857_v62 }
0x2e78   :  { %19334 = vmatprep.subr.bf16.mxu1 %v24053_v20 }
0x2e7b   :  { %19336 = vmatpush3.bf16.msra.mxu1 %v20861_v54 }
0x2e7c   :  { %19337 = vmatprep.subr.bf16.mxu1 %v24053_v20 }
0x2e7f   :  { %19339 = vmatpush3.bf16.msra.mxu1 %v20864_v29 }
0x2e80   :  { %19340 = vmatprep.subr.bf16.mxu1 %v24053_v20 }
0x2e82   :  { %16880 = vmatmul.mubr.f32.vlgmr.msra.gmra.mrb[12].mxu1 %v10018_v12  ;;  %v24280_v12 = vld [vmem:[#allocation70_spill] sm:$0xff] }
0x2e83   :  { %19342 = vmatpush3.bf16.msra.mxu1 %v21115_v1  ;;  %16914 = vmatprep.mubr.msk.f32.mxu1 %vm20177_vm3, %v24069_v49  ;;  %v24282_v1 = vld [vmem:[#allocation45_spill] sm:$0xff] }
0x2e84   :  { %19343 = vmatprep.subr.bf16.mxu1 %v24053_v20 }
0x2e87   :  { %19345 = vmatpush3.bf16.msra.mxu1 %v21125_v7 }
0x2e88   :  { %19346 = vmatprep.subr.bf16.mxu1 %v24053_v20 }
0x2e8b   :  { %19348 = vmatpush3.bf16.msra.mxu1 %v24275_v48 }
0x2e8c   :  { %19349 = vmatprep.subr.bf16.mxu1 %v24053_v20 }
0x2e8f   :  { %19351 = vmatpush3.bf16.msra.mxu1 %v24276_v2 }
0x2e90   :  { %19352 = vmatprep.subr.bf16.mxu1 %v24053_v20 }
0x2e93   :  { %19354 = vmatpush3.bf16.msra.mxu1 %v24277_v34 }
0x2e94   :  { %19355 = vmatprep.subr.bf16.mxu1 %v24053_v20 }
0x2e97   :  { %19357 = vmatpush3.bf16.msra.mxu1 %v24278_v55 }
0x2e98   :  { %19358 = vmatprep.subr.bf16.mxu1 %v24053_v20 }
0x2e9b   :  { %19360 = vmatpush3.bf16.msra.mxu1 %v24279_v52 }
0x2e9c   :  { %19361 = vmatprep.subr.bf16.mxu1 %v24053_v20 }
0x2e9f   :  { %19363 = vmatpush3.bf16.msra.mxu1 %v24280_v12 }
0x2ea0   :  { %19364 = vmatprep.subr.bf16.mxu1 %v24053_v20 }
0x2ea2   :  { %16915 = vmatmul.mubr.f32.vlgmr.msra.gmra.mrb[12].mxu1 %v23089_v32 }
0x2ea3   :  { %19366 = vmatpush3.bf16.msra.mxu1 %v20787_v5  ;;  %16949 = vmatprep.mubr.msk.f32.mxu1 %vm20177_vm3, %v24069_v49 }
0x2ea4   :  { %19367 = vmatprep.subr.bf16.mxu1 %v24053_v20 }
0x2ea7   :  { %19369 = vmatpush3.bf16.msra.mxu1 %v20794_v6 }
0x2ea8   :  { %19370 = vmatprep.subr.bf16.mxu1 %v24053_v20 }
0x2eab   :  { %19372 = vmatpush3.bf16.msra.mxu1 %v20809_v9 }
0x2eac   :  { %19373 = vmatprep.subr.bf16.mxu1 %v24053_v20 }
0x2eaf   :  { %19375 = vmatpush3.bf16.msra.mxu1 %v20819_v17 }
0x2eb0   :  { %19376 = vmatprep.subr.bf16.mxu1 %v24053_v20 }
0x2eb3   :  { %19378 = vmatpush3.bf16.msra.mxu1 %v20853_v25 }
0x2eb4   :  { %19379 = vmatprep.subr.bf16.mxu1 %v24053_v20 }
0x2eb7   :  { %19381 = vmatpush3.bf16.msra.mxu1 %v20857_v62 }
0x2eb8   :  { %19382 = vmatprep.subr.bf16.mxu1 %v24053_v20 }
0x2ebb   :  { %19384 = vmatpush3.bf16.msra.mxu1 %v20861_v54 }
0x2ebc   :  { %19385 = vmatprep.subr.bf16.mxu1 %v24053_v20 }
0x2ebf   :  { %19387 = vmatpush3.bf16.msra.mxu1 %v20864_v29 }
0x2ec0   :  { %19532 = vmatprep.subr.bf16.mxu1 %v24053_v20 }
0x2ec2   :  { %16950 = vmatmul.mubr.f32.vlgmr.msra.gmra.mrb[12].mxu1 %v23089_v32 }
0x2ec3   :  { %19534 = vmatpush3.bf16.msra.mxu1 %v20787_v5  ;;  %17194 = vmatprep.mubr.msk.f32.mxu1 %vm20177_vm3, %v24069_v49 }
0x2ec4   :  { %19535 = vmatprep.subr.bf16.mxu1 %v24053_v20 }
0x2ec7   :  { %19537 = vmatpush3.bf16.msra.mxu1 %v20794_v6 }
0x2ec8   :  { %19538 = vmatprep.subr.bf16.mxu1 %v24053_v20 }
0x2ecb   :  { %19540 = vmatpush3.bf16.msra.mxu1 %v20809_v9 }
0x2ecc   :  { %19541 = vmatprep.subr.bf16.mxu1 %v24053_v20 }
0x2ecf   :  { %19543 = vmatpush3.bf16.msra.mxu1 %v20819_v17 }
0x2ed0   :  { %19544 = vmatprep.subr.bf16.mxu1 %v24053_v20 }
0x2ed3   :  { %19546 = vmatpush3.bf16.msra.mxu1 %v20853_v25 }
0x2ed4   :  { %19547 = vmatprep.subr.bf16.mxu1 %v24053_v20 }
0x2ed7   :  { %19549 = vmatpush3.bf16.msra.mxu1 %v20857_v62 }
0x2ed8   :  { %19550 = vmatprep.subr.bf16.mxu1 %v24053_v20 }
0x2edb   :  { %19552 = vmatpush3.bf16.msra.mxu1 %v20861_v54 }
0x2edc   :  { %19553 = vmatprep.subr.bf16.mxu1 %v24053_v20 }
0x2edf   :  { %19555 = vmatpush3.bf16.msra.mxu1 %v20864_v29 }
0x2ee0   :  { %19556 = vmatprep.subr.bf16.mxu1 %v24053_v20 }
0x2f95   :  { %v10572_v32 = vpop.f32.mrb[12].mxu1 }
0x2f96   :  { %v19689_v51 = vadd.f32 %v23207_v50, %v10572_v32  ;;  %v16951_v40 = vpop.f32.mrb[13].mxu1 }
0x2f97   :  { %v9112_v40 = vmul.f32 %v22872_v63, %v24282_v1 }
0x2f98   :  { %19975 = vtanh.f32 %v19689_v51  ;;  %v12374_v52 = vmul.f32 -1.442695, %v19689_v51 }
0x2f99   :  { %v9113_v32 = vsel %vm849_vm6, %v9112_v40, 0.0  ;;  %v10742_v40 = vld [vmem:[%s23842_s0 + $0xf] sm:$0x1] }
0x2f9a   :  { %19977 = vpow2.f32 %v12374_v52 }
0x2fa2   :  { %v19976_v12 = vpop.eup %19975 }
0x2fa3   :  { %10586 = vrot.lane.b32.xlu0 %v19976_v12, %s20175_s25 }
0x2fa4   :  { %v19978_v55 = vpop.eup %19977 }
0x2fa5   :  { %v10579_v34 = vadd.f32 1.0, %v19978_v55 }
0x2fa7   :  { %10591 = vrot.lane.b32.xlu0 %v22895_v45, %s20179_s26  ;;  %19979 = vrcp.f32 %v10579_v34 }
0x2fb1   :  { %v19980_v2 = vpop.eup %19979 }
0x3015   :  { %v10587_v48 = vpop.permute.xlu0 %10586 }
0x3016   :  { %v10589_v7 = vmul.f32 %v19980_v2, %v10587_v48 }
0x3018   :  { %10596 = vrot.lane.b32.xlu0 %v10589_v7, %s20179_s26 }
0x3019   :  { %v10592_v12 = vpop.permute.xlu0 %10591 }
0x301a   :  { %v10594_v50 = vmul.f32 %v19980_v2, %v10592_v12 }
0x3037   :  { %9114 = vadd.xlane.f32.xlu0 %v9113_v32 }
0x308a   :  { %v10597_v29 = vpop.permute.xlu0 %10596 }
0x308b   :  { %v10599_v45 = vadd.f32 %v10597_v29, %v10594_v50 }
0x308d   :  { %v10602_v52 = vsel %vm10584_vm7, %v10599_v45, %v10592_v12  ;;  %v10745_v12 = vrot.slane %v10742_v40, 7  ;;  %v10741_v45 = vld [vmem:[%s23842_s0 + $0x7] sm:$0x1] }
0x308e   :  { %10606 = vrot.lane.b32.xlu1 %v10602_v52, %s20178_s27 }
0x30c4   :  { %v9115_v34 = vpop.xlane.xlu0 %9114 }
0x30c5   :  { %v9116_v48 = vadd.f32 %v9115_v34, %v21537_v16 }
0x30c7   :  { %vm9117_vm9 = vcmp.gt.f32.partialorder %v9116_v48, 0.0 }
0x30c8   :  { %v12371_v55 = vsel %vm9117_vm9, 1.0, %v24069_v49 }
0x30c9   :  { %v9214_v1 = vrot.slane %v12371_v55, %v24120_v56  ;;  %v9218_v63 = vrot.slane %v12371_v55, %v24121_v28  ;;  %vm10583_vm10 = vcmp.gt.f32.partialorder %v12371_v55, 0.5 }
0x30ca   :  { %vm23223_vm11 = vmor %vm10583_vm10, %vm10584_vm7 }
0x30cb   :  { %9221 = vst.msk [vmem:[%s23853_s11 + $0x5] sm:$0x1] %vm1667_vm8, %v9214_v1  ;;  %9222 = vst.msk [vmem:[%s23853_s11 + $0xd] sm:$0x1] %vm1667_vm8, %v9218_v63 }
0x3100   :  { %v10607_v29 = vpop.permute.xlu1 %10606 }
0x3101   :  { %v23235_v50 = vsel %vm10583_vm10, %v10589_v7, %v10607_v29  ;;  %v10746_v7 = vsel %vm156_vm2, %v10745_v12, %v10741_v45  ;;  %v24297_v45 = vld [vmem:[#allocation49_spill] sm:$0xff] }
0x3102   :  { %19981 = vtanh.f32 %v23235_v50 }
0x310c   :  { %v19982_v32 = vpop.eup %19981 }
0x310d   :  { %10613 = vrot.lane.b32.xlu1 %v19982_v32, %s20178_s27 }
0x3111   :  { %10731 = vrot.lane.b32.xlu1 %v23080_v44, %s20175_s25 }
0x3115   :  { %10747 = vrot.lane.b32.xlu1 %v10746_v7, %s20175_s25  ;;  %v24298_v7 = vld [vmem:[#allocation50_spill] sm:$0xff] }
0x3119   :  { %11407 = vrot.lane.b32.xlu1 %v23057_v46, %s20179_s26 }
0x317f   :  { %v10614_v52 = vpop.permute.xlu1 %10613 }
0x3180   :  { %v10616_v34 = vmul.f32 %v19980_v2, %v10614_v52  ;;  %v24299_v52 = vld [vmem:[#allocation51_spill] sm:$0xff] }
0x3182   :  { %v23254_v48 = vsel %vm23223_vm11, %v10616_v34, %v22914_v18  ;;  %v24300_v34 = vld [vmem:[#allocation52_spill] sm:$0xff] }
0x3183   :  { %v10732_v55 = vpop.permute.xlu1 %10731  ;;  %v10735_v1 = vmul.f32 %v23063_v13, %v23254_v48 }
0x3184   :  { %10734 = vst.msk [vmem:[#allocation2] sm:$0x3] %vm85_vm1, %v10732_v55  ;;  %v24301_v55 = vld [vmem:[#allocation53_spill] sm:$0xff] }
0x3185   :  { %10737 = vrot.lane.b32.xlu0 %v10735_v1, %s20179_s26  ;;  %v24302_v1 = vld [vmem:[#allocation54_spill] sm:$0xff] }
0x3187   :  { %v10748_v29 = vpop.permute.xlu1 %10747 }
0x31f7   :  { %v10738_v63 = vpop.permute.xlu0 %10737 }
0x31f8   :  { %10740 = vst.msk [vmem:[#allocation2] sm:$0x3] %vm149_vm4, %v10738_v63 }
0x31f9   :  { %10750 = vst.msk [vmem:[#allocation2] sm:$0x3] %vm161_vm5, %v10748_v29 }
0x3200   :  { %v23262_v46 = vld [vmem:[#allocation2] sm:$0x3] }
0x3201   :  { %v23265_v2 = vand.u32 4294901760, %v23262_v46 }
0x3203   :  { %v10834_v51 = vsub.f32 %v23262_v46, %v23265_v2 }
0x3205   :  { %v10835_v40 = vand.u32 4294901760, %v10834_v51 }
0x3207   :  { %v10836_v32 = vsub.f32 %v10834_v51, %v10835_v40 }
0x3209   :  { %v10837_v12 = vand.u32 4294901760, %v10836_v32 }
0x320b   :  { %16985 = vmatmul.mubr.f32.vlgmr.msra.gmra.mrb[14].mxu0 %v10837_v12 }
0x320c   :  { %19414 = vmatpush3.bf16.msra.mxu0 %v20543_v0  ;;  %17019 = vmatprep.mubr.msk.f32.mxu0 %vm20177_vm3, %v24069_v49  ;;  %v24285_v0 = vld [vmem:[#allocation39_spill] sm:$0xff] }
0x320d   :  { %19415 = vmatprep.subr.bf16.mxu0 %v24053_v20 }
0x3210   :  { %19417 = vmatpush3.bf16.msra.mxu0 %v20553_v30  ;;  %v24287_v30 = vld [vmem:[#allocation41_spill] sm:$0xff] }
0x3211   :  { %19418 = vmatprep.subr.bf16.mxu0 %v24053_v20 }
0x3214   :  { %19420 = vmatpush3.bf16.msra.mxu0 %v20566_v31  ;;  %v24289_v31 = vld [vmem:[#allocation31_spill] sm:$0xff] }
0x3215   :  { %19421 = vmatprep.subr.bf16.mxu0 %v24053_v20 }
0x3218   :  { %19423 = vmatpush3.bf16.msra.mxu0 %v20570_v11  ;;  %v24290_v11 = vld [vmem:[#allocation32_spill] sm:$0xff] }
0x3219   :  { %19424 = vmatprep.subr.bf16.mxu0 %v24053_v20 }
0x321c   :  { %19426 = vmatpush3.bf16.msra.mxu0 %v20416_v3  ;;  %v24286_v3 = vld [vmem:[#allocation40_spill] sm:$0xff] }
0x321d   :  { %19427 = vmatprep.subr.bf16.mxu0 %v24053_v20 }
0x3220   :  { %19429 = vmatpush3.bf16.msra.mxu0 %v20440_v39  ;;  %v24288_v39 = vld [vmem:[#allocation42_spill] sm:$0xff] }
0x3221   :  { %19430 = vmatprep.subr.bf16.mxu0 %v24053_v20 }
0x3224   :  { %19432 = vmatpush3.bf16.msra.mxu0 %v24158_v21  ;;  %v24291_v21 = vld [vmem:[#allocation33_spill] sm:$0xff] }
0x3225   :  { %19433 = vmatprep.subr.bf16.mxu0 %v24053_v20 }
0x3228   :  { %19435 = vmatpush3.bf16.msra.mxu0 %v24159_v14  ;;  %v24292_v14 = vld [vmem:[#allocation34_spill] sm:$0xff] }
0x3229   :  { %19436 = vmatprep.subr.bf16.mxu0 %v24053_v20 }
0x322b   :  { %17020 = vmatmul.mubr.f32.vlgmr.msra.gmra.mrb[14].mxu0 %v23265_v2 }
0x322c   :  { %19438 = vmatpush3.bf16.msra.mxu0 %v24192_v23  ;;  %17054 = vmatprep.mubr.msk.f32.mxu0 %vm20177_vm3, %v24069_v49  ;;  %v24293_v23 = vld [vmem:[#allocation35_spill] sm:$0xff] }
0x322d   :  { %19439 = vmatprep.subr.bf16.mxu0 %v24053_v20 }
0x3230   :  { %19441 = vmatpush3.bf16.msra.mxu0 %v24223_v27  ;;  %v24294_v27 = vld [vmem:[#allocation36_spill] sm:$0xff] }
0x3231   :  { %19442 = vmatprep.subr.bf16.mxu0 %v24053_v20 }
0x3234   :  { %19444 = vmatpush3.bf16.msra.mxu0 %v24224_v4  ;;  %v24295_v4 = vld [vmem:[#allocation47_spill] sm:$0xff] }
0x3235   :  { %19445 = vmatprep.subr.bf16.mxu0 %v24053_v20 }
0x3238   :  { %19447 = vmatpush3.bf16.msra.mxu0 %v24256_v8  ;;  %v24296_v8 = vld [vmem:[#allocation48_spill] sm:$0xff] }
0x3239   :  { %19448 = vmatprep.subr.bf16.mxu0 %v24053_v20 }
0x323c   :  { %19450 = vmatpush3.bf16.msra.mxu0 %v24285_v0  ;;  %v11408_v0 = vpop.permute.xlu1 %11407 }
0x323d   :  { %19451 = vmatprep.subr.bf16.mxu0 %v24053_v20 }
0x3240   :  { %19453 = vmatpush3.bf16.msra.mxu0 %v24286_v3  ;;  %v11405_v3 = vsub.f32 1.0, %v23063_v13 }
0x3241   :  { %19454 = vmatprep.subr.bf16.mxu0 %v24053_v20 }
0x3244   :  { %19456 = vmatpush3.bf16.msra.mxu0 %v24287_v30 }
0x3245   :  { %19457 = vmatprep.subr.bf16.mxu0 %v24053_v20 }
0x3248   :  { %19459 = vmatpush3.bf16.msra.mxu0 %v24288_v39 }
0x3249   :  { %19460 = vmatprep.subr.bf16.mxu0 %v24053_v20 }
0x324b   :  { %17055 = vmatmul.mubr.f32.vlgmr.msra.gmra.mrb[14].mxu0 %v10834_v51 }
0x324c   :  { %19462 = vmatpush3.bf16.msra.mxu0 %v24135_v10  ;;  %17089 = vmatprep.mubr.msk.f32.mxu0 %vm20177_vm3, %v24069_v49 }
0x324d   :  { %19463 = vmatprep.subr.bf16.mxu0 %v24053_v20 }
0x3250   :  { %19465 = vmatpush3.bf16.msra.mxu0 %v24136_v33 }
0x3251   :  { %19466 = vmatprep.subr.bf16.mxu0 %v24053_v20 }
0x3254   :  { %19468 = vmatpush3.bf16.msra.mxu0 %v24289_v31 }
0x3255   :  { %19469 = vmatprep.subr.bf16.mxu0 %v24053_v20 }
0x3258   :  { %19471 = vmatpush3.bf16.msra.mxu0 %v24290_v11 }
0x3259   :  { %19472 = vmatprep.subr.bf16.mxu0 %v24053_v20 }
0x325c   :  { %19474 = vmatpush3.bf16.msra.mxu0 %v24291_v21 }
0x325d   :  { %19475 = vmatprep.subr.bf16.mxu0 %v24053_v20 }
0x3260   :  { %19477 = vmatpush3.bf16.msra.mxu0 %v24292_v14 }
0x3261   :  { %19478 = vmatprep.subr.bf16.mxu0 %v24053_v20 }
0x3264   :  { %19480 = vmatpush3.bf16.msra.mxu0 %v24293_v23 }
0x3265   :  { %19481 = vmatprep.subr.bf16.mxu0 %v24053_v20 }
0x3268   :  { %19483 = vmatpush3.bf16.msra.mxu0 %v24294_v27 }
0x3269   :  { %19484 = vmatprep.subr.bf16.mxu0 %v24053_v20 }
0x326b   :  { %17090 = vmatmul.mubr.f32.vlgmr.msra.gmra.mrb[14].mxu0 %v10835_v40 }
0x326c   :  { %19486 = vmatpush3.bf16.msra.mxu0 %v24295_v4  ;;  %17124 = vmatprep.mubr.msk.f32.mxu0 %vm20177_vm3, %v24069_v49 }
0x326d   :  { %19487 = vmatprep.subr.bf16.mxu0 %v24053_v20 }
0x3270   :  { %19489 = vmatpush3.bf16.msra.mxu0 %v24296_v8 }
0x3271   :  { %19490 = vmatprep.subr.bf16.mxu0 %v24053_v20 }
0x3274   :  { %19492 = vmatpush3.bf16.msra.mxu0 %v24297_v45 }
0x3275   :  { %19493 = vmatprep.subr.bf16.mxu0 %v24053_v20 }
0x3278   :  { %19495 = vmatpush3.bf16.msra.mxu0 %v24298_v7 }
0x3279   :  { %19496 = vmatprep.subr.bf16.mxu0 %v24053_v20 }
0x327c   :  { %19498 = vmatpush3.bf16.msra.mxu0 %v24299_v52 }
0x327d   :  { %19499 = vmatprep.subr.bf16.mxu0 %v24053_v20 }
0x3280   :  { %19501 = vmatpush3.bf16.msra.mxu0 %v24300_v34 }
0x3281   :  { %19502 = vmatprep.subr.bf16.mxu0 %v24053_v20 }
0x3284   :  { %19504 = vmatpush3.bf16.msra.mxu0 %v24301_v55 }
0x3285   :  { %19505 = vmatprep.subr.bf16.mxu0 %v24053_v20 }
0x3288   :  { %19507 = vmatpush3.bf16.msra.mxu0 %v24302_v1 }
0x3289   :  { %19508 = vmatprep.subr.bf16.mxu0 %v24053_v20 }
0x328b   :  { %17125 = vmatmul.mubr.f32.vlgmr.msra.gmra.mrb[14].mxu0 %v23265_v2 }
0x328c   :  { %19510 = vmatpush3.bf16.msra.mxu0 %v24135_v10  ;;  %17159 = vmatprep.mubr.msk.f32.mxu0 %vm20177_vm3, %v24069_v49 }
0x328d   :  { %19511 = vmatprep.subr.bf16.mxu0 %v24053_v20 }
0x3290   :  { %19513 = vmatpush3.bf16.msra.mxu0 %v24136_v33 }
0x3291   :  { %19514 = vmatprep.subr.bf16.mxu0 %v24053_v20 }
0x3294   :  { %19516 = vmatpush3.bf16.msra.mxu0 %v24289_v31 }
0x3295   :  { %19517 = vmatprep.subr.bf16.mxu0 %v24053_v20 }
0x3298   :  { %19519 = vmatpush3.bf16.msra.mxu0 %v24290_v11 }
0x3299   :  { %19520 = vmatprep.subr.bf16.mxu0 %v24053_v20 }
0x329c   :  { %19522 = vmatpush3.bf16.msra.mxu0 %v24291_v21 }
0x329d   :  { %19523 = vmatprep.subr.bf16.mxu0 %v24053_v20 }
0x32a0   :  { %19525 = vmatpush3.bf16.msra.mxu0 %v24292_v14 }
0x32a1   :  { %19526 = vmatprep.subr.bf16.mxu0 %v24053_v20 }
0x32a4   :  { %19528 = vmatpush3.bf16.msra.mxu0 %v24293_v23 }
0x32a5   :  { %19529 = vmatprep.subr.bf16.mxu0 %v24053_v20 }
0x32a8   :  { %19531 = vmatpush3.bf16.msra.mxu0 %v24294_v27 }
0x32ab   :  { %17160 = vmatmul.mubr.f32.vlgmr.msra.gmra.mrb[14].mxu0 %v23265_v2 }
0x337e   :  { %v11389_v33 = vpop.f32.mrb[14].mxu0 }
0x337f   :  { %v19690_v10 = vadd.f32 %v23043_v36, %v11389_v33  ;;  %v17161_v63 = vpop.f32.mrb[15].mxu0  ;;  %v11423_v36 = vmul.f32 %v23052_v26, %v23262_v46 }
0x3381   :  { %v12376_v29 = vmul.f32 -1.442695, %v19690_v10  ;;  %19983 = vtanh.f32 %v19690_v10  ;;  %v11424_v2 = vsel %vm849_vm6, %v11423_v36, 0.0  ;;  %v24317_v36 = vld [vmem:[#allocation55_spill] sm:$0xff] }
0x3383   :  { %19985 = vpow2.f32 %v12376_v29 }
0x338b   :  { %v19984_v51 = vpop.eup %19983 }
0x338c   :  { %11401 = vrot.lane.b32.xlu1 %v19984_v51, %s20175_s25 }
0x338d   :  { %v19986_v40 = vpop.eup %19985 }
0x338e   :  { %v11396_v32 = vadd.f32 1.0, %v19986_v40  ;;  %v24314_v40 = vld [vmem:[#allocation56_spill] sm:$0xff] }
0x3390   :  { %19987 = vrcp.f32 %v11396_v32 }
0x339a   :  { %v19988_v12 = vpop.eup %19987 }
0x339b   :  { %v11410_v30 = vmul.f32 %v19988_v12, %v11408_v0 }
0x339d   :  { %v11411_v39 = vmul.f32 %v11410_v30, %v11405_v3  ;;  %v24316_v30 = vld [vmem:[#allocation59_spill] sm:$0xff] }
0x339f   :  { %11413 = vrot.lane.b32.xlu1 %v11411_v39, %s20178_s27 }
0x33c3   :  { %11425 = vadd.xlane.f32.xlu1 %v11424_v2 }
0x33fe   :  { %v11402_v31 = vpop.permute.xlu1 %11401 }
0x33ff   :  { %v11404_v11 = vmul.f32 %v19988_v12, %v11402_v31 }
0x3411   :  { %v11414_v21 = vpop.permute.xlu1 %11413 }
0x3412   :  { %v23368_v14 = vadd.f32 %v11414_v21, %v11404_v11 }
0x3414   :  { %19989 = vtanh.f32 %v23368_v14 }
0x341e   :  { %v19990_v23 = vpop.eup %19989 }
0x341f   :  { %11419 = vrot.lane.b32.xlu0 %v19990_v23, %s20178_s27  ;;  %v24318_v23 = vld [vmem:[#allocation30_spill] sm:$0xff] }
0x3450   :  { %v11426_v13 = vpop.xlane.xlu1 %11425 }
0x3451   :  { %v11427_v27 = vadd.f32 %v11426_v13, %v24151_v42 }
0x3453   :  { %vm11428_vm2 = vcmp.gt.f32.partialorder %v11427_v27, 0.0 }
0x3454   :  { %v23374_v4 = vsel %vm11428_vm2, 1.0, %v24069_v49 }
0x3455   :  { %v12217_v26 = vrot.slane %v23374_v4, %v24120_v56  ;;  %v12221_v46 = vrot.slane %v23374_v4, %v24121_v28  ;;  %12262 = vst.msk [vmem:[#allocation8] sm:$0x3] %vm90_vm0, %v23374_v4  ;;  %v11431_v8 = vmul.f32 %v23374_v4, %v23254_v48 }
0x3457   :  { %12224 = vst.msk [vmem:[%s23852_s10 + $0x7] sm:$0x1] %vm1667_vm8, %v12217_v26  ;;  %12225 = vst.msk [vmem:[%s23852_s10 + $0xf] sm:$0x1] %vm1667_vm8, %v12221_v46  ;;  %11433 = vrot.lane.b32.xlu0 %v11431_v8, %s20175_s25 }
0x3491   :  { %v11420_v42 = vpop.permute.xlu0 %11419 }
0x3492   :  { %v23393_v45 = vmul.f32 %v19988_v12, %v11420_v42  ;;  %v24315_v12 = vld [vmem:[#allocation61_spill] sm:$0xff] }
0x3494   :  { %11438 = vrot.lane.b32.xlu0 %v23393_v45, %s20179_s26 }
0x34c9   :  { %v11434_v7 = vpop.permute.xlu0 %11433 }
0x34ca   :  { %11436 = vst.msk [vmem:[#allocation3] sm:$0x3] %vm85_vm1, %v11434_v7  ;;  %v24319_v7 = vld [vmem:[#allocation57_spill] sm:$0xff] }
0x3506   :  { %v11439_v52 = vpop.permute.xlu0 %11438 }
0x3507   :  { %11441 = vst.msk [vmem:[#allocation3] sm:$0x3] %vm149_vm4, %v11439_v52  ;;  %vm1614_vm4 = vcmask 253952  }
0x350e   :  { %v23399_v34 = vld [vmem:[#allocation3] sm:$0x3] }
0x350f   :  { %v23402_v55 = vand.u32 4294901760, %v23399_v34 }
0x3511   :  { %v11525_v1 = vsub.f32 %v23399_v34, %v23402_v55 }
0x3513   :  { %v11526_v33 = vand.u32 4294901760, %v11525_v1 }
0x3515   :  { %v11527_v10 = vsub.f32 %v11525_v1, %v11526_v33 }
0x3517   :  { %v11528_v63 = vand.u32 4294901760, %v11527_v10  ;;  %v24320_v10 = vld [vmem:[#allocation38_spill] sm:$0xff] }
0x3519   :  { %17195 = vmatmul.mubr.f32.vlgmr.msra.gmra.mrb[14].mxu1 %v11528_v63 }
0x351a   :  { %19558 = vmatpush3.bf16.msra.mxu1 %v21018_v57  ;;  %17229 = vmatprep.mubr.msk.f32.mxu1 %vm20177_vm3, %v24069_v49  ;;  %v24304_v57 = vld [vmem:[#allocation63_spill] sm:$0xff] }
0x351b   :  { %19559 = vmatprep.subr.bf16.mxu1 %v24053_v20 }
0x351e   :  { %19561 = vmatpush3.bf16.msra.mxu1 %v21028_v22  ;;  %v24305_v22 = vld [vmem:[#allocation64_spill] sm:$0xff] }
0x351f   :  { %19562 = vmatprep.subr.bf16.mxu1 %v24053_v20 }
0x3522   :  { %19564 = vmatpush3.bf16.msra.mxu1 %v21041_v15 }
0x3523   :  { %19565 = vmatprep.subr.bf16.mxu1 %v24053_v20 }
0x3526   :  { %19567 = vmatpush3.bf16.msra.mxu1 %v21045_v47 }
0x3527   :  { %19568 = vmatprep.subr.bf16.mxu1 %v24053_v20 }
0x352a   :  { %19570 = vmatpush3.bf16.msra.mxu1 %v20902_v43  ;;  %v24306_v43 = vld [vmem:[#allocation65_spill] sm:$0xff] }
0x352b   :  { %19571 = vmatprep.subr.bf16.mxu1 %v24053_v20 }
0x352e   :  { %19573 = vmatpush3.bf16.msra.mxu1 %v20906_v19  ;;  %v24303_v19 = vld [vmem:[#allocation60_spill] sm:$0xff] }
0x352f   :  { %19574 = vmatprep.subr.bf16.mxu1 %v24053_v20 }
0x3532   :  { %19576 = vmatpush3.bf16.msra.mxu1 %v20920_v38  ;;  %v24307_v38 = vld [vmem:[#allocation66_spill] sm:$0xff] }
0x3533   :  { %19577 = vmatprep.subr.bf16.mxu1 %v24053_v20 }
0x3536   :  { %19579 = vmatpush3.bf16.msra.mxu1 %v20928_v35  ;;  %v24308_v35 = vld [vmem:[#allocation67_spill] sm:$0xff] }
0x3537   :  { %19580 = vmatprep.subr.bf16.mxu1 %v24053_v20 }
0x3539   :  { %17230 = vmatmul.mubr.f32.vlgmr.msra.gmra.mrb[14].mxu1 %v23402_v55 }
0x353a   :  { %19582 = vmatpush3.bf16.msra.mxu1 %v21059_v58  ;;  %17264 = vmatprep.mubr.msk.f32.mxu1 %vm20177_vm3, %v24069_v49  ;;  %v23512_v58 = vld [vmem:[%s23847_s5] ss:$0 sm:$0xff] }
0x353b   :  { %19583 = vmatprep.subr.bf16.mxu1 %v24053_v20 }
0x353e   :  { %19585 = vmatpush3.bf16.msra.mxu1 %v21066_v60  ;;  %v24313_v60 = vld [vmem:[#allocation43_spill] sm:$0xff] }
0x353f   :  { %19586 = vmatprep.subr.bf16.mxu1 %v24053_v20 }
0x3542   :  { %19588 = vmatpush3.bf16.msra.mxu1 %v21074_v41  ;;  %v10620_v41 = vmul.f32 %v23512_v58, %v24313_v60 }
0x3543   :  { %19589 = vmatprep.subr.bf16.mxu1 %v24053_v20 }
0x3544   :  { %v10621_v29 = vsel %vm849_vm6, %v10620_v41, 0.0 }
0x3546   :  { %19591 = vmatpush3.bf16.msra.mxu1 %v21080_v61  ;;  %v20180_v61 = vmov 1966171168  }
0x3547   :  { %19592 = vmatprep.subr.bf16.mxu1 %v24053_v20 }
0x354a   :  { %19594 = vmatpush3.bf16.msra.mxu1 %v20932_v59  ;;  %v24309_v59 = vld [vmem:[#allocation68_spill] sm:$0xff] }
0x354b   :  { %19595 = vmatprep.subr.bf16.mxu1 %v24053_v20 }
0x354e   :  { %19597 = vmatpush3.bf16.msra.mxu1 %v20936_v53  ;;  %v24310_v53 = vld [vmem:[#allocation69_spill] sm:$0xff] }
0x354f   :  { %19598 = vmatprep.subr.bf16.mxu1 %v24053_v20 }
0x3552   :  { %19600 = vmatpush3.bf16.msra.mxu1 %v20940_v37  ;;  %v24311_v37 = vld [vmem:[#allocation70_spill] sm:$0xff] }
0x3553   :  { %19601 = vmatprep.subr.bf16.mxu1 %v24053_v20 }
0x3556   :  { %19603 = vmatpush3.bf16.msra.mxu1 %v20944_v24 }
0x3557   :  { %19604 = vmatprep.subr.bf16.mxu1 %v24053_v20 }
0x3559   :  { %17265 = vmatmul.mubr.f32.vlgmr.msra.gmra.mrb[14].mxu1 %v11525_v1 }
0x355a   :  { %19606 = vmatpush3.bf16.msra.mxu1 %v20787_v5  ;;  %17299 = vmatprep.mubr.msk.f32.mxu1 %vm20177_vm3, %v24069_v49 }
0x355b   :  { %19607 = vmatprep.subr.bf16.mxu1 %v24053_v20 }
0x355e   :  { %19609 = vmatpush3.bf16.msra.mxu1 %v20794_v6 }
0x355f   :  { %19610 = vmatprep.subr.bf16.mxu1 %v24053_v20 }
0x3562   :  { %19612 = vmatpush3.bf16.msra.mxu1 %v20809_v9 }
0x3563   :  { %19613 = vmatprep.subr.bf16.mxu1 %v24053_v20 }
0x3566   :  { %19615 = vmatpush3.bf16.msra.mxu1 %v20819_v17 }
0x3567   :  { %19616 = vmatprep.subr.bf16.mxu1 %v24053_v20 }
0x356a   :  { %19618 = vmatpush3.bf16.msra.mxu1 %v20853_v25 }
0x356b   :  { %19619 = vmatprep.subr.bf16.mxu1 %v24053_v20 }
0x356e   :  { %19621 = vmatpush3.bf16.msra.mxu1 %v20857_v62 }
0x356f   :  { %19622 = vmatprep.subr.bf16.mxu1 %v24053_v20 }
0x3572   :  { %19624 = vmatpush3.bf16.msra.mxu1 %v20861_v54 }
0x3573   :  { %19625 = vmatprep.subr.bf16.mxu1 %v24053_v20 }
0x3576   :  { %19627 = vmatpush3.bf16.msra.mxu1 %v24303_v19 }
0x3577   :  { %19628 = vmatprep.subr.bf16.mxu1 %v24053_v20 }
0x3579   :  { %17300 = vmatmul.mubr.f32.vlgmr.msra.gmra.mrb[14].mxu1 %v11526_v33 }
0x357a   :  { %19630 = vmatpush3.bf16.msra.mxu1 %v24304_v57  ;;  %17334 = vmatprep.mubr.msk.f32.mxu1 %vm20177_vm3, %v24069_v49 }
0x357b   :  { %19631 = vmatprep.subr.bf16.mxu1 %v24053_v20 }
0x357e   :  { %19633 = vmatpush3.bf16.msra.mxu1 %v24305_v22 }
0x357f   :  { %19634 = vmatprep.subr.bf16.mxu1 %v24053_v20 }
0x3582   :  { %19636 = vmatpush3.bf16.msra.mxu1 %v24306_v43 }
0x3583   :  { %19637 = vmatprep.subr.bf16.mxu1 %v24053_v20 }
0x3586   :  { %19639 = vmatpush3.bf16.msra.mxu1 %v24307_v38  ;;  %v24321_v38 = vld [vmem:[#allocation37_spill] sm:$0xff] }
0x3587   :  { %19640 = vmatprep.subr.bf16.mxu1 %v24053_v20 }
0x358a   :  { %19642 = vmatpush3.bf16.msra.mxu1 %v24308_v35 }
0x358b   :  { %19643 = vmatprep.subr.bf16.mxu1 %v24053_v20 }
0x358e   :  { %19645 = vmatpush3.bf16.msra.mxu1 %v24309_v59 }
0x358f   :  { %19646 = vmatprep.subr.bf16.mxu1 %v24053_v20 }
0x3592   :  { %19648 = vmatpush3.bf16.msra.mxu1 %v24310_v53 }
0x3593   :  { %19649 = vmatprep.subr.bf16.mxu1 %v24053_v20 }
0x3596   :  { %19651 = vmatpush3.bf16.msra.mxu1 %v24311_v37 }
0x3597   :  { %19652 = vmatprep.subr.bf16.mxu1 %v24053_v20 }
0x3599   :  { %17335 = vmatmul.mubr.f32.vlgmr.msra.gmra.mrb[14].mxu1 %v23402_v55 }
0x359a   :  { %19654 = vmatpush3.bf16.msra.mxu1 %v20787_v5  ;;  %17369 = vmatprep.mubr.msk.f32.mxu1 %vm20177_vm3, %v24069_v49  ;;  %vm12092_vm3 = vcmp.gt.f32.partialorder %v23374_v4, 0.5 }
0x359b   :  { %19655 = vmatprep.subr.bf16.mxu1 %v24053_v20 }
0x359e   :  { %19657 = vmatpush3.bf16.msra.mxu1 %v20794_v6  ;;  %v24312_v6 = vld [vmem:[#allocation62_spill] sm:$0xff] }
0x359f   :  { %19658 = vmatprep.subr.bf16.mxu1 %v24053_v20 }
0x35a2   :  { %19660 = vmatpush3.bf16.msra.mxu1 %v20809_v9 }
0x35a3   :  { %19661 = vmatprep.subr.bf16.mxu1 %v24053_v20 }
0x35a6   :  { %19663 = vmatpush3.bf16.msra.mxu1 %v20819_v17 }
0x35a7   :  { %19664 = vmatprep.subr.bf16.mxu1 %v24053_v20 }
0x35aa   :  { %19666 = vmatpush3.bf16.msra.mxu1 %v20853_v25 }
0x35ab   :  { %19667 = vmatprep.subr.bf16.mxu1 %v24053_v20 }
0x35ae   :  { %19669 = vmatpush3.bf16.msra.mxu1 %v20857_v62 }
0x35af   :  { %19670 = vmatprep.subr.bf16.mxu1 %v24053_v20 }
0x35b2   :  { %19672 = vmatpush3.bf16.msra.mxu1 %v20861_v54 }
0x35b3   :  { %19673 = vmatprep.subr.bf16.mxu1 %v24053_v20 }
0x35b6   :  { %19675 = vmatpush3.bf16.msra.mxu1 %v24303_v19 }
0x35b9   :  { %17370 = vmatmul.mubr.f32.vlgmr.msra.gmra.mrb[14].mxu1 %v23402_v55 }
0x368c   :  { %v12080_v5 = vpop.f32.mrb[14].mxu1 }
0x368d   :  { %v19691_v9 = vadd.f32 %v24312_v6, %v12080_v5  ;;  %v17371_v17 = vpop.f32.mrb[15].mxu1 }
0x368f   :  { %19991 = vtanh.f32 %v19691_v9  ;;  %v12378_v62 = vmul.f32 -1.442695, %v19691_v9 }
0x3691   :  { %19993 = vpow2.f32 %v12378_v62 }
0x3699   :  { %v19992_v25 = vpop.eup %19991 }
0x369a   :  { %12094 = vrot.lane.b32.xlu0 %v19992_v25, %s20175_s25 }
0x369b   :  { %v19994_v54 = vpop.eup %19993 }
0x369c   :  { %v12087_v24 = vadd.f32 1.0, %v19994_v54 }
0x369e   :  { %12099 = vrot.lane.b32.xlu0 %v23235_v50, %s20179_s26  ;;  %19995 = vrcp.f32 %v12087_v24  ;;  %v1579_v50 = vunpack.c.l.s4 %v20180_v61 }
0x36a0   :  { %v1580_v51 = vunpack.c.0.s8 %v1579_v50 }
0x36a2   :  { %v23518_v32 = vsub.s32 %v1580_v51, %v24314_v40 }
0x36a4   :  { %v23522_v0 = vrot.slane %v24315_v12, %v23518_v32  ;;  %v23528_v39 = vrot.slane %v24316_v30, %v23518_v32  ;;  %v23532_v2 = vrot.slane %v24317_v36, %v23518_v32  ;;  %v23541_v13 = vrot.slane %v24318_v23, %v23518_v32  ;;  %v24322_v12 = vld [vmem:[#allocation29_spill] sm:$0xff] }
0x36a5   :  { %v6110_v52 = vrot.slane %v24319_v7, %v23518_v32  ;;  %v6149_v63 = vrot.slane %v24320_v10, %v23518_v32  ;;  %v7657_v35 = vrot.slane %v24321_v38, %v23518_v32  ;;  %v9165_v9 = vrot.slane %v22914_v18, %v23518_v32  ;;  %v24324_v38 = vld [vmem:[#allocation71_spill] sm:$0xff] }
0x36a6   :  { %v1585_v3 = vcombine.high %v23522_v0, %v23522_v0  ;;  %v3134_v11 = vcombine.high %v23528_v39, %v23528_v39  ;;  %v4603_v21 = vcombine.high %v23532_v2, %v23532_v2  ;;  %v4642_v42 = vcombine.high %v23541_v13, %v23541_v13 }
0x36a7   :  { %v6118_v33 = vrot.slane %v6110_v52, %v23518_v32  ;;  %v6150_v57 = vcombine.high %v6149_v63, %v6149_v63  ;;  %v6157_v43 = vrot.slane %v6149_v63, %v23518_v32  ;;  %v7658_v37 = vcombine.high %v7657_v35, %v7657_v35 }
0x36a8   :  { %v23502_v20 = vpop.eup %19995  ;;  %v1599_v31 = vrot.slane %v1585_v3, %v23518_v32  ;;  %v3148_v26 = vrot.slane %v3134_v11, %v23518_v32  ;;  %v4617_v8 = vrot.slane %v4603_v21, %v23518_v32  ;;  %v4656_v1 = vrot.slane %v4642_v42, %v23518_v32  ;;  %v24323_v21 = vld [vmem:[#allocation44_spill] sm:$0xff] }
0x36a9   :  { %v6129_v22 = vrot.slane %v6118_v33, %v24120_v56  ;;  %v6168_v59 = vrot.slane %v6157_v43, %v24120_v56  ;;  %v6164_v53 = vrot.slane %v6150_v57, %v23518_v32  ;;  %v7665_v6 = vrot.slane %v7657_v35, %v23518_v32 }
0x36aa   :  { %v1607_v27 = vrot.slane %v1599_v31, %v24120_v56  ;;  %v3156_v46 = vrot.slane %v3148_v26, %v24120_v56  ;;  %v4625_v55 = vrot.slane %v4617_v8, %v24120_v56  ;;  %v4664_v19 = vrot.slane %v4656_v1, %v24120_v56 }
0x36ab   :  { %v6172_v5 = vrot.slane %v6164_v53, %v24120_v56  ;;  %v7676_v17 = vrot.slane %v7665_v6, %v24120_v56  ;;  %v7672_v25 = vrot.slane %v7658_v37, %v23518_v32  ;;  %v9166_v62 = vcombine.high %v9165_v9, %v9165_v9 }
0x36ac   :  { %v9173_v24 = vrot.slane %v9165_v9, %v23518_v32  ;;  %v7618_v3 = vrot.slane %v24322_v12, %v23518_v32  ;;  %v23599_v23 = vrot.slane %v24323_v21, %v23518_v32  ;;  %v23617_v1 = vrot.slane %v23393_v45, %v23518_v32 }
0x36ad   :  { %v7680_v54 = vrot.slane %v7672_v25, %v24120_v56  ;;  %v9180_v18 = vrot.slane %v9166_v62, %v23518_v32  ;;  %v1592_v43 = vrot.slane %v23522_v0, %v23518_v32  ;;  %v1624_v35 = vrot.slane %v24324_v38, %v23518_v32 }
0x36ae   :  { %v9184_v60 = vrot.slane %v9173_v24, %v24120_v56  ;;  %v7619_v31 = vcombine.high %v7618_v3, %v7618_v3  ;;  %v7626_v11 = vrot.slane %v7618_v3, %v23518_v32  ;;  %v9127_v26 = vcombine.high %v23599_v23, %v23599_v23 }
0x36af   :  { %v9188_v61 = vrot.slane %v9180_v18, %v24120_v56  ;;  %v1632_v6 = vrot.slane %v1624_v35, %v23518_v32  ;;  %v1603_v0 = vrot.slane %v1592_v43, %v24120_v56  ;;  %v4649_v12 = vrot.slane %v23541_v13, %v23518_v32 }
0x36b0   :  { %v7637_v8 = vrot.slane %v7626_v11, %v24120_v56  ;;  %v7633_v42 = vrot.slane %v7619_v31, %v23518_v32 }
0x36b1   :  { %v1643_v62 = vrot.slane %v1632_v6, %v24120_v56  ;;  %v4660_v3 = vrot.slane %v4649_v12, %v24120_v56 }
0x36b2   :  { %v7641_v33 = vrot.slane %v7633_v42, %v24120_v56 }
0x370c   :  { %v12095_v15 = vpop.permute.xlu0 %12094 }
0x370d   :  { %v23505_v47 = vmul.f32 %v23502_v20, %v12095_v15  ;;  %v10673_v15 = vrot.slane %v23254_v48, %v23518_v32 }
0x370f   :  { %12104 = vrot.lane.b32.xlu0 %v23505_v47, %s20179_s26  ;;  %v10674_v41 = vcombine.high %v10673_v15, %v10673_v15  ;;  %v10681_v50 = vrot.slane %v10673_v15, %v23518_v32 }
0x3710   :  { %v12100_v7 = vpop.permute.xlu0 %12099 }
0x3711   :  { %v10692_v51 = vrot.slane %v10681_v50, %v24120_v56  ;;  %v10688_v40 = vrot.slane %v10674_v41, %v23518_v32  ;;  %v3141_v50 = vrot.slane %v23528_v39, %v23518_v32 }
0x3713   :  { %v10696_v30 = vrot.slane %v10688_v40, %v24120_v56 }
0x372e   :  { %10622 = vadd.xlane.f32.xlu0 %v10621_v29  ;;  %v6111_v29 = vcombine.high %v6110_v52, %v6110_v52  ;;  %v9141_v52 = vrot.slane %v9127_v26, %v23518_v32 }
0x3730   :  { %v6125_v36 = vrot.slane %v6111_v29, %v23518_v32  ;;  %v4610_v29 = vrot.slane %v23532_v2, %v23518_v32 }
0x3732   :  { %v4621_v40 = vrot.slane %v4610_v29, %v24120_v56 }
0x3744   :  { %1610 = vrot.lane.b32.xlu0 %v1607_v27, %s20175_s25  ;;  %v6133_v27 = vrot.slane %v6125_v36, %v24120_v56 }
0x3748   :  { %3159 = vrot.lane.b32.xlu0 %v3156_v46, %s20175_s25  ;;  %v23607_v46 = vrot.slane %v23080_v44, %v23518_v32  ;;  %v12102_v44 = vmul.f32 %v23502_v20, %v12100_v7 }
0x374c   :  { %4628 = vrot.lane.b32.xlu0 %v4625_v55, %s20175_s25  ;;  %v10635_v55 = vcombine.high %v23607_v46, %v23607_v46 }
0x374e   :  { %v10649_v63 = vrot.slane %v10635_v55, %v23518_v32 }
0x3750   :  { %4667 = vrot.lane.b32.xlu0 %v4664_v19, %s20175_s25  ;;  %v12143_v19 = vcombine.high %v23617_v1, %v23617_v1  ;;  %v10657_v37 = vrot.slane %v10649_v63, %v24120_v56 }
0x3752   :  { %v12157_v53 = vrot.slane %v12143_v19, %v23518_v32 }
0x3754   :  { %6134 = vrot.lane.b32.xlu0 %v6129_v22, %s20175_s25  ;;  %v9149_v22 = vrot.slane %v9141_v52, %v24120_v56  ;;  %v12165_v9 = vrot.slane %v12157_v53, %v24120_v56 }
0x3758   :  { %6173 = vrot.lane.b32.xlu0 %v6168_v59, %s20175_s25 }
0x375c   :  { %6175 = vrot.lane.b32.xlu0 %v6172_v5, %s20175_s25  ;;  %v1625_v5 = vcombine.high %v1624_v35, %v1624_v35 }
0x3760   :  { %7681 = vrot.lane.b32.xlu0 %v7676_v17, %s20175_s25  ;;  %v24325_v17 = vld [vmem:[#allocation58_spill] sm:$0xff] }
0x3761   :  { %v3094_v25 = vrot.slane %v24325_v17, %v23518_v32 }
0x3763   :  { %v3095_v24 = vcombine.high %v3094_v25, %v3094_v25  ;;  %v3102_v15 = vrot.slane %v3094_v25, %v23518_v32 }
0x3764   :  { %7683 = vrot.lane.b32.xlu0 %v7680_v54, %s20175_s25  ;;  %v1639_v54 = vrot.slane %v1625_v5, %v23518_v32 }
0x3765   :  { %v3113_v18 = vrot.slane %v3102_v15, %v24120_v56  ;;  %v3109_v41 = vrot.slane %v3095_v24, %v23518_v32  ;;  %v9134_v24 = vrot.slane %v23599_v23, %v23518_v32  ;;  %v10642_v15 = vrot.slane %v23607_v46, %v23518_v32 }
0x3768   :  { %9189 = vrot.lane.b32.xlu0 %v9184_v60, %s20175_s25  ;;  %v1647_v60 = vrot.slane %v1639_v54, %v24120_v56 }
0x376c   :  { %9191 = vrot.lane.b32.xlu0 %v9188_v61, %s20175_s25  ;;  %v3117_v61 = vrot.slane %v3109_v41, %v24120_v56  ;;  %v10653_v41 = vrot.slane %v10642_v15, %v24120_v56 }
0x3770   :  { %10697 = vrot.lane.b32.xlu0 %v10692_v51, %s20175_s25  ;;  %v3152_v51 = vrot.slane %v3141_v50, %v24120_v56 }
0x3774   :  { %10699 = vrot.lane.b32.xlu0 %v10696_v30, %s20175_s25 }
0x3778   :  { %6136 = vrot.lane.b32.xlu0 %v6133_v27, %s20175_s25 }
0x377c   :  { %7642 = vrot.lane.b32.xlu0 %v7637_v8, %s20175_s25 }
0x3780   :  { %7644 = vrot.lane.b32.xlu0 %v7641_v33, %s20175_s25 }
0x3781   :  { %v12105_v10 = vpop.permute.xlu0 %12104 }
0x3782   :  { %v12107_v57 = vadd.f32 %v12105_v10, %v12102_v44 }
0x3784   :  { %9152 = vrot.lane.b32.xlu0 %v9149_v22, %s20175_s25  ;;  %v12110_v59 = vsel %vm12092_vm3, %v12107_v57, %v12100_v7 }
0x3785   :  { %12114 = vrot.lane.b32.xlu1 %v12110_v59, %s20178_s27 }
0x3788   :  { %10660 = vrot.lane.b32.xlu0 %v10657_v37, %s20175_s25 }
0x3789   :  { %1608 = vrot.lane.b32.xlu1 %v1603_v0, %s20175_s25 }
0x378c   :  { %12168 = vrot.lane.b32.xlu0 %v12165_v9, %s20175_s25 }
0x378d   :  { %1648 = vrot.lane.b32.xlu1 %v1643_v62, %s20175_s25  ;;  %v12128_v62 = vmul.f32 %v23512_v58, %v23399_v34 }
0x378f   :  { %v12129_v54 = vsel %vm849_vm6, %v12128_v62, 0.0 }
0x3791   :  { %1650 = vrot.lane.b32.xlu1 %v1647_v60, %s20175_s25  ;;  %v9145_v60 = vrot.slane %v9134_v24, %v24120_v56 }
0x3795   :  { %3118 = vrot.lane.b32.xlu1 %v3113_v18, %s20175_s25  ;;  %v12150_v18 = vrot.slane %v23617_v1, %v23518_v32 }
0x3797   :  { %v12161_v34 = vrot.slane %v12150_v18, %v24120_v56 }
0x3799   :  { %3120 = vrot.lane.b32.xlu1 %v3117_v61, %s20175_s25 }
0x379d   :  { %3157 = vrot.lane.b32.xlu1 %v3152_v51, %s20175_s25 }
0x37a1   :  { %4626 = vrot.lane.b32.xlu1 %v4621_v40, %s20175_s25 }
0x37a5   :  { %4665 = vrot.lane.b32.xlu1 %v4660_v3, %s20175_s25 }
0x37bb   :  { %v10623_v39 = vpop.xlane.xlu0 %10622 }
0x37bc   :  { %v10624_v30 = vadd.f32 %v10623_v39, %v21537_v16 }
0x37be   :  { %vm10625_vm5 = vcmp.gt.f32.partialorder %v10624_v30, 0.0 }
0x37bf   :  { %v12375_v2 = vsel %vm10625_vm5, 1.0, %v24069_v49  ;;  %v1611_v36 = vpop.permute.xlu0 %1610 }
0x37c0   :  { %v10722_v31 = vrot.slane %v12375_v2, %v24120_v56  ;;  %v10726_v11 = vrot.slane %v12375_v2, %v24121_v28  ;;  %1616 = vst.msk [vmem:[#allocation17 + $0x8] sm:$0x1] %vm1614_vm4, %v1611_v36  ;;  %vm12091_vm12 = vcmp.gt.f32.partialorder %v12375_v2, 0.5 }
0x37c1   :  { %vm23676_vm13 = vmor %vm12091_vm12, %vm12092_vm3 }
0x37c2   :  { %10729 = vst.msk [vmem:[%s23853_s11 + $0x6] sm:$0x1] %vm1667_vm8, %v10722_v31  ;;  %10730 = vst.msk [vmem:[%s23853_s11 + $0xe] sm:$0x1] %vm1667_vm8, %v10726_v11 }
0x37c3   :  { %v3160_v21 = vpop.permute.xlu0 %3159 }
0x37c4   :  { %3164 = vst.msk [vmem:[#allocation18 + $0x9] sm:$0x1] %vm1614_vm4, %v3160_v21 }
0x37c7   :  { %v4629_v27 = vpop.permute.xlu0 %4628 }
0x37c8   :  { %4633 = vst.msk [vmem:[#allocation17 + $0xa] sm:$0x1] %vm1614_vm4, %v4629_v27 }
0x37cb   :  { %v4668_v4 = vpop.permute.xlu0 %4667 }
0x37cc   :  { %4672 = vst.msk [vmem:[#allocation18 + $0xa] sm:$0x1] %vm1614_vm4, %v4668_v4 }
0x37cf   :  { %v6135_v26 = vpop.permute.xlu0 %6134 }
0x37d0   :  { %6140 = vst.msk [vmem:[#allocation17 + $0x3] sm:$0x1] %vm1614_vm4, %v6135_v26 }
0x37d3   :  { %v6174_v8 = vpop.permute.xlu0 %6173 }
0x37d4   :  { %6179 = vst.msk [vmem:[#allocation18 + $0x3] sm:$0x1] %vm1614_vm4, %v6174_v8 }
0x37d7   :  { %v6176_v42 = vpop.permute.xlu0 %6175 }
0x37d8   :  { %6180 = vst.msk [vmem:[#allocation18 + $0xb] sm:$0x1] %vm1614_vm4, %v6176_v42 }
0x37db   :  { %v7682_v7 = vpop.permute.xlu0 %7681 }
0x37dc   :  { %7687 = vst.msk [vmem:[#allocation18 + $0x4] sm:$0x1] %vm1614_vm4, %v7682_v7 }
0x37df   :  { %v7684_v52 = vpop.permute.xlu0 %7683 }
0x37e0   :  { %7688 = vst.msk [vmem:[#allocation18 + $0xc] sm:$0x1] %vm1614_vm4, %v7684_v52 }
0x37e3   :  { %v9190_v55 = vpop.permute.xlu0 %9189 }
0x37e4   :  { %9195 = vst.msk [vmem:[#allocation18 + $0x5] sm:$0x1] %vm1614_vm4, %v9190_v55 }
0x37e7   :  { %v9192_v33 = vpop.permute.xlu0 %9191 }
0x37e8   :  { %9196 = vst.msk [vmem:[#allocation18 + $0xd] sm:$0x1] %vm1614_vm4, %v9192_v33 }
0x37eb   :  { %v10698_v44 = vpop.permute.xlu0 %10697 }
0x37ec   :  { %10703 = vst.msk [vmem:[#allocation18 + $0x6] sm:$0x1] %vm1614_vm4, %v10698_v44 }
0x37ef   :  { %v10700_v10 = vpop.permute.xlu0 %10699 }
0x37f0   :  { %10704 = vst.msk [vmem:[#allocation18 + $0xe] sm:$0x1] %vm1614_vm4, %v10700_v10 }
0x37f3   :  { %v6137_v63 = vpop.permute.xlu0 %6136 }
0x37f4   :  { %6141 = vst.msk [vmem:[#allocation17 + $0xb] sm:$0x1] %vm1614_vm4, %v6137_v63 }
0x37f7   :  { %v12115_v19 = vpop.permute.xlu1 %12114  ;;  %v7643_v57 = vpop.permute.xlu0 %7642 }
0x37f8   :  { %v23703_v22 = vsel %vm12091_vm12, %v23505_v47, %v12115_v19  ;;  %7648 = vst.msk [vmem:[#allocation17 + $0x4] sm:$0x1] %vm1614_vm4, %v7643_v57 }
0x37f9   :  { %19997 = vtanh.f32 %v23703_v22  ;;  %12248 = vrot.lane.b32.xlu0 %v23703_v22, %s20179_s26 }
0x37fb   :  { %v1609_v43 = vpop.permute.xlu1 %1608  ;;  %v7645_v38 = vpop.permute.xlu0 %7644 }
0x37fc   :  { %1615 = vst.msk [vmem:[#allocation17] sm:$0x1] %vm1614_vm4, %v1609_v43  ;;  %7649 = vst.msk [vmem:[#allocation17 + $0xc] sm:$0x1] %vm1614_vm4, %v7645_v38 }
0x37fd   :  { %12257 = vrot.lane.b32.xlu0 %v23368_v14, %s20179_s26 }
0x37ff   :  { %v1649_v35 = vpop.permute.xlu1 %1648  ;;  %v9153_v59 = vpop.permute.xlu0 %9152 }
0x3800   :  { %1654 = vst.msk [vmem:[#allocation18] sm:$0x1] %vm1614_vm4, %v1649_v35  ;;  %9157 = vst.msk [vmem:[#allocation17 + $0xd] sm:$0x1] %vm1614_vm4, %v9153_v59 }
0x3803   :  { %v19998_v47 = vpop.eup %19997  ;;  %v1651_v53 = vpop.permute.xlu1 %1650 }
0x3804   :  { %v10661_v37 = vpop.permute.xlu0 %10660  ;;  %1655 = vst.msk [vmem:[#allocation18 + $0x8] sm:$0x1] %vm1614_vm4, %v1651_v53  ;;  %12121 = vrot.lane.b32.xlu1 %v19998_v47, %s20178_s27  ;;  %s20181_s27 = smov [#allocation21]  }
0x3805   :  { %10665 = vst.msk [vmem:[#allocation17 + $0xe] sm:$0x1] %vm1614_vm4, %v10661_v37  ;;  %s12317_s20 = sshll.u32 %s20181_s27, 4  ;;  %s12318_s20 = int_to_ptr.vmem [resolvable:$true] %s12317_s20 }
0x3806   :  { %s20068_s21 = scalar_lea.vmem %s12318_s20, 32  ;;  %p20073_p8 = scmp.lt.s32.totalorder %s12318_s20, %s12318_s20 }
0x3807   :  { %v3119_v5 = vpop.permute.xlu1 %3118  ;;  %p20069_p7 = scmp.ne.s32.totalorder %s12318_s20, %s20068_s21  ;;  %p20074_p9 = scmp.lt.s32.totalorder %s20068_s21, %s20068_s21 }
0x3808   :  { %v12169_v6 = vpop.permute.xlu0 %12168  ;;  %3124 = vst.msk [vmem:[#allocation17 + $0x1] sm:$0x1] %vm1614_vm4, %v3119_v5 }
0x3809   :  { %12173 = vst.msk [vmem:[#allocation17 + $0xf] sm:$0x1] %vm1614_vm4, %v12169_v6  ;;  %p20075_p10 = por %p20074_p9, %p20073_p8 }
0x380b   :  { %v3121_v0 = vpop.permute.xlu1 %3120  ;;  %p20076_p11 = pnand %p20075_p10, %p20069_p7 }
0x380c   :  { %3125 = vst.msk [vmem:[#allocation17 + $0x9] sm:$0x1] %vm1614_vm4, %v3121_v0 }
0x380f   :  { %v3158_v9 = vpop.permute.xlu1 %3157 }
0x3810   :  { %3163 = vst.msk [vmem:[#allocation18 + $0x1] sm:$0x1] %vm1614_vm4, %v3158_v9 }
0x3813   :  { %v4627_v17 = vpop.permute.xlu1 %4626 }
0x3814   :  { %4632 = vst.msk [vmem:[#allocation17 + $0x2] sm:$0x1] %vm1614_vm4, %v4627_v17 }
0x3817   :  { %v4666_v25 = vpop.permute.xlu1 %4665 }
0x3818   :  { %4671 = vst.msk [vmem:[#allocation18 + $0x2] sm:$0x1] %vm1614_vm4, %v4666_v25 }
0x3828   :  { %12130 = vadd.xlane.f32.xlu1 %v12129_v54 }
0x3839   :  { %9150 = vrot.lane.b32.xlu1 %v9145_v60, %s20175_s25 }
0x383d   :  { %10658 = vrot.lane.b32.xlu1 %v10653_v41, %s20175_s25 }
0x3841   :  { %12166 = vrot.lane.b32.xlu1 %v12161_v34, %s20175_s25 }
0x3845   :  { %12243 = vrot.lane.b32.xlu1 %v23368_v14, %s20179_s26 }
0x3849   :  { %12252 = vrot.lane.b32.xlu1 %v23393_v45, %s20175_s25 }
0x386b   :  { %v12249_v58 = vpop.permute.xlu0 %12248 }
0x386c   :  { %12251 = vst.msk [vmem:[#allocation21] sm:$0x3] %vm85_vm1, %v12249_v58 }
0x386f   :  { %v12258_v23 = vpop.permute.xlu0 %12257 }
0x3870   :  { %12260 = vst.msk [vmem:[#allocation5] sm:$0x3] %vm85_vm1, %v12258_v23 }
0x3876   :  { %v12122_v46 = vpop.permute.xlu1 %12121 }
0x3877   :  { %v12124_v1 = vmul.f32 %v23502_v20, %v12122_v46 }
0x3879   :  { %v12127_v61 = vsel %vm23676_vm13, %v12124_v1, %v23254_v48 }
0x387a   :  { %v12181_v50 = vrot.slane %v12127_v61, %v23518_v32 }
0x387c   :  { %v12182_v14 = vcombine.high %v12181_v50, %v12181_v50  ;;  %v12189_v45 = vrot.slane %v12181_v50, %v23518_v32 }
0x387d   :  { %20079 = shalt.err (!%p20076_p11)
}
0x387e   :  { %s20080_s22 = scalar_lea.hbm %s23855_s13, 32 }
0x387f   :  { %p20081_p12 = scmp.ne.s32.totalorder %s23855_s13, %s20080_s22  ;;  %p20084_p13 = scmp.lt.u32.totalorder %s20080_s22, %s23855_s13 }
0x3881   :  { %p20086_p0 = pnand %p20084_p13, %p20081_p12 }
0x3883   :  { %20089 = shalt.err (!%p20086_p0)
}
0x3884   :  { %12320 = dma.vmem_to_hbm [thread:$0]  %s12318_s20, 32, %s23855_s13, [#allocation22]   ;;  %v12200_v48 = vrot.slane %v12189_v45, %v24120_v56  ;;  %v12196_v20 = vrot.slane %v12182_v14, %v23518_v32 }
0x3885   :  { %s20182_s15 = smov [#allocation17]  }
0x3886   :  { %12205 = vrot.lane.b32.xlu1 %v12200_v48, %s20175_s25  ;;  %v12204_v29 = vrot.slane %v12196_v20, %v24120_v56  ;;  %s12278_s16 = sshll.u32 %s20182_s15, 4  ;;  %s12279_s16 = int_to_ptr.vmem [resolvable:$true] %s12278_s16 }
0x3887   :  { %s20090_s3 = scalar_lea.vmem %s12279_s16, 256  ;;  %p20095_p2 = scmp.lt.s32.totalorder %s12279_s16, %s12279_s16 }
0x3888   :  { %12207 = vrot.lane.b32.xlu0 %v12204_v29, %s20175_s25  ;;  %p20091_p1 = scmp.ne.s32.totalorder %s12279_s16, %s20090_s3  ;;  %p20096_p3 = scmp.lt.s32.totalorder %s20090_s3, %s20090_s3 }
0x388a   :  { %12263 = vrot.lane.b32.xlu1 %v12127_v61, %s20175_s25  ;;  %p20097_p4 = por %p20096_p3, %p20095_p2 }
0x388c   :  { %12268 = vrot.lane.b32.xlu0 %v23703_v22, %s20179_s26  ;;  %p20098_p5 = pnand %p20097_p4, %p20091_p1 }
0x38b5   :  { %v12131_v51 = vpop.xlane.xlu1 %12130 }
0x38b6   :  { %v12132_v40 = vadd.f32 %v12131_v51, %v21537_v16 }
0x38b8   :  { %vm12133_vm6 = vcmp.gt.f32.partialorder %v12132_v40, 0.0 }
0x38b9   :  { %v12379_v12 = vsel %vm12133_vm6, 1.0, %v24069_v49  ;;  %v9151_v3 = vpop.permute.xlu1 %9150 }
0x38ba   :  { %v12230_v32 = vrot.slane %v12379_v12, %v24120_v56  ;;  %v12234_v39 = vrot.slane %v12379_v12, %v24121_v28  ;;  %12272 = vst.msk [vmem:[#allocation9] sm:$0x3] %vm90_vm0, %v12379_v12 }
0x38bb   :  { %9156 = vst.msk [vmem:[#allocation17 + $0x5] sm:$0x1] %vm1614_vm4, %v9151_v3 }
0x38bc   :  { %12237 = vst.msk [vmem:[%s23853_s11 + $0x7] sm:$0x1] %vm1667_vm8, %v12230_v32  ;;  %12238 = vst.msk [vmem:[%s23853_s11 + $0xf] sm:$0x1] %vm1667_vm8, %v12234_v39 }
0x38bd   :  { %v10659_v49 = vpop.permute.xlu1 %10658 }
0x38be   :  { %10664 = vst.msk [vmem:[#allocation17 + $0x6] sm:$0x1] %vm1614_vm4, %v10659_v49 }
0x38c1   :  { %v12167_v28 = vpop.permute.xlu1 %12166 }
0x38c2   :  { %12172 = vst.msk [vmem:[#allocation17 + $0x7] sm:$0x1] %vm1614_vm4, %v12167_v28 }
0x38c3   :  { %20101 = shalt.err (!%p20098_p5)
}
0x38c4   :  { %s20102_s11 = scalar_lea.hbm %s23850_s8, 256 }
0x38c5   :  { %p20103_p6 = scmp.ne.s32.totalorder %s23850_s8, %s20102_s11  ;;  %p20106_p7 = scmp.lt.u32.totalorder %s20102_s11, %s23850_s8 }
0x38c7   :  { %p20108_p8 = pnand %p20106_p7, %p20103_p6 }
0x38c9   :  { %20111 = shalt.err (!%p20108_p8)
}
0x38ca   :  { %12284 = dma.vmem_to_hbm [thread:$0]  %s12279_s16, 256, %s23850_s8, [#allocation12], %s20169_s18, %s20169_s18, %s20170_s19   ;;  %v12244_v56 = vpop.permute.xlu1 %12243 }
0x38cb   :  { %12246 = vst.msk [vmem:[#allocation20] sm:$0x3] %vm85_vm1, %v12244_v56  ;;  %s20183_s21 = smov [#allocation18]   ;;  %s20184_s6 = smov [#allocation20]  }
0x38cc   :  { %s12290_s4 = sshll.u32 %s20183_s21, 4  ;;  %s12307_s22 = sshll.u32 %s20184_s6, 4  ;;  %s12291_s4 = int_to_ptr.vmem [resolvable:$true] %s12290_s4  ;;  %s23805_s22 = int_to_ptr.vmem [resolvable:$true] %s12307_s22 }
0x38cd   :  { %s20112_s8 = scalar_lea.vmem %s12291_s4, 256  ;;  %p20117_p10 = scmp.lt.s32.totalorder %s12291_s4, %s12291_s4 }
0x38ce   :  { %v12253_v16 = vpop.permute.xlu1 %12252  ;;  %p20113_p9 = scmp.ne.s32.totalorder %s12291_s4, %s20112_s8  ;;  %p20118_p11 = scmp.lt.s32.totalorder %s20112_s8, %s20112_s8 }
0x38cf   :  { %12255 = vst.msk [vmem:[#allocation4] sm:$0x3] %vm85_vm1, %v12253_v16 }
0x38d0   :  { %p20119_p12 = por %p20118_p11, %p20117_p10 }
0x38d2   :  { %p20120_p13 = pnand %p20119_p12, %p20113_p9 }
0x38f8   :  { %v12206_v30 = vpop.permute.xlu1 %12205 }
0x38f9   :  { %12211 = vst.msk [vmem:[#allocation18 + $0x7] sm:$0x1] %vm1614_vm4, %v12206_v30 }
0x38fa   :  { %v12208_v2 = vpop.permute.xlu0 %12207 }
0x38fb   :  { %12212 = vst.msk [vmem:[#allocation18 + $0xf] sm:$0x1] %vm1614_vm4, %v12208_v2 }
0x38fc   :  { %v12264_v36 = vpop.permute.xlu1 %12263 }
0x38fd   :  { %20123 = shalt.err (!%p20120_p13)
}
0x38fe   :  { %s20124_s28 = scalar_lea.hbm %s23851_s9, 256 }
0x38ff   :  { %p20125_p0 = scmp.ne.s32.totalorder %s23851_s9, %s20124_s28  ;;  %p20128_p1 = scmp.lt.u32.totalorder %s20124_s28, %s23851_s9 }
0x3901   :  { %p20130_p2 = pnand %p20128_p1, %p20125_p0 }
0x3903   :  { %20133 = shalt.err (!%p20130_p2)
}
0x3904   :  { %12296 = dma.vmem_to_hbm [thread:$0]  %s12291_s4, 256, %s23851_s9, [#allocation19], %s20169_s18, %s20169_s18, %s20170_s19   ;;  %12266 = vst.msk [vmem:[#allocation6] sm:$0x3] %vm85_vm1, %v12264_v36 }
0x3905   :  { %s20134_s0 = scalar_lea.vmem %s23805_s22, 32  ;;  %p20139_p4 = scmp.lt.s32.totalorder %s23805_s22, %s23805_s22 }
0x3906   :  { %p20135_p3 = scmp.ne.s32.totalorder %s23805_s22, %s20134_s0  ;;  %p20140_p5 = scmp.lt.s32.totalorder %s20134_s0, %s20134_s0 }
0x3908   :  { %p20141_p6 = por %p20140_p5, %p20139_p4 }
0x390a   :  { %p20142_p7 = pnand %p20141_p6, %p20135_p3 }
0x390c   :  { %20145 = shalt.err (!%p20142_p7)
}
0x390d   :  { %s20146_s3 = scalar_lea.hbm %s23854_s12, 32 }
0x390e   :  { %p20147_p8 = scmp.ne.s32.totalorder %s23854_s12, %s20146_s3  ;;  %p20150_p9 = scmp.lt.u32.totalorder %s20146_s3, %s23854_s12 }
0x3910   :  { %p20152_p10 = pnand %p20150_p9, %p20147_p8 }
0x3912   :  { %20155 = shalt.err (!%p20152_p10)
}
0x3913   :  { %12310 = dma.vmem_to_hbm [thread:$0]  %s23805_s22, 32, %s23854_s12, [#allocation19]   ;;  %v12269_v31 = vpop.permute.xlu0 %12268 }
0x3914   :  { %12271 = vst.msk [vmem:[#allocation7] sm:$0x3] %vm85_vm1, %v12269_v31 }
0x3915   :  { %20162 = dma.done.wait [#allocation12], 256  }
0x3916   :  { %20163 = vsyncadd [#allocation12], 4294967040 }
0x3917   :  { %20164 = dma.done.wait [#allocation19], 288  }
0x3918   :  { %20165 = vsyncadd [#allocation19], 4294967008 }
0x3919   :  { %20166 = dma.done.wait [#allocation22], 32  }
0x391a   :  { %20167 = vsyncadd [#allocation22], 4294967264 }
0x391b   :  { %12337 = vsyncpa [#allocation11], 1 }
0x391c   :  { %12338 = vsyncpa [#allocation15], 1 }
0x391d   :  { %12339 = vsyncpa [#allocation12], 1 }
0x391e   :  { %12340 = vsyncpa [#allocation19], 1 }
0x391f   :  { %12341 = vsyncpa [#allocation22], 1 }
0x3920   :  { %12342 = vsyncpa [#allocation13], 1 }

</bundles_post_ra>
